<compile_context>
chip_gen: v5e
topology: v5e:2x2
jax: 0.10.0
libtpu: 0.0.40
codegen_flags: <defaults>
</compile_context>

<pallas_src>
import jax
import jax.numpy as jnp
from jax import lax
from jax.experimental import pallas as pl
from jax.experimental.pallas import tpu as pltpu

_BN_EPS = 1e-5
F32 = jnp.float32
BF16 = jnp.bfloat16


# ---------------------------------------------------------------------------
# Fused kernel
# ---------------------------------------------------------------------------
def _maxpool4_rows(y, n_out, c):
    """MaxPool1d(4) over the leading (length) axis of a (4*n_out, c) f32 tile."""
    y4 = y.reshape(n_out, 4, c)
    return jnp.maximum(jnp.maximum(y4[:, 0, :], y4[:, 1, :]),
                       jnp.maximum(y4[:, 2, :], y4[:, 3, :]))


def _fused_kernel(xa_ref, w1a_ref, w1b_ref, w2_ref, w3_ref, w4_ref, wfc_ref,
                  s1_ref, b1_ref, s2_ref, b2_ref, s3_ref, b3_ref, s4_ref,
                  b4_ref, bfc_ref, o_ref, a1_ref, tail_ref):
    Bb = xa_ref.shape[0]

    # 544 conv1 rows are provably sufficient for these shapes: pool2 reads only
    # conv2 rows 0..131 -> a1 (pool1) rows 0..133 -> conv1 rows 0..535.
    # Chunking 4x128 + 1x32 keeps pool1 writes 8-sublane aligned
    # (write offsets 0/32/64/96/128, sizes 32/32/32/32/8).
    chunks = ((0, 128), (128, 128), (256, 128), (384, 128), (512, 32))

    def per_sample(s, carry):
        # ---- Stage 1: conv1(k=5, s=4) + BN + ReLU + MaxPool(4) --------------
        for r0, nr in chunks:
            z = jnp.dot(xa_ref[s, pl.ds(r0, nr), :], w1a_ref[...],
                        preferred_element_type=F32)
            # conv1 tap 4 of output row r is input position 4r+4 == xa[r+1, 0:128]
            z = z + jnp.dot(xa_ref[s, pl.ds(r0 + 1, nr), 0:128], w1b_ref[...],
                            preferred_element_type=F32)
            y = jnp.maximum(z * s1_ref[...] + b1_ref[...], 0.0)   # (nr, 128) f32
            a1_ref[r0 // 4:(r0 + nr) // 4, :] = _maxpool4_rows(y, nr // 4, 128)

        # ---- Stage 2: conv2(k=3, s=1) + BN + ReLU + MaxPool(4) ---------------
        z = jnp.dot(a1_ref[0:132, :].astype(BF16), w2_ref[0],
                    preferred_element_type=F32)
        z = z + jnp.dot(a1_ref[1:133, :].astype(BF16), w2_ref[1],
                        preferred_element_type=F32)
        z = z + jnp.dot(a1_ref[2:134, :].astype(BF16), w2_ref[2],
                        preferred_element_type=F32)
        y = jnp.maximum(z * s2_ref[...] + b2_ref[...], 0.0)       # (132, 128)
        a2 = _maxpool4_rows(y, 33, 128).astype(BF16)              # (33, 128)

        # ---- Stage 3: conv3(k=3, s=1) + BN + ReLU + MaxPool(4) ---------------
        z = jnp.dot(a2[0:28, :], w3_ref[0], preferred_element_type=F32)
        z = z + jnp.dot(a2[1:29, :], w3_ref[1], preferred_element_type=F32)
        z = z + jnp.dot(a2[2:30, :], w3_ref[2], preferred_element_type=F32)
        y = jnp.maximum(z * s3_ref[...] + b3_ref[...], 0.0)       # (28, 256)
        a3 = _maxpool4_rows(y, 7, 256).astype(BF16)               # (7, 256)

        # ---- Stage 4: conv4(k=3, s=1) + BN + ReLU (MaxPool1d(1) = identity) --
        # AvgPool1d(4) only consumes conv4 rows 0..3 -> compute just those.
        z = jnp.dot(a3[0:4, :], w4_ref[0], preferred_element_type=F32)
        z = z + jnp.dot(a3[1:5, :], w4_ref[1], preferred_element_type=F32)
        z = z + jnp.dot(a3[2:6, :], w4_ref[2], preferred_element_type=F32)
        tail_ref[s] = jnp.maximum(z * s4_ref[...] + b4_ref[...], 0.0)  # (4, 512)
        return carry

    lax.fori_loop(0, Bb, per_sample, 0)

    # ---- Head: AvgPool1d(4) + Linear(512 -> 50, padded to 128 lanes) --------
    avg = jnp.sum(tail_ref[...], axis=1) * 0.25                   # (Bb, 512) f32
    logits = jnp.dot(avg.astype(BF16), wfc_ref[...],
                     preferred_element_type=F32) + bfc_ref[...]
    o_ref[...] = logits                                            # (Bb, 128) f32


# ---------------------------------------------------------------------------
# Wrapper (layout plumbing + pallas_call)
# ---------------------------------------------------------------------------
def epilepsy_net_forward(x, params):
    # mirrors: x = x.unsqueeze(-1).view(-1, 100, 2205)   (NCW)
    x = x.reshape(-1, 100, 2205)
    B = x.shape[0]
    Bb = min(8, B)                                   # samples per grid step
    B_pad = ((B + Bb - 1) // Bb) * Bb
    x = jnp.transpose(x, (0, 2, 1))                  # NCW -> NLC
    x = jnp.pad(x, ((0, B_pad - B), (0, 3), (0, 28)))  # (B_pad, 2208, 128)
    xa = x.astype(BF16).reshape(B_pad, 552, 512)     # space-to-depth view

    out = pl.pallas_call(
        _fused_kernel,
        out_shape=jax.ShapeDtypeStruct((B_pad, 128), F32),
        grid=(B_pad // Bb,),
        in_specs=[
            pl.BlockSpec((Bb, 552, 512), lambda b: (b, 0, 0)),     # xa
            pl.BlockSpec((512, 128), lambda b: (0, 0)),            # w1a
            pl.BlockSpec((128, 128), lambda b: (0, 0)),            # w1b
            pl.BlockSpec((3, 128, 128), lambda b: (0, 0, 0)),      # w2
            pl.BlockSpec((3, 128, 256), lambda b: (0, 0, 0)),      # w3
            pl.BlockSpec((3, 256, 512), lambda b: (0, 0, 0)),      # w4
            pl.BlockSpec((512, 128), lambda b: (0, 0)),            # wfc
            pl.BlockSpec((1, 128), lambda b: (0, 0)),              # s1
            pl.BlockSpec((1, 128), lambda b: (0, 0)),              # b1
            pl.BlockSpec((1, 128), lambda b: (0, 0)),              # s2
            pl.BlockSpec((1, 128), lambda b: (0, 0)),              # b2
            pl.BlockSpec((1, 256), lambda b: (0, 0)),              # s3
            pl.BlockSpec((1, 256), lambda b: (0, 0)),              # b3
            pl.BlockSpec((1, 512), lambda b: (0, 0)),              # s4
            pl.BlockSpec((1, 512), lambda b: (0, 0)),              # b4
            pl.BlockSpec((1, 128), lambda b: (0, 0)),              # bfc
        ],
        out_specs=pl.BlockSpec((Bb, 128), lambda b: (b, 0)),
        scratch_shapes=[
            pltpu.VMEM((136, 128), F32),      # pool1 output (reused per sample)
            pltpu.VMEM((Bb, 4, 512), F32),    # conv4 rows 0..3 for each sample
        ],
        compiler_params=pltpu.CompilerParams(
            dimension_semantics=("parallel",),
            vmem_limit_bytes=32 * 1024 * 1024),
    )(xa, params["w1a"], params["w1b"], params["w2"], params["w3"],
      params["w4"], params["wfc"], params["s1"], params["b1"], params["s2"],
      params["b2"], params["s3"], params["b3"], params["s4"], params["b4"],
      params["bfc"])
    return out[:B, :50]                               # un-pad batch + FC lanes


# ---------------------------------------------------------------------------
# Deterministic parameter construction (shapes from EpilepsyNet.__init__)
# ---------------------------------------------------------------------------
CONV_CFG = [
    dict(c_in=100, c_out=128, ksize=5),   # conv1 / bn1
    dict(c_in=128, c_out=128, ksize=3),   # conv2 / bn2
    dict(c_in=128, c_out=256, ksize=3),   # conv3 / bn3
    dict(c_in=256, c_out=512, ksize=3),   # conv4 / bn4
]


def init_params(key):
    """Build parameters in the kernel's layouts (BN eval stats folded)."""
    folded = []
    for i, cfg in enumerate(CONV_CFG):
        k = jax.random.fold_in(key, i)
        kw, kb, kg, kbe, km, kv = jax.random.split(k, 6)
        c_out, c_in, K = cfg["c_out"], cfg["c_in"], cfg["ksize"]
        w_pt = 0.05 * jax.random.normal(kw, (c_out, c_in, K), F32)  # torch layout
        b_conv = 0.05 * jax.random.normal(kb, (c_out,), F32)
        gamma = 1.0 + 0.1 * jax.random.normal(kg, (c_out,), F32)
        beta = 0.1 * jax.random.normal(kbe, (c_out,), F32)
        mean = 0.1 * jax.random.normal(km, (c_out,), F32)
        var = 1.0 + 0.1 * jnp.abs(jax.random.normal(kv, (c_out,), F32))
        scale = gamma / jnp.sqrt(var + _BN_EPS)
        shift = beta + (b_conv - mean) * scale
        w = jnp.transpose(w_pt, (2, 1, 0))               # (K, C_in, C_out)
        folded.append((w, scale.reshape(1, c_out), shift.reshape(1, c_out)))

    p = {}
    # conv1: pad C_in 100 -> 128; taps 0..3 feed the space-to-depth matmul,
    # tap 4 multiplies the shifted row stream read from the same slab.
    w1 = jnp.pad(folded[0][0], ((0, 0), (0, 28), (0, 0)))  # (5, 128, 128)
    p["w1a"] = w1[0:4].reshape(512, 128).astype(BF16)
    p["w1b"] = w1[4].astype(BF16)                          # (128, 128)
    p["s1"], p["b1"] = folded[0][1], folded[0][2]
    p["w2"] = folded[1][0].astype(BF16)                    # (3, 128, 128)
    p["s2"], p["b2"] = folded[1][1], folded[1][2]
    p["w3"] = folded[2][0].astype(BF16)                    # (3, 128, 256)
    p["s3"], p["b3"] = folded[2][1], folded[2][2]
    p["w4"] = folded[3][0].astype(BF16)                    # (3, 256, 512)
    p["s4"], p["b4"] = folded[3][1], folded[3][2]

    kf = jax.random.fold_in(key, 100)
    kw, kb = jax.random.split(kf)
    wfc_pt = 0.05 * jax.random.normal(kw, (50, 512), F32)  # torch (out, in)
    bfc = 0.05 * jax.random.normal(kb, (50,), F32)
    p["wfc"] = jnp.pad(jnp.transpose(wfc_pt), ((0, 0), (0, 78))).astype(BF16)
    p["bfc"] = jnp.pad(bfc, (0, 78)).reshape(1, 128).astype(F32)
    return p


if __name__ == "__main__":
    key = jax.random.PRNGKey(0)
    kx, kp = jax.random.split(key)
    # Input shape implied by the module's .view(-1, 100, 2205); small batch.
    x = jax.random.normal(kx, (2, 100, 2205), F32)
    params = init_params(kp)
    out = jax.jit(epilepsy_net_forward)(x, params)
    out = jax.block_until_ready(out)
    assert out.shape == (2, 50) and out.dtype == jnp.float32
    print("KERNEL_OK")
</pallas_src>

<mosaic_0001>
module attributes {stable_mosaic.version = 11 : i64} {
  func.func @_fused_kernel(%arg0: i32, %arg1: memref<2x552x512xbf16, #tpu.memory_space<vmem>>, %arg2: memref<512x128xbf16, #tpu.memory_space<vmem>>, %arg3: memref<128x128xbf16, #tpu.memory_space<vmem>>, %arg4: memref<3x128x128xbf16, #tpu.memory_space<vmem>>, %arg5: memref<3x128x256xbf16, #tpu.memory_space<vmem>>, %arg6: memref<3x256x512xbf16, #tpu.memory_space<vmem>>, %arg7: memref<512x128xbf16, #tpu.memory_space<vmem>>, %arg8: memref<1x128xf32, #tpu.memory_space<vmem>>, %arg9: memref<1x128xf32, #tpu.memory_space<vmem>>, %arg10: memref<1x128xf32, #tpu.memory_space<vmem>>, %arg11: memref<1x128xf32, #tpu.memory_space<vmem>>, %arg12: memref<1x256xf32, #tpu.memory_space<vmem>>, %arg13: memref<1x256xf32, #tpu.memory_space<vmem>>, %arg14: memref<1x512xf32, #tpu.memory_space<vmem>>, %arg15: memref<1x512xf32, #tpu.memory_space<vmem>>, %arg16: memref<1x128xf32, #tpu.memory_space<vmem>>, %arg17: memref<2x128xf32, #tpu.memory_space<vmem>>, %arg18: memref<136x128xf32, #tpu.memory_space<vmem>>, %arg19: memref<2x4x512xf32, #tpu.memory_space<vmem>>) attributes {dimension_semantics = [#tpu.dimension_semantics<parallel>], iteration_bounds = array<i64: 1>, scalar_prefetch = 0 : i64, scratch_operands = 2 : i64, tpu.core_type = #tpu.core_type<tc>, window_params = [{transform_indices = @transform_0, window_bounds = array<i64: 2, 552, 512>}, {pipeline_mode = #tpu.pipeline_mode<synchronous>, transform_indices = @transform_1, window_bounds = array<i64: 512, 128>}, {pipeline_mode = #tpu.pipeline_mode<synchronous>, transform_indices = @transform_2, window_bounds = array<i64: 128, 128>}, {pipeline_mode = #tpu.pipeline_mode<synchronous>, transform_indices = @transform_3, window_bounds = array<i64: 3, 128, 128>}, {pipeline_mode = #tpu.pipeline_mode<synchronous>, transform_indices = @transform_4, window_bounds = array<i64: 3, 128, 256>}, {pipeline_mode = #tpu.pipeline_mode<synchronous>, transform_indices = @transform_5, window_bounds = array<i64: 3, 256, 512>}, {pipeline_mode = #tpu.pipeline_mode<synchronous>, transform_indices = @transform_6, window_bounds = array<i64: 512, 128>}, {pipeline_mode = #tpu.pipeline_mode<synchronous>, transform_indices = @transform_7, window_bounds = array<i64: 1, 128>}, {pipeline_mode = #tpu.pipeline_mode<synchronous>, transform_indices = @transform_8, window_bounds = array<i64: 1, 128>}, {pipeline_mode = #tpu.pipeline_mode<synchronous>, transform_indices = @transform_9, window_bounds = array<i64: 1, 128>}, {pipeline_mode = #tpu.pipeline_mode<synchronous>, transform_indices = @transform_10, window_bounds = array<i64: 1, 128>}, {pipeline_mode = #tpu.pipeline_mode<synchronous>, transform_indices = @transform_11, window_bounds = array<i64: 1, 256>}, {pipeline_mode = #tpu.pipeline_mode<synchronous>, transform_indices = @transform_12, window_bounds = array<i64: 1, 256>}, {pipeline_mode = #tpu.pipeline_mode<synchronous>, transform_indices = @transform_13, window_bounds = array<i64: 1, 512>}, {pipeline_mode = #tpu.pipeline_mode<synchronous>, transform_indices = @transform_14, window_bounds = array<i64: 1, 512>}, {pipeline_mode = #tpu.pipeline_mode<synchronous>, transform_indices = @transform_15, window_bounds = array<i64: 1, 128>}, {transform_indices = @transform_16, window_bounds = array<i64: 2, 128>}]} {
    %c0_i32 = arith.constant 0 : i32
    %c2_i32 = arith.constant 2 : i32
    %0 = arith.addi %c0_i32, %c2_i32 : i32
    %c1_i32 = arith.constant 1 : i32
    scf.for %arg20 = %c0_i32 to %0 step %c1_i32  : i32 {
      %12 = arith.index_cast %arg20 : i32 to index
      %c0_11 = arith.constant 0 : index
      %c0_12 = arith.constant 0 : index
      %13 = vector.load %arg1[%12, %c0_11, %c0_12] : memref<2x552x512xbf16, #tpu.memory_space<vmem>>, vector<1x128x512xbf16>
      %14 = vector.shape_cast %13 : vector<1x128x512xbf16> to vector<128x512xbf16>
      %c0_13 = arith.constant 0 : index
      %c0_14 = arith.constant 0 : index
      %15 = vector.load %arg2[%c0_13, %c0_14] : memref<512x128xbf16, #tpu.memory_space<vmem>>, vector<512x128xbf16>
      %cst_15 = arith.constant dense<0.000000e+00> : vector<128x128xf32>
      %16 = tpu.matmul %14, %15, %cst_15 {dimension_numbers = #tpu.dot_dimension_numbers<[1], [0], [0], [1], [0, 0, 1, 1], [], []>} : vector<128x512xbf16>, vector<512x128xbf16>, vector<128x128xf32> -> vector<128x128xf32>
      %17 = arith.index_cast %arg20 : i32 to index
      %c1 = arith.constant 1 : index
      %c0_16 = arith.constant 0 : index
      %18 = vector.load %arg1[%17, %c1, %c0_16] : memref<2x552x512xbf16, #tpu.memory_space<vmem>>, vector<1x128x128xbf16>
      %19 = vector.shape_cast %18 : vector<1x128x128xbf16> to vector<128x128xbf16>
      %c0_17 = arith.constant 0 : index
      %c0_18 = arith.constant 0 : index
      %20 = vector.load %arg3[%c0_17, %c0_18] : memref<128x128xbf16, #tpu.memory_space<vmem>>, vector<128x128xbf16>
      %cst_19 = arith.constant dense<0.000000e+00> : vector<128x128xf32>
      %21 = tpu.matmul %19, %20, %cst_19 {dimension_numbers = #tpu.dot_dimension_numbers<[1], [0], [0], [1], [0, 0, 1, 1], [], []>} : vector<128x128xbf16>, vector<128x128xbf16>, vector<128x128xf32> -> vector<128x128xf32>
      %22 = arith.addf %16, %21 : vector<128x128xf32>
      %c0_20 = arith.constant 0 : index
      %c0_21 = arith.constant 0 : index
      %23 = vector.load %arg8[%c0_20, %c0_21] : memref<1x128xf32, #tpu.memory_space<vmem>>, vector<1x128xf32>
      %24 = vector.broadcast %23 : vector<1x128xf32> to vector<128x128xf32>
      %25 = arith.mulf %22, %24 : vector<128x128xf32>
      %c0_22 = arith.constant 0 : index
      %c0_23 = arith.constant 0 : index
      %26 = vector.load %arg9[%c0_22, %c0_23] : memref<1x128xf32, #tpu.memory_space<vmem>>, vector<1x128xf32>
      %27 = vector.broadcast %26 : vector<1x128xf32> to vector<128x128xf32>
      %28 = arith.addf %25, %27 : vector<128x128xf32>
      %cst_24 = arith.constant 0.000000e+00 : f32
      %29 = vector.broadcast %cst_24 : f32 to vector<128x128xf32>
      %30 = arith.maximumf %28, %29 : vector<128x128xf32>
      %31 = vector.shape_cast %30 : vector<128x128xf32> to vector<32x4x128xf32>
      %32 = vector.extract_strided_slice %31 {offsets = [0, 0, 0], sizes = [32, 1, 128], strides = [1, 1, 1]} : vector<32x4x128xf32> to vector<32x1x128xf32>
      %33 = vector.shape_cast %32 : vector<32x1x128xf32> to vector<32x128xf32>
      %34 = vector.extract_strided_slice %31 {offsets = [0, 1, 0], sizes = [32, 1, 128], strides = [1, 1, 1]} : vector<32x4x128xf32> to vector<32x1x128xf32>
      %35 = vector.shape_cast %34 : vector<32x1x128xf32> to vector<32x128xf32>
      %36 = arith.maximumf %33, %35 : vector<32x128xf32>
      %37 = vector.extract_strided_slice %31 {offsets = [0, 2, 0], sizes = [32, 1, 128], strides = [1, 1, 1]} : vector<32x4x128xf32> to vector<32x1x128xf32>
      %38 = vector.shape_cast %37 : vector<32x1x128xf32> to vector<32x128xf32>
      %39 = vector.extract_strided_slice %31 {offsets = [0, 3, 0], sizes = [32, 1, 128], strides = [1, 1, 1]} : vector<32x4x128xf32> to vector<32x1x128xf32>
      %40 = vector.shape_cast %39 : vector<32x1x128xf32> to vector<32x128xf32>
      %41 = arith.maximumf %38, %40 : vector<32x128xf32>
      %42 = arith.maximumf %36, %41 : vector<32x128xf32>
      %c0_25 = arith.constant 0 : index
      %c0_26 = arith.constant 0 : index
      %43 = vector.load %arg18[%c0_25, %c0_26] : memref<136x128xf32, #tpu.memory_space<vmem>>, vector<32x128xf32>
      tpu.vector_store %arg18[%c0_25, %c0_26], %42 {strides = array<i32>} : memref<136x128xf32, #tpu.memory_space<vmem>>, vector<32x128xf32>,
      %44 = arith.index_cast %arg20 : i32 to index
      %c128 = arith.constant 128 : index
      %c0_27 = arith.constant 0 : index
      %45 = vector.load %arg1[%44, %c128, %c0_27] : memref<2x552x512xbf16, #tpu.memory_space<vmem>>, vector<1x128x512xbf16>
      %46 = vector.shape_cast %45 : vector<1x128x512xbf16> to vector<128x512xbf16>
      %c0_28 = arith.constant 0 : index
      %c0_29 = arith.constant 0 : index
      %47 = vector.load %arg2[%c0_28, %c0_29] : memref<512x128xbf16, #tpu.memory_space<vmem>>, vector<512x128xbf16>
      %cst_30 = arith.constant dense<0.000000e+00> : vector<128x128xf32>
      %48 = tpu.matmul %46, %47, %cst_30 {dimension_numbers = #tpu.dot_dimension_numbers<[1], [0], [0], [1], [0, 0, 1, 1], [], []>} : vector<128x512xbf16>, vector<512x128xbf16>, vector<128x128xf32> -> vector<128x128xf32>
      %49 = arith.index_cast %arg20 : i32 to index
      %c129 = arith.constant 129 : index
      %c0_31 = arith.constant 0 : index
      %50 = vector.load %arg1[%49, %c129, %c0_31] : memref<2x552x512xbf16, #tpu.memory_space<vmem>>, vector<1x128x128xbf16>
      %51 = vector.shape_cast %50 : vector<1x128x128xbf16> to vector<128x128xbf16>
      %c0_32 = arith.constant 0 : index
      %c0_33 = arith.constant 0 : index
      %52 = vector.load %arg3[%c0_32, %c0_33] : memref<128x128xbf16, #tpu.memory_space<vmem>>, vector<128x128xbf16>
      %cst_34 = arith.constant dense<0.000000e+00> : vector<128x128xf32>
      %53 = tpu.matmul %51, %52, %cst_34 {dimension_numbers = #tpu.dot_dimension_numbers<[1], [0], [0], [1], [0, 0, 1, 1], [], []>} : vector<128x128xbf16>, vector<128x128xbf16>, vector<128x128xf32> -> vector<128x128xf32>
      %54 = arith.addf %48, %53 : vector<128x128xf32>
      %c0_35 = arith.constant 0 : index
      %c0_36 = arith.constant 0 : index
      %55 = vector.load %arg8[%c0_35, %c0_36] : memref<1x128xf32, #tpu.memory_space<vmem>>, vector<1x128xf32>
      %56 = vector.broadcast %55 : vector<1x128xf32> to vector<128x128xf32>
      %57 = arith.mulf %54, %56 : vector<128x128xf32>
      %c0_37 = arith.constant 0 : index
      %c0_38 = arith.constant 0 : index
      %58 = vector.load %arg9[%c0_37, %c0_38] : memref<1x128xf32, #tpu.memory_space<vmem>>, vector<1x128xf32>
      %59 = vector.broadcast %58 : vector<1x128xf32> to vector<128x128xf32>
      %60 = arith.addf %57, %59 : vector<128x128xf32>
      %cst_39 = arith.constant 0.000000e+00 : f32
      %61 = vector.broadcast %cst_39 : f32 to vector<128x128xf32>
      %62 = arith.maximumf %60, %61 : vector<128x128xf32>
      %63 = vector.shape_cast %62 : vector<128x128xf32> to vector<32x4x128xf32>
      %64 = vector.extract_strided_slice %63 {offsets = [0, 0, 0], sizes = [32, 1, 128], strides = [1, 1, 1]} : vector<32x4x128xf32> to vector<32x1x128xf32>
      %65 = vector.shape_cast %64 : vector<32x1x128xf32> to vector<32x128xf32>
      %66 = vector.extract_strided_slice %63 {offsets = [0, 1, 0], sizes = [32, 1, 128], strides = [1, 1, 1]} : vector<32x4x128xf32> to vector<32x1x128xf32>
      %67 = vector.shape_cast %66 : vector<32x1x128xf32> to vector<32x128xf32>
      %68 = arith.maximumf %65, %67 : vector<32x128xf32>
      %69 = vector.extract_strided_slice %63 {offsets = [0, 2, 0], sizes = [32, 1, 128], strides = [1, 1, 1]} : vector<32x4x128xf32> to vector<32x1x128xf32>
      %70 = vector.shape_cast %69 : vector<32x1x128xf32> to vector<32x128xf32>
      %71 = vector.extract_strided_slice %63 {offsets = [0, 3, 0], sizes = [32, 1, 128], strides = [1, 1, 1]} : vector<32x4x128xf32> to vector<32x1x128xf32>
      %72 = vector.shape_cast %71 : vector<32x1x128xf32> to vector<32x128xf32>
      %73 = arith.maximumf %70, %72 : vector<32x128xf32>
      %74 = arith.maximumf %68, %73 : vector<32x128xf32>
      %c32 = arith.constant 32 : index
      %c0_40 = arith.constant 0 : index
      %75 = vector.load %arg18[%c32, %c0_40] : memref<136x128xf32, #tpu.memory_space<vmem>>, vector<32x128xf32>
      tpu.vector_store %arg18[%c32, %c0_40], %74 {strides = array<i32>} : memref<136x128xf32, #tpu.memory_space<vmem>>, vector<32x128xf32>,
      %76 = arith.index_cast %arg20 : i32 to index
      %c256 = arith.constant 256 : index
      %c0_41 = arith.constant 0 : index
      %77 = vector.load %arg1[%76, %c256, %c0_41] : memref<2x552x512xbf16, #tpu.memory_space<vmem>>, vector<1x128x512xbf16>
      %78 = vector.shape_cast %77 : vector<1x128x512xbf16> to vector<128x512xbf16>
      %c0_42 = arith.constant 0 : index
      %c0_43 = arith.constant 0 : index
      %79 = vector.load %arg2[%c0_42, %c0_43] : memref<512x128xbf16, #tpu.memory_space<vmem>>, vector<512x128xbf16>
      %cst_44 = arith.constant dense<0.000000e+00> : vector<128x128xf32>
      %80 = tpu.matmul %78, %79, %cst_44 {dimension_numbers = #tpu.dot_dimension_numbers<[1], [0], [0], [1], [0, 0, 1, 1], [], []>} : vector<128x512xbf16>, vector<512x128xbf16>, vector<128x128xf32> -> vector<128x128xf32>
      %81 = arith.index_cast %arg20 : i32 to index
      %c257 = arith.constant 257 : index
      %c0_45 = arith.constant 0 : index
      %82 = vector.load %arg1[%81, %c257, %c0_45] : memref<2x552x512xbf16, #tpu.memory_space<vmem>>, vector<1x128x128xbf16>
      %83 = vector.shape_cast %82 : vector<1x128x128xbf16> to vector<128x128xbf16>
      %c0_46 = arith.constant 0 : index
      %c0_47 = arith.constant 0 : index
      %84 = vector.load %arg3[%c0_46, %c0_47] : memref<128x128xbf16, #tpu.memory_space<vmem>>, vector<128x128xbf16>
      %cst_48 = arith.constant dense<0.000000e+00> : vector<128x128xf32>
      %85 = tpu.matmul %83, %84, %cst_48 {dimension_numbers = #tpu.dot_dimension_numbers<[1], [0], [0], [1], [0, 0, 1, 1], [], []>} : vector<128x128xbf16>, vector<128x128xbf16>, vector<128x128xf32> -> vector<128x128xf32>
      %86 = arith.addf %80, %85 : vector<128x128xf32>
      %c0_49 = arith.constant 0 : index
      %c0_50 = arith.constant 0 : index
      %87 = vector.load %arg8[%c0_49, %c0_50] : memref<1x128xf32, #tpu.memory_space<vmem>>, vector<1x128xf32>
      %88 = vector.broadcast %87 : vector<1x128xf32> to vector<128x128xf32>
      %89 = arith.mulf %86, %88 : vector<128x128xf32>
      %c0_51 = arith.constant 0 : index
      %c0_52 = arith.constant 0 : index
      %90 = vector.load %arg9[%c0_51, %c0_52] : memref<1x128xf32, #tpu.memory_space<vmem>>, vector<1x128xf32>
      %91 = vector.broadcast %90 : vector<1x128xf32> to vector<128x128xf32>
      %92 = arith.addf %89, %91 : vector<128x128xf32>
      %cst_53 = arith.constant 0.000000e+00 : f32
      %93 = vector.broadcast %cst_53 : f32 to vector<128x128xf32>
      %94 = arith.maximumf %92, %93 : vector<128x128xf32>
      %95 = vector.shape_cast %94 : vector<128x128xf32> to vector<32x4x128xf32>
      %96 = vector.extract_strided_slice %95 {offsets = [0, 0, 0], sizes = [32, 1, 128], strides = [1, 1, 1]} : vector<32x4x128xf32> to vector<32x1x128xf32>
      %97 = vector.shape_cast %96 : vector<32x1x128xf32> to vector<32x128xf32>
      %98 = vector.extract_strided_slice %95 {offsets = [0, 1, 0], sizes = [32, 1, 128], strides = [1, 1, 1]} : vector<32x4x128xf32> to vector<32x1x128xf32>
      %99 = vector.shape_cast %98 : vector<32x1x128xf32> to vector<32x128xf32>
      %100 = arith.maximumf %97, %99 : vector<32x128xf32>
      %101 = vector.extract_strided_slice %95 {offsets = [0, 2, 0], sizes = [32, 1, 128], strides = [1, 1, 1]} : vector<32x4x128xf32> to vector<32x1x128xf32>
      %102 = vector.shape_cast %101 : vector<32x1x128xf32> to vector<32x128xf32>
      %103 = vector.extract_strided_slice %95 {offsets = [0, 3, 0], sizes = [32, 1, 128], strides = [1, 1, 1]} : vector<32x4x128xf32> to vector<32x1x128xf32>
      %104 = vector.shape_cast %103 : vector<32x1x128xf32> to vector<32x128xf32>
      %105 = arith.maximumf %102, %104 : vector<32x128xf32>
      %106 = arith.maximumf %100, %105 : vector<32x128xf32>
      %c64 = arith.constant 64 : index
      %c0_54 = arith.constant 0 : index
      %107 = vector.load %arg18[%c64, %c0_54] : memref<136x128xf32, #tpu.memory_space<vmem>>, vector<32x128xf32>
      tpu.vector_store %arg18[%c64, %c0_54], %106 {strides = array<i32>} : memref<136x128xf32, #tpu.memory_space<vmem>>, vector<32x128xf32>,
      %108 = arith.index_cast %arg20 : i32 to index
      %c384 = arith.constant 384 : index
      %c0_55 = arith.constant 0 : index
      %109 = vector.load %arg1[%108, %c384, %c0_55] : memref<2x552x512xbf16, #tpu.memory_space<vmem>>, vector<1x128x512xbf16>
      %110 = vector.shape_cast %109 : vector<1x128x512xbf16> to vector<128x512xbf16>
      %c0_56 = arith.constant 0 : index
      %c0_57 = arith.constant 0 : index
      %111 = vector.load %arg2[%c0_56, %c0_57] : memref<512x128xbf16, #tpu.memory_space<vmem>>, vector<512x128xbf16>
      %cst_58 = arith.constant dense<0.000000e+00> : vector<128x128xf32>
      %112 = tpu.matmul %110, %111, %cst_58 {dimension_numbers = #tpu.dot_dimension_numbers<[1], [0], [0], [1], [0, 0, 1, 1], [], []>} : vector<128x512xbf16>, vector<512x128xbf16>, vector<128x128xf32> -> vector<128x128xf32>
      %113 = arith.index_cast %arg20 : i32 to index
      %c385 = arith.constant 385 : index
      %c0_59 = arith.constant 0 : index
      %114 = vector.load %arg1[%113, %c385, %c0_59] : memref<2x552x512xbf16, #tpu.memory_space<vmem>>, vector<1x128x128xbf16>
      %115 = vector.shape_cast %114 : vector<1x128x128xbf16> to vector<128x128xbf16>
      %c0_60 = arith.constant 0 : index
      %c0_61 = arith.constant 0 : index
      %116 = vector.load %arg3[%c0_60, %c0_61] : memref<128x128xbf16, #tpu.memory_space<vmem>>, vector<128x128xbf16>
      %cst_62 = arith.constant dense<0.000000e+00> : vector<128x128xf32>
      %117 = tpu.matmul %115, %116, %cst_62 {dimension_numbers = #tpu.dot_dimension_numbers<[1], [0], [0], [1], [0, 0, 1, 1], [], []>} : vector<128x128xbf16>, vector<128x128xbf16>, vector<128x128xf32> -> vector<128x128xf32>
      %118 = arith.addf %112, %117 : vector<128x128xf32>
      %c0_63 = arith.constant 0 : index
      %c0_64 = arith.constant 0 : index
      %119 = vector.load %arg8[%c0_63, %c0_64] : memref<1x128xf32, #tpu.memory_space<vmem>>, vector<1x128xf32>
      %120 = vector.broadcast %119 : vector<1x128xf32> to vector<128x128xf32>
      %121 = arith.mulf %118, %120 : vector<128x128xf32>
      %c0_65 = arith.constant 0 : index
      %c0_66 = arith.constant 0 : index
      %122 = vector.load %arg9[%c0_65, %c0_66] : memref<1x128xf32, #tpu.memory_space<vmem>>, vector<1x128xf32>
      %123 = vector.broadcast %122 : vector<1x128xf32> to vector<128x128xf32>
      %124 = arith.addf %121, %123 : vector<128x128xf32>
      %cst_67 = arith.constant 0.000000e+00 : f32
      %125 = vector.broadcast %cst_67 : f32 to vector<128x128xf32>
      %126 = arith.maximumf %124, %125 : vector<128x128xf32>
      %127 = vector.shape_cast %126 : vector<128x128xf32> to vector<32x4x128xf32>
      %128 = vector.extract_strided_slice %127 {offsets = [0, 0, 0], sizes = [32, 1, 128], strides = [1, 1, 1]} : vector<32x4x128xf32> to vector<32x1x128xf32>
      %129 = vector.shape_cast %128 : vector<32x1x128xf32> to vector<32x128xf32>
      %130 = vector.extract_strided_slice %127 {offsets = [0, 1, 0], sizes = [32, 1, 128], strides = [1, 1, 1]} : vector<32x4x128xf32> to vector<32x1x128xf32>
      %131 = vector.shape_cast %130 : vector<32x1x128xf32> to vector<32x128xf32>
      %132 = arith.maximumf %129, %131 : vector<32x128xf32>
      %133 = vector.extract_strided_slice %127 {offsets = [0, 2, 0], sizes = [32, 1, 128], strides = [1, 1, 1]} : vector<32x4x128xf32> to vector<32x1x128xf32>
      %134 = vector.shape_cast %133 : vector<32x1x128xf32> to vector<32x128xf32>
      %135 = vector.extract_strided_slice %127 {offsets = [0, 3, 0], sizes = [32, 1, 128], strides = [1, 1, 1]} : vector<32x4x128xf32> to vector<32x1x128xf32>
      %136 = vector.shape_cast %135 : vector<32x1x128xf32> to vector<32x128xf32>
      %137 = arith.maximumf %134, %136 : vector<32x128xf32>
      %138 = arith.maximumf %132, %137 : vector<32x128xf32>
      %c96 = arith.constant 96 : index
      %c0_68 = arith.constant 0 : index
      %139 = vector.load %arg18[%c96, %c0_68] : memref<136x128xf32, #tpu.memory_space<vmem>>, vector<32x128xf32>
      tpu.vector_store %arg18[%c96, %c0_68], %138 {strides = array<i32>} : memref<136x128xf32, #tpu.memory_space<vmem>>, vector<32x128xf32>,
      %140 = arith.index_cast %arg20 : i32 to index
      %c512 = arith.constant 512 : index
      %c0_69 = arith.constant 0 : index
      %141 = vector.load %arg1[%140, %c512, %c0_69] : memref<2x552x512xbf16, #tpu.memory_space<vmem>>, vector<1x32x512xbf16>
      %142 = vector.shape_cast %141 : vector<1x32x512xbf16> to vector<32x512xbf16>
      %c0_70 = arith.constant 0 : index
      %c0_71 = arith.constant 0 : index
      %143 = vector.load %arg2[%c0_70, %c0_71] : memref<512x128xbf16, #tpu.memory_space<vmem>>, vector<512x128xbf16>
      %cst_72 = arith.constant dense<0.000000e+00> : vector<32x128xf32>
      %144 = tpu.matmul %142, %143, %cst_72 {dimension_numbers = #tpu.dot_dimension_numbers<[1], [0], [0], [1], [0, 0, 1, 1], [], []>} : vector<32x512xbf16>, vector<512x128xbf16>, vector<32x128xf32> -> vector<32x128xf32>
      %145 = arith.index_cast %arg20 : i32 to index
      %c513 = arith.constant 513 : index
      %c0_73 = arith.constant 0 : index
      %146 = vector.load %arg1[%145, %c513, %c0_73] : memref<2x552x512xbf16, #tpu.memory_space<vmem>>, vector<1x32x128xbf16>
      %147 = vector.shape_cast %146 : vector<1x32x128xbf16> to vector<32x128xbf16>
      %c0_74 = arith.constant 0 : index
      %c0_75 = arith.constant 0 : index
      %148 = vector.load %arg3[%c0_74, %c0_75] : memref<128x128xbf16, #tpu.memory_space<vmem>>, vector<128x128xbf16>
      %cst_76 = arith.constant dense<0.000000e+00> : vector<32x128xf32>
      %149 = tpu.matmul %147, %148, %cst_76 {dimension_numbers = #tpu.dot_dimension_numbers<[1], [0], [0], [1], [0, 0, 1, 1], [], []>} : vector<32x128xbf16>, vector<128x128xbf16>, vector<32x128xf32> -> vector<32x128xf32>
      %150 = arith.addf %144, %149 : vector<32x128xf32>
      %c0_77 = arith.constant 0 : index
      %c0_78 = arith.constant 0 : index
      %151 = vector.load %arg8[%c0_77, %c0_78] : memref<1x128xf32, #tpu.memory_space<vmem>>, vector<1x128xf32>
      %152 = vector.broadcast %151 : vector<1x128xf32> to vector<32x128xf32>
      %153 = arith.mulf %150, %152 : vector<32x128xf32>
      %c0_79 = arith.constant 0 : index
      %c0_80 = arith.constant 0 : index
      %154 = vector.load %arg9[%c0_79, %c0_80] : memref<1x128xf32, #tpu.memory_space<vmem>>, vector<1x128xf32>
      %155 = vector.broadcast %154 : vector<1x128xf32> to vector<32x128xf32>
      %156 = arith.addf %153, %155 : vector<32x128xf32>
      %cst_81 = arith.constant 0.000000e+00 : f32
      %157 = vector.broadcast %cst_81 : f32 to vector<32x128xf32>
      %158 = arith.maximumf %156, %157 : vector<32x128xf32>
      %159 = vector.shape_cast %158 : vector<32x128xf32> to vector<8x4x128xf32>
      %160 = vector.extract_strided_slice %159 {offsets = [0, 0, 0], sizes = [8, 1, 128], strides = [1, 1, 1]} : vector<8x4x128xf32> to vector<8x1x128xf32>
      %161 = vector.shape_cast %160 : vector<8x1x128xf32> to vector<8x128xf32>
      %162 = vector.extract_strided_slice %159 {offsets = [0, 1, 0], sizes = [8, 1, 128], strides = [1, 1, 1]} : vector<8x4x128xf32> to vector<8x1x128xf32>
      %163 = vector.shape_cast %162 : vector<8x1x128xf32> to vector<8x128xf32>
      %164 = arith.maximumf %161, %163 : vector<8x128xf32>
      %165 = vector.extract_strided_slice %159 {offsets = [0, 2, 0], sizes = [8, 1, 128], strides = [1, 1, 1]} : vector<8x4x128xf32> to vector<8x1x128xf32>
      %166 = vector.shape_cast %165 : vector<8x1x128xf32> to vector<8x128xf32>
      %167 = vector.extract_strided_slice %159 {offsets = [0, 3, 0], sizes = [8, 1, 128], strides = [1, 1, 1]} : vector<8x4x128xf32> to vector<8x1x128xf32>
      %168 = vector.shape_cast %167 : vector<8x1x128xf32> to vector<8x128xf32>
      %169 = arith.maximumf %166, %168 : vector<8x128xf32>
      %170 = arith.maximumf %164, %169 : vector<8x128xf32>
      %c128_82 = arith.constant 128 : index
      %c0_83 = arith.constant 0 : index
      %171 = vector.load %arg18[%c128_82, %c0_83] : memref<136x128xf32, #tpu.memory_space<vmem>>, vector<8x128xf32>
      tpu.vector_store %arg18[%c128_82, %c0_83], %170 {strides = array<i32>} : memref<136x128xf32, #tpu.memory_space<vmem>>, vector<8x128xf32>,
      %c0_84 = arith.constant 0 : index
      %c0_85 = arith.constant 0 : index
      %172 = vector.load %arg18[%c0_84, %c0_85] : memref<136x128xf32, #tpu.memory_space<vmem>>, vector<132x128xf32>
      %173 = arith.truncf %172 : vector<132x128xf32> to vector<132x128xbf16>
      %c0_86 = arith.constant 0 : index
      %c0_87 = arith.constant 0 : index
      %c0_88 = arith.constant 0 : index
      %174 = vector.load %arg4[%c0_86, %c0_87, %c0_88] : memref<3x128x128xbf16, #tpu.memory_space<vmem>>, vector<1x128x128xbf16>
      %175 = vector.shape_cast %174 : vector<1x128x128xbf16> to vector<128x128xbf16>
      %cst_89 = arith.constant dense<0.000000e+00> : vector<132x128xf32>
      %176 = tpu.matmul %173, %175, %cst_89 {dimension_numbers = #tpu.dot_dimension_numbers<[1], [0], [0], [1], [0, 0, 1, 1], [], []>} : vector<132x128xbf16>, vector<128x128xbf16>, vector<132x128xf32> -> vector<132x128xf32>
      %c1_90 = arith.constant 1 : index
      %c0_91 = arith.constant 0 : index
      %177 = vector.load %arg18[%c1_90, %c0_91] : memref<136x128xf32, #tpu.memory_space<vmem>>, vector<132x128xf32>
      %178 = arith.truncf %177 : vector<132x128xf32> to vector<132x128xbf16>
      %c1_92 = arith.constant 1 : index
      %c0_93 = arith.constant 0 : index
      %c0_94 = arith.constant 0 : index
      %179 = vector.load %arg4[%c1_92, %c0_93, %c0_94] : memref<3x128x128xbf16, #tpu.memory_space<vmem>>, vector<1x128x128xbf16>
      %180 = vector.shape_cast %179 : vector<1x128x128xbf16> to vector<128x128xbf16>
      %cst_95 = arith.constant dense<0.000000e+00> : vector<132x128xf32>
      %181 = tpu.matmul %178, %180, %cst_95 {dimension_numbers = #tpu.dot_dimension_numbers<[1], [0], [0], [1], [0, 0, 1, 1], [], []>} : vector<132x128xbf16>, vector<128x128xbf16>, vector<132x128xf32> -> vector<132x128xf32>
      %182 = arith.addf %176, %181 : vector<132x128xf32>
      %c2 = arith.constant 2 : index
      %c0_96 = arith.constant 0 : index
      %183 = vector.load %arg18[%c2, %c0_96] : memref<136x128xf32, #tpu.memory_space<vmem>>, vector<132x128xf32>
      %184 = arith.truncf %183 : vector<132x128xf32> to vector<132x128xbf16>
      %c2_97 = arith.constant 2 : index
      %c0_98 = arith.constant 0 : index
      %c0_99 = arith.constant 0 : index
      %185 = vector.load %arg4[%c2_97, %c0_98, %c0_99] : memref<3x128x128xbf16, #tpu.memory_space<vmem>>, vector<1x128x128xbf16>
      %186 = vector.shape_cast %185 : vector<1x128x128xbf16> to vector<128x128xbf16>
      %cst_100 = arith.constant dense<0.000000e+00> : vector<132x128xf32>
      %187 = tpu.matmul %184, %186, %cst_100 {dimension_numbers = #tpu.dot_dimension_numbers<[1], [0], [0], [1], [0, 0, 1, 1], [], []>} : vector<132x128xbf16>, vector<128x128xbf16>, vector<132x128xf32> -> vector<132x128xf32>
      %188 = arith.addf %182, %187 : vector<132x128xf32>
      %c0_101 = arith.constant 0 : index
      %c0_102 = arith.constant 0 : index
      %189 = vector.load %arg10[%c0_101, %c0_102] : memref<1x128xf32, #tpu.memory_space<vmem>>, vector<1x128xf32>
      %190 = vector.broadcast %189 : vector<1x128xf32> to vector<132x128xf32>
      %191 = arith.mulf %188, %190 : vector<132x128xf32>
      %c0_103 = arith.constant 0 : index
      %c0_104 = arith.constant 0 : index
      %192 = vector.load %arg11[%c0_103, %c0_104] : memref<1x128xf32, #tpu.memory_space<vmem>>, vector<1x128xf32>
      %193 = vector.broadcast %192 : vector<1x128xf32> to vector<132x128xf32>
      %194 = arith.addf %191, %193 : vector<132x128xf32>
      %cst_105 = arith.constant 0.000000e+00 : f32
      %195 = vector.broadcast %cst_105 : f32 to vector<132x128xf32>
      %196 = arith.maximumf %194, %195 : vector<132x128xf32>
      %197 = vector.shape_cast %196 : vector<132x128xf32> to vector<33x4x128xf32>
      %198 = vector.extract_strided_slice %197 {offsets = [0, 0, 0], sizes = [33, 1, 128], strides = [1, 1, 1]} : vector<33x4x128xf32> to vector<33x1x128xf32>
      %199 = vector.shape_cast %198 : vector<33x1x128xf32> to vector<33x128xf32>
      %200 = vector.extract_strided_slice %197 {offsets = [0, 1, 0], sizes = [33, 1, 128], strides = [1, 1, 1]} : vector<33x4x128xf32> to vector<33x1x128xf32>
      %201 = vector.shape_cast %200 : vector<33x1x128xf32> to vector<33x128xf32>
      %202 = arith.maximumf %199, %201 : vector<33x128xf32>
      %203 = vector.extract_strided_slice %197 {offsets = [0, 2, 0], sizes = [33, 1, 128], strides = [1, 1, 1]} : vector<33x4x128xf32> to vector<33x1x128xf32>
      %204 = vector.shape_cast %203 : vector<33x1x128xf32> to vector<33x128xf32>
      %205 = vector.extract_strided_slice %197 {offsets = [0, 3, 0], sizes = [33, 1, 128], strides = [1, 1, 1]} : vector<33x4x128xf32> to vector<33x1x128xf32>
      %206 = vector.shape_cast %205 : vector<33x1x128xf32> to vector<33x128xf32>
      %207 = arith.maximumf %204, %206 : vector<33x128xf32>
      %208 = arith.maximumf %202, %207 : vector<33x128xf32>
      %209 = arith.truncf %208 : vector<33x128xf32> to vector<33x128xbf16>
      %210 = vector.extract_strided_slice %209 {offsets = [0, 0], sizes = [28, 128], strides = [1, 1]} : vector<33x128xbf16> to vector<28x128xbf16>
      %c0_106 = arith.constant 0 : index
      %c0_107 = arith.constant 0 : index
      %c0_108 = arith.constant 0 : index
      %211 = vector.load %arg5[%c0_106, %c0_107, %c0_108] : memref<3x128x256xbf16, #tpu.memory_space<vmem>>, vector<1x128x256xbf16>
      %212 = vector.shape_cast %211 : vector<1x128x256xbf16> to vector<128x256xbf16>
      %cst_109 = arith.constant dense<0.000000e+00> : vector<28x256xf32>
      %213 = tpu.matmul %210, %212, %cst_109 {dimension_numbers = #tpu.dot_dimension_numbers<[1], [0], [0], [1], [0, 0, 1, 1], [], []>} : vector<28x128xbf16>, vector<128x256xbf16>, vector<28x256xf32> -> vector<28x256xf32>
      %214 = vector.extract_strided_slice %209 {offsets = [1, 0], sizes = [28, 128], strides = [1, 1]} : vector<33x128xbf16> to vector<28x128xbf16>
      %c1_110 = arith.constant 1 : index
      %c0_111 = arith.constant 0 : index
      %c0_112 = arith.constant 0 : index
      %215 = vector.load %arg5[%c1_110, %c0_111, %c0_112] : memref<3x128x256xbf16, #tpu.memory_space<vmem>>, vector<1x128x256xbf16>
      %216 = vector.shape_cast %215 : vector<1x128x256xbf16> to vector<128x256xbf16>
      %cst_113 = arith.constant dense<0.000000e+00> : vector<28x256xf32>
      %217 = tpu.matmul %214, %216, %cst_113 {dimension_numbers = #tpu.dot_dimension_numbers<[1], [0], [0], [1], [0, 0, 1, 1], [], []>} : vector<28x128xbf16>, vector<128x256xbf16>, vector<28x256xf32> -> vector<28x256xf32>
      %218 = arith.addf %213, %217 : vector<28x256xf32>
      %219 = vector.extract_strided_slice %209 {offsets = [2, 0], sizes = [28, 128], strides = [1, 1]} : vector<33x128xbf16> to vector<28x128xbf16>
      %c2_114 = arith.constant 2 : index
      %c0_115 = arith.constant 0 : index
      %c0_116 = arith.constant 0 : index
      %220 = vector.load %arg5[%c2_114, %c0_115, %c0_116] : memref<3x128x256xbf16, #tpu.memory_space<vmem>>, vector<1x128x256xbf16>
      %221 = vector.shape_cast %220 : vector<1x128x256xbf16> to vector<128x256xbf16>
      %cst_117 = arith.constant dense<0.000000e+00> : vector<28x256xf32>
      %222 = tpu.matmul %219, %221, %cst_117 {dimension_numbers = #tpu.dot_dimension_numbers<[1], [0], [0], [1], [0, 0, 1, 1], [], []>} : vector<28x128xbf16>, vector<128x256xbf16>, vector<28x256xf32> -> vector<28x256xf32>
      %223 = arith.addf %218, %222 : vector<28x256xf32>
      %c0_118 = arith.constant 0 : index
      %c0_119 = arith.constant 0 : index
      %224 = vector.load %arg12[%c0_118, %c0_119] : memref<1x256xf32, #tpu.memory_space<vmem>>, vector<1x256xf32>
      %225 = vector.broadcast %224 : vector<1x256xf32> to vector<28x256xf32>
      %226 = arith.mulf %223, %225 : vector<28x256xf32>
      %c0_120 = arith.constant 0 : index
      %c0_121 = arith.constant 0 : index
      %227 = vector.load %arg13[%c0_120, %c0_121] : memref<1x256xf32, #tpu.memory_space<vmem>>, vector<1x256xf32>
      %228 = vector.broadcast %227 : vector<1x256xf32> to vector<28x256xf32>
      %229 = arith.addf %226, %228 : vector<28x256xf32>
      %cst_122 = arith.constant 0.000000e+00 : f32
      %230 = vector.broadcast %cst_122 : f32 to vector<28x256xf32>
      %231 = arith.maximumf %229, %230 : vector<28x256xf32>
      %232 = vector.shape_cast %231 : vector<28x256xf32> to vector<7x4x256xf32>
      %233 = vector.extract_strided_slice %232 {offsets = [0, 0, 0], sizes = [7, 1, 256], strides = [1, 1, 1]} : vector<7x4x256xf32> to vector<7x1x256xf32>
      %234 = vector.shape_cast %233 : vector<7x1x256xf32> to vector<7x256xf32>
      %235 = vector.extract_strided_slice %232 {offsets = [0, 1, 0], sizes = [7, 1, 256], strides = [1, 1, 1]} : vector<7x4x256xf32> to vector<7x1x256xf32>
      %236 = vector.shape_cast %235 : vector<7x1x256xf32> to vector<7x256xf32>
      %237 = arith.maximumf %234, %236 : vector<7x256xf32>
      %238 = vector.extract_strided_slice %232 {offsets = [0, 2, 0], sizes = [7, 1, 256], strides = [1, 1, 1]} : vector<7x4x256xf32> to vector<7x1x256xf32>
      %239 = vector.shape_cast %238 : vector<7x1x256xf32> to vector<7x256xf32>
      %240 = vector.extract_strided_slice %232 {offsets = [0, 3, 0], sizes = [7, 1, 256], strides = [1, 1, 1]} : vector<7x4x256xf32> to vector<7x1x256xf32>
      %241 = vector.shape_cast %240 : vector<7x1x256xf32> to vector<7x256xf32>
      %242 = arith.maximumf %239, %241 : vector<7x256xf32>
      %243 = arith.maximumf %237, %242 : vector<7x256xf32>
      %244 = arith.truncf %243 : vector<7x256xf32> to vector<7x256xbf16>
      %245 = vector.extract_strided_slice %244 {offsets = [0, 0], sizes = [4, 256], strides = [1, 1]} : vector<7x256xbf16> to vector<4x256xbf16>
      %c0_123 = arith.constant 0 : index
      %c0_124 = arith.constant 0 : index
      %c0_125 = arith.constant 0 : index
      %246 = vector.load %arg6[%c0_123, %c0_124, %c0_125] : memref<3x256x512xbf16, #tpu.memory_space<vmem>>, vector<1x256x512xbf16>
      %247 = vector.shape_cast %246 : vector<1x256x512xbf16> to vector<256x512xbf16>
      %cst_126 = arith.constant dense<0.000000e+00> : vector<4x512xf32>
      %248 = tpu.matmul %245, %247, %cst_126 {dimension_numbers = #tpu.dot_dimension_numbers<[1], [0], [0], [1], [0, 0, 1, 1], [], []>} : vector<4x256xbf16>, vector<256x512xbf16>, vector<4x512xf32> -> vector<4x512xf32>
      %249 = vector.extract_strided_slice %244 {offsets = [1, 0], sizes = [4, 256], strides = [1, 1]} : vector<7x256xbf16> to vector<4x256xbf16>
      %c1_127 = arith.constant 1 : index
      %c0_128 = arith.constant 0 : index
      %c0_129 = arith.constant 0 : index
      %250 = vector.load %arg6[%c1_127, %c0_128, %c0_129] : memref<3x256x512xbf16, #tpu.memory_space<vmem>>, vector<1x256x512xbf16>
      %251 = vector.shape_cast %250 : vector<1x256x512xbf16> to vector<256x512xbf16>
      %cst_130 = arith.constant dense<0.000000e+00> : vector<4x512xf32>
      %252 = tpu.matmul %249, %251, %cst_130 {dimension_numbers = #tpu.dot_dimension_numbers<[1], [0], [0], [1], [0, 0, 1, 1], [], []>} : vector<4x256xbf16>, vector<256x512xbf16>, vector<4x512xf32> -> vector<4x512xf32>
      %253 = arith.addf %248, %252 : vector<4x512xf32>
      %254 = vector.extract_strided_slice %244 {offsets = [2, 0], sizes = [4, 256], strides = [1, 1]} : vector<7x256xbf16> to vector<4x256xbf16>
      %c2_131 = arith.constant 2 : index
      %c0_132 = arith.constant 0 : index
      %c0_133 = arith.constant 0 : index
      %255 = vector.load %arg6[%c2_131, %c0_132, %c0_133] : memref<3x256x512xbf16, #tpu.memory_space<vmem>>, vector<1x256x512xbf16>
      %256 = vector.shape_cast %255 : vector<1x256x512xbf16> to vector<256x512xbf16>
      %cst_134 = arith.constant dense<0.000000e+00> : vector<4x512xf32>
      %257 = tpu.matmul %254, %256, %cst_134 {dimension_numbers = #tpu.dot_dimension_numbers<[1], [0], [0], [1], [0, 0, 1, 1], [], []>} : vector<4x256xbf16>, vector<256x512xbf16>, vector<4x512xf32> -> vector<4x512xf32>
      %258 = arith.addf %253, %257 : vector<4x512xf32>
      %c0_135 = arith.constant 0 : index
      %c0_136 = arith.constant 0 : index
      %259 = vector.load %arg14[%c0_135, %c0_136] : memref<1x512xf32, #tpu.memory_space<vmem>>, vector<1x512xf32>
      %260 = vector.broadcast %259 : vector<1x512xf32> to vector<4x512xf32>
      %261 = arith.mulf %258, %260 : vector<4x512xf32>
      %c0_137 = arith.constant 0 : index
      %c0_138 = arith.constant 0 : index
      %262 = vector.load %arg15[%c0_137, %c0_138] : memref<1x512xf32, #tpu.memory_space<vmem>>, vector<1x512xf32>
      %263 = vector.broadcast %262 : vector<1x512xf32> to vector<4x512xf32>
      %264 = arith.addf %261, %263 : vector<4x512xf32>
      %cst_139 = arith.constant 0.000000e+00 : f32
      %265 = vector.broadcast %cst_139 : f32 to vector<4x512xf32>
      %266 = arith.maximumf %264, %265 : vector<4x512xf32>
      %267 = arith.index_cast %arg20 : i32 to index
      %c0_140 = arith.constant 0 : index
      %c0_141 = arith.constant 0 : index
      %268 = vector.load %arg19[%267, %c0_140, %c0_141] : memref<2x4x512xf32, #tpu.memory_space<vmem>>, vector<1x4x512xf32>
      %269 = vector.shape_cast %268 : vector<1x4x512xf32> to vector<4x512xf32>
      %270 = vector.shape_cast %266 : vector<4x512xf32> to vector<1x4x512xf32>
      tpu.vector_store %arg19[%267, %c0_140, %c0_141], %270 {strides = array<i32>} : memref<2x4x512xf32, #tpu.memory_space<vmem>>, vector<1x4x512xf32>,
    }
    %c2_i32_0 = arith.constant 2 : i32
    %c0 = arith.constant 0 : index
    %c0_1 = arith.constant 0 : index
    %c0_2 = arith.constant 0 : index
    %1 = vector.load %arg19[%c0, %c0_1, %c0_2] : memref<2x4x512xf32, #tpu.memory_space<vmem>>, vector<2x4x512xf32>
    %cst = arith.constant dense<0.000000e+00> : vector<2x512xf32>
    %2 = vector.multi_reduction <add>, %1, %cst [1] : vector<2x4x512xf32> to vector<2x512xf32>
    %cst_3 = arith.constant 2.500000e-01 : f32
    %3 = vector.broadcast %cst_3 : f32 to vector<2x512xf32>
    %4 = arith.mulf %2, %3 : vector<2x512xf32>
    %5 = arith.truncf %4 : vector<2x512xf32> to vector<2x512xbf16>
    %c0_4 = arith.constant 0 : index
    %c0_5 = arith.constant 0 : index
    %6 = vector.load %arg7[%c0_4, %c0_5] : memref<512x128xbf16, #tpu.memory_space<vmem>>, vector<512x128xbf16>
    %cst_6 = arith.constant dense<0.000000e+00> : vector<2x128xf32>
    %7 = tpu.matmul %5, %6, %cst_6 {dimension_numbers = #tpu.dot_dimension_numbers<[1], [0], [0], [1], [0, 0, 1, 1], [], []>} : vector<2x512xbf16>, vector<512x128xbf16>, vector<2x128xf32> -> vector<2x128xf32>
    %c0_7 = arith.constant 0 : index
    %c0_8 = arith.constant 0 : index
    %8 = vector.load %arg16[%c0_7, %c0_8] : memref<1x128xf32, #tpu.memory_space<vmem>>, vector<1x128xf32>
    %9 = vector.broadcast %8 : vector<1x128xf32> to vector<2x128xf32>
    %10 = arith.addf %7, %9 : vector<2x128xf32>
    %c0_9 = arith.constant 0 : index
    %c0_10 = arith.constant 0 : index
    %11 = vector.load %arg17[%c0_9, %c0_10] : memref<2x128xf32, #tpu.memory_space<vmem>>, vector<2x128xf32>
    tpu.vector_store %arg17[%c0_9, %c0_10], %10 {strides = array<i32>} : memref<2x128xf32, #tpu.memory_space<vmem>>, vector<2x128xf32>,
    return
  }
  func.func @transform_0(%arg0: i32) -> (i32, i32, i32) {
    %c0_i32 = arith.constant 0 : i32
    %c0_i32_0 = arith.constant 0 : i32
    %c0_i32_1 = arith.constant 0 : i32
    return %arg0, %c0_i32, %c0_i32_0 : i32, i32, i32
  }
  func.func @transform_1(%arg0: i32) -> (i32, i32) {
    %c0_i32 = arith.constant 0 : i32
    %c0_i32_0 = arith.constant 0 : i32
    %c0_i32_1 = arith.constant 0 : i32
    return %c0_i32, %c0_i32_0 : i32, i32
  }
  func.func @transform_2(%arg0: i32) -> (i32, i32) {
    %c0_i32 = arith.constant 0 : i32
    %c0_i32_0 = arith.constant 0 : i32
    %c0_i32_1 = arith.constant 0 : i32
    return %c0_i32, %c0_i32_0 : i32, i32
  }
  func.func @transform_3(%arg0: i32) -> (i32, i32, i32) {
    %c0_i32 = arith.constant 0 : i32
    %c0_i32_0 = arith.constant 0 : i32
    %c0_i32_1 = arith.constant 0 : i32
    %c0_i32_2 = arith.constant 0 : i32
    return %c0_i32, %c0_i32_0, %c0_i32_1 : i32, i32, i32
  }
  func.func @transform_4(%arg0: i32) -> (i32, i32, i32) {
    %c0_i32 = arith.constant 0 : i32
    %c0_i32_0 = arith.constant 0 : i32
    %c0_i32_1 = arith.constant 0 : i32
    %c0_i32_2 = arith.constant 0 : i32
    return %c0_i32, %c0_i32_0, %c0_i32_1 : i32, i32, i32
  }
  func.func @transform_5(%arg0: i32) -> (i32, i32, i32) {
    %c0_i32 = arith.constant 0 : i32
    %c0_i32_0 = arith.constant 0 : i32
    %c0_i32_1 = arith.constant 0 : i32
    %c0_i32_2 = arith.constant 0 : i32
    return %c0_i32, %c0_i32_0, %c0_i32_1 : i32, i32, i32
  }
  func.func @transform_6(%arg0: i32) -> (i32, i32) {
    %c0_i32 = arith.constant 0 : i32
    %c0_i32_0 = arith.constant 0 : i32
    %c0_i32_1 = arith.constant 0 : i32
    return %c0_i32, %c0_i32_0 : i32, i32
  }
  func.func @transform_7(%arg0: i32) -> (i32, i32) {
    %c0_i32 = arith.constant 0 : i32
    %c0_i32_0 = arith.constant 0 : i32
    %c0_i32_1 = arith.constant 0 : i32
    return %c0_i32, %c0_i32_0 : i32, i32
  }
  func.func @transform_8(%arg0: i32) -> (i32, i32) {
    %c0_i32 = arith.constant 0 : i32
    %c0_i32_0 = arith.constant 0 : i32
    %c0_i32_1 = arith.constant 0 : i32
    return %c0_i32, %c0_i32_0 : i32, i32
  }
  func.func @transform_9(%arg0: i32) -> (i32, i32) {
    %c0_i32 = arith.constant 0 : i32
    %c0_i32_0 = arith.constant 0 : i32
    %c0_i32_1 = arith.constant 0 : i32
    return %c0_i32, %c0_i32_0 : i32, i32
  }
  func.func @transform_10(%arg0: i32) -> (i32, i32) {
    %c0_i32 = arith.constant 0 : i32
    %c0_i32_0 = arith.constant 0 : i32
    %c0_i32_1 = arith.constant 0 : i32
    return %c0_i32, %c0_i32_0 : i32, i32
  }
  func.func @transform_11(%arg0: i32) -> (i32, i32) {
    %c0_i32 = arith.constant 0 : i32
    %c0_i32_0 = arith.constant 0 : i32
    %c0_i32_1 = arith.constant 0 : i32
    return %c0_i32, %c0_i32_0 : i32, i32
  }
  func.func @transform_12(%arg0: i32) -> (i32, i32) {
    %c0_i32 = arith.constant 0 : i32
    %c0_i32_0 = arith.constant 0 : i32
    %c0_i32_1 = arith.constant 0 : i32
    return %c0_i32, %c0_i32_0 : i32, i32
  }
  func.func @transform_13(%arg0: i32) -> (i32, i32) {
    %c0_i32 = arith.constant 0 : i32
    %c0_i32_0 = arith.constant 0 : i32
    %c0_i32_1 = arith.constant 0 : i32
    return %c0_i32, %c0_i32_0 : i32, i32
  }
  func.func @transform_14(%arg0: i32) -> (i32, i32) {
    %c0_i32 = arith.constant 0 : i32
    %c0_i32_0 = arith.constant 0 : i32
    %c0_i32_1 = arith.constant 0 : i32
    return %c0_i32, %c0_i32_0 : i32, i32
  }
  func.func @transform_15(%arg0: i32) -> (i32, i32) {
    %c0_i32 = arith.constant 0 : i32
    %c0_i32_0 = arith.constant 0 : i32
    %c0_i32_1 = arith.constant 0 : i32
    return %c0_i32, %c0_i32_0 : i32, i32
  }
  func.func @transform_16(%arg0: i32) -> (i32, i32) {
    %c0_i32 = arith.constant 0 : i32
    %c0_i32_0 = arith.constant 0 : i32
    return %arg0, %c0_i32 : i32, i32
  }
}

</mosaic_0001>

<bundles_post_ra>
// kernel: epilepsy_net_forward.1
= control target key start
LH: loop header
LB: loop body
LE: loop exit
PB: predicated region body
PF: predicated region fallthrough
CT: control target
= control target key end

     0   :  { %s17834_s0 = inlined_call_operand.vmem [shape: bf16[2,552,512], index: 0, kind: input, shape index: {}]   ;;  %s17835_s1 = inlined_call_operand.vmem [shape: bf16[512,128], index: 1, kind: input, shape index: {}]   ;;  %s17836_s2 = inlined_call_operand.vmem [shape: bf16[128,128], index: 2, kind: input, shape index: {}]   ;;  %s17837_s3 = inlined_call_operand.vmem [shape: bf16[3,128,128], index: 3, kind: input, shape index: {}]   ;;  %s17838_s4 = inlined_call_operand.vmem [shape: bf16[3,128,256], index: 4, kind: input, shape index: {}]   ;;  %s17839_s5 = inlined_call_operand.vmem [shape: bf16[3,256,512], index: 5, kind: input, shape index: {}]   ;;  %s17840_s6 = inlined_call_operand.vmem [shape: bf16[512,128], index: 6, kind: input, shape index: {}]   ;;  %s17841_s7 = inlined_call_operand.vmem [shape: f32[1,128], index: 7, kind: input, shape index: {}]   ;;  %s17842_s8 = inlined_call_operand.vmem [shape: f32[1,128], index: 8, kind: input, shape index: {}]   ;;  %s17843_s9 = inlined_call_operand.vmem [shape: f32[1,128], index: 9, kind: input, shape index: {}]   ;;  %s17844_s10 = inlined_call_operand.vmem [shape: f32[1,128], index: 10, kind: input, shape index: {}]   ;;  %s17845_s11 = inlined_call_operand.vmem [shape: f32[1,256], index: 11, kind: input, shape index: {}]   ;;  %s17846_s12 = inlined_call_operand.vmem [shape: f32[1,256], index: 12, kind: input, shape index: {}]   ;;  %s17847_s13 = inlined_call_operand.vmem [shape: f32[1,512], index: 13, kind: input, shape index: {}]   ;;  %s17848_s14 = inlined_call_operand.vmem [shape: f32[1,512], index: 14, kind: input, shape index: {}]   ;;  %s17849_s15 = inlined_call_operand.vmem [shape: f32[1,128], index: 15, kind: input, shape index: {}]   ;;  %s17850_s16 = inlined_call_operand.hbm [shape: f32[2,128], index: 16, kind: output, shape index: {}]  }
   0x1   :  { %17851 = sst [smem:[#allocation7_spill]] %s17834_s0 }
   0x2   :  { %21 = vsyncpa [#allocation5], 0  ;;  %s14047_s21 = smov 0  }
   0x3 LB: > { %v13309_v0 = vld [vmem:[%s17836_s2 + $0x38] sm:$0xff]  ;;  %v13308_v4 = vld [vmem:[%s17836_s2 + $0x30] sm:$0xff]  ;;  %s13229_s24 = smul.u32 1104, %s13959_s21  ;;  %v13307_v8 = vld [vmem:[%s17836_s2 + $0x28] sm:$0xff]  ;;  %s17852_s20 = sld [smem:[#allocation7_spill]]  ;;  %vm1413_vm1 = vcmask 1041409   ;;  %s13959_s21 = sphi %s14047_s21, %s59_s21  }
   0x4   : > { %v13269_v1 = vld [vmem:[%s17835_s1 + $0x38] sm:$0xff]  ;;  %360 = vmatpush.bf16.msra.mxu0 %v13309_v0  ;;  %v13268_v5 = vld [vmem:[%s17835_s1 + $0x30] sm:$0xff]  ;;  %v13267_v9 = vld [vmem:[%s17835_s1 + $0x28] sm:$0xff]  ;;  %vm235_vm0 = vsmask.f32 7424  ;;  %vm1415_vm2 = vcmask 1042434  }
   0x5   : > { %v13277_v2 = vld [vmem:[%s17835_s1 + $0x78] sm:$0xff]  ;;  %761 = vmatpush.bf16.msra.mxu1 %v13269_v1  ;;  %v13276_v6 = vld [vmem:[%s17835_s1 + $0x70] sm:$0xff]  ;;  %v13275_v10 = vld [vmem:[%s17835_s1 + $0x68] sm:$0xff]  ;;  %vm1417_vm3 = vcmask 1043459   ;;  %vm1419_vm4 = vcmask 1044484   ;;  %vm1421_vm5 = vcmask 1045509  }
   0x6   : > { %v13285_v3 = vld [vmem:[%s17835_s1 + $0xb8] sm:$0xff]  ;;  %810 = vmatpush.bf16.msra.mxu2 %v13277_v2  ;;  %v13284_v7 = vld [vmem:[%s17835_s1 + $0xb0] sm:$0xff]  ;;  %v13283_v11 = vld [vmem:[%s17835_s1 + $0xa8] sm:$0xff]  ;;  %vm1423_vm6 = vcmask 1046534   ;;  %vm1425_vm7 = vcmask 1047559   ;;  %vm7800_vm8 = vcmask 1043456  }
   0x7   : > { %859 = vmatpush.bf16.msra.mxu3 %v13285_v3  ;;  %v13306_v12 = vld [vmem:[%s17836_s2 + $0x20] sm:$0xff]  ;;  %v13305_v18 = vld [vmem:[%s17836_s2 + $0x18] sm:$0xff]  ;;  %v13304_v27 = vld [vmem:[%s17836_s2 + $0x10] sm:$0xff] }
   0x8   : > { %361 = vmatpush.bf16.msra.mxu0 %v13308_v4  ;;  %v13266_v13 = vld [vmem:[%s17835_s1 + $0x20] sm:$0xff]  ;;  %v13265_v20 = vld [vmem:[%s17835_s1 + $0x18] sm:$0xff]  ;;  %v13264_v28 = vld [vmem:[%s17835_s1 + $0x10] sm:$0xff] }
   0x9   : > { %762 = vmatpush.bf16.msra.mxu1 %v13268_v5  ;;  %s14092_s22 = scalar_lea.vmem %s17852_s20, %s13229_s24  ;;  %v13274_v15 = vld [vmem:[%s17835_s1 + $0x60] sm:$0xff]  ;;  %v13273_v23 = vld [vmem:[%s17835_s1 + $0x58] sm:$0xff]  ;;  %v13272_v29 = vld [vmem:[%s17835_s1 + $0x50] sm:$0xff] }
   0xa   : > { %811 = vmatpush.bf16.msra.mxu2 %v13276_v6  ;;  %v9987_v14 = vld [vmem:[%s14092_s22] sm:$0xf]  ;;  %v13294_v17 = vld [vmem:[%s14092_s22 + $0xc] sm:$0xf0]  ;;  %v13281_v24 = vld [vmem:[%s17835_s1 + $0x98] sm:$0xff] }
   0xb   : > { %860 = vmatpush.bf16.msra.mxu3 %v13284_v7  ;;  %v13282_v16 = vld [vmem:[%s17835_s1 + $0xa0] sm:$0xff]  ;;  %v9988_v19 = vor.u32 %v13294_v17, %v9987_v14  ;;  %v13295_v22 = vld [vmem:[%s14092_s22 + $0x2c] sm:$0xf0]  ;;  %v13303_v31 = vld [vmem:[%s17836_s2 + $0x8] sm:$0xff] }
   0xc   : > { %362 = vmatpush.bf16.msra.mxu0 %v13307_v8  ;;  %v9991_v21 = vld [vmem:[%s14092_s22 + $0x20] sm:$0xf]  ;;  %v13280_v30 = vld [vmem:[%s17835_s1 + $0x90] sm:$0xff]  ;;  %v13263_v32 = vld [vmem:[%s17835_s1 + $0x8] sm:$0xff] }
   0xd   : > { %763 = vmatpush.bf16.msra.mxu1 %v13267_v9  ;;  %v9992_v25 = vor.u32 %v13295_v22, %v9991_v21  ;;  %v239_v26 = vshll.u32 %v9988_v19, 16  ;;  %v237_v33 = vshrl.u32 %v9988_v19, 16  ;;  %v13271_v34 = vld [vmem:[%s17835_s1 + $0x48] sm:$0xff]  ;;  %v13302_v38 = vld [vmem:[%s17836_s2] sm:$0xff]  ;;  %v13232_v45 = vld [vmem:[%s14092_s22 + $0xc] sm:$0xf0] }
   0xe   : > { %812 = vmatpush.bf16.msra.mxu2 %v13275_v10  ;;  %v13279_v37 = vld [vmem:[%s17835_s1 + $0x88] sm:$0xff]  ;;  %v13262_v39 = vld [vmem:[%s17835_s1] sm:$0xff]  ;;  %v10053_v47 = vld [vmem:[%s14092_s22 + $0x10] sm:$0xf0] }
   0xf   : > { %861 = vmatpush.bf16.msra.mxu3 %v13283_v11  ;;  %v241_v35 = vrot.slane %v239_v26, 1  ;;  %v244_v36 = vshll.u32 %v9992_v25, 16  ;;  %v13270_v40 = vld [vmem:[%s17835_s1 + $0x40] sm:$0xff]  ;;  %v10059_v48 = vld [vmem:[%s14092_s22 + $0x8] sm:$0xf]  ;;  %v13293_v57 = vld [vmem:[%s17835_s1 + $0xf8] sm:$0xff] }
  0x10   : > { %363 = vmatpush.bf16.msra.mxu0 %v13306_v12  ;;  %v10051_v41 = vld [vmem:[%s14092_s22] sm:$0xf]  ;;  %v13230_v46 = vld [vmem:[%s14092_s22 + $0x4] sm:$0xf]  ;;  %v13233_v49 = vld [vmem:[%s14092_s22 + $0x14] sm:$0xf0] }
  0x11   : > { %764 = vmatpush.bf16.msra.mxu1 %v13266_v13  ;;  %v13278_v42 = vld [vmem:[%s17835_s1 + $0x80] sm:$0xff]  ;;  %v242_v43 = vor.u32 %v241_v35, %v237_v33  ;;  %v246_v44 = vrot.slane %v244_v36, 1  ;;  %v10052_v50 = vor.u32 %v13232_v45, %v10051_v41  ;;  %v10056_v52 = vor.u32 %v13230_v46, %v10053_v47  ;;  %v13296_v55 = vld [vmem:[%s14092_s22 + $0x4c] sm:$0xf0]  ;;  %v10069_v1 = vld [vmem:[%s14092_s22 + $0x30] sm:$0xf0] }
  0x12   : > { %813 = vmatpush.bf16.msra.mxu2 %v13274_v15  ;;  %v10060_v53 = vor.u32 %v13233_v49, %v10059_v48  ;;  %v9995_v54 = vld [vmem:[%s14092_s22 + $0x40] sm:$0xf]  ;;  %v248_v58 = vshrl.u32 %v9992_v25, 16  ;;  %v13236_v63 = vld [vmem:[%s14092_s22 + $0x2c] sm:$0xf0]  ;;  %v13349_v12 = vld [vmem:[%s17835_s1 + $0x38] sm:$0xff] }
  0x13   : > { %862 = vmatpush.bf16.msra.mxu3 %v13282_v16  ;;  %v247_v51 = vsel %vm235_vm0, %v242_v43, %v246_v44  ;;  %v9996_v56 = vor.u32 %v13296_v55, %v9995_v54  ;;  %v10067_v60 = vld [vmem:[%s14092_s22 + $0x20] sm:$0xf]  ;;  %v13234_v0 = vld [vmem:[%s14092_s22 + $0x24] sm:$0xf]  ;;  %v10075_v2 = vld [vmem:[%s14092_s22 + $0x28] sm:$0xf] }
  0x14   : > { %364 = vmatpush.bf16.msra.mxu0 %v13305_v18  ;;  %v250_v61 = vor.u32 %v248_v58, %v246_v44  ;;  %v13237_v3 = vld [vmem:[%s14092_s22 + $0x34] sm:$0xf0]  ;;  %v10068_v4 = vor.u32 %v13236_v63, %v10067_v60  ;;  %v10072_v6 = vor.u32 %v13234_v0, %v10069_v1  ;;  %v9999_v8 = vld [vmem:[%s14092_s22 + $0x60] sm:$0xf]  ;;  %v13297_v9 = vld [vmem:[%s14092_s22 + $0x6c] sm:$0xf0] }
  0x15   : > { %765 = vmatpush.bf16.msra.mxu1 %v13265_v20  ;;  %v252_v59 = vshll.u32 %v9996_v56, 16  ;;  %v10076_v7 = vor.u32 %v13237_v3, %v10075_v2  ;;  %v10000_v10 = vor.u32 %v13297_v9, %v9999_v8  ;;  %v13292_v11 = vld [vmem:[%s17835_s1 + $0xf0] sm:$0xff]  ;;  %v13357_v13 = vld [vmem:[%s17835_s1 + $0x78] sm:$0xff]  ;;  %v256_v15 = vshrl.u32 %v9996_v56, 16  ;;  %v10083_v18 = vld [vmem:[%s14092_s22 + $0x40] sm:$0xf] }
  0x16   : > { %814 = vmatpush.bf16.msra.mxu2 %v13273_v23  ;;  %v13240_v19 = vld [vmem:[%s14092_s22 + $0x4c] sm:$0xf0]  ;;  %v13238_v20 = vld [vmem:[%s14092_s22 + $0x44] sm:$0xf]  ;;  %v10085_v21 = vld [vmem:[%s14092_s22 + $0x50] sm:$0xf0] }
  0x17   : > { %863 = vmatpush.bf16.msra.mxu3 %v13281_v24  ;;  %v254_v62 = vrot.slane %v252_v59, 1  ;;  %v260_v14 = vshll.u32 %v10000_v10, 16  ;;  %v10091_v22 = vld [vmem:[%s14092_s22 + $0x48] sm:$0xf]  ;;  %v13241_v23 = vld [vmem:[%s14092_s22 + $0x54] sm:$0xf0]  ;;  %v10084_v24 = vor.u32 %v13240_v19, %v10083_v18  ;;  %v10088_v26 = vor.u32 %v13238_v20, %v10085_v21 }
  0x18   : > { %365 = vmatpush.bf16.msra.mxu0 %v13304_v27  ;;  %v10092_v27 = vor.u32 %v13241_v23, %v10091_v22  ;;  %v13348_v33 = vld [vmem:[%s17835_s1 + $0x30] sm:$0xff]  ;;  %v264_v36 = vshrl.u32 %v10000_v10, 16  ;;  %v13242_v41 = vld [vmem:[%s14092_s22 + $0x64] sm:$0xf]  ;;  %v10107_v43 = vld [vmem:[%s14092_s22 + $0x68] sm:$0xf] }
  0x19   : > { %766 = vmatpush.bf16.msra.mxu1 %v13264_v28  ;;  %v255_v5 = vsel %vm235_vm0, %v250_v61, %v254_v62  ;;  %v262_v16 = vrot.slane %v260_v14, 1  ;;  %v258_v17 = vor.u32 %v256_v15, %v254_v62  ;;  %v10003_v28 = vld [vmem:[%s14092_s22 + $0x80] sm:$0xf]  ;;  %v13245_v44 = vld [vmem:[%s14092_s22 + $0x74] sm:$0xf0]  ;;  %v13347_v54 = vld [vmem:[%s17835_s1 + $0x28] sm:$0xff] }
  0x1a   : > { %815 = vmatpush.bf16.msra.mxu2 %v13272_v29  ;;  %v13298_v29 = vld [vmem:[%s14092_s22 + $0x8c] sm:$0xf0]  ;;  %v10108_v48 = vor.u32 %v13245_v44, %v10107_v43  ;;  %v10007_v49 = vld [vmem:[%s14092_s22 + $0xa0] sm:$0xf]  ;;  %v13355_v55 = vld [vmem:[%s17835_s1 + $0x68] sm:$0xff] }
  0x1b   : > { %864 = vmatpush.bf16.msra.mxu3 %v13280_v30  ;;  %v263_v25 = vsel %vm235_vm0, %v258_v17, %v262_v16  ;;  %v10004_v30 = vor.u32 %v13298_v29, %v10003_v28  ;;  %v10115_v60 = vld [vmem:[%s14092_s22 + $0x80] sm:$0xf]  ;;  %v13248_v61 = vld [vmem:[%s14092_s22 + $0x8c] sm:$0xf0]  ;;  %v13246_v62 = vld [vmem:[%s14092_s22 + $0x84] sm:$0xf] }
  0x1c   : > { %366 = vmatpush.bf16.msra.mxu0 %v13303_v31  ;;  %v13389_v31 = vld [vmem:[%s17836_s2 + $0x38] sm:$0xff]  ;;  %v10117_v63 = vld [vmem:[%s14092_s22 + $0x90] sm:$0xf0]  ;;  %v10123_v0 = vld [vmem:[%s14092_s22 + $0x88] sm:$0xf]  ;;  %v10116_v2 = vor.u32 %v13248_v61, %v10115_v60 }
  0x1d   : > { %767 = vmatpush.bf16.msra.mxu1 %v13263_v32  ;;  %v13291_v32 = vld [vmem:[%s17835_s1 + $0xe8] sm:$0xff]  ;;  %v268_v35 = vshll.u32 %v10004_v30, 16  ;;  %v13249_v1 = vld [vmem:[%s14092_s22 + $0x94] sm:$0xf0]  ;;  %v10131_v18 = vld [vmem:[%s14092_s22 + $0xa0] sm:$0xf] }
  0x1e   : > { %816 = vmatpush.bf16.msra.mxu2 %v13271_v34  ;;  %v13356_v34 = vld [vmem:[%s17835_s1 + $0x70] sm:$0xff]  ;;  %v13387_v9 = vld [vmem:[%s17836_s2 + $0x28] sm:$0xff]  ;;  %v13289_v10 = vld [vmem:[%s17835_s1 + $0xd8] sm:$0xff] }
  0x1f   : > { %865 = vmatpush.bf16.msra.mxu3 %v13279_v37  ;;  %v270_v37 = vrot.slane %v268_v35, 1  ;;  %v13252_v19 = vld [vmem:[%s14092_s22 + $0xac] sm:$0xf0]  ;;  %v13250_v20 = vld [vmem:[%s14092_s22 + $0xa4] sm:$0xf]  ;;  %v13351_v43 = vld [vmem:[%s17835_s1 + $0x48] sm:$0xff] }
  0x20   : > { %367 = vmatpush.bf16.msra.mxu0 %v13302_v38  ;;  %v266_v38 = vor.u32 %v264_v36, %v262_v16  ;;  %v10133_v21 = vld [vmem:[%s14092_s22 + $0xb0] sm:$0xf0]  ;;  %v10139_v22 = vld [vmem:[%s14092_s22 + $0xa8] sm:$0xf]  ;;  %v13253_v23 = vld [vmem:[%s14092_s22 + $0xb4] sm:$0xf0] }
  0x21   : > { %768 = vmatpush.bf16.msra.mxu1 %v13262_v39  ;;  %v10099_v39 = vld [vmem:[%s14092_s22 + $0x60] sm:$0xf]  ;;  %v13301_v29 = vld [vmem:[%s14092_s22 + $0xec] sm:$0xf0] }
  0x22   : > { %817 = vmatpush.bf16.msra.mxu2 %v13270_v40  ;;  %v13244_v40 = vld [vmem:[%s14092_s22 + $0x6c] sm:$0xf0]  ;;  %v271_v46 = vsel %vm235_vm0, %v266_v38, %v270_v37  ;;  %v10015_v28 = vld [vmem:[%s14092_s22 + $0xe0] sm:$0xf]  ;;  %v13287_v38 = vld [vmem:[%s17835_s1 + $0xc8] sm:$0xff] }
  0x23   : > { %866 = vmatpush.bf16.msra.mxu3 %v13278_v42  ;;  %368 = vmatmul.bf16.vlgmr.msra.gmra.mxu0 %v247_v51  ;;  %v10101_v42 = vld [vmem:[%s14092_s22 + $0x70] sm:$0xf0]  ;;  %v10100_v45 = vor.u32 %v13244_v40, %v10099_v39  ;;  %v13350_v61 = vld [vmem:[%s17835_s1 + $0x40] sm:$0xff] }
  0x24   : > { %769 = vmatmul.bf16.vlgmr.msra.gmra.mxu1 %v10052_v50  ;;  %908 = vmatpush.bf16.msrb.mxu0 %v13293_v57  ;;  %v10104_v47 = vor.u32 %v13242_v41, %v10101_v42  ;;  %v13299_v50 = vld [vmem:[%s14092_s22 + $0xac] sm:$0xf0]  ;;  %v272_v57 = vshrl.u32 %v10004_v30, 16  ;;  %v10016_v30 = vor.u32 %v13301_v29, %v10015_v28  ;;  %v13383_v41 = vld [vmem:[%s17836_s2 + $0x8] sm:$0xff]  ;;  %v13310_v29 = vld [vmem:[%s14092_s22 + $0x104] sm:$0xf] }
  0x25   : > { %818 = vmatmul.bf16.vlgmr.msra.gmra.mxu2 %v10056_v52  ;;  %1752 = vmatpush.bf16.msrb.mxu1 %v13389_v31  ;;  %v10008_v51 = vor.u32 %v13299_v50, %v10007_v49  ;;  %v13388_v52 = vld [vmem:[%s17836_s2 + $0x30] sm:$0xff]  ;;  %v13385_v31 = vld [vmem:[%s17836_s2 + $0x18] sm:$0xff]  ;;  %v13343_v42 = vld [vmem:[%s17835_s1 + $0x8] sm:$0xff] }
  0x26   : > { %867 = vmatmul.bf16.vlgmr.msra.gmra.mxu3 %v10060_v53  ;;  %2153 = vmatpush.bf16.msrb.mxu2 %v13349_v12  ;;  %v13290_v53 = vld [vmem:[%s17835_s1 + $0xe0] sm:$0xff]  ;;  %v274_v59 = vor.u32 %v272_v57, %v270_v37  ;;  %v13384_v35 = vld [vmem:[%s17836_s2 + $0x10] sm:$0xff]  ;;  %v292_v39 = vshll.u32 %v10016_v30, 16 }
  0x27   : > { %2202 = vmatpush.bf16.msrb.mxu3 %v13357_v13  ;;  %v276_v56 = vshll.u32 %v10008_v51, 16  ;;  %v13354_v12 = vld [vmem:[%s17835_s1 + $0x60] sm:$0xff]  ;;  %v280_v15 = vshrl.u32 %v10008_v51, 16  ;;  %v13344_v36 = vld [vmem:[%s17835_s1 + $0x10] sm:$0xff]  ;;  %v10155_v51 = vld [vmem:[%s14092_s22 + $0xc8] sm:$0xf] }
  0x28   : > { %909 = vmatpush.bf16.msrb.mxu0 %v13292_v11  ;;  %v13346_v11 = vld [vmem:[%s17835_s1 + $0x20] sm:$0xff]  ;;  %v13352_v37 = vld [vmem:[%s17835_s1 + $0x50] sm:$0xff]  ;;  %v294_v44 = vrot.slane %v292_v39, 1 }
  0x29   : > { %1753 = vmatpush.bf16.msrb.mxu1 %v13388_v52  ;;  %v278_v58 = vrot.slane %v276_v56, 1  ;;  %v13386_v13 = vld [vmem:[%s17836_s2 + $0x20] sm:$0xff]  ;;  %v10149_v50 = vld [vmem:[%s14092_s22 + $0xd0] sm:$0xf0]  ;;  %v13257_v52 = vld [vmem:[%s14092_s22 + $0xd4] sm:$0xf0] }
  0x2a   : > { %2154 = vmatpush.bf16.msrb.mxu2 %v13348_v33  ;;  %v13353_v33 = vld [vmem:[%s17835_s1 + $0x58] sm:$0xff]  ;;  %v175_v49 = vld [vmem:[%s14092_s22 + $0x100] sm:$0x1]  ;;  %v10156_v60 = vor.u32 %v13257_v52, %v10155_v51  ;;  %v13312_v28 = vld [vmem:[%s14092_s22 + $0x10c] sm:$0xf0] }
  0x2b   : > { %2203 = vmatpush.bf16.msrb.mxu3 %v13356_v34  ;;  %v279_v3 = vsel %vm235_vm0, %v274_v59, %v278_v58  ;;  %v282_v17 = vor.u32 %v280_v15, %v278_v58  ;;  %v13288_v34 = vld [vmem:[%s17835_s1 + $0xd0] sm:$0xff]  ;;  %v13382_v56 = vld [vmem:[%s17836_s2] sm:$0xff]  ;;  %v13235_v51 = vld [vmem:[%s14092_s22 + $0x2c] sm:$0xf] }
  0x2c   : > { %910 = vmatpush.bf16.msrb.mxu0 %v13291_v32  ;;  %v13345_v32 = vld [vmem:[%s17835_s1 + $0x18] sm:$0xff]  ;;  %v13342_v57 = vld [vmem:[%s17835_s1] sm:$0xff]  ;;  %v13376_v39 = vld [vmem:[%s14092_s22 + $0x14c] sm:$0xf0] }
  0x2d   : > { %1754 = vmatpush.bf16.msrb.mxu1 %v13387_v9  ;;  %v10371_v9 = vld [vmem:[%s14092_s22 + $0x100] sm:$0xf]  ;;  %v10077_v52 = vld [vmem:[%s14092_s22 + $0x38] sm:$0xf0] }
  0x2e   : > { %2155 = vmatpush.bf16.msrb.mxu2 %v13347_v54  ;;  %v225_v54 = vunpack.c.l.b16 %v175_v49 }
  0x2f   : > { %2204 = vmatpush.bf16.msrb.mxu3 %v13355_v55  ;;  %v13286_v55 = vld [vmem:[%s17835_s1 + $0xc0] sm:$0xff] }
  0x30   : > { %911 = vmatpush.bf16.msrb.mxu0 %v13290_v53 }
  0x31   : > { %1755 = vmatpush.bf16.msrb.mxu1 %v13386_v13 }
  0x32   : > { %2156 = vmatpush.bf16.msrb.mxu2 %v13346_v11 }
  0x33   : > { %373 = vmatmul.bf16.gmra.mxu0 %v255_v5  ;;  %v10124_v5 = vor.u32 %v13249_v1, %v10123_v0  ;;  %2205 = vmatpush.bf16.msrb.mxu3 %v13354_v12  ;;  %v296_v0 = vshrl.u32 %v10016_v30, 16  ;;  %v10437_v30 = vld [vmem:[%s14092_s22 + $0x110] sm:$0xf0] }
  0x34   : > { %774 = vmatmul.bf16.gmra.mxu1 %v10068_v4  ;;  %v10120_v4 = vor.u32 %v13246_v62, %v10117_v63  ;;  %912 = vmatpush.bf16.msrb.mxu0 %v13289_v10  ;;  %v234_v62 = vpack.c.b16 %v225_v54, %v225_v54  ;;  %v13374_v10 = vld [vmem:[%s14092_s22 + $0x10c] sm:$0xf0] }
  0x35   : > { %823 = vmatmul.bf16.gmra.mxu2 %v10072_v6  ;;  %v10011_v6 = vld [vmem:[%s14092_s22 + $0xc0] sm:$0xf]  ;;  %1756 = vmatpush.bf16.msrb.mxu1 %v13385_v31  ;;  %v10372_v15 = vor.u32 %v13374_v10, %v10371_v9 }
  0x36   : > { %872 = vmatmul.bf16.gmra.mxu3 %v10076_v7  ;;  %v13300_v7 = vld [vmem:[%s14092_s22 + $0xcc] sm:$0xf0]  ;;  %2157 = vmatpush.bf16.msrb.mxu2 %v13345_v32  ;;  %v300_v63 = vshll.u32 %v234_v62, 16 }
  0x37   : > { %v10012_v8 = vor.u32 %v13300_v7, %v10011_v6  ;;  %2206 = vmatpush.bf16.msrb.mxu3 %v13353_v33  ;;  %v10165_v6 = vld [vmem:[%s14092_s22 + $0xf0] sm:$0xf0]  ;;  %v10171_v7 = vld [vmem:[%s14092_s22 + $0xe8] sm:$0xf] }
  0x38   : > { %913 = vmatpush.bf16.msrb.mxu0 %v13288_v34  ;;  %v302_v1 = vrot.slane %v300_v63, 1 }
  0x39   : > { %v284_v14 = vshll.u32 %v10012_v8, 16  ;;  %v288_v40 = vshrl.u32 %v10012_v8, 16  ;;  %1757 = vmatpush.bf16.msrb.mxu1 %v13384_v35  ;;  %v13261_v8 = vld [vmem:[%s14092_s22 + $0xf4] sm:$0xf0] }
  0x3a   : > { %2158 = vmatpush.bf16.msrb.mxu2 %v13344_v36  ;;  %v10440_v36 = vor.u32 %v13310_v29, %v10437_v30 }
  0x3b   : > { %v286_v16 = vrot.slane %v284_v14, 1  ;;  %2207 = vmatpush.bf16.msrb.mxu3 %v13352_v37  ;;  %v10172_v14 = vor.u32 %v13261_v8, %v10171_v7 }
  0x3c   : > { %914 = vmatpush.bf16.msrb.mxu0 %v13287_v38  ;;  %v10379_v38 = vld [vmem:[%s14092_s22 + $0x140] sm:$0xf] }
  0x3d   : > { %1758 = vmatpush.bf16.msrb.mxu1 %v13383_v41 }
  0x3e   : > { %2159 = vmatpush.bf16.msrb.mxu2 %v13343_v42 }
  0x3f   : > { %2208 = vmatpush.bf16.msrb.mxu3 %v13351_v43 }
  0x40   : > { %915 = vmatpush.bf16.msrb.mxu0 %v13286_v55  ;;  %v10451_v55 = vld [vmem:[%s14092_s22 + $0x120] sm:$0xf] }
  0x41   : > { %1759 = vmatpush.bf16.msrb.mxu1 %v13382_v56  ;;  %v13316_v56 = vld [vmem:[%s14092_s22 + $0x12c] sm:$0xf0] }
  0x42   : > { %2160 = vmatpush.bf16.msrb.mxu2 %v13342_v57  ;;  %v13314_v57 = vld [vmem:[%s14092_s22 + $0x124] sm:$0xf] }
  0x43   : > { %378 = vmatmul.bf16.gmra.mxu0 %v263_v25  ;;  %v287_v25 = vsel %vm235_vm0, %v282_v17, %v286_v16  ;;  %2209 = vmatpush.bf16.msrb.mxu3 %v13350_v61  ;;  %v13375_v17 = vld [vmem:[%s14092_s22 + $0x12c] sm:$0xf0]  ;;  %v10080_v61 = vor.u32 %v13235_v51, %v10077_v52 }
  0x44   : > { %779 = vmatmul.bf16.gmra.mxu1 %v10084_v24  ;;  %v10132_v24 = vor.u32 %v13252_v19, %v10131_v18  ;;  %v1631_v19 = vshll.u32 %v10372_v15, 16 }
  0x45   : > { %828 = vmatmul.bf16.gmra.mxu2 %v10088_v26  ;;  %v10136_v26 = vor.u32 %v13250_v20, %v10133_v21  ;;  %v1629_v20 = vshrl.u32 %v10372_v15, 16 }
  0x46   : > { %877 = vmatmul.bf16.gmra.mxu3 %v10092_v27  ;;  %v10140_v27 = vor.u32 %v13253_v23, %v10139_v22  ;;  %v1633_v21 = vrot.slane %v1631_v19, 1  ;;  %v13231_v23 = vld [vmem:[%s14092_s22 + $0xc] sm:$0xf] }
  0x47   : > { %v13239_v19 = vld [vmem:[%s14092_s22 + $0x4c] sm:$0xf] }
  0x53   : > { %383 = vmatmul.bf16.gmra.mxu0 %v271_v46  ;;  %v290_v46 = vor.u32 %v288_v40, %v286_v16  ;;  %v10375_v16 = vld [vmem:[%s14092_s22 + $0x120] sm:$0xf]  ;;  %v10380_v40 = vor.u32 %v13376_v39, %v10379_v38  ;;  %v13378_v38 = vld [vmem:[%s14092_s22 + $0x18c] sm:$0xf0] }
  0x54   : > { %784 = vmatmul.bf16.gmra.mxu1 %v10100_v45  ;;  %v10147_v45 = vld [vmem:[%s14092_s22 + $0xc0] sm:$0xf]  ;;  %v10376_v18 = vor.u32 %v13375_v17, %v10375_v16 }
  0x55   : > { %833 = vmatmul.bf16.gmra.mxu2 %v10104_v47  ;;  %v13256_v47 = vld [vmem:[%s14092_s22 + $0xcc] sm:$0xf0]  ;;  %v295_v58 = vsel %vm235_vm0, %v290_v46, %v294_v44 }
  0x56   : > { %882 = vmatmul.bf16.gmra.mxu3 %v10108_v48  ;;  %v13254_v48 = vld [vmem:[%s14092_s22 + $0xc4] sm:$0xf]  ;;  %v10148_v53 = vor.u32 %v13256_v47, %v10147_v45  ;;  %v1636_v22 = vshll.u32 %v10376_v18, 16  ;;  %v1640_v46 = vshrl.u32 %v10376_v18, 16  ;;  %v1644_v47 = vshll.u32 %v10380_v40, 16  ;;  %v13364_v18 = vld [vmem:[%s17835_s1 + $0xb0] sm:$0xff] }
  0x57   : > { %v10152_v59 = vor.u32 %v13254_v48, %v10149_v50  ;;  %v13365_v50 = vld [vmem:[%s17835_s1 + $0xb8] sm:$0xff] }
  0x58   : > { %v1646_v54 = vrot.slane %v1644_v47, 1  ;;  %2251 = vmatpush.bf16.msra.mxu0 %v13365_v50 }
  0x5c   : > { %2252 = vmatpush.bf16.msra.mxu0 %v13364_v18 }
  0x63   : > { %388 = vmatmul.bf16.gmra.mxu0 %v279_v3  ;;  %v13260_v3 = vld [vmem:[%s14092_s22 + $0xec] sm:$0xf0] }
  0x64   : > { %789 = vmatmul.bf16.gmra.mxu1 %v10116_v2  ;;  %v10163_v2 = vld [vmem:[%s14092_s22 + $0xe0] sm:$0xf] }
  0x65   : > { %838 = vmatmul.bf16.gmra.mxu2 %v10120_v4  ;;  %v298_v4 = vor.u32 %v296_v0, %v294_v44  ;;  %v10164_v11 = vor.u32 %v13260_v3, %v10163_v2  ;;  %v10452_v2 = vor.u32 %v13316_v56, %v10451_v55  ;;  %v13243_v55 = vld [vmem:[%s14092_s22 + $0x6c] sm:$0xf]  ;;  %v10109_v56 = vld [vmem:[%s14092_s22 + $0x78] sm:$0xf0] }
  0x66   : > { %887 = vmatmul.bf16.gmra.mxu3 %v10124_v5  ;;  %v13258_v5 = vld [vmem:[%s14092_s22 + $0xe4] sm:$0xf] }
  0x67   : > { %v303_v12 = vsel %vm235_vm0, %v298_v4, %v302_v1  ;;  %v10168_v13 = vor.u32 %v13258_v5, %v10165_v6  ;;  %v10383_v5 = vld [vmem:[%s14092_s22 + $0x160] sm:$0xf]  ;;  %v13377_v6 = vld [vmem:[%s14092_s22 + $0x16c] sm:$0xf0] }
  0x68   : > { %v10384_v8 = vor.u32 %v13377_v6, %v10383_v5 }
  0x6a   : > { %v1652_v15 = vshll.u32 %v10384_v8, 16  ;;  %v1656_v50 = vshrl.u32 %v10384_v8, 16 }
  0x73   : > { %393 = vmatmul.bf16.gmra.mxu0 %v287_v25  ;;  %v1634_v25 = vor.u32 %v1633_v21, %v1629_v20  ;;  %v10093_v20 = vld [vmem:[%s14092_s22 + $0x58] sm:$0xf0] }
  0x74   : > { %794 = vmatmul.bf16.gmra.mxu1 %v10132_v24  ;;  %v10061_v24 = vld [vmem:[%s14092_s22 + $0x18] sm:$0xf0]  ;;  %v10096_v29 = vor.u32 %v13239_v19, %v10093_v20 }
  0x75   : > { %843 = vmatmul.bf16.gmra.mxu2 %v10136_v26  ;;  %v1638_v26 = vrot.slane %v1636_v22, 1  ;;  %v10064_v31 = vor.u32 %v13231_v23, %v10061_v24  ;;  %v1654_v22 = vrot.slane %v1652_v15, 1  ;;  %v10467_v23 = vld [vmem:[%s14092_s22 + $0x140] sm:$0xf]  ;;  %v13320_v24 = vld [vmem:[%s14092_s22 + $0x14c] sm:$0xf0] }
  0x76   : > { %892 = vmatmul.bf16.gmra.mxu3 %v10140_v27  ;;  %v10435_v27 = vld [vmem:[%s14092_s22 + $0x100] sm:$0xf] }
  0x77   : > { %v1639_v34 = vsel %vm235_vm0, %v1634_v25, %v1638_v26  ;;  %v10436_v35 = vor.u32 %v13312_v28, %v10435_v27  ;;  %v13318_v25 = vld [vmem:[%s14092_s22 + $0x144] sm:$0xf] }
  0x83   : > { %398 = vmatmul.bf16.gmra.mxu0 %v295_v58  ;;  %v10453_v58 = vld [vmem:[%s14092_s22 + $0x130] sm:$0xf0] }
  0x84   : > { %799 = vmatmul.bf16.gmra.mxu1 %v10148_v53  ;;  %v1642_v53 = vor.u32 %v1640_v46, %v1638_v26  ;;  %v10456_v3 = vor.u32 %v13314_v57, %v10453_v58  ;;  %v10469_v26 = vld [vmem:[%s14092_s22 + $0x150] sm:$0xf0]  ;;  %v1658_v57 = vor.u32 %v1656_v50, %v1654_v22 }
  0x85   : > { %848 = vmatmul.bf16.gmra.mxu2 %v10152_v59 }
  0x86   : > { %897 = vmatmul.bf16.gmra.mxu3 %v10156_v60  ;;  %v1647_v1 = vsel %vm235_vm0, %v1642_v53, %v1646_v54 }
  0x93   : > { %403 = vmatmul.bf16.gmra.mxu0 %v303_v12 }
  0x94   : > { %804 = vmatmul.bf16.gmra.mxu1 %v10164_v11 }
  0x95   : > { %853 = vmatmul.bf16.gmra.mxu2 %v10168_v13 }
  0x96   : > { %902 = vmatmul.bf16.gmra.mxu3 %v10172_v14  ;;  %v1648_v14 = vshrl.u32 %v10380_v40, 16  ;;  %v13469_v40 = vld [vmem:[%s17836_s2 + $0x38] sm:$0xff] }
  0x97   : > { %3137 = vmatpush.bf16.msra.mxu2 %v13469_v40 }
  0x98   : > { %v1650_v21 = vor.u32 %v1648_v14, %v1646_v54  ;;  %v13363_v54 = vld [vmem:[%s17835_s1 + $0xa8] sm:$0xff]  ;;  %v13428_v14 = vld [vmem:[%s17835_s1 + $0x30] sm:$0xff] }
  0x99   : > { %2253 = vmatpush.bf16.msra.mxu0 %v13363_v54 }
  0xa0   : > { %v369_v32 = vpop.f32.mrf.mxu0 }
  0xa1   : > { %v770_v33 = vpop.f32.mrf.mxu1 }
  0xa2   : > { %v771_v37 = vadd.f32 %v770_v33, %v369_v32  ;;  %v1655_v33 = vsel %vm235_vm0, %v1650_v21, %v1654_v22 }
  0xa3   : > { %916 = vmatmul.bf16.vlgmr.msrb.gmra.mxu0 %v10064_v31 }
  0xa4   : > { %1760 = vmatmul.bf16.vlgmr.msrb.gmra.mxu1 %v1639_v34  ;;  %v10468_v34 = vor.u32 %v13320_v24, %v10467_v23 }
  0xa5   : > { %2161 = vmatmul.bf16.vlgmr.msrb.gmra.mxu2 %v10436_v35  ;;  %v10472_v35 = vor.u32 %v13318_v25, %v10469_v26 }
  0xa6   : > { %2210 = vmatmul.bf16.vlgmr.msrb.gmra.mxu3 %v10440_v36 }
  0xa8   : > { %v819_v41 = vpop.f32.mrf.mxu2  ;;  %v371_v44 = vpop.f32.mrf.mxu0 }
  0xa9   : > { %v868_v42 = vpop.f32.mrf.mxu3  ;;  %v820_v43 = vadd.f32 %v819_v41, %v771_v37  ;;  %v772_v45 = vpop.f32.mrf.mxu1  ;;  %v10387_v37 = vld [vmem:[%s14092_s22 + $0x180] sm:$0xf]  ;;  %v13429_v41 = vld [vmem:[%s17835_s1 + $0x38] sm:$0xff] }
  0xaa   : > { %v773_v48 = vadd.f32 %v772_v45, %v371_v44  ;;  %3538 = vmatpush.bf16.msra.mxu3 %v13429_v41 }
  0xab   : > { %v14336_v49 = vadd.f32 %v868_v42, %v820_v43  ;;  %v10388_v42 = vor.u32 %v13378_v38, %v10387_v37  ;;  %v13373_v43 = vld [vmem:[%s17835_s1 + $0xf8] sm:$0xff] }
  0xac   : > { %2300 = vmatpush.bf16.msra.mxu1 %v13373_v43 }
  0xad   : > { %v1660_v51 = vshll.u32 %v10388_v42, 16  ;;  %v1664_v23 = vshrl.u32 %v10388_v42, 16 }
  0xae   : > { %3539 = vmatpush.bf16.msra.mxu3 %v13428_v14 }
  0xaf   : > { %v1662_v58 = vrot.slane %v1660_v51, 1  ;;  %v13467_v51 = vld [vmem:[%s17836_s2 + $0x28] sm:$0xff] }
  0xb0   : > { %v821_v59 = vpop.f32.mrf.mxu2  ;;  %v374_v63 = vpop.f32.mrf.mxu0 }
  0xb1   : > { %v870_v60 = vpop.f32.mrf.mxu3  ;;  %v822_v62 = vadd.f32 %v821_v59, %v773_v48  ;;  %v775_v0 = vpop.f32.mrf.mxu1  ;;  %v10483_v59 = vld [vmem:[%s14092_s22 + $0x160] sm:$0xf]  ;;  %v1663_v5 = vsel %vm235_vm0, %v1658_v57, %v1662_v58 }
  0xb2   : > { %v776_v4 = vadd.f32 %v775_v0, %v374_v63 }
  0xb3   : > { %v14350_v7 = vadd.f32 %v870_v60, %v822_v62  ;;  %921 = vmatmul.bf16.gmra.mxu0 %v10080_v61  ;;  %v13324_v60 = vld [vmem:[%s14092_s22 + $0x16c] sm:$0xf0]  ;;  %v13322_v61 = vld [vmem:[%s14092_s22 + $0x164] sm:$0xf]  ;;  %v10485_v62 = vld [vmem:[%s14092_s22 + $0x170] sm:$0xf0] }
  0xb4   : > { %1765 = vmatmul.bf16.gmra.mxu1 %v1647_v1  ;;  %v10112_v1 = vor.u32 %v13243_v55, %v10109_v56  ;;  %v10484_v6 = vor.u32 %v13324_v60, %v10483_v59  ;;  %v10488_v8 = vor.u32 %v13322_v61, %v10485_v62  ;;  %v13371_v55 = vld [vmem:[%s17835_s1 + $0xe8] sm:$0xff] }
  0xb5   : > { %2166 = vmatmul.bf16.gmra.mxu2 %v10452_v2 }
  0xb6   : > { %2215 = vmatmul.bf16.gmra.mxu3 %v10456_v3 }
  0xb8   : > { %v824_v9 = vpop.f32.mrf.mxu2  ;;  %v376_v12 = vpop.f32.mrf.mxu0 }
  0xb9   : > { %v873_v10 = vpop.f32.mrf.mxu3  ;;  %v825_v11 = vadd.f32 %v824_v9, %v776_v4  ;;  %v777_v13 = vpop.f32.mrf.mxu1 }
  0xba   : > { %v778_v16 = vadd.f32 %v777_v13, %v376_v12  ;;  %v13468_v13 = vld [vmem:[%s17836_s2 + $0x30] sm:$0xff] }
  0xbb   : > { %v14352_v17 = vadd.f32 %v873_v10, %v825_v11  ;;  %v10391_v10 = vld [vmem:[%s14092_s22 + $0x1a0] sm:$0xf]  ;;  %v13379_v11 = vld [vmem:[%s14092_s22 + $0x1ac] sm:$0xf0]  ;;  %3138 = vmatpush.bf16.msra.mxu2 %v13468_v13 }
  0xbc   : > { %v10392_v15 = vor.u32 %v13379_v11, %v10391_v10  ;;  %v10517_v10 = vld [vmem:[%s14092_s22 + $0x1b0] sm:$0xf0] }
  0xbe   : > { %v1668_v24 = vshll.u32 %v10392_v15, 16  ;;  %v1672_v61 = vshrl.u32 %v10392_v15, 16  ;;  %v13466_v15 = vld [vmem:[%s17836_s2 + $0x20] sm:$0xff] }
  0xbf   : > { %3139 = vmatpush.bf16.msra.mxu2 %v13467_v51  ;;  %v13367_v51 = vld [vmem:[%s17835_s1 + $0xc8] sm:$0xff] }
  0xc0   : > { %v826_v27 = vpop.f32.mrf.mxu2  ;;  %v379_v31 = vpop.f32.mrf.mxu0 }
  0xc1   : > { %v875_v28 = vpop.f32.mrf.mxu3  ;;  %v827_v30 = vadd.f32 %v826_v27, %v778_v16  ;;  %v780_v32 = vpop.f32.mrf.mxu1  ;;  %v13372_v16 = vld [vmem:[%s17835_s1 + $0xf0] sm:$0xff]  ;;  %v13362_v27 = vld [vmem:[%s17835_s1 + $0xa0] sm:$0xff] }
  0xc2   : > { %v781_v36 = vadd.f32 %v780_v32, %v379_v31  ;;  %2301 = vmatpush.bf16.msra.mxu1 %v13372_v16  ;;  %v1670_v31 = vrot.slane %v1668_v24, 1  ;;  %v10499_v32 = vld [vmem:[%s14092_s22 + $0x180] sm:$0xf]  ;;  %2254 = vmatpush.bf16.msra.mxu0 %v13362_v27  ;;  %v13381_v27 = vld [vmem:[%s14092_s22 + $0x1ec] sm:$0xf0] }
  0xc3   : > { %v14366_v39 = vadd.f32 %v875_v28, %v827_v30  ;;  %926 = vmatmul.bf16.gmra.mxu0 %v10096_v29  ;;  %v13247_v28 = vld [vmem:[%s14092_s22 + $0x8c] sm:$0xf]  ;;  %v10125_v29 = vld [vmem:[%s14092_s22 + $0x98] sm:$0xf0]  ;;  %v1666_v30 = vor.u32 %v1664_v23, %v1662_v58  ;;  %v13370_v16 = vld [vmem:[%s17835_s1 + $0xe0] sm:$0xff]  ;;  %3140 = vmatpush.bf16.msra.mxu2 %v13466_v15 }
  0xc4   : > { %1770 = vmatmul.bf16.gmra.mxu1 %v1655_v33  ;;  %v13328_v33 = vld [vmem:[%s14092_s22 + $0x18c] sm:$0xf0]  ;;  %v10128_v38 = vor.u32 %v13247_v28, %v10125_v29 }
  0xc5   : > { %2171 = vmatmul.bf16.gmra.mxu2 %v10468_v34  ;;  %v13326_v34 = vld [vmem:[%s14092_s22 + $0x184] sm:$0xf]  ;;  %v1671_v43 = vsel %vm235_vm0, %v1666_v30, %v1670_v31 }
  0xc6   : > { %2220 = vmatmul.bf16.gmra.mxu3 %v10472_v35  ;;  %v10501_v35 = vld [vmem:[%s14092_s22 + $0x190] sm:$0xf0]  ;;  %2302 = vmatpush.bf16.msra.mxu1 %v13371_v55 }
  0xc8   : > { %v829_v44 = vpop.f32.mrf.mxu2  ;;  %v381_v47 = vpop.f32.mrf.mxu0 }
  0xc9   : > { %v878_v45 = vpop.f32.mrf.mxu3  ;;  %v830_v46 = vadd.f32 %v829_v44, %v781_v36  ;;  %v782_v48 = vpop.f32.mrf.mxu1  ;;  %v10500_v44 = vor.u32 %v13328_v33, %v10499_v32  ;;  %v13465_v32 = vld [vmem:[%s17836_s2 + $0x18] sm:$0xff] }
  0xca   : > { %v783_v52 = vadd.f32 %v782_v48, %v381_v47  ;;  %v10395_v47 = vld [vmem:[%s14092_s22 + $0x1c0] sm:$0xf]  ;;  %v13380_v48 = vld [vmem:[%s14092_s22 + $0x1cc] sm:$0xf0]  ;;  %2303 = vmatpush.bf16.msra.mxu1 %v13370_v16  ;;  %v13425_v33 = vld [vmem:[%s17835_s1 + $0x18] sm:$0xff]  ;;  %3141 = vmatpush.bf16.msra.mxu2 %v13465_v32 }
  0xcb   : > { %v14377_v53 = vadd.f32 %v878_v45, %v830_v46  ;;  %v10504_v45 = vor.u32 %v13326_v34, %v10501_v35  ;;  %v14424_v54 = vor.u32 %v13380_v48, %v10395_v47  ;;  %v13359_v48 = vld [vmem:[%s17835_s1 + $0x88] sm:$0xff]  ;;  %v13422_v16 = vld [vmem:[%s17835_s1] sm:$0xff] }
  0xcd   : > { %v1676_v62 = vshll.u32 %v14424_v54, 16 }
  0xd0   : > { %v831_v63 = vpop.f32.mrf.mxu2  ;;  %v384_v3 = vpop.f32.mrf.mxu0 }
  0xd1   : > { %v880_v0 = vpop.f32.mrf.mxu3  ;;  %v832_v2 = vadd.f32 %v831_v63, %v783_v52  ;;  %v785_v4 = vpop.f32.mrf.mxu1  ;;  %v13427_v52 = vld [vmem:[%s17835_s1 + $0x28] sm:$0xff] }
  0xd2   : > { %v786_v9 = vadd.f32 %v785_v4, %v384_v3  ;;  %3540 = vmatpush.bf16.msra.mxu3 %v13427_v52  ;;  %v10141_v3 = vld [vmem:[%s14092_s22 + $0xb8] sm:$0xf0]  ;;  %v1674_v4 = vor.u32 %v1672_v61, %v1670_v31  ;;  %v13463_v52 = vld [vmem:[%s17836_s2 + $0x8] sm:$0xff]  ;;  %v13334_v61 = vld [vmem:[%s14092_s22 + $0x1c4] sm:$0xf] }
  0xd3   : > { %v14391_v12 = vadd.f32 %v880_v0, %v832_v2  ;;  %931 = vmatmul.bf16.gmra.mxu0 %v10112_v1  ;;  %v13361_v1 = vld [vmem:[%s17835_s1 + $0x98] sm:$0xff]  ;;  %v13251_v2 = vld [vmem:[%s14092_s22 + $0xac] sm:$0xf] }
  0xd4   : > { %1775 = vmatmul.bf16.gmra.mxu1 %v1663_v5  ;;  %v1678_v5 = vrot.slane %v1676_v62, 1  ;;  %2255 = vmatpush.bf16.msra.mxu0 %v13361_v1  ;;  %v10144_v14 = vor.u32 %v13251_v2, %v10141_v3  ;;  %v13369_v31 = vld [vmem:[%s17835_s1 + $0xd8] sm:$0xff]  ;;  %v10533_v62 = vld [vmem:[%s14092_s22 + $0x1d0] sm:$0xf0] }
  0xd5   : > { %2176 = vmatmul.bf16.gmra.mxu2 %v10484_v6  ;;  %v10515_v6 = vld [vmem:[%s14092_s22 + $0x1a0] sm:$0xf]  ;;  %2304 = vmatpush.bf16.msra.mxu1 %v13369_v31 }
  0xd6   : > { %2225 = vmatmul.bf16.gmra.mxu3 %v10488_v8  ;;  %v13332_v8 = vld [vmem:[%s14092_s22 + $0x1ac] sm:$0xf0] }
  0xd7   : > { %v10516_v23 = vor.u32 %v13332_v8, %v10515_v6  ;;  %v13366_v6 = vld [vmem:[%s17835_s1 + $0xc0] sm:$0xff] }
  0xd8   : > { %v834_v18 = vpop.f32.mrf.mxu2  ;;  %v386_v21 = vpop.f32.mrf.mxu0  ;;  %v13462_v8 = vld [vmem:[%s17836_s2] sm:$0xff] }
  0xd9   : > { %v883_v19 = vpop.f32.mrf.mxu3  ;;  %v835_v20 = vadd.f32 %v834_v18, %v786_v9  ;;  %v787_v22 = vpop.f32.mrf.mxu1  ;;  %v13330_v9 = vld [vmem:[%s14092_s22 + $0x1a4] sm:$0xf] }
  0xda   : > { %v788_v25 = vadd.f32 %v787_v22, %v386_v21  ;;  %v13426_v18 = vld [vmem:[%s17835_s1 + $0x20] sm:$0xff]  ;;  %v1679_v22 = vsel %vm235_vm0, %v1674_v4, %v1678_v5  ;;  %v10520_v24 = vor.u32 %v13330_v9, %v10517_v10 }
  0xdb   : > { %v14402_v26 = vadd.f32 %v883_v19, %v835_v20  ;;  %3541 = vmatpush.bf16.msra.mxu3 %v13426_v18 }
  0xdf   : > { %3542 = vmatpush.bf16.msra.mxu3 %v13425_v33  ;;  %v13259_v33 = vld [vmem:[%s14092_s22 + $0xec] sm:$0xf] }
  0xe0   : > { %v836_v36 = vpop.f32.mrf.mxu2  ;;  %v389_v41 = vpop.f32.mrf.mxu0 }
  0xe1   : > { %v885_v37 = vpop.f32.mrf.mxu3  ;;  %v837_v40 = vadd.f32 %v836_v36, %v788_v25  ;;  %v790_v42 = vpop.f32.mrf.mxu1  ;;  %v10399_v25 = vld [vmem:[%s14092_s22 + $0x1e0] sm:$0xf]  ;;  %v1680_v36 = vshrl.u32 %v14424_v54, 16  ;;  %v13255_v54 = vld [vmem:[%s14092_s22 + $0xcc] sm:$0xf] }
  0xe2   : > { %v791_v46 = vadd.f32 %v790_v42, %v389_v41  ;;  %v14455_v30 = vor.u32 %v13381_v27, %v10399_v25  ;;  %v13464_v41 = vld [vmem:[%s17836_s2 + $0x10] sm:$0xff] }
  0xe3   : > { %v14416_v50 = vadd.f32 %v885_v37, %v837_v40  ;;  %936 = vmatmul.bf16.gmra.mxu0 %v10128_v38  ;;  %v13360_v38 = vld [vmem:[%s17835_s1 + $0x90] sm:$0xff]  ;;  %3142 = vmatpush.bf16.msra.mxu2 %v13464_v41  ;;  %v1682_v55 = vor.u32 %v1680_v36, %v1678_v5  ;;  %v13358_v5 = vld [vmem:[%s17835_s1 + $0x80] sm:$0xff] }
  0xe4   : > { %1780 = vmatmul.bf16.gmra.mxu1 %v1671_v43  ;;  %v1684_v37 = vshll.u32 %v14455_v30, 16  ;;  %v13368_v40 = vld [vmem:[%s17835_s1 + $0xd0] sm:$0xff]  ;;  %2256 = vmatpush.bf16.msra.mxu0 %v13360_v38  ;;  %v1688_v27 = vshrl.u32 %v14455_v30, 16 }
  0xe5   : > { %2181 = vmatmul.bf16.gmra.mxu2 %v10500_v44  ;;  %2305 = vmatpush.bf16.msra.mxu1 %v13368_v40  ;;  %v13340_v38 = vld [vmem:[%s14092_s22 + $0x1ec] sm:$0xf0]  ;;  %v13338_v40 = vld [vmem:[%s14092_s22 + $0x1e4] sm:$0xf]  ;;  %v10549_v41 = vld [vmem:[%s14092_s22 + $0x1f0] sm:$0xf0] }
  0xe6   : > { %2230 = vmatmul.bf16.gmra.mxu3 %v10504_v45  ;;  %v13424_v45 = vld [vmem:[%s17835_s1 + $0x10] sm:$0xff] }
  0xe7   : > { %3543 = vmatpush.bf16.msra.mxu3 %v13424_v45  ;;  %3143 = vmatpush.bf16.msra.mxu2 %v13463_v52 }
  0xe8   : > { %v839_v56 = vpop.f32.mrf.mxu2  ;;  %v391_v59 = vpop.f32.mrf.mxu0  ;;  %2257 = vmatpush.bf16.msra.mxu0 %v13359_v48 }
  0xe9   : > { %v888_v57 = vpop.f32.mrf.mxu3  ;;  %v840_v58 = vadd.f32 %v839_v56, %v791_v46  ;;  %v792_v60 = vpop.f32.mrf.mxu1  ;;  %v1686_v56 = vrot.slane %v1684_v37, 1  ;;  %2306 = vmatpush.bf16.msra.mxu1 %v13367_v51  ;;  %v10547_v37 = vld [vmem:[%s14092_s22 + $0x1e0] sm:$0xf] }
  0xea   : > { %v793_v63 = vadd.f32 %v792_v60, %v391_v59  ;;  %v10531_v59 = vld [vmem:[%s14092_s22 + $0x1c0] sm:$0xf]  ;;  %v13336_v60 = vld [vmem:[%s14092_s22 + $0x1cc] sm:$0xf0] }
  0xeb   : > { %v14430_v0 = vadd.f32 %v888_v57, %v840_v58  ;;  %v13423_v57 = vld [vmem:[%s17835_s1 + $0x8] sm:$0xff]  ;;  %v10157_v58 = vld [vmem:[%s14092_s22 + $0xd8] sm:$0xf0]  ;;  %v1687_v4 = vsel %vm235_vm0, %v1682_v55, %v1686_v56  ;;  %3144 = vmatpush.bf16.msra.mxu2 %v13462_v8  ;;  %v10552_v55 = vor.u32 %v13338_v40, %v10549_v41  ;;  %v10763_v40 = vld [vmem:[%s14092_s22 + $0x240] sm:$0xf] }
  0xec   : > { %3544 = vmatpush.bf16.msra.mxu3 %v13423_v57  ;;  %v10160_v3 = vor.u32 %v13255_v54, %v10157_v58  ;;  %2258 = vmatpush.bf16.msra.mxu0 %v13358_v5  ;;  %v10548_v54 = vor.u32 %v13340_v38, %v10547_v37  ;;  %v13456_v41 = vld [vmem:[%s14092_s22 + $0x24c] sm:$0xf0] }
  0xed   : > { %2307 = vmatpush.bf16.msra.mxu1 %v13366_v6 }
  0xf0   : > { %v841_v11 = vpop.f32.mrf.mxu2  ;;  %v394_v20 = vpop.f32.mrf.mxu0  ;;  %3545 = vmatpush.bf16.msra.mxu3 %v13422_v16 }
  0xf1   : > { %v890_v13 = vpop.f32.mrf.mxu3  ;;  %v842_v19 = vadd.f32 %v841_v11, %v793_v63  ;;  %v795_v21 = vpop.f32.mrf.mxu1  ;;  %v1568_v63 = vld [vmem:[%s14092_s22 + $0x200] sm:$0x1] }
  0xf2   : > { %v796_v28 = vadd.f32 %v795_v21, %v394_v20  ;;  %v1618_v15 = vunpack.c.l.b16 %v1568_v63 }
  0xf3   : > { %v14453_v29 = vadd.f32 %v890_v13, %v842_v19  ;;  %941 = vmatmul.bf16.gmra.mxu0 %v10144_v14  ;;  %v10532_v13 = vor.u32 %v13336_v60, %v10531_v59  ;;  %v10536_v14 = vor.u32 %v13334_v61, %v10533_v62  ;;  %v10759_v59 = vld [vmem:[%s14092_s22 + $0x220] sm:$0xf]  ;;  %v13455_v60 = vld [vmem:[%s14092_s22 + $0x22c] sm:$0xf0] }
  0xf4   : > { %1785 = vmatmul.bf16.gmra.mxu1 %v1679_v22  ;;  %v1627_v20 = vpack.c.b16 %v1618_v15, %v1618_v15  ;;  %v14532_v61 = vor.u32 %v13455_v60, %v10759_v59  ;;  %v10445_v15 = vld [vmem:[%s14092_s22 + $0x118] sm:$0xf0] }
  0xf5   : > { %2186 = vmatmul.bf16.gmra.mxu2 %v10516_v23 }
  0xf6   : > { %2235 = vmatmul.bf16.gmra.mxu3 %v10520_v24 }
  0xf8   : > { %v844_v34 = vpop.f32.mrf.mxu2  ;;  %v396_v43 = vpop.f32.mrf.mxu0 }
  0xf9   : > { %v893_v35 = vpop.f32.mrf.mxu3  ;;  %v845_v42 = vadd.f32 %v844_v34, %v796_v28  ;;  %v797_v44 = vpop.f32.mrf.mxu1  ;;  %v1692_v28 = vshll.u32 %v1627_v20, 16  ;;  %v10173_v34 = vld [vmem:[%s14092_s22 + $0xf8] sm:$0xf0]  ;;  %v10819_v20 = vld [vmem:[%s14092_s22 + $0x200] sm:$0xf] }
  0xfa   : > { %v798_v46 = vadd.f32 %v797_v44, %v396_v43  ;;  %v13454_v43 = vld [vmem:[%s14092_s22 + $0x20c] sm:$0xf0] }
  0xfb   : > { %v14480_v47 = vadd.f32 %v893_v35, %v845_v42  ;;  %v1690_v35 = vor.u32 %v1688_v27, %v1686_v56  ;;  %v1694_v36 = vrot.slane %v1692_v28, 1  ;;  %v10755_v42 = vld [vmem:[%s14092_s22 + $0x200] sm:$0xf] }
  0xfc   : > { %v10756_v57 = vor.u32 %v13454_v43, %v10755_v42 }
  0xfd   : > { %v1695_v52 = vsel %vm235_vm0, %v1690_v35, %v1694_v36  ;;  %v14552_v36 = vld [vmem:[%s17842_s8] ss:$0 sm:$0xff] }
  0xfe   : > { %v3016_v62 = vshll.u32 %v10756_v57, 16  ;;  %v3014_v6 = vshrl.u32 %v10756_v57, 16 }
 0x100   : > { %v846_v1 = vpop.f32.mrf.mxu2  ;;  %v399_v10 = vpop.f32.mrf.mxu0  ;;  %v3018_v8 = vrot.slane %v3016_v62, 1 }
 0x101   : > { %v895_v2 = vpop.f32.mrf.mxu3  ;;  %v847_v9 = vadd.f32 %v846_v1, %v798_v46  ;;  %v800_v11 = vpop.f32.mrf.mxu1  ;;  %v10176_v46 = vor.u32 %v13259_v33, %v10173_v34 }
 0x102   : > { %v801_v18 = vadd.f32 %v800_v11, %v399_v10  ;;  %v10443_v11 = vld [vmem:[%s14092_s22 + $0x108] sm:$0xf]  ;;  %v3019_v16 = vor.u32 %v3018_v8, %v3014_v6 }
 0x103   : > { %v14514_v19 = vadd.f32 %v895_v2, %v847_v9  ;;  %946 = vmatmul.bf16.gmra.mxu0 %v10160_v3  ;;  %v3021_v9 = vshll.u32 %v14532_v61, 16 }
 0x104   : > { %1790 = vmatmul.bf16.gmra.mxu1 %v1687_v4 }
 0x105   : > { %2191 = vmatmul.bf16.gmra.mxu2 %v10532_v13  ;;  %v13313_v13 = vld [vmem:[%s14092_s22 + $0x114] sm:$0xf0] }
 0x106   : > { %2240 = vmatmul.bf16.gmra.mxu3 %v10536_v14  ;;  %v13311_v14 = vld [vmem:[%s14092_s22 + $0x10c] sm:$0xf] }
 0x107   : > { %v10448_v27 = vor.u32 %v13311_v14, %v10445_v15 }
 0x108   : > { %v849_v21 = vpop.f32.mrf.mxu2  ;;  %v401_v24 = vpop.f32.mrf.mxu0 }
 0x109   : > { %v898_v22 = vpop.f32.mrf.mxu3  ;;  %v850_v23 = vadd.f32 %v849_v21, %v801_v18  ;;  %v802_v25 = vpop.f32.mrf.mxu1  ;;  %v3023_v18 = vrot.slane %v3021_v9, 1  ;;  %v13392_v21 = vld [vmem:[%s14092_s22 + $0x20c] sm:$0xf0]  ;;  %v10835_v9 = vld [vmem:[%s14092_s22 + $0x220] sm:$0xf] }
 0x10a   : > { %v803_v31 = vadd.f32 %v802_v25, %v401_v24  ;;  %v14546_v24 = vld [vmem:[%s17841_s7] ss:$0 sm:$0xff]  ;;  %v10444_v25 = vor.u32 %v13313_v13, %v10443_v11  ;;  %v10820_v34 = vor.u32 %v13392_v21, %v10819_v20 }
 0x10b   : > { %v14517_v32 = vadd.f32 %v898_v22, %v850_v23  ;;  %v3024_v37 = vsel %vm235_vm0, %v3019_v16, %v3023_v18 }
 0x110   : > { %v851_v44 = vpop.f32.mrf.mxu2  ;;  %v404_v48 = vpop.f32.mrf.mxu0 }
 0x111   : > { %v900_v45 = vpop.f32.mrf.mxu3  ;;  %v852_v30 = vadd.f32 %v851_v44, %v803_v31  ;;  %v805_v51 = vpop.f32.mrf.mxu1 }
 0x112   : > { %v806_v56 = vadd.f32 %v805_v51, %v404_v48 }
 0x113   : > { %v14528_v58 = vadd.f32 %v900_v45, %v852_v30  ;;  %951 = vmatmul.bf16.gmra.mxu0 %v10176_v46 }
 0x114   : > { %1795 = vmatmul.bf16.gmra.mxu1 %v1695_v52  ;;  %v3025_v52 = vshrl.u32 %v14532_v61, 16 }
 0x115   : > { %2196 = vmatmul.bf16.gmra.mxu2 %v10548_v54 }
 0x116   : > { %2245 = vmatmul.bf16.gmra.mxu3 %v10552_v55  ;;  %v3027_v6 = vor.u32 %v3025_v52, %v3023_v18 }
 0x118   : > { %v854_v63 = vpop.f32.mrf.mxu2  ;;  %v406_v3 = vpop.f32.mrf.mxu0 }
 0x119   : > { %v903_v1 = vpop.f32.mrf.mxu3  ;;  %v855_v2 = vadd.f32 %v854_v63, %v806_v56  ;;  %v807_v4 = vpop.f32.mrf.mxu1  ;;  %v10459_v63 = vld [vmem:[%s14092_s22 + $0x128] sm:$0xf] }
 0x11a   : > { %v808_v5 = vadd.f32 %v807_v4, %v406_v3  ;;  %v13315_v3 = vld [vmem:[%s14092_s22 + $0x12c] sm:$0xf]  ;;  %v10461_v4 = vld [vmem:[%s14092_s22 + $0x138] sm:$0xf0] }
 0x11b   : > { %v14535_v10 = vadd.f32 %v903_v1, %v855_v2  ;;  %v13317_v2 = vld [vmem:[%s14092_s22 + $0x134] sm:$0xf0]  ;;  %v10464_v20 = vor.u32 %v13315_v3, %v10461_v4 }
 0x11c   : > { %v10460_v16 = vor.u32 %v13317_v2, %v10459_v63 }
 0x120   : > { %v856_v22 = vpop.f32.mrf.mxu2  ;;  %v917_v31 = vpop.f32.mrf.mxu0 }
 0x121   : > { %v905_v23 = vpop.f32.mrf.mxu3  ;;  %v857_v28 = vadd.f32 %v856_v22, %v808_v5  ;;  %v1761_v33 = vpop.f32.mrf.mxu1  ;;  %v918_v35 = vadd.f32 %v917_v31, %v14336_v49  ;;  %v14561_v49 = vor.u32 %v13456_v41, %v10763_v40  ;;  %v13457_v40 = vld [vmem:[%s14092_s22 + $0x26c] sm:$0xf0] }
 0x123   : > { %v14555_v38 = vadd.f32 %v905_v23, %v857_v28  ;;  %v961_v42 = vmul.f32 %v14546_v24, %v918_v35  ;;  %2259 = vmatmul.bf16.vlgmr.msra.gmra.mxu0 %v10444_v25  ;;  %v3029_v57 = vshll.u32 %v14561_v49, 16 }
 0x124   : > { %2308 = vmatmul.bf16.vlgmr.msra.gmra.mxu1 %v10448_v27 }
 0x125   : > { %3145 = vmatmul.bf16.vlgmr.msra.gmra.mxu2 %v3024_v37  ;;  %v981_v43 = vadd.f32 %v14552_v36, %v961_v42  ;;  %v14574_v8 = vrot.slane %v3029_v57, 1  ;;  %v10767_v37 = vld [vmem:[%s14092_s22 + $0x260] sm:$0xf] }
 0x126   : > { %3546 = vmatmul.bf16.vlgmr.msra.gmra.mxu3 %v10820_v34 }
 0x127   : > { %v997_v44 = vmax.f32 %v981_v43, 0.0  ;;  %v3032_v18 = vsel %vm235_vm0, %v3027_v6, %v14574_v8 }
 0x128   : > { %v2162_v45 = vpop.f32.mrf.mxu2  ;;  %v919_v48 = vpop.f32.mrf.mxu0 }
 0x129   : > { %v2211_v46 = vpop.f32.mrf.mxu3  ;;  %v2163_v30 = vadd.f32 %v2162_v45, %v1761_v33  ;;  %v1763_v51 = vpop.f32.mrf.mxu1  ;;  %v1029_v54 = vrot.slane %v997_v44, 4  ;;  %v10305_v55 = vrot.slane %v997_v44, 9  ;;  %v920_v56 = vadd.f32 %v919_v48, %v14350_v7  ;;  %v13396_v7 = vld [vmem:[%s14092_s22 + $0x22c] sm:$0xf0] }
 0x12a   : > { %v10836_v27 = vor.u32 %v13396_v7, %v10835_v9 }
 0x12b   : > { %v14566_v59 = vadd.f32 %v2211_v46, %v2163_v30  ;;  %v10306_v60 = vrot.slane %v1029_v54, 9  ;;  %v962_v62 = vmul.f32 %v14546_v24, %v920_v56  ;;  %v1157_v1 = vmax.f32 %v997_v44, %v10305_v55 }
 0x12c   : > { %v14586_v30 = vor.u32 %v13457_v40, %v10767_v37 }
 0x12d   : > { %v1158_v5 = vmax.f32 %v1029_v54, %v10306_v60  ;;  %v982_v61 = vadd.f32 %v14552_v36, %v962_v62  ;;  %v10337_v21 = vrot.slane %v1157_v1, 10 }
 0x12f   : > { %v10338_v11 = vrot.slane %v1158_v5, 10  ;;  %v998_v13 = vmax.f32 %v982_v61, 0.0  ;;  %v1317_v43 = vmax.f32 %v1157_v1, %v10337_v21  ;;  %v3033_v1 = vshrl.u32 %v14561_v49, 16  ;;  %v10477_v21 = vld [vmem:[%s14092_s22 + $0x158] sm:$0xf0] }
 0x130   : > { %v2164_v14 = vpop.f32.mrf.mxu2  ;;  %v922_v23 = vpop.f32.mrf.mxu0 }
 0x131   : > { %v2213_v15 = vpop.f32.mrf.mxu3  ;;  %v2165_v22 = vadd.f32 %v2164_v14, %v1763_v51  ;;  %v1766_v25 = vpop.f32.mrf.mxu1  ;;  %v1030_v28 = vrot.slane %v998_v13, 4  ;;  %v10307_v31 = vrot.slane %v998_v13, 9  ;;  %v1318_v33 = vmax.f32 %v1158_v5, %v10338_v11  ;;  %v10475_v14 = vld [vmem:[%s14092_s22 + $0x148] sm:$0xf] }
 0x132   : > { %v923_v35 = vadd.f32 %v922_v23, %v14352_v17  ;;  %v1381_v56 = vperm.slane %v1317_v43, 0  ;;  %v3037_v5 = vshll.u32 %v14586_v30, 16 }
 0x133   : > { %v14580_v34 = vadd.f32 %v2213_v15, %v2165_v22  ;;  %v10308_v41 = vrot.slane %v1030_v28, 9  ;;  %v1159_v42 = vmax.f32 %v998_v13, %v10307_v31  ;;  %2264 = vmatmul.bf16.gmra.mxu0 %v10460_v16  ;;  %v1382_v48 = vperm.slane %v1318_v33, 0  ;;  %v13321_v15 = vld [vmem:[%s14092_s22 + $0x154] sm:$0xf0]  ;;  %v10851_v31 = vld [vmem:[%s14092_s22 + $0x240] sm:$0xf] }
 0x134   : > { %2313 = vmatmul.bf16.gmra.mxu1 %v10464_v20  ;;  %v963_v44 = vmul.f32 %v14546_v24, %v923_v35  ;;  %v13437_v22 = vld [vmem:[%s17835_s1 + $0x78] sm:$0xff] }
 0x135   : > { %3150 = vmatmul.bf16.gmra.mxu2 %v3032_v18  ;;  %v1160_v45 = vmax.f32 %v1030_v28, %v10308_v41  ;;  %v10339_v46 = vrot.slane %v1159_v42, 10  ;;  %v1414_v61 = vsel %vm1413_vm1, %v1382_v48, %v1381_v56  ;;  %v14607_v28 = vrot.slane %v3037_v5, 1  ;;  %v13400_v18 = vld [vmem:[%s14092_s22 + $0x24c] sm:$0xf0]  ;;  %3587 = vmatpush.bf16.msrb.mxu0 %v13437_v22  ;;  %v10771_v56 = vld [vmem:[%s14092_s22 + $0x280] sm:$0xf] }
 0x136   : > { %3551 = vmatmul.bf16.gmra.mxu3 %v10836_v27  ;;  %v983_v51 = vadd.f32 %v14552_v36, %v963_v44  ;;  %v3035_v27 = vor.u32 %v3033_v1, %v14574_v8  ;;  %v3041_v22 = vshrl.u32 %v14586_v30, 16 }
 0x137   : > { %v10340_v17 = vrot.slane %v1160_v45, 10  ;;  %v1319_v52 = vmax.f32 %v1159_v42, %v10339_v46  ;;  %v10476_v42 = vor.u32 %v13321_v15, %v10475_v14 }
 0x138   : > { %v2167_v54 = vpop.f32.mrf.mxu2  ;;  %v999_v57 = vmax.f32 %v983_v51, 0.0  ;;  %v924_v62 = vpop.f32.mrf.mxu0  ;;  %v10852_v51 = vor.u32 %v13400_v18, %v10851_v31 }
 0x139   : > { %v2216_v55 = vpop.f32.mrf.mxu3  ;;  %v2168_v60 = vadd.f32 %v2167_v54, %v1766_v25  ;;  %v1768_v63 = vpop.f32.mrf.mxu1  ;;  %v1320_v2 = vmax.f32 %v1160_v45, %v10340_v17  ;;  %v1383_v3 = vperm.slane %v1319_v52, 0  ;;  %v925_v4 = vadd.f32 %v924_v62, %v14366_v39  ;;  %v13319_v39 = vld [vmem:[%s14092_s22 + $0x14c] sm:$0xf] }
 0x13a   : > { %v1031_v6 = vrot.slane %v999_v57, 4  ;;  %v10309_v9 = vrot.slane %v999_v57, 9  ;;  %v10480_v43 = vor.u32 %v13319_v39, %v10477_v21 }
 0x13b   : > { %v14593_v7 = vadd.f32 %v2216_v55, %v2168_v60  ;;  %v1384_v11 = vperm.slane %v1320_v2, 0  ;;  %v1416_v13 = vsel %vm1415_vm2, %v1383_v3, %v1414_v61  ;;  %v964_v49 = vmul.f32 %v14546_v24, %v925_v4 }
 0x13c   : > { %v10310_v16 = vrot.slane %v1031_v6, 9  ;;  %v1161_v20 = vmax.f32 %v999_v57, %v10309_v9  ;;  %v3040_v55 = vsel %vm235_vm0, %v3035_v27, %v14607_v28  ;;  %v13458_v57 = vld [vmem:[%s14092_s22 + $0x28c] sm:$0xf0] }
 0x13d   : > { %v1418_v23 = vsel %vm1417_vm3, %v1384_v11, %v1416_v13  ;;  %v984_v25 = vadd.f32 %v14552_v36, %v964_v49 }
 0x13e   : > { %v1162_v33 = vmax.f32 %v1031_v6, %v10310_v16  ;;  %v10341_v35 = vrot.slane %v1161_v20, 10 }
 0x13f   : > { %v1000_v37 = vmax.f32 %v984_v25, 0.0 }
 0x140   : > { %v2169_v40 = vpop.f32.mrf.mxu2  ;;  %v10342_v44 = vrot.slane %v1162_v33, 10  ;;  %v1321_v45 = vmax.f32 %v1161_v20, %v10341_v35  ;;  %v927_v48 = vpop.f32.mrf.mxu0 }
 0x141   : > { %v2218_v41 = vpop.f32.mrf.mxu3  ;;  %v2170_v46 = vadd.f32 %v2169_v40, %v1768_v63  ;;  %v1771_v8 = vpop.f32.mrf.mxu1  ;;  %v1032_v17 = vrot.slane %v1000_v37, 4  ;;  %v10311_v52 = vrot.slane %v1000_v37, 9  ;;  %v928_v54 = vadd.f32 %v927_v48, %v14377_v53 }
 0x142   : > { %v1322_v60 = vmax.f32 %v1162_v33, %v10342_v44  ;;  %v1385_v62 = vperm.slane %v1321_v45, 0  ;;  %v14620_v53 = vor.u32 %v13458_v57, %v10771_v56  ;;  %v13323_v44 = vld [vmem:[%s14092_s22 + $0x16c] sm:$0xf]  ;;  %v10493_v45 = vld [vmem:[%s14092_s22 + $0x178] sm:$0xf0] }
 0x143   : > { %v14616_v1 = vadd.f32 %v2218_v41, %v2170_v46  ;;  %v10312_v2 = vrot.slane %v1032_v17, 9  ;;  %v1163_v3 = vmax.f32 %v1000_v37, %v10311_v52  ;;  %v965_v63 = vmul.f32 %v14546_v24, %v928_v54  ;;  %2269 = vmatmul.bf16.gmra.mxu0 %v10476_v42  ;;  %v10491_v42 = vld [vmem:[%s14092_s22 + $0x168] sm:$0xf]  ;;  %v10867_v52 = vld [vmem:[%s14092_s22 + $0x260] sm:$0xf]  ;;  %v13453_v56 = vld [vmem:[%s17835_s1 + $0xf8] sm:$0xff] }
 0x144   : > { %2318 = vmatmul.bf16.gmra.mxu1 %v10480_v43  ;;  %v1386_v4 = vperm.slane %v1322_v60, 0  ;;  %v1420_v5 = vsel %vm1419_vm4, %v1385_v62, %v1418_v23  ;;  %v3045_v23 = vshll.u32 %v14620_v53, 16  ;;  %v13325_v43 = vld [vmem:[%s14092_s22 + $0x174] sm:$0xf0]  ;;  %v3043_v46 = vor.u32 %v3041_v22, %v14607_v28  ;;  %3685 = vmatpush.bf16.msrb.mxu2 %v13453_v56 }
 0x145   : > { %3155 = vmatmul.bf16.gmra.mxu2 %v3040_v55  ;;  %v1164_v61 = vmax.f32 %v1032_v17, %v10312_v2  ;;  %v10343_v6 = vrot.slane %v1163_v3, 10  ;;  %v985_v9 = vadd.f32 %v14552_v36, %v965_v63  ;;  %v13436_v55 = vld [vmem:[%s17835_s1 + $0x70] sm:$0xff]  ;;  %v10492_v62 = vor.u32 %v13325_v43, %v10491_v42 }
 0x146   : > { %3556 = vmatmul.bf16.gmra.mxu3 %v10852_v51  ;;  %v1422_v11 = vsel %vm1421_vm5, %v1386_v4, %v1420_v5  ;;  %v14637_v17 = vrot.slane %v3045_v23, 1  ;;  %v10496_v2 = vor.u32 %v13323_v44, %v10493_v45  ;;  %3588 = vmatpush.bf16.msrb.mxu0 %v13436_v55 }
 0x147   : > { %v10344_v13 = vrot.slane %v1164_v61, 10  ;;  %v1323_v49 = vmax.f32 %v1163_v3, %v10343_v6  ;;  %v1001_v14 = vmax.f32 %v985_v9, 0.0 }
 0x148   : > { %v2172_v15 = vpop.f32.mrf.mxu2  ;;  %v929_v39 = vpop.f32.mrf.mxu0 }
 0x149   : > { %v2221_v16 = vpop.f32.mrf.mxu3  ;;  %v2173_v20 = vadd.f32 %v2172_v15, %v1771_v8  ;;  %v1773_v21 = vpop.f32.mrf.mxu1  ;;  %v1324_v25 = vmax.f32 %v1164_v61, %v10344_v13  ;;  %v1387_v27 = vperm.slane %v1323_v49, 0  ;;  %v1033_v31 = vrot.slane %v1001_v14, 4  ;;  %v10775_v13 = vld [vmem:[%s14092_s22 + $0x2a0] sm:$0xf]  ;;  %v13459_v49 = vld [vmem:[%s14092_s22 + $0x2ac] sm:$0xf0] }
 0x14a   : > { %v10313_v18 = vrot.slane %v1001_v14, 9  ;;  %v930_v35 = vadd.f32 %v929_v39, %v14391_v12  ;;  %v13404_v12 = vld [vmem:[%s14092_s22 + $0x26c] sm:$0xf0]  ;;  %v14656_v23 = vor.u32 %v13459_v49, %v10775_v13 }
 0x14b   : > { %v14626_v33 = vadd.f32 %v2221_v16, %v2173_v20  ;;  %v1388_v37 = vperm.slane %v1324_v25, 0  ;;  %v1424_v40 = vsel %vm1423_vm6, %v1387_v27, %v1422_v11  ;;  %v10314_v41 = vrot.slane %v1033_v31, 9 }
 0x14c   : > { %v966_v30 = vmul.f32 %v14546_v24, %v930_v35  ;;  %v1165_v8 = vmax.f32 %v1001_v14, %v10313_v18  ;;  %v10868_v61 = vor.u32 %v13404_v12, %v10867_v52  ;;  %v3048_v11 = vsel %vm235_vm0, %v3043_v46, %v14637_v17  ;;  %v13549_v18 = vld [vmem:[%s17836_s2 + $0x38] sm:$0xff] }
 0x14d   : > { %v1426_v48 = vsel %vm1425_vm7, %v1388_v37, %v1424_v40  ;;  %v1166_v51 = vmax.f32 %v1033_v31, %v10314_v41  ;;  %v13445_v35 = vld [vmem:[%s17835_s1 + $0xb8] sm:$0xff]  ;;  %4522 = vmatpush.bf16.msrb.mxu3 %v13549_v18 }
 0x14e   : > { %1452 = vst [vmem:[#allocation2] sm:$0xff] %v1426_v48  ;;  %v986_v54 = vadd.f32 %v14552_v36, %v966_v30  ;;  %v10345_v6 = vrot.slane %v1165_v8, 10  ;;  %v3049_v30 = vshrl.u32 %v14620_v53, 16  ;;  %3636 = vmatpush.bf16.msrb.mxu1 %v13445_v35 }
 0x14f   : > { %v10346_v28 = vrot.slane %v1166_v51, 10 }
 0x150   : > { %v2174_v57 = vpop.f32.mrf.mxu2  ;;  %v1002_v3 = vmax.f32 %v986_v54, 0.0  ;;  %v932_v4 = vpop.f32.mrf.mxu0 }
 0x151   : > { %v2223_v60 = vpop.f32.mrf.mxu3  ;;  %v2175_v63 = vadd.f32 %v2174_v57, %v1773_v21  ;;  %v1776_v5 = vpop.f32.mrf.mxu1  ;;  %v933_v9 = vadd.f32 %v932_v4, %v14402_v26  ;;  %v1326_v20 = vmax.f32 %v1166_v51, %v10346_v28  ;;  %v1325_v26 = vmax.f32 %v1165_v8, %v10345_v6  ;;  %v10507_v28 = vld [vmem:[%s14092_s22 + $0x188] sm:$0xf]  ;;  %v10509_v6 = vld [vmem:[%s14092_s22 + $0x198] sm:$0xf0] }
 0x152   : > { %v1034_v14 = vrot.slane %v1002_v3, 4  ;;  %v10315_v15 = vrot.slane %v1002_v3, 9  ;;  %v3053_v8 = vshll.u32 %v14656_v23, 16 }
 0x153   : > { %v14653_v16 = vadd.f32 %v2223_v60, %v2175_v63  ;;  %v967_v39 = vmul.f32 %v14546_v24, %v933_v9  ;;  %2274 = vmatmul.bf16.gmra.mxu0 %v10492_v62  ;;  %v1390_v37 = vperm.slane %v1326_v20, 0  ;;  %v1389_v51 = vperm.slane %v1325_v26, 0  ;;  %v13435_v63 = vld [vmem:[%s17835_s1 + $0x68] sm:$0xff]  ;;  %v13408_v20 = vld [vmem:[%s14092_s22 + $0x28c] sm:$0xf0] }
 0x154   : > { %2323 = vmatmul.bf16.gmra.mxu1 %v10496_v2  ;;  %v10316_v21 = vrot.slane %v1034_v14, 9  ;;  %v1167_v22 = vmax.f32 %v1002_v3, %v10315_v15  ;;  %v13329_v3 = vld [vmem:[%s14092_s22 + $0x194] sm:$0xf0]  ;;  %v3051_v9 = vor.u32 %v3049_v30, %v14637_v17  ;;  %v10883_v15 = vld [vmem:[%s14092_s22 + $0x280] sm:$0xf]  ;;  %3589 = vmatpush.bf16.msrb.mxu0 %v13435_v63 }
 0x155   : > { %3160 = vmatmul.bf16.gmra.mxu2 %v3048_v11  ;;  %v987_v25 = vadd.f32 %v14552_v36, %v967_v39  ;;  %v1427_v57 = vsel %vm1413_vm1, %v1390_v37, %v1389_v51  ;;  %v14684_v11 = vrot.slane %v3053_v8, 1  ;;  %v10779_v8 = vld [vmem:[%s14092_s22 + $0x2c0] sm:$0xf]  ;;  %v13460_v51 = vld [vmem:[%s14092_s22 + $0x2cc] sm:$0xf0] }
 0x156   : > { %3561 = vmatmul.bf16.gmra.mxu3 %v10868_v61  ;;  %v1168_v27 = vmax.f32 %v1034_v14, %v10316_v21  ;;  %v10347_v31 = vrot.slane %v1167_v22, 10  ;;  %v13327_v61 = vld [vmem:[%s14092_s22 + $0x18c] sm:$0xf]  ;;  %v10508_v21 = vor.u32 %v13329_v3, %v10507_v28 }
 0x157   : > { %v1003_v40 = vmax.f32 %v987_v25, 0.0 }
 0x158   : > { %v2177_v41 = vpop.f32.mrf.mxu2  ;;  %v10348_v43 = vrot.slane %v1168_v27, 10  ;;  %v1327_v44 = vmax.f32 %v1167_v22, %v10347_v31  ;;  %v934_v46 = vpop.f32.mrf.mxu0  ;;  %v10512_v31 = vor.u32 %v13327_v61, %v10509_v6 }
 0x159   : > { %v2226_v42 = vpop.f32.mrf.mxu3  ;;  %v2178_v45 = vadd.f32 %v2177_v41, %v1776_v5  ;;  %v1778_v48 = vpop.f32.mrf.mxu1  ;;  %v1035_v52 = vrot.slane %v1003_v40, 4  ;;  %v10317_v12 = vrot.slane %v1003_v40, 9  ;;  %v935_v54 = vadd.f32 %v934_v46, %v14416_v50  ;;  %v13452_v50 = vld [vmem:[%s17835_s1 + $0xf0] sm:$0xff] }
 0x15a   : > { %v1328_v55 = vmax.f32 %v1168_v27, %v10348_v43  ;;  %v1391_v53 = vperm.slane %v1327_v44, 0  ;;  %3686 = vmatpush.bf16.msrb.mxu2 %v13452_v50  ;;  %v10884_v41 = vor.u32 %v13408_v20, %v10883_v15 }
 0x15b   : > { %v14668_v56 = vadd.f32 %v2226_v42, %v2178_v45  ;;  %v10318_v60 = vrot.slane %v1035_v52, 9  ;;  %v1169_v62 = vmax.f32 %v1003_v40, %v10317_v12  ;;  %v968_v2 = vmul.f32 %v14546_v24, %v935_v54 }
 0x15c   : > { %v1392_v4 = vperm.slane %v1328_v55, 0  ;;  %v1428_v5 = vsel %vm1415_vm2, %v1391_v53, %v1427_v57  ;;  %v3056_v40 = vsel %vm235_vm0, %v3051_v9, %v14684_v11 }
 0x15d   : > { %v1170_v13 = vmax.f32 %v1035_v52, %v10318_v60  ;;  %v10349_v49 = vrot.slane %v1169_v62, 10  ;;  %v988_v14 = vadd.f32 %v14552_v36, %v968_v2  ;;  %v14703_v60 = vor.u32 %v13460_v51, %v10779_v8  ;;  %v13412_v8 = vld [vmem:[%s14092_s22 + $0x2ac] sm:$0xf0] }
 0x15e   : > { %v1429_v39 = vsel %vm1417_vm3, %v1392_v4, %v1428_v5 }
 0x15f   : > { %v10350_v22 = vrot.slane %v1170_v13, 10  ;;  %v1329_v26 = vmax.f32 %v1169_v62, %v10349_v49  ;;  %v1004_v25 = vmax.f32 %v988_v14, 0.0  ;;  %v13444_v62 = vld [vmem:[%s17835_s1 + $0xb0] sm:$0xff]  ;;  %v3061_v20 = vshll.u32 %v14703_v60, 16 }
 0x160   : > { %v2179_v27 = vpop.f32.mrf.mxu2  ;;  %v937_v35 = vpop.f32.mrf.mxu0  ;;  %3637 = vmatpush.bf16.msrb.mxu1 %v13444_v62 }
 0x161   : > { %v2228_v17 = vpop.f32.mrf.mxu3  ;;  %v2180_v18 = vadd.f32 %v2179_v27, %v1778_v48  ;;  %v1781_v37 = vpop.f32.mrf.mxu1  ;;  %v1330_v42 = vmax.f32 %v1170_v13, %v10350_v22  ;;  %v1393_v30 = vperm.slane %v1329_v26, 0  ;;  %v1036_v43 = vrot.slane %v1004_v25, 4  ;;  %v10523_v26 = vld [vmem:[%s14092_s22 + $0x1a8] sm:$0xf] }
 0x162   : > { %v10319_v44 = vrot.slane %v1004_v25, 9  ;;  %v938_v46 = vadd.f32 %v937_v35, %v14430_v0  ;;  %v13548_v0 = vld [vmem:[%s17836_s2 + $0x30] sm:$0xff]  ;;  %v3057_v13 = vshrl.u32 %v14656_v23, 16 }
 0x163   : > { %v14692_v45 = vadd.f32 %v2228_v17, %v2180_v18  ;;  %v1394_v52 = vperm.slane %v1330_v42, 0  ;;  %v1430_v12 = vsel %vm1419_vm4, %v1393_v30, %v1429_v39  ;;  %v10320_v48 = vrot.slane %v1036_v43, 9  ;;  %2279 = vmatmul.bf16.gmra.mxu0 %v10508_v21  ;;  %4523 = vmatpush.bf16.msrb.mxu3 %v13548_v0  ;;  %v13443_v18 = vld [vmem:[%s17835_s1 + $0xa8] sm:$0xff] }
 0x164   : > { %v1171_v54 = vmax.f32 %v1004_v25, %v10319_v44  ;;  %2328 = vmatmul.bf16.gmra.mxu1 %v10512_v31  ;;  %v969_v55 = vmul.f32 %v14546_v24, %v938_v46  ;;  %v13333_v25 = vld [vmem:[%s14092_s22 + $0x1b4] sm:$0xf0]  ;;  %v13547_v31 = vld [vmem:[%s17836_s2 + $0x28] sm:$0xff]  ;;  %v14732_v44 = vrot.slane %v3061_v20, 1  ;;  %v10899_v46 = vld [vmem:[%s14092_s22 + $0x2a0] sm:$0xf] }
 0x165   : > { %3165 = vmatmul.bf16.gmra.mxu2 %v3056_v40  ;;  %v1431_v53 = vsel %vm1421_vm5, %v1394_v52, %v1430_v12  ;;  %v1172_v28 = vmax.f32 %v1036_v43, %v10320_v48  ;;  %v13331_v40 = vld [vmem:[%s14092_s22 + $0x1ac] sm:$0xf]  ;;  %v3059_v43 = vor.u32 %v3057_v13, %v14684_v11  ;;  %3638 = vmatpush.bf16.msrb.mxu1 %v13443_v18  ;;  %v13450_v11 = vld [vmem:[%s17835_s1 + $0xe0] sm:$0xff] }
 0x166   : > { %3566 = vmatmul.bf16.gmra.mxu3 %v10884_v41  ;;  %v10351_v57 = vrot.slane %v1171_v54, 10  ;;  %v989_v2 = vadd.f32 %v14552_v36, %v969_v55  ;;  %v10525_v41 = vld [vmem:[%s14092_s22 + $0x1b8] sm:$0xf0]  ;;  %v10783_v13 = vld [vmem:[%s14092_s22 + $0x2e0] sm:$0xf] }
 0x167   : > { %v10352_v3 = vrot.slane %v1172_v28, 10  ;;  %4524 = vmatpush.bf16.msrb.mxu3 %v13547_v31  ;;  %v10528_v55 = vor.u32 %v13331_v40, %v10525_v41 }
 0x168   : > { %v1331_v63 = vmax.f32 %v1171_v54, %v10351_v57  ;;  %v2182_v50 = vpop.f32.mrf.mxu2  ;;  %v1005_v5 = vmax.f32 %v989_v2, 0.0  ;;  %v939_v6 = vpop.f32.mrf.mxu0  ;;  %v10524_v54 = vor.u32 %v13333_v25, %v10523_v26  ;;  %v13441_v25 = vld [vmem:[%s17835_s1 + $0x98] sm:$0xff] }
 0x169   : > { %v2231_v4 = vpop.f32.mrf.mxu3  ;;  %v2183_v61 = vadd.f32 %v2182_v50, %v1781_v37  ;;  %v1783_v9 = vpop.f32.mrf.mxu1  ;;  %v1332_v49 = vmax.f32 %v1172_v28, %v10352_v3  ;;  %v940_v15 = vadd.f32 %v939_v6, %v14453_v29  ;;  %v13451_v29 = vld [vmem:[%s17835_s1 + $0xe8] sm:$0xff]  ;;  %v13442_v28 = vld [vmem:[%s17835_s1 + $0xa0] sm:$0xff]  ;;  %v3064_v6 = vsel %vm235_vm0, %v3059_v43, %v14732_v44  ;;  %v13440_v43 = vld [vmem:[%s17835_s1 + $0x90] sm:$0xff] }
 0x16a   : > { %v1395_v14 = vperm.slane %v1331_v63, 0  ;;  %v1037_v39 = vrot.slane %v1005_v5, 4  ;;  %v10321_v21 = vrot.slane %v1005_v5, 9  ;;  %3687 = vmatpush.bf16.msrb.mxu2 %v13451_v29  ;;  %v10900_v63 = vor.u32 %v13412_v8, %v10899_v46  ;;  %v13546_v50 = vld [vmem:[%s17836_s2 + $0x20] sm:$0xff]  ;;  %3639 = vmatpush.bf16.msrb.mxu1 %v13442_v28  ;;  %v13448_v46 = vld [vmem:[%s17835_s1 + $0xd0] sm:$0xff] }
 0x16b   : > { %v14712_v22 = vadd.f32 %v2231_v4, %v2183_v61  ;;  %v1396_v27 = vperm.slane %v1332_v49, 0  ;;  %v970_v23 = vmul.f32 %v14546_v24, %v940_v15  ;;  %v13461_v49 = vld [vmem:[%s14092_s22 + $0x2ec] sm:$0xf0]  ;;  %4525 = vmatpush.bf16.msrb.mxu3 %v13546_v50 }
 0x16c   : > { %v1432_v17 = vsel %vm1423_vm6, %v1395_v14, %v1431_v53  ;;  %v10322_v35 = vrot.slane %v1037_v39, 9  ;;  %v1173_v37 = vmax.f32 %v1005_v5, %v10321_v21  ;;  %v13434_v53 = vld [vmem:[%s17835_s1 + $0x60] sm:$0xff]  ;;  %v14759_v26 = vor.u32 %v13461_v49, %v10783_v13  ;;  %v13335_v49 = vld [vmem:[%s14092_s22 + $0x1cc] sm:$0xf] }
 0x16d   : > { %v1433_v42 = vsel %vm1425_vm7, %v1396_v27, %v1432_v17  ;;  %v990_v30 = vadd.f32 %v14552_v36, %v970_v23  ;;  %3590 = vmatpush.bf16.msrb.mxu0 %v13434_v53  ;;  %v13449_v27 = vld [vmem:[%s17835_s1 + $0xd8] sm:$0xff] }
 0x16e   : > { %1453 = vst [vmem:[#allocation2 + $0x8] sm:$0xff] %v1433_v42  ;;  %v1174_v51 = vmax.f32 %v1037_v39, %v10322_v35  ;;  %v10353_v57 = vrot.slane %v1173_v37, 10  ;;  %3688 = vmatpush.bf16.msrb.mxu2 %v13450_v11  ;;  %v13545_v17 = vld [vmem:[%s17836_s2 + $0x18] sm:$0xff]  ;;  %3640 = vmatpush.bf16.msrb.mxu1 %v13441_v25 }
 0x16f   : > { %v1006_v52 = vmax.f32 %v990_v30, 0.0  ;;  %4526 = vmatpush.bf16.msrb.mxu3 %v13545_v17  ;;  %v13432_v30 = vld [vmem:[%s17835_s1 + $0x50] sm:$0xff] }
 0x170   : > { %v2184_v12 = vpop.f32.mrf.mxu2  ;;  %v10354_v0 = vrot.slane %v1174_v51, 10  ;;  %v942_v2 = vpop.f32.mrf.mxu0  ;;  %v1333_v21 = vmax.f32 %v1173_v37, %v10353_v57  ;;  %v13416_v17 = vld [vmem:[%s14092_s22 + $0x2cc] sm:$0xf0] }
 0x171   : > { %v2233_v48 = vpop.f32.mrf.mxu3  ;;  %v2185_v62 = vadd.f32 %v2184_v12, %v1783_v9  ;;  %v1786_v3 = vpop.f32.mrf.mxu1  ;;  %v1038_v4 = vrot.slane %v1006_v52, 4  ;;  %v10323_v5 = vrot.slane %v1006_v52, 9  ;;  %v943_v61 = vadd.f32 %v942_v2, %v14480_v47  ;;  %v13433_v47 = vld [vmem:[%s17835_s1 + $0x58] sm:$0xff] }
 0x172   : > { %v1334_v14 = vmax.f32 %v1174_v51, %v10354_v0  ;;  %3591 = vmatpush.bf16.msrb.mxu0 %v13433_v47  ;;  %3689 = vmatpush.bf16.msrb.mxu2 %v13449_v27  ;;  %v1397_v8 = vperm.slane %v1333_v21, 0  ;;  %v10915_v27 = vld [vmem:[%s14092_s22 + $0x2c0] sm:$0xf] }
 0x173   : > { %v14753_v9 = vadd.f32 %v2233_v48, %v2185_v62  ;;  %v10324_v15 = vrot.slane %v1038_v4, 9  ;;  %v1175_v20 = vmax.f32 %v1006_v52, %v10323_v5  ;;  %v971_v39 = vmul.f32 %v14546_v24, %v943_v61  ;;  %2284 = vmatmul.bf16.gmra.mxu0 %v10524_v54  ;;  %3641 = vmatpush.bf16.msrb.mxu1 %v13440_v43  ;;  %v13431_v61 = vld [vmem:[%s17835_s1 + $0x48] sm:$0xff] }
 0x174   : > { %2333 = vmatmul.bf16.gmra.mxu1 %v10528_v55  ;;  %v1398_v18 = vperm.slane %v1334_v14, 0  ;;  %v3065_v48 = vshrl.u32 %v14703_v60, 16  ;;  %v3069_v54 = vshll.u32 %v14759_v26, 16  ;;  %v13544_v55 = vld [vmem:[%s17836_s2 + $0x10] sm:$0xff]  ;;  %v10539_v60 = vld [vmem:[%s14092_s22 + $0x1c8] sm:$0xf] }
 0x175   : > { %3170 = vmatmul.bf16.gmra.mxu2 %v3064_v6  ;;  %v1176_v23 = vmax.f32 %v1038_v4, %v10324_v15  ;;  %v10355_v29 = vrot.slane %v1175_v20, 10  ;;  %v991_v31 = vadd.f32 %v14552_v36, %v971_v39  ;;  %4527 = vmatpush.bf16.msrb.mxu3 %v13544_v55  ;;  %v13447_v6 = vld [vmem:[%s17835_s1 + $0xc8] sm:$0xff]  ;;  %v10541_v14 = vld [vmem:[%s14092_s22 + $0x1d8] sm:$0xf0] }
 0x176   : > { %3571 = vmatmul.bf16.gmra.mxu3 %v10900_v63  ;;  %3592 = vmatpush.bf16.msrb.mxu0 %v13432_v30  ;;  %v1434_v0 = vsel %vm1413_vm1, %v1398_v18, %v1397_v8  ;;  %v3067_v15 = vor.u32 %v3065_v48, %v14732_v44  ;;  %v13543_v39 = vld [vmem:[%s17836_s2 + $0x8] sm:$0xff]  ;;  %v13446_v30 = vld [vmem:[%s17835_s1 + $0xc0] sm:$0xff]  ;;  %v10916_v48 = vor.u32 %v13416_v17, %v10915_v27 }
 0x177   : > { %v10356_v35 = vrot.slane %v1176_v23, 10  ;;  %v1335_v37 = vmax.f32 %v1175_v20, %v10355_v29  ;;  %v1007_v40 = vmax.f32 %v991_v31, 0.0  ;;  %3690 = vmatpush.bf16.msrb.mxu2 %v13448_v46  ;;  %v14805_v20 = vrot.slane %v3069_v54, 1  ;;  %v2953_v29 = vld [vmem:[%s14092_s22 + $0x300] sm:$0x1] }
 0x178   : > { %v2187_v41 = vpop.f32.mrf.mxu2  ;;  %v944_v52 = vpop.f32.mrf.mxu0 }
 0x179   : > { %v2236_v42 = vpop.f32.mrf.mxu3  ;;  %v2188_v51 = vadd.f32 %v2187_v41, %v1786_v3  ;;  %v1788_v12 = vpop.f32.mrf.mxu1  ;;  %v1336_v53 = vmax.f32 %v1176_v23, %v10356_v35  ;;  %v1399_v11 = vperm.slane %v1335_v37, 0  ;;  %v1039_v28 = vrot.slane %v1007_v40, 4  ;;  %v13337_v3 = vld [vmem:[%s14092_s22 + $0x1d4] sm:$0xf0]  ;;  %4528 = vmatpush.bf16.msrb.mxu3 %v13543_v39  ;;  %v13430_v41 = vld [vmem:[%s17835_s1 + $0x40] sm:$0xff] }
 0x17a   : > { %v10325_v57 = vrot.slane %v1007_v40, 9  ;;  %v945_v2 = vadd.f32 %v944_v52, %v14514_v19  ;;  %v13439_v19 = vld [vmem:[%s17835_s1 + $0x88] sm:$0xff]  ;;  %3593 = vmatpush.bf16.msrb.mxu0 %v13431_v61  ;;  %v10540_v37 = vor.u32 %v13337_v3, %v10539_v60  ;;  %v3072_v52 = vsel %vm235_vm0, %v3067_v15, %v14805_v20 }
 0x17b   : > { %v14786_v62 = vadd.f32 %v2236_v42, %v2188_v51  ;;  %v1400_v63 = vperm.slane %v1336_v53, 0  ;;  %v1435_v50 = vsel %vm1415_vm2, %v1399_v11, %v1434_v0  ;;  %v10326_v4 = vrot.slane %v1039_v28, 9  ;;  %3642 = vmatpush.bf16.msrb.mxu1 %v13439_v19  ;;  %3691 = vmatpush.bf16.msrb.mxu2 %v13447_v6  ;;  %v13438_v42 = vld [vmem:[%s17835_s1 + $0x80] sm:$0xff] }
 0x17c   : > { %v1177_v5 = vmax.f32 %v1007_v40, %v10325_v57  ;;  %v972_v13 = vmul.f32 %v14546_v24, %v945_v2  ;;  %v10544_v40 = vor.u32 %v13335_v49, %v10541_v14  ;;  %v3003_v11 = vunpack.c.l.b16 %v2953_v29 }
 0x17d   : > { %v1178_v47 = vmax.f32 %v1039_v28, %v10326_v4  ;;  %v1436_v25 = vsel %vm1417_vm3, %v1400_v63, %v1435_v50  ;;  %v13542_v28 = vld [vmem:[%s17836_s2] sm:$0xff] }
 0x17e   : > { %v10357_v21 = vrot.slane %v1177_v5, 10  ;;  %v992_v23 = vadd.f32 %v14552_v36, %v972_v13  ;;  %3594 = vmatpush.bf16.msrb.mxu0 %v13430_v41  ;;  %4529 = vmatpush.bf16.msrb.mxu3 %v13542_v28  ;;  %v13341_v41 = vld [vmem:[%s14092_s22 + $0x1f4] sm:$0xf0] }
 0x17f   : > { %v10358_v31 = vrot.slane %v1178_v47, 10  ;;  %3643 = vmatpush.bf16.msrb.mxu1 %v13438_v42  ;;  %3692 = vmatpush.bf16.msrb.mxu2 %v13446_v30 }
 0x180   : > { %v1337_v44 = vmax.f32 %v1177_v5, %v10357_v21  ;;  %v2189_v18 = vpop.f32.mrf.mxu2  ;;  %v1008_v43 = vmax.f32 %v992_v23, 0.0  ;;  %v947_v8 = vpop.f32.mrf.mxu0  ;;  %v3012_v5 = vpack.c.b16 %v3003_v11, %v3003_v11 }
 0x181   : > { %v2238_v35 = vpop.f32.mrf.mxu3  ;;  %v2190_v46 = vadd.f32 %v2189_v18, %v1788_v12  ;;  %v1791_v51 = vpop.f32.mrf.mxu1  ;;  %v1338_v54 = vmax.f32 %v1178_v47, %v10358_v31  ;;  %v948_v53 = vadd.f32 %v947_v8, %v14517_v32 }
 0x182   : > { %v1401_v55 = vperm.slane %v1337_v44, 0  ;;  %v1040_v57 = vrot.slane %v1008_v43, 4  ;;  %v10327_v0 = vrot.slane %v1008_v43, 9  ;;  %v3077_v29 = vshll.u32 %v3012_v5, 16 }
 0x183   : > { %v14830_v2 = vadd.f32 %v2238_v35, %v2190_v46  ;;  %v1402_v12 = vperm.slane %v1338_v54, 0  ;;  %v973_v3 = vmul.f32 %v14546_v24, %v948_v53  ;;  %2289 = vmatmul.bf16.gmra.mxu0 %v10540_v37  ;;  %v13420_v54 = vld [vmem:[%s14092_s22 + $0x2ec] sm:$0xf0] }
 0x184   : > { %v1437_v60 = vsel %vm1419_vm4, %v1401_v55, %v1436_v25  ;;  %2338 = vmatmul.bf16.gmra.mxu1 %v10544_v40  ;;  %v10328_v32 = vrot.slane %v1040_v57, 9  ;;  %v1179_v63 = vmax.f32 %v1008_v43, %v10327_v0  ;;  %v3073_v25 = vshrl.u32 %v14759_v26, 16  ;;  %v10555_v40 = vld [vmem:[%s14092_s22 + $0x1e8] sm:$0xf]  ;;  %v13339_v43 = vld [vmem:[%s14092_s22 + $0x1ec] sm:$0xf] }
 0x185   : > { %3175 = vmatmul.bf16.gmra.mxu2 %v3072_v52  ;;  %v1438_v50 = vsel %vm1421_vm5, %v1402_v12, %v1437_v60  ;;  %v993_v4 = vadd.f32 %v14552_v36, %v973_v3  ;;  %v3079_v52 = vrot.slane %v3077_v29, 1  ;;  %v13534_v53 = vld [vmem:[%s14092_s22 + $0x30c] sm:$0xf0]  ;;  %v10556_v12 = vor.u32 %v13341_v41, %v10555_v40 }
 0x186   : > { %3576 = vmatmul.bf16.gmra.mxu3 %v10916_v48  ;;  %v1180_v61 = vmax.f32 %v1040_v57, %v10328_v32  ;;  %v10359_v19 = vrot.slane %v1179_v63, 10  ;;  %v10931_v48 = vld [vmem:[%s14092_s22 + $0x2e0] sm:$0xf] }
 0x187   : > { %v1009_v6 = vmax.f32 %v993_v4, 0.0 }
 0x188   : > { %v2192_v13 = vpop.f32.mrf.mxu2  ;;  %v10360_v14 = vrot.slane %v1180_v61, 10  ;;  %v1339_v15 = vmax.f32 %v1179_v63, %v10359_v19  ;;  %v949_v47 = vpop.f32.mrf.mxu0  ;;  %v10932_v63 = vor.u32 %v13420_v54, %v10931_v48  ;;  %v13535_v19 = vld [vmem:[%s14092_s22 + $0x32c] sm:$0xf0] }
 0x189   : > { %v2241_v49 = vpop.f32.mrf.mxu3  ;;  %v2193_v39 = vadd.f32 %v2192_v13, %v1791_v51  ;;  %v1793_v21 = vpop.f32.mrf.mxu1  ;;  %v1041_v27 = vrot.slane %v1009_v6, 4  ;;  %v10329_v17 = vrot.slane %v1009_v6, 9  ;;  %v950_v23 = vadd.f32 %v949_v47, %v14528_v58  ;;  %v10557_v58 = vld [vmem:[%s14092_s22 + $0x1f8] sm:$0xf0] }
 0x18a   : > { %v1340_v31 = vmax.f32 %v1180_v61, %v10360_v14  ;;  %v1403_v44 = vperm.slane %v1339_v15, 0  ;;  %v3075_v51 = vor.u32 %v3073_v25, %v14805_v20  ;;  %v10560_v60 = vor.u32 %v13339_v43, %v10557_v58  ;;  %v11143_v61 = vld [vmem:[%s14092_s22 + $0x320] sm:$0xf] }
 0x18b   : > { %v14838_v18 = vadd.f32 %v2241_v49, %v2193_v39  ;;  %v10330_v35 = vrot.slane %v1041_v27, 9  ;;  %v974_v37 = vmul.f32 %v14546_v24, %v950_v23  ;;  %v1181_v30 = vmax.f32 %v1009_v6, %v10329_v17  ;;  %v11139_v24 = vld [vmem:[%s14092_s22 + $0x300] sm:$0xf] }
 0x18c   : > { %v1404_v26 = vperm.slane %v1340_v31, 0  ;;  %v1439_v42 = vsel %vm1423_vm6, %v1403_v44, %v1438_v50  ;;  %v3080_v5 = vsel %vm235_vm0, %v3075_v51, %v3079_v52  ;;  %v11140_v6 = vor.u32 %v13534_v53, %v11139_v24 }
 0x18d   : > { %v1182_v46 = vmax.f32 %v1041_v27, %v10330_v35  ;;  %v994_v8 = vadd.f32 %v14552_v36, %v974_v37  ;;  %v10361_v3 = vrot.slane %v1181_v30, 10  ;;  %v14862_v27 = vor.u32 %v13535_v19, %v11143_v61 }
 0x18e   : > { %v1440_v55 = vsel %vm1425_vm7, %v1404_v26, %v1439_v42  ;;  %v4401_v29 = vshll.u32 %v11140_v6, 16  ;;  %v4399_v26 = vshrl.u32 %v11140_v6, 16 }
 0x18f   : > { %1454 = vst [vmem:[#allocation2 + $0x10] sm:$0xff] %v1440_v55  ;;  %v10362_v11 = vrot.slane %v1182_v46, 10  ;;  %v1010_v28 = vmax.f32 %v994_v8, 0.0  ;;  %v1341_v47 = vmax.f32 %v1181_v30, %v10361_v3  ;;  %v4406_v8 = vshll.u32 %v14862_v27, 16 }
 0x190   : > { %v2194_v57 = vpop.f32.mrf.mxu2  ;;  %v952_v32 = vpop.f32.mrf.mxu0  ;;  %v4403_v54 = vrot.slane %v4401_v29, 1 }
 0x191   : > { %v2243_v0 = vpop.f32.mrf.mxu3  ;;  %v2195_v36 = vadd.f32 %v2194_v57, %v1793_v21  ;;  %v1796_v20 = vpop.f32.mrf.mxu1  ;;  %v1042_v50 = vrot.slane %v1010_v28, 4  ;;  %v10331_v4 = vrot.slane %v1010_v28, 9  ;;  %v1342_v13 = vmax.f32 %v1182_v46, %v10362_v11  ;;  %v13918_v21 = vld [vmem:[%s17841_s7] ss:$0 sm:$0xff] }
 0x192   : > { %v953_v14 = vadd.f32 %v952_v32, %v14535_v10  ;;  %v13919_v10 = vld [vmem:[%s17842_s8] ss:$0 sm:$0xff]  ;;  %v1405_v42 = vperm.slane %v1341_v47, 0  ;;  %v10827_v32 = vld [vmem:[%s14092_s22 + $0x208] sm:$0xf]  ;;  %v14880_v61 = vrot.slane %v4406_v8, 1 }
 0x193   : > { %v14856_v49 = vadd.f32 %v2243_v0, %v2195_v36  ;;  %v10332_v15 = vrot.slane %v1042_v50, 9  ;;  %v1183_v39 = vmax.f32 %v1010_v28, %v10331_v4  ;;  %2294 = vmatmul.bf16.gmra.mxu0 %v10556_v12  ;;  %v1406_v31 = vperm.slane %v1342_v13, 0  ;;  %v13390_v12 = vld [vmem:[%s14092_s22 + $0x204] sm:$0xf]  ;;  %v10829_v4 = vld [vmem:[%s14092_s22 + $0x218] sm:$0xf0] }
 0x194   : > { %2343 = vmatmul.bf16.gmra.mxu1 %v10560_v60  ;;  %v975_v25 = vmul.f32 %v13918_v21, %v953_v14  ;;  %v10821_v60 = vld [vmem:[%s14092_s22 + $0x210] sm:$0xf0] }
 0x195   : > { %3180 = vmatmul.bf16.gmra.mxu2 %v3080_v5  ;;  %v1184_v17 = vmax.f32 %v1042_v50, %v10332_v15  ;;  %v10363_v23 = vrot.slane %v1183_v39, 10  ;;  %v1441_v55 = vsel %vm1413_vm1, %v1406_v31, %v1405_v42  ;;  %v13391_v50 = vld [vmem:[%s14092_s22 + $0x20c] sm:$0xf]  ;;  %v4404_v5 = vor.u32 %v4403_v54, %v4399_v26  ;;  %v14885_v31 = vld [vmem:[%s17841_s7] ss:$0 sm:$0xff] }
 0x196   : > { %3581 = vmatmul.bf16.gmra.mxu3 %v10932_v63  ;;  %v995_v44 = vadd.f32 %v13919_v10, %v975_v25  ;;  %v13536_v26 = vld [vmem:[%s14092_s22 + $0x34c] sm:$0xf0] }
 0x197   : > { %v10364_v35 = vrot.slane %v1184_v17, 10  ;;  %v1343_v37 = vmax.f32 %v1183_v39, %v10363_v23  ;;  %v10824_v39 = vor.u32 %v13390_v12, %v10821_v60 }
 0x198   : > { %v2197_v40 = vpop.f32.mrf.mxu2  ;;  %v1011_v30 = vmax.f32 %v995_v44, 0.0  ;;  %v954_v58 = vpop.f32.mrf.mxu0 }
 0x199   : > { %v2246_v41 = vpop.f32.mrf.mxu3  ;;  %v2198_v43 = vadd.f32 %v2197_v40, %v1796_v20  ;;  %v1798_v46 = vpop.f32.mrf.mxu1  ;;  %v1344_v51 = vmax.f32 %v1184_v17, %v10364_v35  ;;  %v1407_v52 = vperm.slane %v1343_v37, 0  ;;  %v955_v48 = vadd.f32 %v954_v58, %v14555_v38  ;;  %v13393_v20 = vld [vmem:[%s14092_s22 + $0x214] sm:$0xf0] }
 0x19a   : > { %v1043_v24 = vrot.slane %v1011_v30, 4  ;;  %v10333_v53 = vrot.slane %v1011_v30, 9  ;;  %v10828_v47 = vor.u32 %v13393_v20, %v10827_v32  ;;  %v4409_v40 = vsel %vm235_vm0, %v4404_v5, %v14880_v61 }
 0x19b   : > { %v14870_v11 = vadd.f32 %v2246_v41, %v2198_v43  ;;  %v1408_v28 = vperm.slane %v1344_v51, 0  ;;  %v1442_v57 = vsel %vm1415_vm2, %v1407_v52, %v1441_v55  ;;  %v976_v0 = vmul.f32 %v13918_v21, %v955_v48  ;;  %v11147_v41 = vld [vmem:[%s14092_s22 + $0x340] sm:$0xf] }
 0x19c   : > { %v10334_v3 = vrot.slane %v1043_v24, 9  ;;  %v1185_v36 = vmax.f32 %v1011_v30, %v10333_v53  ;;  %v14897_v51 = vld [vmem:[%s17842_s8] ss:$0 sm:$0xff]  ;;  %v14900_v48 = vor.u32 %v13536_v26, %v11147_v41  ;;  %v4410_v20 = vshrl.u32 %v14862_v27, 16 }
 0x19d   : > { %v1443_v38 = vsel %vm1417_vm3, %v1408_v28, %v1442_v57  ;;  %v996_v63 = vadd.f32 %v13919_v10, %v976_v0  ;;  %v10832_v10 = vor.u32 %v13391_v50, %v10829_v4 }
 0x19e   : > { %v1186_v19 = vmax.f32 %v1043_v24, %v10334_v3  ;;  %v10365_v6 = vrot.slane %v1185_v36, 10 }
 0x19f   : > { %v1012_v13 = vmax.f32 %v996_v63, 0.0 }
 0x1a0   : > { %v2199_v14 = vpop.f32.mrf.mxu2  ;;  %v10366_v21 = vrot.slane %v1186_v19, 10  ;;  %v1345_v25 = vmax.f32 %v1185_v36, %v10365_v6  ;;  %v2260_v23 = vpop.f32.mrf.mxu0 }
 0x1a1   : > { %v2248_v15 = vpop.f32.mrf.mxu3  ;;  %v2200_v17 = vadd.f32 %v2199_v14, %v1798_v46  ;;  %v2309_v29 = vpop.f32.mrf.mxu1  ;;  %v1044_v44 = vrot.slane %v1012_v13, 4  ;;  %v10335_v35 = vrot.slane %v1012_v13, 9  ;;  %v2261_v37 = vadd.f32 %v2260_v23, %v14566_v59  ;;  %v13395_v23 = vld [vmem:[%s14092_s22 + $0x22c] sm:$0xf] }
 0x1a2   : > { %v1346_v42 = vmax.f32 %v1186_v19, %v10366_v21  ;;  %v1409_v30 = vperm.slane %v1345_v25, 0  ;;  %v10843_v21 = vld [vmem:[%s14092_s22 + $0x228] sm:$0xf]  ;;  %v13397_v25 = vld [vmem:[%s14092_s22 + $0x234] sm:$0xf0] }
 0x1a3   : > { %v14892_v43 = vadd.f32 %v2248_v15, %v2200_v17  ;;  %v10336_v58 = vrot.slane %v1044_v44, 9  ;;  %v1187_v46 = vmax.f32 %v1012_v13, %v10335_v35  ;;  %v2310_v8 = vadd.f32 %v2309_v29, %v2261_v37  ;;  %3595 = vmatmul.bf16.vlgmr.msrb.gmra.mxu0 %v10824_v39  ;;  %v13394_v15 = vld [vmem:[%s14092_s22 + $0x224] sm:$0xf]  ;;  %v10845_v29 = vld [vmem:[%s14092_s22 + $0x238] sm:$0xf0] }
 0x1a4   : > { %3644 = vmatmul.bf16.vlgmr.msrb.gmra.mxu1 %v10828_v47  ;;  %v1410_v59 = vperm.slane %v1346_v42, 0  ;;  %v1444_v52 = vsel %vm1419_vm4, %v1409_v30, %v1443_v38  ;;  %v4414_v38 = vshll.u32 %v14900_v48, 16  ;;  %v10837_v47 = vld [vmem:[%s14092_s22 + $0x230] sm:$0xf0]  ;;  %v10844_v42 = vor.u32 %v13397_v25, %v10843_v21 }
 0x1a5   : > { %3693 = vmatmul.bf16.vlgmr.msrb.gmra.mxu2 %v10832_v10  ;;  %v1188_v54 = vmax.f32 %v1044_v44, %v10336_v58  ;;  %v10367_v55 = vrot.slane %v1187_v46, 10  ;;  %v2353_v24 = vmul.f32 %v14885_v31, %v2310_v8  ;;  %v4412_v10 = vor.u32 %v4410_v20, %v14880_v61 }
 0x1a6   : > { %4530 = vmatmul.bf16.vlgmr.msrb.gmra.mxu3 %v4409_v40  ;;  %v1445_v53 = vsel %vm1421_vm5, %v1410_v59, %v1444_v52  ;;  %v4416_v44 = vrot.slane %v4414_v38, 1  ;;  %v10840_v26 = vor.u32 %v13394_v15, %v10837_v47  ;;  %v10848_v59 = vor.u32 %v13395_v23, %v10845_v29  ;;  %v13398_v23 = vld [vmem:[%s14092_s22 + $0x244] sm:$0xf] }
 0x1a7   : > { %v10368_v28 = vrot.slane %v1188_v54, 10  ;;  %v1347_v57 = vmax.f32 %v1187_v46, %v10367_v55  ;;  %v2373_v0 = vadd.f32 %v14897_v51, %v2353_v24  ;;  %v11151_v55 = vld [vmem:[%s14092_s22 + $0x360] sm:$0xf]  ;;  %v13537_v24 = vld [vmem:[%s14092_s22 + $0x36c] sm:$0xf0] }
 0x1a8   : > { %v3146_v12 = vpop.f32.mrf.mxu2  ;;  %v2262_v36 = vpop.f32.mrf.mxu0 }
 0x1a9   : > { %v3547_v60 = vpop.f32.mrf.mxu3  ;;  %v2311_v32 = vpop.f32.mrf.mxu1  ;;  %v1348_v63 = vmax.f32 %v1188_v54, %v10368_v28  ;;  %v1411_v50 = vperm.slane %v1347_v57, 0  ;;  %v2389_v4 = vmax.f32 %v2373_v0, 0.0  ;;  %v2263_v5 = vadd.f32 %v2262_v36, %v14580_v34 }
 0x1aa   : > { %v14905_v3 = vadd.f32 %v3547_v60, %v3146_v12  ;;  %v4417_v54 = vsel %vm235_vm0, %v4412_v10, %v4416_v44  ;;  %v14927_v60 = vor.u32 %v13537_v24, %v11151_v55 }
 0x1ab   : > { %v1412_v19 = vperm.slane %v1348_v63, 0  ;;  %v1446_v6 = vsel %vm1423_vm6, %v1411_v50, %v1445_v53  ;;  %v2421_v13 = vrot.slane %v2389_v4, 4  ;;  %v10689_v14 = vrot.slane %v2389_v4, 9 }
 0x1ac   : > { %v2312_v39 = vadd.f32 %v2311_v32, %v2263_v5  ;;  %v4418_v5 = vshrl.u32 %v14900_v48, 16 }
 0x1ad   : > { %v1447_v27 = vsel %vm1425_vm7, %v1412_v19, %v1446_v6  ;;  %v10690_v17 = vrot.slane %v2421_v13, 9  ;;  %v2549_v35 = vmax.f32 %v2389_v4, %v10689_v14 }
 0x1ae   : > { %1455 = vst [vmem:[#allocation2 + $0x18] sm:$0xff] %v1447_v27  ;;  %v2354_v34 = vmul.f32 %v14885_v31, %v2312_v39  ;;  %v4422_v39 = vshll.u32 %v14927_v60, 16 }
 0x1af   : > { %v2550_v37 = vmax.f32 %v2421_v13, %v10690_v17  ;;  %v10721_v28 = vrot.slane %v2549_v35, 10 }
 0x1b0   : > { %v3148_v40 = vpop.f32.mrf.mxu2  ;;  %v2374_v30 = vadd.f32 %v14897_v51, %v2354_v34  ;;  %v2265_v46 = vpop.f32.mrf.mxu0 }
 0x1b1   : > { %v3549_v41 = vpop.f32.mrf.mxu3  ;;  %v2314_v8 = vpop.f32.mrf.mxu1  ;;  %v10722_v61 = vrot.slane %v2550_v37, 10  ;;  %v2266_v52 = vadd.f32 %v2265_v46, %v14593_v7  ;;  %v2709_v38 = vmax.f32 %v2549_v35, %v10721_v28  ;;  %v10853_v35 = vld [vmem:[%s14092_s22 + $0x250] sm:$0xf0] }
 0x1b2   : > { %v14921_v58 = vadd.f32 %v3549_v41, %v3148_v40  ;;  %v2390_v53 = vmax.f32 %v2374_v30, 0.0  ;;  %v10859_v41 = vld [vmem:[%s14092_s22 + $0x248] sm:$0xf]  ;;  %v14940_v30 = vrot.slane %v4422_v39, 1 }
 0x1b3   : > { %v2315_v57 = vadd.f32 %v2314_v8, %v2266_v52  ;;  %3600 = vmatmul.bf16.gmra.mxu0 %v10840_v26  ;;  %v2710_v36 = vmax.f32 %v2550_v37, %v10722_v61  ;;  %v2773_v48 = vperm.slane %v2709_v38, 0  ;;  %v13401_v26 = vld [vmem:[%s14092_s22 + $0x254] sm:$0xf0]  ;;  %v13399_v61 = vld [vmem:[%s14092_s22 + $0x24c] sm:$0xf] }
 0x1b4   : > { %3649 = vmatmul.bf16.gmra.mxu1 %v10844_v42  ;;  %v2422_v0 = vrot.slane %v2390_v53, 4  ;;  %v10691_v12 = vrot.slane %v2390_v53, 9  ;;  %v4420_v42 = vor.u32 %v4418_v5, %v4416_v44  ;;  %v10861_v52 = vld [vmem:[%s14092_s22 + $0x258] sm:$0xf0] }
 0x1b5   : > { %3698 = vmatmul.bf16.gmra.mxu2 %v10848_v59  ;;  %v2355_v32 = vmul.f32 %v14885_v31, %v2315_v57  ;;  %v2774_v47 = vperm.slane %v2710_v36, 0  ;;  %v10860_v36 = vor.u32 %v13401_v26, %v10859_v41 }
 0x1b6   : > { %4535 = vmatmul.bf16.gmra.mxu3 %v4417_v54  ;;  %v10692_v20 = vrot.slane %v2422_v0, 9  ;;  %v2551_v7 = vmax.f32 %v2390_v53, %v10691_v12  ;;  %v13509_v54 = vld [vmem:[%s17835_s1 + $0x38] sm:$0xff]  ;;  %v10856_v53 = vor.u32 %v13398_v23, %v10853_v35 }
 0x1b7   : > { %v2375_v63 = vadd.f32 %v14897_v51, %v2355_v32  ;;  %v2805_v46 = vsel %vm1413_vm1, %v2774_v47, %v2773_v48  ;;  %4923 = vmatpush.bf16.msra.mxu0 %v13509_v54 }
 0x1b8   : > { %v3151_v50 = vpop.f32.mrf.mxu2  ;;  %v2552_v19 = vmax.f32 %v2422_v0, %v10692_v20  ;;  %v10723_v6 = vrot.slane %v2551_v7, 10  ;;  %v2267_v14 = vpop.f32.mrf.mxu0 }
 0x1b9   : > { %v3552_v4 = vpop.f32.mrf.mxu3  ;;  %v2316_v15 = vpop.f32.mrf.mxu1  ;;  %v2391_v21 = vmax.f32 %v2375_v63, 0.0  ;;  %v2268_v25 = vadd.f32 %v2267_v14, %v14616_v1  ;;  %v10864_v63 = vor.u32 %v13399_v61, %v10861_v52  ;;  %v11155_v14 = vld [vmem:[%s14092_s22 + $0x380] sm:$0xf] }
 0x1ba   : > { %v14932_v13 = vadd.f32 %v3552_v4, %v3151_v50  ;;  %v10724_v27 = vrot.slane %v2552_v19, 10  ;;  %v2711_v17 = vmax.f32 %v2551_v7, %v10723_v6  ;;  %v4425_v50 = vsel %vm235_vm0, %v4420_v42, %v14940_v30 }
 0x1bb   : > { %v2423_v29 = vrot.slane %v2391_v21, 4  ;;  %v10693_v10 = vrot.slane %v2391_v21, 9  ;;  %v2317_v34 = vadd.f32 %v2316_v15, %v2268_v25  ;;  %v13538_v15 = vld [vmem:[%s14092_s22 + $0x38c] sm:$0xf0] }
 0x1bc   : > { %v2712_v37 = vmax.f32 %v2552_v19, %v10724_v27  ;;  %v2775_v40 = vperm.slane %v2711_v17, 0  ;;  %v14959_v17 = vor.u32 %v13538_v15, %v11155_v14 }
 0x1bd   : > { %v10694_v1 = vrot.slane %v2423_v29, 9  ;;  %v2553_v8 = vmax.f32 %v2391_v21, %v10693_v10  ;;  %v2356_v59 = vmul.f32 %v14885_v31, %v2317_v34 }
 0x1be   : > { %v2776_v55 = vperm.slane %v2712_v37, 0  ;;  %v2806_v24 = vsel %vm1415_vm2, %v2775_v40, %v2805_v46  ;;  %v4430_v54 = vshll.u32 %v14959_v17, 16 }
 0x1bf   : > { %v2554_v28 = vmax.f32 %v2423_v29, %v10694_v1  ;;  %v10725_v44 = vrot.slane %v2553_v8, 10  ;;  %v2376_v57 = vadd.f32 %v14897_v51, %v2356_v59 }
 0x1c0   : > { %v3153_v0 = vpop.f32.mrf.mxu2  ;;  %v2807_v32 = vsel %vm1417_vm3, %v2776_v55, %v2806_v24  ;;  %v2270_v7 = vpop.f32.mrf.mxu0 }
 0x1c1   : > { %v3554_v12 = vpop.f32.mrf.mxu3  ;;  %v2319_v38 = vpop.f32.mrf.mxu1  ;;  %v10726_v4 = vrot.slane %v2554_v28, 10  ;;  %v2713_v5 = vmax.f32 %v2553_v8, %v10725_v44  ;;  %v2392_v19 = vmax.f32 %v2376_v57, 0.0  ;;  %v2271_v6 = vadd.f32 %v2270_v7, %v14626_v33  ;;  %v13402_v44 = vld [vmem:[%s14092_s22 + $0x264] sm:$0xf]  ;;  %v10869_v57 = vld [vmem:[%s14092_s22 + $0x270] sm:$0xf0] }
 0x1c2   : > { %v14952_v20 = vadd.f32 %v3554_v12, %v3153_v0  ;;  %v4426_v8 = vshrl.u32 %v14927_v60, 16 }
 0x1c3   : > { %v2714_v39 = vmax.f32 %v2554_v28, %v10726_v4  ;;  %v2777_v47 = vperm.slane %v2713_v5, 0  ;;  %v2424_v21 = vrot.slane %v2392_v19, 4  ;;  %v10695_v25 = vrot.slane %v2392_v19, 9  ;;  %3605 = vmatmul.bf16.gmra.mxu0 %v10856_v53 }
 0x1c4   : > { %3654 = vmatmul.bf16.gmra.mxu1 %v10860_v36  ;;  %v2320_v27 = vadd.f32 %v2319_v38, %v2271_v6  ;;  %v10875_v36 = vld [vmem:[%s14092_s22 + $0x268] sm:$0xf]  ;;  %v4428_v60 = vor.u32 %v4426_v8, %v14940_v30  ;;  %v14979_v4 = vrot.slane %v4430_v54, 1  ;;  %v10872_v30 = vor.u32 %v13402_v44, %v10869_v57 }
 0x1c5   : > { %3703 = vmatmul.bf16.gmra.mxu2 %v10864_v63  ;;  %v2778_v23 = vperm.slane %v2714_v39, 0  ;;  %v2808_v48 = vsel %vm1419_vm4, %v2777_v47, %v2807_v32  ;;  %v10696_v29 = vrot.slane %v2424_v21, 9  ;;  %v2555_v10 = vmax.f32 %v2392_v19, %v10695_v25  ;;  %v13405_v32 = vld [vmem:[%s14092_s22 + $0x274] sm:$0xf0]  ;;  %v13403_v63 = vld [vmem:[%s14092_s22 + $0x26c] sm:$0xf] }
 0x1c6   : > { %4540 = vmatmul.bf16.gmra.mxu3 %v4425_v50  ;;  %v2357_v33 = vmul.f32 %v14885_v31, %v2320_v27  ;;  %v10877_v50 = vld [vmem:[%s14092_s22 + $0x278] sm:$0xf0]  ;;  %v10876_v47 = vor.u32 %v13405_v32, %v10875_v36 }
 0x1c7   : > { %v2809_v34 = vsel %vm1421_vm5, %v2778_v23, %v2808_v48  ;;  %v2556_v35 = vmax.f32 %v2424_v21, %v10696_v29  ;;  %v10727_v37 = vrot.slane %v2555_v10, 10  ;;  %v10880_v48 = vor.u32 %v13403_v63, %v10877_v50  ;;  %v11159_v29 = vld [vmem:[%s14092_s22 + $0x3a0] sm:$0xf] }
 0x1c8   : > { %v3156_v40 = vpop.f32.mrf.mxu2  ;;  %v2377_v26 = vadd.f32 %v14897_v51, %v2357_v33  ;;  %v2272_v46 = vpop.f32.mrf.mxu0 }
 0x1c9   : > { %v3557_v41 = vpop.f32.mrf.mxu3  ;;  %v2321_v1 = vpop.f32.mrf.mxu1  ;;  %v10728_v59 = vrot.slane %v2556_v35, 10  ;;  %v2715_v61 = vmax.f32 %v2555_v10, %v10727_v37  ;;  %v2273_v52 = vadd.f32 %v2272_v46, %v14653_v16  ;;  %v13525_v37 = vld [vmem:[%s17835_s1 + $0xb8] sm:$0xff] }
 0x1ca   : > { %v14965_v42 = vadd.f32 %v3557_v41, %v3156_v40  ;;  %v2393_v55 = vmax.f32 %v2377_v26, 0.0  ;;  %v13539_v40 = vld [vmem:[%s14092_s22 + $0x3ac] sm:$0xf0]  ;;  %5021 = vmatpush.bf16.msra.mxu2 %v13525_v37 }
 0x1cb   : > { %v2716_v24 = vmax.f32 %v2556_v35, %v10728_v59  ;;  %v2779_v53 = vperm.slane %v2715_v61, 0  ;;  %v2322_v28 = vadd.f32 %v2321_v1, %v2273_v52  ;;  %v13508_v35 = vld [vmem:[%s17835_s1 + $0x30] sm:$0xff]  ;;  %v14996_v59 = vor.u32 %v13539_v40, %v11159_v29  ;;  %v13407_v29 = vld [vmem:[%s14092_s22 + $0x28c] sm:$0xf]  ;;  %v10893_v40 = vld [vmem:[%s14092_s22 + $0x298] sm:$0xf0] }
 0x1cc   : > { %v2425_v0 = vrot.slane %v2393_v55, 4  ;;  %v10697_v12 = vrot.slane %v2393_v55, 9  ;;  %4924 = vmatpush.bf16.msra.mxu0 %v13508_v35 }
 0x1cd   : > { %v2780_v7 = vperm.slane %v2716_v24, 0  ;;  %v2810_v38 = vsel %vm1423_vm6, %v2779_v53, %v2809_v34  ;;  %v2358_v16 = vmul.f32 %v14885_v31, %v2322_v28  ;;  %v4433_v34 = vsel %vm235_vm0, %v4428_v60, %v14979_v4 }
 0x1ce   : > { %v10698_v5 = vrot.slane %v2425_v0, 9  ;;  %v2557_v19 = vmax.f32 %v2393_v55, %v10697_v12  ;;  %v13517_v12 = vld [vmem:[%s17835_s1 + $0x78] sm:$0xff] }
 0x1cf   : > { %v2811_v6 = vsel %vm1425_vm7, %v2780_v7, %v2810_v38  ;;  %v2378_v14 = vadd.f32 %v14897_v51, %v2358_v16  ;;  %v4434_v38 = vshrl.u32 %v14959_v17, 16  ;;  %v4438_v16 = vshll.u32 %v14996_v59, 16  ;;  %4972 = vmatpush.bf16.msra.mxu1 %v13517_v12  ;;  %v10891_v17 = vld [vmem:[%s14092_s22 + $0x288] sm:$0xf] }
 0x1d0   : > { %v3158_v15 = vpop.f32.mrf.mxu2  ;;  %2837 = vst [vmem:[#allocation2 + $0x20] sm:$0xff] %v2811_v6  ;;  %v2558_v21 = vmax.f32 %v2425_v0, %v10698_v5  ;;  %v2275_v27 = vpop.f32.mrf.mxu0  ;;  %v10729_v41 = vrot.slane %v2557_v19, 10  ;;  %v13533_v0 = vld [vmem:[%s17835_s1 + $0xf8] sm:$0xff] }
 0x1d1   : > { %v3559_v39 = vpop.f32.mrf.mxu3  ;;  %v2324_v23 = vpop.f32.mrf.mxu1  ;;  %v2394_v10 = vmax.f32 %v2378_v14, 0.0  ;;  %v2276_v33 = vadd.f32 %v2275_v27, %v14668_v56  ;;  %5070 = vmatpush.bf16.msra.mxu3 %v13533_v0  ;;  %v13406_v14 = vld [vmem:[%s14092_s22 + $0x284] sm:$0xf] }
 0x1d2   : > { %v14983_v25 = vadd.f32 %v3559_v39, %v3158_v15  ;;  %v10730_v26 = vrot.slane %v2558_v21, 10  ;;  %v2717_v55 = vmax.f32 %v2557_v19, %v10729_v41  ;;  %v10885_v15 = vld [vmem:[%s14092_s22 + $0x290] sm:$0xf0]  ;;  %v13507_v41 = vld [vmem:[%s17835_s1 + $0x28] sm:$0xff] }
 0x1d3   : > { %v2426_v46 = vrot.slane %v2394_v10, 4  ;;  %v10699_v1 = vrot.slane %v2394_v10, 9  ;;  %v2325_v8 = vadd.f32 %v2324_v23, %v2276_v33  ;;  %3610 = vmatmul.bf16.gmra.mxu0 %v10872_v30  ;;  %v15018_v33 = vrot.slane %v4438_v16, 1 }
 0x1d4   : > { %3659 = vmatmul.bf16.gmra.mxu1 %v10876_v47  ;;  %v2718_v56 = vmax.f32 %v2558_v21, %v10730_v26  ;;  %v2781_v6 = vperm.slane %v2717_v55, 0  ;;  %v13524_v26 = vld [vmem:[%s17835_s1 + $0xb0] sm:$0xff]  ;;  %4925 = vmatpush.bf16.msra.mxu0 %v13507_v41  ;;  %v4442_v41 = vshrl.u32 %v14996_v59, 16  ;;  %v13531_v59 = vld [vmem:[%s17835_s1 + $0xe8] sm:$0xff] }
 0x1d5   : > { %3708 = vmatmul.bf16.gmra.mxu2 %v10880_v48  ;;  %v10700_v61 = vrot.slane %v2426_v46, 9  ;;  %v2559_v52 = vmax.f32 %v2394_v10, %v10699_v1  ;;  %v2359_v54 = vmul.f32 %v14885_v31, %v2325_v8  ;;  %v13409_v48 = vld [vmem:[%s14092_s22 + $0x294] sm:$0xf0]  ;;  %v4436_v10 = vor.u32 %v4434_v38, %v14979_v4  ;;  %v13540_v38 = vld [vmem:[%s14092_s22 + $0x3cc] sm:$0xf0] }
 0x1d6   : > { %4545 = vmatmul.bf16.gmra.mxu3 %v4433_v34  ;;  %v2782_v36 = vperm.slane %v2718_v56, 0  ;;  %v10888_v1 = vor.u32 %v13406_v14, %v10885_v15  ;;  %5022 = vmatpush.bf16.msra.mxu2 %v13524_v26 }
 0x1d7   : > { %v2560_v24 = vmax.f32 %v2426_v46, %v10700_v61  ;;  %v10731_v53 = vrot.slane %v2559_v52, 10  ;;  %v2379_v28 = vadd.f32 %v14897_v51, %v2359_v54  ;;  %v10892_v54 = vor.u32 %v13409_v48, %v10891_v17  ;;  %v13516_v48 = vld [vmem:[%s17835_s1 + $0x70] sm:$0xff] }
 0x1d8   : > { %v3161_v44 = vpop.f32.mrf.mxu2  ;;  %v2277_v60 = vpop.f32.mrf.mxu0  ;;  %v2812_v27 = vsel %vm1413_vm1, %v2782_v36, %v2781_v6  ;;  %v4441_v36 = vsel %vm235_vm0, %v4436_v10, %v15018_v33  ;;  %4973 = vmatpush.bf16.msra.mxu1 %v13516_v48  ;;  %v13530_v48 = vld [vmem:[%s17835_s1 + $0xe0] sm:$0xff] }
 0x1d9   : > { %v3562_v57 = vpop.f32.mrf.mxu3  ;;  %v2326_v7 = vpop.f32.mrf.mxu1  ;;  %v10732_v63 = vrot.slane %v2560_v24, 10  ;;  %v2719_v50 = vmax.f32 %v2559_v52, %v10731_v53  ;;  %v2395_v5 = vmax.f32 %v2379_v28, 0.0  ;;  %v2278_v19 = vadd.f32 %v2277_v60, %v14692_v45 }
 0x1da   : > { %v15006_v32 = vadd.f32 %v3562_v57, %v3161_v44  ;;  %v10896_v44 = vor.u32 %v13407_v29, %v10893_v40 }
 0x1db   : > { %v2720_v39 = vmax.f32 %v2560_v24, %v10732_v63  ;;  %v2783_v30 = vperm.slane %v2719_v50, 0  ;;  %v2427_v47 = vrot.slane %v2395_v5, 4  ;;  %v10701_v21 = vrot.slane %v2395_v5, 9 }
 0x1dc   : > { %v2327_v23 = vadd.f32 %v2326_v7, %v2278_v19  ;;  %v11163_v7 = vld [vmem:[%s14092_s22 + $0x3c0] sm:$0xf] }
 0x1dd   : > { %v2784_v45 = vperm.slane %v2720_v39, 0  ;;  %v2813_v34 = vsel %vm1415_vm2, %v2783_v30, %v2812_v27  ;;  %v10702_v35 = vrot.slane %v2427_v47, 9  ;;  %v2561_v37 = vmax.f32 %v2395_v5, %v10701_v21 }
 0x1de   : > { %v2360_v46 = vmul.f32 %v14885_v31, %v2327_v23  ;;  %v15040_v15 = vor.u32 %v13540_v38, %v11163_v7  ;;  %v13532_v23 = vld [vmem:[%s17835_s1 + $0xf0] sm:$0xff] }
 0x1df   : > { %v2562_v4 = vmax.f32 %v2427_v47, %v10702_v35  ;;  %v10733_v8 = vrot.slane %v2561_v37, 10  ;;  %v2814_v56 = vsel %vm1417_vm3, %v2784_v45, %v2813_v34  ;;  %5071 = vmatpush.bf16.msra.mxu3 %v13532_v23 }
 0x1e0   : > { %v3163_v61 = vpop.f32.mrf.mxu2  ;;  %v2380_v55 = vadd.f32 %v14897_v51, %v2360_v46  ;;  %v2280_v53 = vpop.f32.mrf.mxu0  ;;  %v4446_v26 = vshll.u32 %v15040_v15, 16 }
 0x1e1   : > { %v3564_v52 = vpop.f32.mrf.mxu3  ;;  %v2329_v28 = vpop.f32.mrf.mxu1  ;;  %v10734_v57 = vrot.slane %v2562_v4, 10  ;;  %v2721_v0 = vmax.f32 %v2561_v37, %v10733_v8  ;;  %v2281_v12 = vadd.f32 %v2280_v53, %v14712_v22  ;;  %v10901_v8 = vld [vmem:[%s14092_s22 + $0x2b0] sm:$0xf0] }
 0x1e2   : > { %v15031_v24 = vadd.f32 %v3564_v52, %v3163_v61  ;;  %v2396_v60 = vmax.f32 %v2380_v55, 0.0  ;;  %v15072_v7 = vrot.slane %v4446_v26, 1 }
 0x1e3   : > { %v2722_v16 = vmax.f32 %v2562_v4, %v10734_v57  ;;  %v2785_v63 = vperm.slane %v2721_v0, 0  ;;  %v2330_v50 = vadd.f32 %v2329_v28, %v2281_v12  ;;  %3615 = vmatmul.bf16.gmra.mxu0 %v10888_v1  ;;  %v13410_v4 = vld [vmem:[%s14092_s22 + $0x2a4] sm:$0xf]  ;;  %v10907_v28 = vld [vmem:[%s14092_s22 + $0x2a8] sm:$0xf]  ;;  %5072 = vmatpush.bf16.msra.mxu3 %v13531_v59  ;;  %v13529_v59 = vld [vmem:[%s17835_s1 + $0xd8] sm:$0xff] }
 0x1e4   : > { %3664 = vmatmul.bf16.gmra.mxu1 %v10892_v54  ;;  %v2428_v5 = vrot.slane %v2396_v60, 4  ;;  %v10703_v19 = vrot.slane %v2396_v60, 9  ;;  %v13515_v54 = vld [vmem:[%s17835_s1 + $0x68] sm:$0xff] }
 0x1e5   : > { %3713 = vmatmul.bf16.gmra.mxu2 %v10896_v44  ;;  %v2786_v6 = vperm.slane %v2722_v16, 0  ;;  %v2815_v14 = vsel %vm1419_vm4, %v2785_v63, %v2814_v56  ;;  %v2361_v22 = vmul.f32 %v14885_v31, %v2330_v50  ;;  %v13413_v44 = vld [vmem:[%s14092_s22 + $0x2b4] sm:$0xf0]  ;;  %v13411_v12 = vld [vmem:[%s14092_s22 + $0x2ac] sm:$0xf]  ;;  %4974 = vmatpush.bf16.msra.mxu1 %v13515_v54 }
 0x1e6   : > { %4550 = vmatmul.bf16.gmra.mxu3 %v4441_v36  ;;  %v10704_v39 = vrot.slane %v2428_v5, 9  ;;  %v2563_v30 = vmax.f32 %v2396_v60, %v10703_v19  ;;  %v10909_v36 = vld [vmem:[%s14092_s22 + $0x2b8] sm:$0xf0]  ;;  %v4444_v60 = vor.u32 %v4442_v41, %v15018_v33  ;;  %v13506_v33 = vld [vmem:[%s17835_s1 + $0x20] sm:$0xff]  ;;  %v13541_v41 = vld [vmem:[%s14092_s22 + $0x3ec] sm:$0xf0] }
 0x1e7   : > { %v2816_v47 = vsel %vm1421_vm5, %v2786_v6, %v2815_v14  ;;  %v2381_v21 = vadd.f32 %v14897_v51, %v2361_v22  ;;  %v10904_v14 = vor.u32 %v13410_v4, %v10901_v8  ;;  %v10908_v22 = vor.u32 %v13413_v44, %v10907_v28  ;;  %4926 = vmatpush.bf16.msra.mxu0 %v13506_v33  ;;  %v13513_v8 = vld [vmem:[%s17835_s1 + $0x58] sm:$0xff]  ;;  %v15129_v33 = vld [vmem:[%s14092_s22 + $0x2c4] sm:$0xf] }
 0x1e8   : > { %v3166_v17 = vpop.f32.mrf.mxu2  ;;  %v2564_v29 = vmax.f32 %v2428_v5, %v10704_v39  ;;  %v10735_v10 = vrot.slane %v2563_v30, 10  ;;  %v2282_v34 = vpop.f32.mrf.mxu0  ;;  %v13522_v39 = vld [vmem:[%s17835_s1 + $0xa0] sm:$0xff]  ;;  %v10912_v23 = vor.u32 %v13411_v12, %v10909_v36  ;;  %5073 = vmatpush.bf16.msra.mxu3 %v13530_v48  ;;  %v13512_v12 = vld [vmem:[%s17835_s1 + $0x50] sm:$0xff] }
 0x1e9   : > { %v3567_v27 = vpop.f32.mrf.mxu3  ;;  %v2331_v35 = vpop.f32.mrf.mxu1  ;;  %v2397_v37 = vmax.f32 %v2381_v21, 0.0  ;;  %v2283_v40 = vadd.f32 %v2282_v34, %v14753_v9  ;;  %v13523_v9 = vld [vmem:[%s17835_s1 + $0xa8] sm:$0xff]  ;;  %v13520_v36 = vld [vmem:[%s17835_s1 + $0x90] sm:$0xff] }
 0x1ea   : > { %v15050_v45 = vadd.f32 %v3567_v27, %v3166_v17  ;;  %v10736_v46 = vrot.slane %v2564_v29, 10  ;;  %v2723_v1 = vmax.f32 %v2563_v30, %v10735_v10  ;;  %5023 = vmatpush.bf16.msra.mxu2 %v13523_v9  ;;  %v13514_v30 = vld [vmem:[%s17835_s1 + $0x60] sm:$0xff] }
 0x1eb   : > { %v2429_v56 = vrot.slane %v2397_v37, 4  ;;  %v10705_v61 = vrot.slane %v2397_v37, 9  ;;  %v2332_v52 = vadd.f32 %v2331_v35, %v2283_v40  ;;  %v4449_v35 = vsel %vm235_vm0, %v4444_v60, %v15072_v7  ;;  %v11167_v40 = vld [vmem:[%s14092_s22 + $0x3e0] sm:$0xf]  ;;  %4975 = vmatpush.bf16.msra.mxu1 %v13514_v30 }
 0x1ec   : > { %v2724_v55 = vmax.f32 %v2564_v29, %v10736_v46  ;;  %v2787_v53 = vperm.slane %v2723_v1, 0  ;;  %v13505_v1 = vld [vmem:[%s17835_s1 + $0x18] sm:$0xff]  ;;  %v15105_v9 = vor.u32 %v13541_v41, %v11167_v40  ;;  %5074 = vmatpush.bf16.msra.mxu3 %v13529_v59 }
 0x1ed   : > { %v10706_v57 = vrot.slane %v2429_v56, 9  ;;  %v2362_v0 = vmul.f32 %v14885_v31, %v2332_v52  ;;  %v2565_v63 = vmax.f32 %v2397_v37, %v10705_v61  ;;  %4927 = vmatpush.bf16.msra.mxu0 %v13505_v1  ;;  %v13527_v1 = vld [vmem:[%s17835_s1 + $0xc8] sm:$0xff] }
 0x1ee   : > { %v2788_v38 = vperm.slane %v2724_v55, 0  ;;  %v2817_v16 = vsel %vm1423_vm6, %v2787_v53, %v2816_v47  ;;  %5024 = vmatpush.bf16.msra.mxu2 %v13522_v39  ;;  %v10917_v39 = vld [vmem:[%s14092_s22 + $0x2d0] sm:$0xf0]  ;;  %v4454_v30 = vshll.u32 %v15105_v9, 16 }
 0x1ef   : > { %v2566_v50 = vmax.f32 %v2429_v56, %v10706_v57  ;;  %v2382_v5 = vadd.f32 %v14897_v51, %v2362_v0  ;;  %v10737_v37 = vrot.slane %v2565_v63, 10  ;;  %v13521_v56 = vld [vmem:[%s17835_s1 + $0x98] sm:$0xff]  ;;  %4976 = vmatpush.bf16.msra.mxu1 %v13513_v8  ;;  %v13504_v0 = vld [vmem:[%s17835_s1 + $0x10] sm:$0xff] }
 0x1f0   : > { %v3168_v19 = vpop.f32.mrf.mxu2  ;;  %v2818_v47 = vsel %vm1425_vm7, %v2788_v38, %v2817_v16  ;;  %v2285_v17 = vpop.f32.mrf.mxu0 }
 0x1f1   : > { %v3569_v6 = vpop.f32.mrf.mxu3  ;;  %v2334_v27 = vpop.f32.mrf.mxu1  ;;  %2838 = vst [vmem:[#allocation2 + $0x28] sm:$0xff] %v2818_v47  ;;  %v10738_v29 = vrot.slane %v2566_v50, 10  ;;  %v2398_v10 = vmax.f32 %v2382_v5, 0.0  ;;  %v2286_v34 = vadd.f32 %v2285_v17, %v14786_v62  ;;  %v2725_v54 = vmax.f32 %v2565_v63, %v10737_v37  ;;  %4928 = vmatpush.bf16.msra.mxu0 %v13504_v0  ;;  %v13502_v0 = vld [vmem:[%s17835_s1] sm:$0xff] }
 0x1f2   : > { %v15086_v21 = vadd.f32 %v3569_v6, %v3168_v19  ;;  %5025 = vmatpush.bf16.msra.mxu2 %v13521_v56  ;;  %v4450_v5 = vshrl.u32 %v15040_v15, 16  ;;  %v13528_v19 = vld [vmem:[%s17835_s1 + $0xd0] sm:$0xff]  ;;  %v13415_v15 = vld [vmem:[%s14092_s22 + $0x2cc] sm:$0xf]  ;;  %v15153_v56 = vrot.slane %v4454_v30, 1 }
 0x1f3   : > { %v2430_v26 = vrot.slane %v2398_v10, 4  ;;  %v10707_v46 = vrot.slane %v2398_v10, 9  ;;  %3620 = vmatmul.bf16.gmra.mxu0 %v10904_v14  ;;  %v2726_v4 = vmax.f32 %v2566_v50, %v10738_v29  ;;  %v2335_v62 = vadd.f32 %v2334_v27, %v2286_v34  ;;  %v10923_v27 = vld [vmem:[%s14092_s22 + $0x2c8] sm:$0xf]  ;;  %4977 = vmatpush.bf16.msra.mxu1 %v13512_v12  ;;  %v13510_v12 = vld [vmem:[%s17835_s1 + $0x40] sm:$0xff] }
 0x1f4   : > { %3669 = vmatmul.bf16.gmra.mxu1 %v10908_v22  ;;  %v2789_v47 = vperm.slane %v2725_v54, 0  ;;  %5075 = vmatpush.bf16.msra.mxu3 %v13528_v19  ;;  %v13511_v34 = vld [vmem:[%s17835_s1 + $0x48] sm:$0xff]  ;;  %v10920_v54 = vor.u32 %v15129_v33, %v10917_v39  ;;  %v13526_v33 = vld [vmem:[%s17835_s1 + $0xc0] sm:$0xff] }
 0x1f5   : > { %3718 = vmatmul.bf16.gmra.mxu2 %v10912_v23  ;;  %v10708_v61 = vrot.slane %v2430_v26, 9  ;;  %v2567_v52 = vmax.f32 %v2398_v10, %v10707_v46  ;;  %v2363_v55 = vmul.f32 %v14885_v31, %v2335_v62  ;;  %v2790_v60 = vperm.slane %v2726_v4, 0  ;;  %v13417_v23 = vld [vmem:[%s14092_s22 + $0x2d4] sm:$0xf0] }
 0x1f6   : > { %4555 = vmatmul.bf16.gmra.mxu3 %v4449_v35  ;;  %5026 = vmatpush.bf16.msra.mxu2 %v13520_v36  ;;  %v13519_v35 = vld [vmem:[%s17835_s1 + $0x88] sm:$0xff]  ;;  %v4452_v46 = vor.u32 %v4450_v5, %v15072_v7  ;;  %v13518_v36 = vld [vmem:[%s17835_s1 + $0x80] sm:$0xff] }
 0x1f7   : > { %v2568_v53 = vmax.f32 %v2430_v26, %v10708_v61  ;;  %v10739_v28 = vrot.slane %v2567_v52, 10  ;;  %v2383_v38 = vadd.f32 %v14897_v51, %v2363_v55  ;;  %v2819_v37 = vsel %vm1413_vm1, %v2790_v60, %v2789_v47  ;;  %v10925_v26 = vld [vmem:[%s14092_s22 + $0x2d8] sm:$0xf0]  ;;  %v4338_v61 = vld [vmem:[%s14092_s22 + $0x400] sm:$0x1]  ;;  %4978 = vmatpush.bf16.msra.mxu1 %v13511_v34 }
 0x1f8   : > { %v3171_v44 = vpop.f32.mrf.mxu2  ;;  %v2287_v63 = vpop.f32.mrf.mxu0  ;;  %5076 = vmatpush.bf16.msra.mxu3 %v13527_v1  ;;  %v4388_v19 = vunpack.c.l.b16 %v4338_v61 }
 0x1f9   : > { %v3572_v57 = vpop.f32.mrf.mxu3  ;;  %v2336_v50 = vpop.f32.mrf.mxu1  ;;  %v10740_v6 = vrot.slane %v2568_v53, 10  ;;  %v2727_v14 = vmax.f32 %v2567_v52, %v10739_v28  ;;  %v2288_v22 = vadd.f32 %v2287_v63, %v14830_v2  ;;  %v2399_v17 = vmax.f32 %v2383_v38, 0.0  ;;  %v13503_v2 = vld [vmem:[%s17835_s1 + $0x8] sm:$0xff] }
 0x1fa   : > { %v15121_v16 = vadd.f32 %v3572_v57, %v3171_v44  ;;  %4929 = vmatpush.bf16.msra.mxu0 %v13503_v2  ;;  %5027 = vmatpush.bf16.msra.mxu2 %v13519_v35  ;;  %v10924_v44 = vor.u32 %v13417_v23, %v10923_v27  ;;  %v10928_v57 = vor.u32 %v13415_v15, %v10925_v26 }
 0x1fb   : > { %v2728_v48 = vmax.f32 %v2568_v53, %v10740_v6  ;;  %v2791_v29 = vperm.slane %v2727_v14, 0  ;;  %v2337_v10 = vadd.f32 %v2336_v50, %v2288_v22  ;;  %v2431_v40 = vrot.slane %v2399_v17, 4  ;;  %4979 = vmatpush.bf16.msra.mxu1 %v13510_v12  ;;  %v13421_v12 = vld [vmem:[%s14092_s22 + $0x2f4] sm:$0xf0] }
 0x1fc   : > { %v10709_v41 = vrot.slane %v2399_v17, 9  ;;  %v4457_v22 = vsel %vm235_vm0, %v4452_v46, %v15153_v56  ;;  %5077 = vmatpush.bf16.msra.mxu3 %v13526_v33 }
 0x1fd   : > { %v2792_v4 = vperm.slane %v2728_v48, 0  ;;  %v2820_v62 = vsel %vm1415_vm2, %v2791_v29, %v2819_v37  ;;  %v2364_v8 = vmul.f32 %v14885_v31, %v2337_v10  ;;  %v10710_v52 = vrot.slane %v2431_v40, 9 }
 0x1fe   : > { %v2569_v59 = vmax.f32 %v2399_v17, %v10709_v41  ;;  %4930 = vmatpush.bf16.msra.mxu0 %v13502_v0  ;;  %5028 = vmatpush.bf16.msra.mxu2 %v13518_v36  ;;  %v10939_v0 = vld [vmem:[%s14092_s22 + $0x2e8] sm:$0xf]  ;;  %v13419_v36 = vld [vmem:[%s14092_s22 + $0x2ec] sm:$0xf] }
 0x1ff   : > { %v2821_v7 = vsel %vm1417_vm3, %v2792_v4, %v2820_v62  ;;  %v2384_v55 = vadd.f32 %v14897_v51, %v2364_v8  ;;  %v2570_v60 = vmax.f32 %v2431_v40, %v10710_v52  ;;  %v4458_v62 = vshrl.u32 %v15105_v9, 16 }
 0x200   : > { %v3173_v53 = vpop.f32.mrf.mxu2  ;;  %v10741_v38 = vrot.slane %v2569_v59, 10  ;;  %v2290_v50 = vpop.f32.mrf.mxu0 }
 0x201   : > { %v3574_v28 = vpop.f32.mrf.mxu3  ;;  %v2339_v5 = vpop.f32.mrf.mxu1  ;;  %v2400_v6 = vmax.f32 %v2384_v55, 0.0  ;;  %v2291_v14 = vadd.f32 %v2290_v50, %v14838_v18  ;;  %v10742_v39 = vrot.slane %v2570_v60, 10  ;;  %v4397_v18 = vpack.c.b16 %v4388_v19, %v4388_v19 }
 0x202   : > { %v15168_v63 = vadd.f32 %v3574_v28, %v3173_v53  ;;  %v2729_v30 = vmax.f32 %v2569_v59, %v10741_v38 }
 0x203   : > { %v2432_v47 = vrot.slane %v2400_v6, 4  ;;  %v10711_v17 = vrot.slane %v2400_v6, 9  ;;  %v2340_v27 = vadd.f32 %v2339_v5, %v2291_v14  ;;  %3625 = vmatmul.bf16.gmra.mxu0 %v10920_v54  ;;  %v2730_v23 = vmax.f32 %v2570_v60, %v10742_v39  ;;  %v13418_v54 = vld [vmem:[%s14092_s22 + $0x2e4] sm:$0xf]  ;;  %v10941_v5 = vld [vmem:[%s14092_s22 + $0x2f8] sm:$0xf0] }
 0x204   : > { %3674 = vmatmul.bf16.gmra.mxu1 %v10924_v44  ;;  %v2793_v15 = vperm.slane %v2729_v30, 0  ;;  %v4462_v8 = vshll.u32 %v4397_v18, 16  ;;  %v10933_v44 = vld [vmem:[%s14092_s22 + $0x2f0] sm:$0xf0]  ;;  %v4460_v60 = vor.u32 %v4458_v62, %v15153_v56  ;;  %v13921_v56 = vld [vmem:[%s17842_s8] ss:$0 sm:$0xff] }
 0x205   : > { %3723 = vmatmul.bf16.gmra.mxu2 %v10928_v57  ;;  %v10712_v48 = vrot.slane %v2432_v47, 9  ;;  %v2571_v29 = vmax.f32 %v2400_v6, %v10711_v17  ;;  %v2365_v10 = vmul.f32 %v14885_v31, %v2340_v27  ;;  %v2794_v2 = vperm.slane %v2730_v23, 0 }
 0x206   : > { %4560 = vmatmul.bf16.gmra.mxu3 %v4457_v22  ;;  %v2822_v34 = vsel %vm1419_vm4, %v2793_v15, %v2821_v7  ;;  %v4464_v19 = vrot.slane %v4462_v8, 1  ;;  %v10936_v14 = vor.u32 %v13418_v54, %v10933_v44  ;;  %v10940_v17 = vor.u32 %v13421_v12, %v10939_v0  ;;  %v11203_v44 = vld [vmem:[%s14092_s22 + $0x300] sm:$0xf]  ;;  %v13472_v12 = vld [vmem:[%s14092_s22 + $0x30c] sm:$0xf0] }
 0x207   : > { %v2572_v35 = vmax.f32 %v2432_v47, %v10712_v48  ;;  %v10743_v37 = vrot.slane %v2571_v29, 10  ;;  %v2385_v40 = vadd.f32 %v14897_v51, %v2365_v10  ;;  %v2823_v46 = vsel %vm1421_vm5, %v2794_v2, %v2822_v34 }
 0x208   : > { %v3176_v41 = vpop.f32.mrf.mxu2  ;;  %v2292_v4 = vpop.f32.mrf.mxu0  ;;  %v10944_v48 = vor.u32 %v13419_v36, %v10941_v5  ;;  %v4465_v2 = vsel %vm235_vm0, %v4460_v60, %v4464_v19  ;;  %v13470_v36 = vld [vmem:[%s14092_s22 + $0x304] sm:$0xf]  ;;  %v11205_v5 = vld [vmem:[%s14092_s22 + $0x310] sm:$0xf0] }
 0x209   : > { %v3577_v26 = vpop.f32.mrf.mxu3  ;;  %v2341_v31 = vpop.f32.mrf.mxu1  ;;  %v10744_v61 = vrot.slane %v2572_v35, 10  ;;  %v2731_v52 = vmax.f32 %v2571_v29, %v10743_v37  ;;  %v2401_v59 = vmax.f32 %v2385_v40, 0.0  ;;  %v2293_v51 = vadd.f32 %v2292_v4, %v14856_v49  ;;  %v13920_v49 = vld [vmem:[%s17841_s7] ss:$0 sm:$0xff] }
 0x20a   : > { %v15180_v1 = vadd.f32 %v3577_v26, %v3176_v41 }
 0x20b   : > { %v2732_v7 = vmax.f32 %v2572_v35, %v10744_v61  ;;  %v2795_v55 = vperm.slane %v2731_v52, 0  ;;  %v2433_v53 = vrot.slane %v2401_v59, 4  ;;  %v10713_v28 = vrot.slane %v2401_v59, 9 }
 0x20c   : > { %v2342_v57 = vadd.f32 %v2341_v31, %v2293_v51 }
 0x20d   : > { %v2796_v9 = vperm.slane %v2732_v7, 0  ;;  %v2824_v38 = vsel %vm1423_vm6, %v2795_v55, %v2823_v46  ;;  %v10714_v50 = vrot.slane %v2433_v53, 9  ;;  %v2573_v33 = vmax.f32 %v2401_v59, %v10713_v28 }
 0x20e   : > { %v2366_v6 = vmul.f32 %v13920_v49, %v2342_v57 }
 0x20f   : > { %v2825_v22 = vsel %vm1425_vm7, %v2796_v9, %v2824_v38  ;;  %v2574_v39 = vmax.f32 %v2433_v53, %v10714_v50  ;;  %v10745_v35 = vrot.slane %v2573_v33, 10 }
 0x210   : > { %v3178_v30 = vpop.f32.mrf.mxu2  ;;  %2839 = vst [vmem:[#allocation2 + $0x30] sm:$0xff] %v2825_v22  ;;  %v2386_v27 = vadd.f32 %v13921_v56, %v2366_v6  ;;  %v2295_v15 = vpop.f32.mrf.mxu0  ;;  %v13473_v22 = vld [vmem:[%s14092_s22 + $0x314] sm:$0xf0] }
 0x211   : > { %v3579_v47 = vpop.f32.mrf.mxu3  ;;  %v2344_v18 = vpop.f32.mrf.mxu1  ;;  %v10746_v29 = vrot.slane %v2574_v39, 10  ;;  %v2296_v10 = vadd.f32 %v2295_v15, %v14870_v11  ;;  %v2733_v62 = vmax.f32 %v2573_v33, %v10745_v35  ;;  %v11208_v35 = vor.u32 %v13470_v36, %v11205_v5 }
 0x212   : > { %v15199_v23 = vadd.f32 %v3579_v47, %v3178_v30  ;;  %v2402_v34 = vmax.f32 %v2386_v27, 0.0  ;;  %v13471_v47 = vld [vmem:[%s14092_s22 + $0x30c] sm:$0xf] }
 0x213   : > { %v2345_v37 = vadd.f32 %v2344_v18, %v2296_v10  ;;  %3630 = vmatmul.bf16.gmra.mxu0 %v10936_v14  ;;  %v2734_v26 = vmax.f32 %v2574_v39, %v10746_v29  ;;  %v2797_v60 = vperm.slane %v2733_v62, 0  ;;  %v11211_v14 = vld [vmem:[%s14092_s22 + $0x308] sm:$0xf]  ;;  %v11204_v18 = vor.u32 %v13472_v12, %v11203_v44 }
 0x214   : > { %3679 = vmatmul.bf16.gmra.mxu1 %v10940_v17  ;;  %v2434_v40 = vrot.slane %v2402_v34, 4  ;;  %v10715_v41 = vrot.slane %v2402_v34, 9  ;;  %v11213_v17 = vld [vmem:[%s14092_s22 + $0x318] sm:$0xf0] }
 0x215   : > { %3728 = vmatmul.bf16.gmra.mxu2 %v10944_v48  ;;  %v2367_v46 = vmul.f32 %v13920_v49, %v2345_v37  ;;  %v2798_v55 = vperm.slane %v2734_v26, 0 }
 0x216   : > { %4565 = vmatmul.bf16.gmra.mxu3 %v4465_v2  ;;  %v10716_v4 = vrot.slane %v2434_v40, 9  ;;  %v2575_v31 = vmax.f32 %v2402_v34, %v10715_v41 }
 0x217   : > { %v2387_v11 = vadd.f32 %v13921_v56, %v2367_v46  ;;  %v2826_v33 = vsel %vm1413_vm1, %v2798_v55, %v2797_v60  ;;  %v11212_v46 = vor.u32 %v13473_v22, %v11211_v14  ;;  %v15232_v60 = vld [vmem:[%s17842_s8] ss:$0 sm:$0xff] }
 0x218   : > { %v3181_v8 = vpop.f32.mrf.mxu2  ;;  %v2576_v52 = vmax.f32 %v2434_v40, %v10716_v4  ;;  %v10747_v59 = vrot.slane %v2575_v31, 10  ;;  %v2297_v54 = vpop.f32.mrf.mxu0  ;;  %v11219_v14 = vld [vmem:[%s14092_s22 + $0x320] sm:$0xf] }
 0x219   : > { %v3582_v61 = vpop.f32.mrf.mxu3  ;;  %v2346_v7 = vpop.f32.mrf.mxu1  ;;  %v2403_v53 = vmax.f32 %v2387_v11, 0.0  ;;  %v2298_v28 = vadd.f32 %v2297_v54, %v14892_v43 }
 0x21a   : > { %v15203_v51 = vadd.f32 %v3582_v61, %v3181_v8  ;;  %v10748_v57 = vrot.slane %v2576_v52, 10  ;;  %v2735_v0 = vmax.f32 %v2575_v31, %v10747_v59 }
 0x21b   : > { %v2435_v9 = vrot.slane %v2403_v53, 4  ;;  %v10717_v38 = vrot.slane %v2403_v53, 9  ;;  %v2347_v50 = vadd.f32 %v2346_v7, %v2298_v28  ;;  %v15224_v28 = vld [vmem:[%s17841_s7] ss:$0 sm:$0xff] }
 0x21c   : > { %v2736_v19 = vmax.f32 %v2576_v52, %v10748_v57  ;;  %v2799_v6 = vperm.slane %v2735_v0, 0 }
 0x21d   : > { %v10718_v39 = vrot.slane %v2435_v9, 9  ;;  %v2577_v43 = vmax.f32 %v2403_v53, %v10717_v38  ;;  %v2368_v30 = vmul.f32 %v13920_v49, %v2347_v50  ;;  %v11216_v49 = vor.u32 %v13471_v47, %v11213_v17  ;;  %v11221_v47 = vld [vmem:[%s14092_s22 + $0x330] sm:$0xf0]  ;;  %v11227_v17 = vld [vmem:[%s14092_s22 + $0x328] sm:$0xf] }
 0x21e   : > { %v2800_v27 = vperm.slane %v2736_v19, 0  ;;  %v2827_v15 = vsel %vm1415_vm2, %v2799_v6, %v2826_v33 }
 0x21f   : > { %v2578_v48 = vmax.f32 %v2435_v9, %v10718_v39  ;;  %v10749_v29 = vrot.slane %v2577_v43, 10  ;;  %v2388_v10 = vadd.f32 %v13921_v56, %v2368_v30  ;;  %v13476_v39 = vld [vmem:[%s14092_s22 + $0x32c] sm:$0xf0] }
 0x220   : > { %v3183_v2 = vpop.f32.mrf.mxu2  ;;  %v2828_v37 = vsel %vm1417_vm3, %v2800_v27, %v2827_v15  ;;  %v3596_v41 = vpop.f32.mrf.mxu0  ;;  %v13477_v27 = vld [vmem:[%s14092_s22 + $0x334] sm:$0xf0] }
 0x221   : > { %v3584_v34 = vpop.f32.mrf.mxu3  ;;  %v3645_v26 = vpop.f32.mrf.mxu1  ;;  %v10750_v4 = vrot.slane %v2578_v48, 10  ;;  %v2737_v31 = vmax.f32 %v2577_v43, %v10749_v29  ;;  %v2404_v62 = vmax.f32 %v2388_v10, 0.0  ;;  %v3597_v11 = vadd.f32 %v3596_v41, %v14905_v3  ;;  %v13474_v43 = vld [vmem:[%s14092_s22 + $0x324] sm:$0xf]  ;;  %v11229_v29 = vld [vmem:[%s14092_s22 + $0x338] sm:$0xf0] }
 0x222   : > { %v15217_v40 = vadd.f32 %v3584_v34, %v3183_v2  ;;  %v11224_v41 = vor.u32 %v13474_v43, %v11221_v47  ;;  %v13478_v43 = vld [vmem:[%s14092_s22 + $0x344] sm:$0xf] }
 0x223   : > { %v2738_v8 = vmax.f32 %v2578_v48, %v10750_v4  ;;  %v2801_v61 = vperm.slane %v2737_v31, 0  ;;  %v2436_v52 = vrot.slane %v2404_v62, 4  ;;  %v10719_v56 = vrot.slane %v2404_v62, 9  ;;  %4931 = vmatmul.bf16.vlgmr.msra.gmra.mxu0 %v11204_v18  ;;  %v13475_v48 = vld [vmem:[%s14092_s22 + $0x32c] sm:$0xf] }
 0x224   : > { %4980 = vmatmul.bf16.vlgmr.msra.gmra.mxu1 %v11208_v35  ;;  %v3646_v53 = vadd.f32 %v3645_v26, %v3597_v11  ;;  %v11228_v26 = vor.u32 %v13477_v27, %v11227_v17  ;;  %v11232_v11 = vor.u32 %v13475_v48, %v11229_v29  ;;  %v11243_v27 = vld [vmem:[%s14092_s22 + $0x348] sm:$0xf] }
 0x225   : > { %5029 = vmatmul.bf16.vlgmr.msra.gmra.mxu2 %v11212_v46  ;;  %v2802_v59 = vperm.slane %v2738_v8, 0  ;;  %v2829_v54 = vsel %vm1419_vm4, %v2801_v61, %v2828_v37  ;;  %v10720_v7 = vrot.slane %v2436_v52, 9  ;;  %v2579_v55 = vmax.f32 %v2404_v62, %v10719_v56 }
 0x226   : > { %5078 = vmatmul.bf16.vlgmr.msra.gmra.mxu3 %v11216_v49  ;;  %v11220_v37 = vor.u32 %v13476_v39, %v11219_v14  ;;  %v11235_v14 = vld [vmem:[%s14092_s22 + $0x340] sm:$0xf]  ;;  %v13480_v39 = vld [vmem:[%s14092_s22 + $0x34c] sm:$0xf0] }
 0x227   : > { %v2830_v3 = vsel %vm1421_vm5, %v2802_v59, %v2829_v54  ;;  %v2580_v44 = vmax.f32 %v2436_v52, %v10720_v7  ;;  %v10751_v57 = vrot.slane %v2579_v55, 10 }
 0x228   : > { %v3694_v0 = vpop.f32.mrf.mxu2  ;;  %v3598_v9 = vpop.f32.mrf.mxu0 }
 0x229   : > { %v15227_v12 = vpop.f32.mrf.mxu3  ;;  %v3695_v36 = vadd.f32 %v3694_v0, %v3646_v53  ;;  %v3647_v38 = vpop.f32.mrf.mxu1  ;;  %v10752_v50 = vrot.slane %v2580_v44, 10  ;;  %v2739_v5 = vmax.f32 %v2579_v55, %v10751_v57  ;;  %v3599_v6 = vadd.f32 %v3598_v9, %v14921_v58 }
 0x22b   : > { %v3738_v19 = vmul.f32 %v15224_v28, %v3695_v36  ;;  %v2740_v22 = vmax.f32 %v2580_v44, %v10752_v50  ;;  %v2803_v33 = vperm.slane %v2739_v5, 0  ;;  %v3648_v2 = vadd.f32 %v3647_v38, %v3599_v6 }
 0x22d   : > { %v3758_v30 = vadd.f32 %v15232_v60, %v3738_v19  ;;  %v2804_v15 = vperm.slane %v2740_v22, 0  ;;  %v2831_v18 = vsel %vm1423_vm6, %v2803_v33, %v2830_v3 }
 0x22f   : > { %v3774_v10 = vmax.f32 %v3758_v30, 0.0  ;;  %v2832_v34 = vsel %vm1425_vm7, %v2804_v15, %v2831_v18  ;;  %v11237_v30 = vld [vmem:[%s14092_s22 + $0x350] sm:$0xf0]  ;;  %v13481_v15 = vld [vmem:[%s14092_s22 + $0x354] sm:$0xf0] }
 0x230   : > { %v3696_v58 = vpop.f32.mrf.mxu2  ;;  %2840 = vst [vmem:[#allocation2 + $0x38] sm:$0xff] %v2832_v34  ;;  %v3601_v31 = vpop.f32.mrf.mxu0  ;;  %v13599_v18 = vld [vmem:[%s17836_s2 + $0x38] sm:$0xff] }
 0x231   : > { %v15247_v35 = vpop.f32.mrf.mxu3  ;;  %v3806_v46 = vrot.slane %v3774_v10, 4  ;;  %v11073_v49 = vrot.slane %v3774_v10, 9  ;;  %v3697_v4 = vadd.f32 %v3696_v58, %v3648_v2  ;;  %v3650_v62 = vpop.f32.mrf.mxu1  ;;  %v3602_v56 = vadd.f32 %v3601_v31, %v14932_v13  ;;  %5787 = vmatpush.bf16.msrb.mxu0 %v13599_v18  ;;  %v13484_v18 = vld [vmem:[%s14092_s22 + $0x36c] sm:$0xf0] }
 0x232   : > { %v11244_v31 = vor.u32 %v13481_v15, %v11243_v27  ;;  %v11251_v15 = vld [vmem:[%s14092_s22 + $0x360] sm:$0xf] }
 0x233   : > { %v11074_v8 = vrot.slane %v3806_v46, 9  ;;  %v3739_v61 = vmul.f32 %v15224_v28, %v3697_v4  ;;  %v3934_v52 = vmax.f32 %v3774_v10, %v11073_v49  ;;  %4936 = vmatmul.bf16.gmra.mxu0 %v11220_v37  ;;  %v3651_v3 = vadd.f32 %v3650_v62, %v3602_v56  ;;  %v13479_v10 = vld [vmem:[%s14092_s22 + $0x34c] sm:$0xf] }
 0x234   : > { %4985 = vmatmul.bf16.gmra.mxu1 %v11224_v41  ;;  %v11236_v37 = vor.u32 %v13480_v39, %v11235_v14  ;;  %v11240_v4 = vor.u32 %v13478_v43, %v11237_v30 }
 0x235   : > { %v3935_v59 = vmax.f32 %v3806_v46, %v11074_v8  ;;  %v3759_v54 = vadd.f32 %v15232_v60, %v3739_v61  ;;  %5034 = vmatmul.bf16.gmra.mxu2 %v11228_v26  ;;  %v11105_v53 = vrot.slane %v3934_v52, 10 }
 0x236   : > { %5083 = vmatmul.bf16.gmra.mxu3 %v11232_v11 }
 0x237   : > { %v11106_v7 = vrot.slane %v3935_v59, 10  ;;  %v3775_v55 = vmax.f32 %v3759_v54, 0.0  ;;  %v4094_v22 = vmax.f32 %v3934_v52, %v11105_v53 }
 0x238   : > { %v3699_v44 = vpop.f32.mrf.mxu2  ;;  %v3603_v36 = vpop.f32.mrf.mxu0 }
 0x239   : > { %v15252_v57 = vpop.f32.mrf.mxu3  ;;  %v3807_v0 = vrot.slane %v3775_v55, 4  ;;  %v11075_v13 = vrot.slane %v3775_v55, 9  ;;  %v3652_v9 = vpop.f32.mrf.mxu1  ;;  %v4095_v38 = vmax.f32 %v3935_v59, %v11106_v7  ;;  %v3700_v50 = vadd.f32 %v3699_v44, %v3651_v3 }
 0x23a   : > { %v3604_v6 = vadd.f32 %v3603_v36, %v14952_v20  ;;  %v11245_v20 = vld [vmem:[%s14092_s22 + $0x358] sm:$0xf0]  ;;  %v4158_v41 = vperm.slane %v4094_v22, 0 }
 0x23b   : > { %v11076_v5 = vrot.slane %v3807_v0, 9  ;;  %v3936_v19 = vmax.f32 %v3775_v55, %v11075_v13  ;;  %v3740_v33 = vmul.f32 %v15224_v28, %v3700_v50  ;;  %v4159_v48 = vperm.slane %v4095_v38, 0 }
 0x23c   : > { %v3653_v58 = vadd.f32 %v3652_v9, %v3604_v6  ;;  %v11248_v56 = vor.u32 %v13479_v10, %v11245_v20  ;;  %v13482_v20 = vld [vmem:[%s14092_s22 + $0x364] sm:$0xf] }
 0x23d   : > { %v3937_v47 = vmax.f32 %v3807_v0, %v11076_v5  ;;  %v11107_v17 = vrot.slane %v3936_v19, 10  ;;  %v3760_v29 = vadd.f32 %v15232_v60, %v3740_v33  ;;  %v4190_v59 = vsel %vm1413_vm1, %v4159_v48, %v4158_v41  ;;  %v11259_v41 = vld [vmem:[%s14092_s22 + $0x368] sm:$0xf] }
 0x23f   : > { %v11108_v2 = vrot.slane %v3937_v47, 10  ;;  %v4096_v34 = vmax.f32 %v3936_v19, %v11107_v17  ;;  %v3776_v26 = vmax.f32 %v3760_v29, 0.0 }
 0x240   : > { %v3701_v46 = vpop.f32.mrf.mxu2  ;;  %v3606_v61 = vpop.f32.mrf.mxu0 }
 0x241   : > { %v15268_v49 = vpop.f32.mrf.mxu3  ;;  %v4097_v62 = vmax.f32 %v3937_v47, %v11108_v2  ;;  %v4160_v11 = vperm.slane %v4096_v34, 0  ;;  %v3702_v8 = vadd.f32 %v3701_v46, %v3653_v58  ;;  %v3655_v52 = vpop.f32.mrf.mxu1  ;;  %v3808_v54 = vrot.slane %v3776_v26, 4  ;;  %v11253_v2 = vld [vmem:[%s14092_s22 + $0x370] sm:$0xf0] }
 0x242   : > { %v11077_v7 = vrot.slane %v3776_v26, 9  ;;  %v3607_v44 = vadd.f32 %v3606_v61, %v14965_v42 }
 0x243   : > { %v4161_v55 = vperm.slane %v4097_v62, 0  ;;  %v4191_v53 = vsel %vm1415_vm2, %v4160_v11, %v4190_v59  ;;  %v3741_v3 = vmul.f32 %v15224_v28, %v3702_v8  ;;  %v11078_v0 = vrot.slane %v3808_v54, 9  ;;  %4941 = vmatmul.bf16.gmra.mxu0 %v11236_v37  ;;  %v13483_v62 = vld [vmem:[%s14092_s22 + $0x36c] sm:$0xf]  ;;  %v11261_v11 = vld [vmem:[%s14092_s22 + $0x378] sm:$0xf0] }
 0x244   : > { %v3938_v13 = vmax.f32 %v3776_v26, %v11077_v7  ;;  %4990 = vmatmul.bf16.gmra.mxu1 %v11240_v4  ;;  %v3656_v19 = vadd.f32 %v3655_v52, %v3607_v44  ;;  %v13485_v26 = vld [vmem:[%s14092_s22 + $0x374] sm:$0xf0]  ;;  %v13598_v8 = vld [vmem:[%s17836_s2 + $0x30] sm:$0xff]  ;;  %v11264_v44 = vor.u32 %v13483_v62, %v11261_v11  ;;  %v13486_v11 = vld [vmem:[%s14092_s22 + $0x384] sm:$0xf] }
 0x245   : > { %v4192_v36 = vsel %vm1417_vm3, %v4161_v55, %v4191_v53  ;;  %v3761_v9 = vadd.f32 %v15232_v60, %v3741_v3  ;;  %5039 = vmatmul.bf16.gmra.mxu2 %v11244_v31  ;;  %v3939_v38 = vmax.f32 %v3808_v54, %v11078_v0  ;;  %v11252_v54 = vor.u32 %v13484_v18, %v11251_v15  ;;  %v13488_v62 = vld [vmem:[%s14092_s22 + $0x38c] sm:$0xf0] }
 0x246   : > { %5088 = vmatmul.bf16.gmra.mxu3 %v11248_v56  ;;  %v11109_v50 = vrot.slane %v3938_v13, 10  ;;  %5788 = vmatpush.bf16.msrb.mxu0 %v13598_v8  ;;  %v11256_v53 = vor.u32 %v13482_v20, %v11253_v2  ;;  %v11260_v3 = vor.u32 %v13485_v26, %v11259_v41 }
 0x247   : > { %v3777_v5 = vmax.f32 %v3761_v9, 0.0  ;;  %v11110_v6 = vrot.slane %v3939_v38, 10 }
 0x248   : > { %v4098_v14 = vmax.f32 %v3938_v13, %v11109_v50  ;;  %v3704_v42 = vpop.f32.mrf.mxu2  ;;  %v3608_v30 = vpop.f32.mrf.mxu0 }
 0x249   : > { %v15276_v22 = vpop.f32.mrf.mxu3  ;;  %v3809_v33 = vrot.slane %v3777_v5, 4  ;;  %v11079_v39 = vrot.slane %v3777_v5, 9  ;;  %v3705_v43 = vadd.f32 %v3704_v42, %v3656_v19  ;;  %v3657_v47 = vpop.f32.mrf.mxu1  ;;  %v4099_v17 = vmax.f32 %v3939_v38, %v11110_v6 }
 0x24a   : > { %v4162_v27 = vperm.slane %v4098_v14, 0  ;;  %v3609_v37 = vadd.f32 %v3608_v30, %v14983_v25 }
 0x24b   : > { %v11080_v48 = vrot.slane %v3809_v33, 9  ;;  %v3940_v29 = vmax.f32 %v3777_v5, %v11079_v39  ;;  %v3742_v10 = vmul.f32 %v15224_v28, %v3705_v43  ;;  %v4163_v34 = vperm.slane %v4099_v17, 0  ;;  %v13573_v17 = vld [vmem:[%s17835_s1 + $0x78] sm:$0xff] }
 0x24c   : > { %v4193_v58 = vsel %vm1419_vm4, %v4162_v27, %v4192_v36  ;;  %v3658_v25 = vadd.f32 %v3657_v47, %v3609_v37  ;;  %v13565_v27 = vld [vmem:[%s17835_s1 + $0x38] sm:$0xff]  ;;  %6057 = vmatpush.bf16.msrb.mxu2 %v13573_v17 }
 0x24d   : > { %v3941_v46 = vmax.f32 %v3809_v33, %v11080_v48  ;;  %v11111_v4 = vrot.slane %v3940_v29, 10  ;;  %v3762_v31 = vadd.f32 %v15232_v60, %v3742_v10  ;;  %v4194_v61 = vsel %vm1421_vm5, %v4163_v34, %v4193_v58  ;;  %6038 = vmatpush.bf16.msrb.mxu1 %v13565_v27 }
 0x24f   : > { %v11112_v52 = vrot.slane %v3941_v46, 10  ;;  %v4100_v56 = vmax.f32 %v3940_v29, %v11111_v4  ;;  %v3778_v59 = vmax.f32 %v3762_v31, 0.0  ;;  %v11267_v31 = vld [vmem:[%s14092_s22 + $0x380] sm:$0xf] }
 0x250   : > { %v3706_v7 = vpop.f32.mrf.mxu2  ;;  %v3611_v38 = vpop.f32.mrf.mxu0 }
 0x251   : > { %v15294_v55 = vpop.f32.mrf.mxu3  ;;  %v4101_v0 = vmax.f32 %v3941_v46, %v11112_v52  ;;  %v4164_v13 = vperm.slane %v4100_v56, 0  ;;  %v3810_v36 = vrot.slane %v3778_v59, 4  ;;  %v11081_v9 = vrot.slane %v3778_v59, 9  ;;  %v3660_v50 = vpop.f32.mrf.mxu1  ;;  %v11269_v52 = vld [vmem:[%s14092_s22 + $0x390] sm:$0xf0] }
 0x252   : > { %v3707_v5 = vadd.f32 %v3706_v7, %v3658_v25  ;;  %v3612_v42 = vadd.f32 %v3611_v38, %v15006_v32  ;;  %v13581_v32 = vld [vmem:[%s17835_s1 + $0xb8] sm:$0xff]  ;;  %v11275_v56 = vld [vmem:[%s14092_s22 + $0x388] sm:$0xf]  ;;  %v13487_v7 = vld [vmem:[%s14092_s22 + $0x38c] sm:$0xf]  ;;  %v11272_v38 = vor.u32 %v13486_v11, %v11269_v52 }
 0x253   : > { %v4165_v19 = vperm.slane %v4101_v0, 0  ;;  %v4195_v6 = vsel %vm1423_vm6, %v4164_v13, %v4194_v61  ;;  %v11082_v14 = vrot.slane %v3810_v36, 9  ;;  %4946 = vmatmul.bf16.gmra.mxu0 %v11252_v54  ;;  %v3942_v43 = vmax.f32 %v3778_v59, %v11081_v9  ;;  %6076 = vmatpush.bf16.msrb.mxu3 %v13581_v32  ;;  %v13489_v25 = vld [vmem:[%s14092_s22 + $0x394] sm:$0xf0] }
 0x254   : > { %v3743_v33 = vmul.f32 %v15224_v28, %v3707_v5  ;;  %4995 = vmatmul.bf16.gmra.mxu1 %v11256_v53  ;;  %v3661_v18 = vadd.f32 %v3660_v50, %v3612_v42  ;;  %v11277_v53 = vld [vmem:[%s14092_s22 + $0x398] sm:$0xf0]  ;;  %v11268_v0 = vor.u32 %v13488_v62, %v11267_v31 }
 0x255   : > { %v4196_v39 = vsel %vm1425_vm7, %v4165_v19, %v4195_v6  ;;  %v3943_v30 = vmax.f32 %v3810_v36, %v11082_v14  ;;  %5044 = vmatmul.bf16.gmra.mxu2 %v11260_v3  ;;  %v11113_v20 = vrot.slane %v3942_v43, 10  ;;  %v11276_v14 = vor.u32 %v13489_v25, %v11275_v56 }
 0x256   : > { %5093 = vmatmul.bf16.gmra.mxu3 %v11264_v44  ;;  %4222 = vst [vmem:[#allocation2 + $0x40] sm:$0xff] %v4196_v39  ;;  %v3763_v47 = vadd.f32 %v15232_v60, %v3743_v33  ;;  %v11280_v42 = vor.u32 %v13487_v7, %v11277_v53 }
 0x257   : > { %v11114_v15 = vrot.slane %v3943_v30, 10  ;;  %v4102_v59 = vmax.f32 %v3942_v43, %v11113_v20  ;;  %v13572_v20 = vld [vmem:[%s17835_s1 + $0x70] sm:$0xff] }
 0x258   : > { %v3779_v48 = vmax.f32 %v3763_v47, 0.0  ;;  %v3709_v29 = vpop.f32.mrf.mxu2  ;;  %v3613_v34 = vpop.f32.mrf.mxu0  ;;  %6058 = vmatpush.bf16.msrb.mxu2 %v13572_v20 }
 0x259   : > { %v15310_v10 = vpop.f32.mrf.mxu3  ;;  %v3710_v2 = vadd.f32 %v3709_v29, %v3661_v18  ;;  %v3662_v58 = vpop.f32.mrf.mxu1  ;;  %v4103_v26 = vmax.f32 %v3943_v30, %v11114_v15  ;;  %v3614_v4 = vadd.f32 %v3613_v34, %v15031_v24  ;;  %v13597_v24 = vld [vmem:[%s17836_s2 + $0x28] sm:$0xff]  ;;  %v4166_v33 = vperm.slane %v4102_v59, 0  ;;  %v13564_v34 = vld [vmem:[%s17835_s1 + $0x30] sm:$0xff] }
 0x25a   : > { %v3811_v37 = vrot.slane %v3779_v48, 4  ;;  %v11083_v41 = vrot.slane %v3779_v48, 9  ;;  %5789 = vmatpush.bf16.msrb.mxu0 %v13597_v24  ;;  %6039 = vmatpush.bf16.msrb.mxu1 %v13564_v34 }
 0x25b   : > { %v3744_v46 = vmul.f32 %v15224_v28, %v3710_v2  ;;  %v4167_v13 = vperm.slane %v4103_v26, 0  ;;  %v3663_v9 = vadd.f32 %v3662_v58, %v3614_v4  ;;  %v13580_v2 = vld [vmem:[%s17835_s1 + $0xb0] sm:$0xff] }
 0x25c   : > { %v11084_v8 = vrot.slane %v3811_v37, 9  ;;  %v3944_v61 = vmax.f32 %v3779_v48, %v11083_v41  ;;  %6077 = vmatpush.bf16.msrb.mxu3 %v13580_v2 }
 0x25d   : > { %v3764_v54 = vadd.f32 %v15232_v60, %v3744_v46  ;;  %v4197_v15 = vsel %vm1413_vm1, %v4167_v13, %v4166_v33 }
 0x25e   : > { %v3945_v3 = vmax.f32 %v3811_v37, %v11084_v8  ;;  %v11115_v44 = vrot.slane %v3944_v61, 10 }
 0x25f   : > { %v3780_v36 = vmax.f32 %v3764_v54, 0.0 }
 0x260   : > { %v11116_v50 = vrot.slane %v3945_v3, 10  ;;  %v4104_v5 = vmax.f32 %v3944_v61, %v11115_v44  ;;  %v3711_v19 = vpop.f32.mrf.mxu2  ;;  %v3616_v47 = vpop.f32.mrf.mxu0 }
 0x261   : > { %v15326_v6 = vpop.f32.mrf.mxu3  ;;  %v3812_v39 = vrot.slane %v3780_v36, 4  ;;  %v11085_v43 = vrot.slane %v3780_v36, 9  ;;  %v3712_v30 = vadd.f32 %v3711_v19, %v3663_v9  ;;  %v3665_v17 = vpop.f32.mrf.mxu1  ;;  %v3617_v41 = vadd.f32 %v3616_v47, %v15050_v45  ;;  %v11283_v9 = vld [vmem:[%s14092_s22 + $0x3a0] sm:$0xf]  ;;  %v11285_v19 = vld [vmem:[%s14092_s22 + $0x3b0] sm:$0xf0] }
 0x262   : > { %v4105_v32 = vmax.f32 %v3945_v3, %v11116_v50  ;;  %v4168_v27 = vperm.slane %v4104_v5, 0  ;;  %v13490_v50 = vld [vmem:[%s14092_s22 + $0x3a4] sm:$0xf]  ;;  %v13579_v47 = vld [vmem:[%s17835_s1 + $0xa8] sm:$0xff] }
 0x263   : > { %v11086_v18 = vrot.slane %v3812_v39, 9  ;;  %v3946_v48 = vmax.f32 %v3780_v36, %v11085_v43  ;;  %v3745_v29 = vmul.f32 %v15224_v28, %v3712_v30  ;;  %4951 = vmatmul.bf16.gmra.mxu0 %v11268_v0  ;;  %v3666_v61 = vadd.f32 %v3665_v17, %v3617_v41  ;;  %v13571_v30 = vld [vmem:[%s17835_s1 + $0x68] sm:$0xff]  ;;  %6078 = vmatpush.bf16.msrb.mxu3 %v13579_v47 }
 0x264   : > { %v4169_v58 = vperm.slane %v4105_v32, 0  ;;  %v4198_v37 = vsel %vm1415_vm2, %v4168_v27, %v4197_v15  ;;  %5000 = vmatmul.bf16.gmra.mxu1 %v11272_v38  ;;  %v13492_v38 = vld [vmem:[%s14092_s22 + $0x3ac] sm:$0xf0]  ;;  %v13491_v32 = vld [vmem:[%s14092_s22 + $0x3ac] sm:$0xf]  ;;  %6059 = vmatpush.bf16.msrb.mxu2 %v13571_v30 }
 0x265   : > { %v3947_v26 = vmax.f32 %v3812_v39, %v11086_v18  ;;  %v11117_v46 = vrot.slane %v3946_v48, 10  ;;  %v3765_v4 = vadd.f32 %v15232_v60, %v3745_v29  ;;  %5049 = vmatmul.bf16.gmra.mxu2 %v11276_v14  ;;  %v11291_v14 = vld [vmem:[%s14092_s22 + $0x3a8] sm:$0xf]  ;;  %v11293_v27 = vld [vmem:[%s14092_s22 + $0x3b8] sm:$0xf0] }
 0x266   : > { %5098 = vmatmul.bf16.gmra.mxu3 %v11280_v42  ;;  %v4199_v31 = vsel %vm1417_vm3, %v4169_v58, %v4198_v37  ;;  %v13493_v42 = vld [vmem:[%s14092_s22 + $0x3b4] sm:$0xf0]  ;;  %v13563_v15 = vld [vmem:[%s17835_s1 + $0x28] sm:$0xff]  ;;  %v11284_v58 = vor.u32 %v13492_v38, %v11283_v9  ;;  %v11288_v37 = vor.u32 %v13490_v50, %v11285_v19 }
 0x267   : > { %v11118_v62 = vrot.slane %v3947_v26, 10  ;;  %v4106_v11 = vmax.f32 %v3946_v48, %v11117_v46  ;;  %v3781_v8 = vmax.f32 %v3765_v4, 0.0  ;;  %v11292_v41 = vor.u32 %v13493_v42, %v11291_v14  ;;  %6040 = vmatpush.bf16.msrb.mxu1 %v13563_v15  ;;  %v13561_v38 = vld [vmem:[%s17835_s1 + $0x18] sm:$0xff] }
 0x268   : > { %v3714_v45 = vpop.f32.mrf.mxu2  ;;  %v3618_v7 = vpop.f32.mrf.mxu0  ;;  %v13569_v50 = vld [vmem:[%s17835_s1 + $0x58] sm:$0xff] }
 0x269   : > { %v15343_v52 = vpop.f32.mrf.mxu3  ;;  %v4107_v56 = vmax.f32 %v3947_v26, %v11118_v62  ;;  %v4170_v59 = vperm.slane %v4106_v11, 0  ;;  %v3813_v54 = vrot.slane %v3781_v8, 4  ;;  %v11087_v25 = vrot.slane %v3781_v8, 9  ;;  %v3667_v53 = vpop.f32.mrf.mxu1 }
 0x26a   : > { %v3715_v3 = vadd.f32 %v3714_v45, %v3666_v61  ;;  %v3619_v44 = vadd.f32 %v3618_v7, %v15086_v21  ;;  %v13596_v21 = vld [vmem:[%s17836_s2 + $0x20] sm:$0xff]  ;;  %v11296_v11 = vor.u32 %v13491_v32, %v11293_v27  ;;  %v13594_v32 = vld [vmem:[%s17836_s2 + $0x10] sm:$0xff] }
 0x26b   : > { %v4171_v0 = vperm.slane %v4107_v56, 0  ;;  %v4200_v24 = vsel %vm1419_vm4, %v4170_v59, %v4199_v31  ;;  %v11088_v13 = vrot.slane %v3813_v54, 9  ;;  %v3948_v36 = vmax.f32 %v3781_v8, %v11087_v25  ;;  %5790 = vmatpush.bf16.msrb.mxu0 %v13596_v21  ;;  %v13570_v8 = vld [vmem:[%s17835_s1 + $0x60] sm:$0xff]  ;;  %v13568_v27 = vld [vmem:[%s17835_s1 + $0x50] sm:$0xff] }
 0x26c   : > { %v3746_v5 = vmul.f32 %v15224_v28, %v3715_v3  ;;  %v3668_v29 = vadd.f32 %v3667_v53, %v3619_v44  ;;  %v13562_v56 = vld [vmem:[%s17835_s1 + $0x20] sm:$0xff]  ;;  %6060 = vmatpush.bf16.msrb.mxu2 %v13570_v8 }
 0x26d   : > { %v4201_v33 = vsel %vm1421_vm5, %v4171_v0, %v4200_v24  ;;  %v3949_v39 = vmax.f32 %v3813_v54, %v11088_v13  ;;  %v11119_v43 = vrot.slane %v3948_v36, 10  ;;  %v13578_v59 = vld [vmem:[%s17835_s1 + $0xa0] sm:$0xff]  ;;  %v13595_v13 = vld [vmem:[%s17836_s2 + $0x18] sm:$0xff]  ;;  %6041 = vmatpush.bf16.msrb.mxu1 %v13562_v56  ;;  %v13593_v56 = vld [vmem:[%s17836_s2 + $0x8] sm:$0xff] }
 0x26e   : > { %v3766_v17 = vadd.f32 %v15232_v60, %v3746_v5  ;;  %6079 = vmatpush.bf16.msrb.mxu3 %v13578_v59  ;;  %v13577_v5 = vld [vmem:[%s17835_s1 + $0x98] sm:$0xff]  ;;  %v13567_v59 = vld [vmem:[%s17835_s1 + $0x48] sm:$0xff] }
 0x26f   : > { %v11120_v18 = vrot.slane %v3949_v39, 10  ;;  %v4108_v48 = vmax.f32 %v3948_v36, %v11119_v43  ;;  %5791 = vmatpush.bf16.msrb.mxu0 %v13595_v13 }
 0x270   : > { %v3782_v20 = vmax.f32 %v3766_v17, 0.0  ;;  %v3716_v2 = vpop.f32.mrf.mxu2  ;;  %v3621_v31 = vpop.f32.mrf.mxu0  ;;  %v15401_v17 = vld [vmem:[%s14092_s22 + $0x3c0] sm:$0xf]  ;;  %6061 = vmatpush.bf16.msrb.mxu2 %v13569_v50 }
 0x271   : > { %v15370_v34 = vpop.f32.mrf.mxu3  ;;  %v4109_v26 = vmax.f32 %v3949_v39, %v11120_v18  ;;  %v4172_v46 = vperm.slane %v4108_v48, 0  ;;  %v3717_v4 = vadd.f32 %v3716_v2, %v3668_v29  ;;  %v3670_v62 = vpop.f32.mrf.mxu1  ;;  %v3622_v53 = vadd.f32 %v3621_v31, %v15121_v16  ;;  %v13496_v18 = vld [vmem:[%s14092_s22 + $0x3cc] sm:$0xf0]  ;;  %6042 = vmatpush.bf16.msrb.mxu1 %v13561_v38  ;;  %v13497_v31 = vld [vmem:[%s14092_s22 + $0x3d4] sm:$0xf0] }
 0x272   : > { %v3814_v61 = vrot.slane %v3782_v20, 4  ;;  %v11089_v45 = vrot.slane %v3782_v20, 9  ;;  %6080 = vmatpush.bf16.msrb.mxu3 %v13577_v5  ;;  %v13560_v48 = vld [vmem:[%s17835_s1 + $0x10] sm:$0xff] }
 0x273   : > { %v4173_v54 = vperm.slane %v4109_v26, 0  ;;  %v4202_v25 = vsel %vm1423_vm6, %v4172_v46, %v4201_v33  ;;  %v3747_v7 = vmul.f32 %v15224_v28, %v3717_v4  ;;  %4956 = vmatmul.bf16.gmra.mxu0 %v11284_v58  ;;  %v3671_v9 = vadd.f32 %v3670_v62, %v3622_v53  ;;  %v13576_v29 = vld [vmem:[%s17835_s1 + $0x90] sm:$0xff]  ;;  %v11307_v4 = vld [vmem:[%s14092_s22 + $0x3c8] sm:$0xf]  ;;  %v13495_v62 = vld [vmem:[%s14092_s22 + $0x3cc] sm:$0xf] }
 0x274   : > { %v11090_v3 = vrot.slane %v3814_v61, 9  ;;  %v3950_v44 = vmax.f32 %v3782_v20, %v11089_v45  ;;  %5005 = vmatmul.bf16.gmra.mxu1 %v11288_v37  ;;  %v13494_v37 = vld [vmem:[%s14092_s22 + $0x3c4] sm:$0xf]  ;;  %5792 = vmatpush.bf16.msrb.mxu0 %v13594_v32  ;;  %v11309_v45 = vld [vmem:[%s14092_s22 + $0x3d8] sm:$0xf0] }
 0x275   : > { %v4203_v0 = vsel %vm1425_vm7, %v4173_v54, %v4202_v25  ;;  %v3767_v24 = vadd.f32 %v15232_v60, %v3747_v7  ;;  %5054 = vmatmul.bf16.gmra.mxu2 %v11292_v41  ;;  %v11301_v41 = vld [vmem:[%s14092_s22 + $0x3d0] sm:$0xf0]  ;;  %6043 = vmatpush.bf16.msrb.mxu1 %v13560_v48  ;;  %v13559_v25 = vld [vmem:[%s17835_s1 + $0x8] sm:$0xff]  ;;  %v11312_v38 = vor.u32 %v13495_v62, %v11309_v45  ;;  %v13566_v32 = vld [vmem:[%s17835_s1 + $0x40] sm:$0xff] }
 0x276   : > { %5103 = vmatmul.bf16.gmra.mxu3 %v11296_v11  ;;  %4223 = vst [vmem:[#allocation2 + $0x48] sm:$0xff] %v4203_v0  ;;  %v3951_v36 = vmax.f32 %v3814_v61, %v11090_v3  ;;  %v11121_v19 = vrot.slane %v3950_v44, 10  ;;  %6062 = vmatpush.bf16.msrb.mxu2 %v13568_v27  ;;  %v13575_v7 = vld [vmem:[%s17835_s1 + $0x88] sm:$0xff]  ;;  %v11304_v0 = vor.u32 %v13494_v37, %v11301_v41  ;;  %v13589_v37 = vld [vmem:[%s17835_s1 + $0xf8] sm:$0xff] }
 0x277   : > { %v3783_v16 = vmax.f32 %v3767_v24, 0.0  ;;  %6081 = vmatpush.bf16.msrb.mxu3 %v13576_v29 }
 0x278   : > { %v11122_v14 = vrot.slane %v3951_v36, 10  ;;  %v3719_v42 = vpop.f32.mrf.mxu2  ;;  %v3623_v30 = vpop.f32.mrf.mxu0  ;;  %v4110_v26 = vmax.f32 %v3950_v44, %v11121_v19  ;;  %5793 = vmatpush.bf16.msrb.mxu0 %v13593_v56 }
 0x279   : > { %v15398_v33 = vpop.f32.mrf.mxu3  ;;  %v3815_v39 = vrot.slane %v3783_v16, 4  ;;  %v11091_v43 = vrot.slane %v3783_v16, 9  ;;  %v3720_v21 = vadd.f32 %v3719_v42, %v3671_v9  ;;  %v3672_v47 = vpop.f32.mrf.mxu1  ;;  %v3624_v46 = vadd.f32 %v3623_v30, %v15168_v63  ;;  %6044 = vmatpush.bf16.msrb.mxu1 %v13559_v25 }
 0x27a   : > { %v4111_v15 = vmax.f32 %v3951_v36, %v11122_v14  ;;  %v11300_v63 = vor.u32 %v13496_v18, %v15401_v17  ;;  %v4174_v24 = vperm.slane %v4110_v26, 0  ;;  %v11308_v9 = vor.u32 %v13497_v31, %v11307_v4  ;;  %6063 = vmatpush.bf16.msrb.mxu2 %v13567_v59  ;;  %v13558_v17 = vld [vmem:[%s17835_s1] sm:$0xff]  ;;  %v13615_v26 = vld [vmem:[%s17837_s3 + $0x78] sm:$0xff] }
 0x27b   : > { %v11092_v20 = vrot.slane %v3815_v39, 9  ;;  %v3952_v2 = vmax.f32 %v3783_v16, %v11091_v43  ;;  %v3748_v58 = vmul.f32 %v15224_v28, %v3720_v21  ;;  %v3673_v13 = vadd.f32 %v3672_v47, %v3624_v46  ;;  %v13592_v43 = vld [vmem:[%s17836_s2] sm:$0xff]  ;;  %6082 = vmatpush.bf16.msrb.mxu3 %v13575_v7  ;;  %v13607_v46 = vld [vmem:[%s17837_s3 + $0x38] sm:$0xff]  ;;  %v13588_v7 = vld [vmem:[%s17835_s1 + $0xf0] sm:$0xff] }
 0x27c   : > { %v4175_v54 = vperm.slane %v4111_v15, 0  ;;  %5794 = vmatpush.bf16.msrb.mxu0 %v13592_v43  ;;  %v13623_v4 = vld [vmem:[%s17837_s3 + $0xb8] sm:$0xff] }
 0x27d   : > { %v3953_v11 = vmax.f32 %v3815_v39, %v11092_v20  ;;  %v11123_v8 = vrot.slane %v3952_v2, 10  ;;  %v3768_v61 = vadd.f32 %v15232_v60, %v3748_v58  ;;  %6045 = vmatpush.bf16.msrb.mxu1 %v13558_v17 }
 0x27e   : > { %v4204_v21 = vsel %vm1413_vm1, %v4175_v54, %v4174_v24  ;;  %6064 = vmatpush.bf16.msrb.mxu2 %v13566_v32  ;;  %v15482_v24 = vld [vmem:[%s14092_s22 + $0x3e0] sm:$0xf] }
 0x27f   : > { %v11124_v53 = vrot.slane %v3953_v11, 10  ;;  %v4112_v3 = vmax.f32 %v3952_v2, %v11123_v8  ;;  %v3784_v44 = vmax.f32 %v3768_v61, 0.0 }
 0x280   : > { %v3721_v36 = vpop.f32.mrf.mxu2  ;;  %v3626_v42 = vpop.f32.mrf.mxu0  ;;  %6095 = vmatpush.bf16.msra.mxu0 %v13589_v37 }
 0x281   : > { %v15438_v16 = vpop.f32.mrf.mxu3  ;;  %v4113_v50 = vmax.f32 %v3953_v11, %v11124_v53  ;;  %v4176_v5 = vperm.slane %v4112_v3, 0  ;;  %v3816_v19 = vrot.slane %v3784_v44, 4  ;;  %v11093_v14 = vrot.slane %v3784_v44, 9  ;;  %v3675_v39 = vpop.f32.mrf.mxu1  ;;  %6376 = vmatpush.bf16.msra.mxu1 %v13615_v26  ;;  %v13614_v53 = vld [vmem:[%s17837_s3 + $0x70] sm:$0xff] }
 0x282   : > { %v3722_v30 = vadd.f32 %v3721_v36, %v3673_v13  ;;  %v3627_v47 = vadd.f32 %v3626_v42, %v15180_v1  ;;  %v13574_v1 = vld [vmem:[%s17835_s1 + $0x80] sm:$0xff]  ;;  %6475 = vmatpush.bf16.msra.mxu2 %v13607_v46  ;;  %v13606_v3 = vld [vmem:[%s17837_s3 + $0x30] sm:$0xff]  ;;  %v11323_v42 = vld [vmem:[%s14092_s22 + $0x3e8] sm:$0xf] }
 0x283   : > { %v4177_v27 = vperm.slane %v4113_v50, 0  ;;  %v4205_v15 = vsel %vm1415_vm2, %v4176_v5, %v4204_v21  ;;  %v11094_v18 = vrot.slane %v3816_v19, 9  ;;  %v3954_v48 = vmax.f32 %v3784_v44, %v11093_v14  ;;  %4961 = vmatmul.bf16.gmra.mxu0 %v11300_v63  ;;  %6083 = vmatpush.bf16.msrb.mxu3 %v13574_v1  ;;  %v15485_v13 = vld [vmem:[%s14092_s22 + $0x3ec] sm:$0xf0]  ;;  %v15488_v36 = vld [vmem:[%s14092_s22 + $0x3e4] sm:$0xf] }
 0x284   : > { %v3749_v29 = vmul.f32 %v15224_v28, %v3722_v30  ;;  %5010 = vmatmul.bf16.gmra.mxu1 %v11304_v0  ;;  %v3676_v11 = vadd.f32 %v3675_v39, %v3627_v47  ;;  %v13501_v39 = vld [vmem:[%s14092_s22 + $0x3f4] sm:$0xf0]  ;;  %6096 = vmatpush.bf16.msra.mxu0 %v13588_v7  ;;  %v13499_v30 = vld [vmem:[%s14092_s22 + $0x3ec] sm:$0xf]  ;;  %v11325_v47 = vld [vmem:[%s14092_s22 + $0x3f8] sm:$0xf0]  ;;  %v11316_v37 = vor.u32 %v15485_v13, %v15482_v24 }
 0x285   : > { %v3955_v20 = vmax.f32 %v3816_v19, %v11094_v18  ;;  %v11125_v2 = vrot.slane %v3954_v48, 10  ;;  %v4206_v58 = vsel %vm1417_vm3, %v4177_v27, %v4205_v15  ;;  %5059 = vmatmul.bf16.gmra.mxu2 %v11308_v9  ;;  %v11317_v9 = vld [vmem:[%s14092_s22 + $0x3f0] sm:$0xf0]  ;;  %6377 = vmatpush.bf16.msra.mxu1 %v13614_v53  ;;  %v13613_v27 = vld [vmem:[%s17837_s3 + $0x68] sm:$0xff]  ;;  %v11523_v1 = vld [vmem:[%s14092_s22 + $0x400] sm:$0xf] }
 0x286   : > { %5108 = vmatmul.bf16.gmra.mxu3 %v11312_v38  ;;  %v3769_v41 = vadd.f32 %v15232_v60, %v3749_v29  ;;  %v13622_v38 = vld [vmem:[%s17837_s3 + $0xb0] sm:$0xff]  ;;  %6476 = vmatpush.bf16.msra.mxu2 %v13606_v3  ;;  %v13605_v15 = vld [vmem:[%s17837_s3 + $0x28] sm:$0xff]  ;;  %v13586_v7 = vld [vmem:[%s17835_s1 + $0xe0] sm:$0xff] }
 0x287   : > { %v11126_v31 = vrot.slane %v3955_v20, 10  ;;  %v4114_v62 = vmax.f32 %v3954_v48, %v11125_v2  ;;  %6617 = vmatpush.bf16.msra.mxu3 %v13623_v4  ;;  %v13590_v29 = vld [vmem:[%s14092_s22 + $0x40c] sm:$0xf0]  ;;  %v13604_v24 = vld [vmem:[%s17837_s3 + $0x20] sm:$0xff] }
 0x288   : > { %v3785_v8 = vmax.f32 %v3769_v41, 0.0  ;;  %v3724_v61 = vpop.f32.mrf.mxu2  ;;  %v3628_v63 = vpop.f32.mrf.mxu0  ;;  %v11320_v41 = vor.u32 %v15488_v36, %v11317_v9  ;;  %v13620_v9 = vld [vmem:[%s17837_s3 + $0xa0] sm:$0xff] }
 0x289   : > { %v15470_v45 = vpop.f32.mrf.mxu3  ;;  %v4115_v56 = vmax.f32 %v3955_v20, %v11126_v31  ;;  %v4178_v59 = vperm.slane %v4114_v62, 0  ;;  %v3725_v54 = vadd.f32 %v3724_v61, %v3676_v11  ;;  %v3677_v25 = vpop.f32.mrf.mxu1  ;;  %v3629_v14 = vadd.f32 %v3628_v63, %v15199_v23  ;;  %v13587_v23 = vld [vmem:[%s17835_s1 + $0xe8] sm:$0xff]  ;;  %6378 = vmatpush.bf16.msra.mxu1 %v13613_v27  ;;  %v11527_v63 = vld [vmem:[%s14092_s22 + $0x420] sm:$0xf] }
 0x28a   : > { %v3817_v44 = vrot.slane %v3785_v8, 4  ;;  %v11095_v0 = vrot.slane %v3785_v8, 9  ;;  %v13621_v20 = vld [vmem:[%s17837_s3 + $0xa8] sm:$0xff]  ;;  %6097 = vmatpush.bf16.msra.mxu0 %v13587_v23  ;;  %v11324_v62 = vor.u32 %v13501_v39, %v11323_v42  ;;  %v11328_v11 = vor.u32 %v13499_v30, %v11325_v47  ;;  %6477 = vmatpush.bf16.msra.mxu2 %v13605_v15 }
 0x28b   : > { %v4179_v50 = vperm.slane %v4115_v56, 0  ;;  %v4207_v5 = vsel %vm1419_vm4, %v4178_v59, %v4206_v58  ;;  %v3750_v19 = vmul.f32 %v15224_v28, %v3725_v54  ;;  %6618 = vmatpush.bf16.msra.mxu3 %v13622_v38  ;;  %v3678_v58 = vadd.f32 %v3677_v25, %v3629_v14 }
 0x28c   : > { %v11096_v43 = vrot.slane %v3817_v44, 9  ;;  %v3956_v21 = vmax.f32 %v3785_v8, %v11095_v0  ;;  %v15523_v25 = vor.u32 %v13590_v29, %v11523_v1  ;;  %v13612_v0 = vld [vmem:[%s17837_s3 + $0x60] sm:$0xff] }
 0x28d   : > { %v4208_v17 = vsel %vm1421_vm5, %v4179_v50, %v4207_v5  ;;  %v3770_v32 = vadd.f32 %v15232_v60, %v3750_v19  ;;  %6379 = vmatpush.bf16.msra.mxu1 %v13612_v0 }
 0x28e   : > { %v3957_v18 = vmax.f32 %v3817_v44, %v11096_v43  ;;  %v11127_v48 = vrot.slane %v3956_v21, 10  ;;  %v13591_v44 = vld [vmem:[%s14092_s22 + $0x42c] sm:$0xf0]  ;;  %6098 = vmatpush.bf16.msra.mxu0 %v13586_v7  ;;  %v13585_v43 = vld [vmem:[%s17835_s1 + $0xd8] sm:$0xff]  ;;  %6478 = vmatpush.bf16.msra.mxu2 %v13604_v24 }
 0x28f   : > { %v3786_v2 = vmax.f32 %v3770_v32, 0.0  ;;  %6619 = vmatpush.bf16.msra.mxu3 %v13621_v20  ;;  %v15542_v39 = vor.u32 %v13591_v44, %v11527_v63  ;;  %v13553_v44 = vld [vmem:[%s14092_s22 + $0x414] sm:$0xf0] }
 0x290   : > { %v11128_v26 = vrot.slane %v3957_v18, 10  ;;  %v4116_v46 = vmax.f32 %v3956_v21, %v11127_v48  ;;  %v3726_v4 = vpop.f32.mrf.mxu2  ;;  %v3631_v59 = vpop.f32.mrf.mxu0 }
 0x291   : > { %v15520_v31 = vpop.f32.mrf.mxu3  ;;  %v3818_v8 = vrot.slane %v3786_v2, 4  ;;  %v11097_v61 = vrot.slane %v3786_v2, 9  ;;  %v3727_v56 = vadd.f32 %v3726_v4, %v3678_v58  ;;  %v3680_v54 = vpop.f32.mrf.mxu1  ;;  %v3632_v19 = vadd.f32 %v3631_v59, %v15203_v51  ;;  %v13611_v51 = vld [vmem:[%s17837_s3 + $0x58] sm:$0xff]  ;;  %v13610_v4 = vld [vmem:[%s17837_s3 + $0x50] sm:$0xff]  ;;  %v15577_v59 = vld [vmem:[%s14092_s22 + $0x404] sm:$0xf] }
 0x292   : > { %v4117_v53 = vmax.f32 %v3957_v18, %v11128_v26  ;;  %v4180_v3 = vperm.slane %v4116_v46, 0  ;;  %6099 = vmatpush.bf16.msra.mxu0 %v13585_v43  ;;  %v5718_v18 = vshrl.u32 %v15523_v25, 16  ;;  %v5725_v58 = vshll.u32 %v15542_v39, 16  ;;  %v15566_v46 = vld [vmem:[%s14092_s22 + $0x400] sm:$0xf]  ;;  %6380 = vmatpush.bf16.msra.mxu1 %v13611_v51 }
 0x293   : > { %v11098_v13 = vrot.slane %v3818_v8, 9  ;;  %v3751_v36 = vmul.f32 %v15224_v28, %v3727_v56  ;;  %v3958_v5 = vmax.f32 %v3786_v2, %v11097_v61  ;;  %4966 = vmatmul.bf16.gmra.mxu0 %v11316_v37  ;;  %v5720_v28 = vshll.u32 %v15523_v25, 16  ;;  %6620 = vmatpush.bf16.msra.mxu3 %v13620_v9  ;;  %v13584_v37 = vld [vmem:[%s17835_s1 + $0xd0] sm:$0xff]  ;;  %v13922_v25 = vld [vmem:[%s17841_s7] ss:$0 sm:$0xff]  ;;  %v13583_v9 = vld [vmem:[%s17835_s1 + $0xc8] sm:$0xff] }
 0x294   : > { %v4181_v38 = vperm.slane %v4117_v53, 0  ;;  %v4209_v50 = vsel %vm1423_vm6, %v4180_v3, %v4208_v17  ;;  %5015 = vmatmul.bf16.gmra.mxu1 %v11320_v41  ;;  %v13619_v17 = vld [vmem:[%s17837_s3 + $0x98] sm:$0xff]  ;;  %v3681_v23 = vadd.f32 %v3680_v54, %v3632_v19  ;;  %v13552_v56 = vld [vmem:[%s14092_s22 + $0x40c] sm:$0xf0]  ;;  %v11565_v53 = vld [vmem:[%s14092_s22 + $0x410] sm:$0xf0] }
 0x295   : > { %v3959_v14 = vmax.f32 %v3818_v8, %v11098_v13  ;;  %v3771_v42 = vadd.f32 %v15232_v60, %v3751_v36  ;;  %5064 = vmatmul.bf16.gmra.mxu2 %v11324_v62  ;;  %v13603_v60 = vld [vmem:[%s17837_s3 + $0x18] sm:$0xff]  ;;  %v11129_v32 = vrot.slane %v3958_v5, 10  ;;  %v5722_v2 = vrot.slane %v5720_v28, 1  ;;  %v13602_v62 = vld [vmem:[%s17837_s3 + $0x10] sm:$0xff]  ;;  %v11571_v3 = vld [vmem:[%s14092_s22 + $0x408] sm:$0xf] }
 0x296   : > { %5113 = vmatmul.bf16.gmra.mxu3 %v11328_v11  ;;  %v4210_v21 = vsel %vm1425_vm7, %v4181_v38, %v4209_v50  ;;  %6479 = vmatpush.bf16.msra.mxu2 %v13603_v60  ;;  %v13618_v54 = vld [vmem:[%s17837_s3 + $0x90] sm:$0xff]  ;;  %v15588_v13 = vrot.slane %v5725_v58, 1  ;;  %v5687_v36 = vld [vmem:[%s14092_s22 + $0x440] sm:$0x1]  ;;  %v11564_v19 = vor.u32 %v13552_v56, %v15566_v46  ;;  %v11568_v51 = vor.u32 %v15577_v59, %v11565_v53  ;;  %v13617_v60 = vld [vmem:[%s17837_s3 + $0x88] sm:$0xff] }
 0x297   : > { %4224 = vst [vmem:[#allocation2 + $0x50] sm:$0xff] %v4210_v21  ;;  %v11130_v30 = vrot.slane %v3959_v14, 10  ;;  %v3787_v47 = vmax.f32 %v3771_v42, 0.0  ;;  %6621 = vmatpush.bf16.msra.mxu3 %v13619_v17  ;;  %6100 = vmatpush.bf16.msra.mxu0 %v13584_v37  ;;  %v4118_v63 = vmax.f32 %v3958_v5, %v11129_v32  ;;  %v5723_v24 = vor.u32 %v5722_v2, %v5718_v18  ;;  %v13923_v50 = vld [vmem:[%s17842_s8] ss:$0 sm:$0xff]  ;;  %v13601_v42 = vld [vmem:[%s17837_s3 + $0x8] sm:$0xff] }
 0x298   : > { %v3729_v27 = vpop.f32.mrf.mxu2  ;;  %v3633_v29 = vpop.f32.mrf.mxu0  ;;  %6381 = vmatpush.bf16.msra.mxu1 %v13610_v4  ;;  %v13582_v58 = vld [vmem:[%s17835_s1 + $0xc0] sm:$0xff] }
 0x299   : > { %v15558_v15 = vpop.f32.mrf.mxu3  ;;  %v3819_v48 = vrot.slane %v3787_v47, 4  ;;  %v11099_v1 = vrot.slane %v3787_v47, 9  ;;  %v3682_v20 = vpop.f32.mrf.mxu1  ;;  %v4119_v41 = vmax.f32 %v3959_v14, %v11130_v30  ;;  %v3730_v26 = vadd.f32 %v3729_v27, %v3681_v23  ;;  %v13609_v14 = vld [vmem:[%s17837_s3 + $0x48] sm:$0xff]  ;;  %v13608_v46 = vld [vmem:[%s17837_s3 + $0x40] sm:$0xff] }
 0x29a   : > { %v3634_v61 = vadd.f32 %v3633_v29, %v15217_v40  ;;  %6480 = vmatpush.bf16.msra.mxu2 %v13602_v62  ;;  %v4182_v30 = vperm.slane %v4118_v63, 0  ;;  %v11572_v23 = vor.u32 %v13553_v44, %v11571_v3  ;;  %v5713_v27 = vunpack.c.l.b16 %v5687_v36  ;;  %v13600_v4 = vld [vmem:[%s17837_s3] sm:$0xff] }
 0x29b   : > { %v11100_v11 = vrot.slane %v3819_v48, 9  ;;  %v3960_v8 = vmax.f32 %v3787_v47, %v11099_v1  ;;  %v3752_v7 = vmul.f32 %v13922_v25, %v3730_v26  ;;  %v4183_v38 = vperm.slane %v4119_v41, 0  ;;  %6622 = vmatpush.bf16.msra.mxu3 %v13618_v54  ;;  %6101 = vmatpush.bf16.msra.mxu0 %v13583_v9  ;;  %v13616_v56 = vld [vmem:[%s17837_s3 + $0x80] sm:$0xff] }
 0x29c   : > { %v3683_v21 = vadd.f32 %v3682_v20, %v3634_v61  ;;  %v5728_v2 = vsel %vm235_vm0, %v5723_v24, %v15588_v13  ;;  %6382 = vmatpush.bf16.msra.mxu1 %v13609_v14  ;;  %v5716_v63 = vpack.c.b16 %v5713_v27, %v5713_v27  ;;  %v5729_v9 = vshrl.u32 %v15542_v39, 16  ;;  %v15632_v14 = vld [vmem:[%s17841_s7] ss:$0 sm:$0xff] }
 0x29d   : > { %v3961_v40 = vmax.f32 %v3819_v48, %v11100_v11  ;;  %v11131_v0 = vrot.slane %v3960_v8, 10  ;;  %v3772_v5 = vadd.f32 %v13923_v50, %v3752_v7  ;;  %v4211_v37 = vsel %vm1413_vm1, %v4183_v38, %v4182_v30  ;;  %v15637_v39 = vld [vmem:[%s17842_s8] ss:$0 sm:$0xff] }
 0x29e   : > { %6481 = vmatpush.bf16.msra.mxu2 %v13601_v42  ;;  %v5733_v38 = vshll.u32 %v5716_v63, 16 }
 0x29f   : > { %v11132_v28 = vrot.slane %v3961_v40, 10  ;;  %v4120_v43 = vmax.f32 %v3960_v8, %v11131_v0  ;;  %v3788_v47 = vmax.f32 %v3772_v5, 0.0  ;;  %6623 = vmatpush.bf16.msra.mxu3 %v13617_v60  ;;  %6102 = vmatpush.bf16.msra.mxu0 %v13582_v58 }
 0x2a0   : > { %v3731_v17 = vpop.f32.mrf.mxu2  ;;  %v4932_v29 = vpop.f32.mrf.mxu0  ;;  %6383 = vmatpush.bf16.msra.mxu1 %v13608_v46 }
 0x2a1   : > { %v15608_v32 = vpop.f32.mrf.mxu3  ;;  %v4121_v18 = vmax.f32 %v3961_v40, %v11132_v28  ;;  %v4184_v48 = vperm.slane %v4120_v43, 0  ;;  %v3732_v1 = vadd.f32 %v3731_v17, %v3683_v21  ;;  %v4981_v20 = vpop.f32.mrf.mxu1  ;;  %v3820_v41 = vrot.slane %v3788_v47, 4  ;;  %v11579_v17 = vld [vmem:[%s14092_s22 + $0x420] sm:$0xf] }
 0x2a2   : > { %v11101_v26 = vrot.slane %v3788_v47, 9  ;;  %v4933_v61 = vadd.f32 %v4932_v29, %v15227_v12  ;;  %6482 = vmatpush.bf16.msra.mxu2 %v13600_v4  ;;  %v13554_v29 = vld [vmem:[%s14092_s22 + $0x424] sm:$0xf] }
 0x2a3   : > { %v4185_v62 = vperm.slane %v4121_v18, 0  ;;  %v4212_v11 = vsel %vm1415_vm2, %v4184_v48, %v4211_v37  ;;  %v3753_v8 = vmul.f32 %v13922_v25, %v3732_v1  ;;  %v11102_v59 = vrot.slane %v3820_v41, 9  ;;  %5795 = vmatmul.bf16.vlgmr.msrb.gmra.mxu0 %v5728_v2  ;;  %6624 = vmatpush.bf16.msra.mxu3 %v13616_v56 }
 0x2a4   : > { %v3962_v54 = vmax.f32 %v3788_v47, %v11101_v26  ;;  %6046 = vmatmul.bf16.vlgmr.msrb.gmra.mxu1 %v11564_v19  ;;  %v4982_v44 = vadd.f32 %v4981_v20, %v4933_v61  ;;  %v5731_v48 = vor.u32 %v5729_v9, %v15588_v13  ;;  %v5735_v1 = vrot.slane %v5733_v38, 1  ;;  %v11581_v20 = vld [vmem:[%s14092_s22 + $0x430] sm:$0xf0]  ;;  %v13557_v26 = vld [vmem:[%s14092_s22 + $0x434] sm:$0xf0] }
 0x2a5   : > { %v4213_v7 = vsel %vm1417_vm3, %v4185_v62, %v4212_v11  ;;  %v3773_v53 = vadd.f32 %v13923_v50, %v3753_v8  ;;  %6065 = vmatmul.bf16.vlgmr.msrb.gmra.mxu2 %v11568_v51  ;;  %v3963_v3 = vmax.f32 %v3820_v41, %v11102_v59  ;;  %v11587_v41 = vld [vmem:[%s14092_s22 + $0x428] sm:$0xf]  ;;  %v11584_v59 = vor.u32 %v13554_v29, %v11581_v20 }
 0x2a6   : > { %6084 = vmatmul.bf16.vlgmr.msrb.gmra.mxu3 %v11572_v23  ;;  %v11133_v25 = vrot.slane %v3962_v54, 10  ;;  %v13556_v23 = vld [vmem:[%s14092_s22 + $0x42c] sm:$0xf0]  ;;  %v5736_v13 = vsel %vm235_vm0, %v5731_v48, %v5735_v1  ;;  %v13551_v48 = vld [vmem:[%s14092_s22 + $0x40c] sm:$0xf] }
 0x2a7   : > { %v3789_v12 = vmax.f32 %v3773_v53, 0.0  ;;  %v11134_v40 = vrot.slane %v3963_v3, 10  ;;  %v11580_v56 = vor.u32 %v13556_v23, %v11579_v17  ;;  %v11573_v1 = vld [vmem:[%s14092_s22 + $0x418] sm:$0xf0] }
 0x2a8   : > { %v4122_v0 = vmax.f32 %v3962_v54, %v11133_v25  ;;  %v5030_v24 = vpop.f32.mrf.mxu2  ;;  %v4934_v42 = vpop.f32.mrf.mxu0  ;;  %v11588_v54 = vor.u32 %v13557_v26, %v11587_v41  ;;  %v6286_v41 = vld [vmem:[#allocation2 + $0x9] sm:$0xff] }
 0x2a9   : > { %v5079_v36 = vpop.f32.mrf.mxu3  ;;  %v3821_v5 = vrot.slane %v3789_v12, 4  ;;  %v11103_v50 = vrot.slane %v3789_v12, 9  ;;  %v5031_v19 = vadd.f32 %v5030_v24, %v4982_v44  ;;  %v4983_v28 = vpop.f32.mrf.mxu1  ;;  %v4123_v43 = vmax.f32 %v3963_v3, %v11134_v40  ;;  %v6244_v26 = vld [vmem:[#allocation2 + $0x8] sm:$0xff] }
 0x2aa   : > { %v4186_v21 = vperm.slane %v4122_v0, 0  ;;  %v4935_v47 = vadd.f32 %v4934_v42, %v15247_v35 }
 0x2ab   : > { %v11104_v51 = vrot.slane %v3821_v5, 9  ;;  %v3964_v60 = vmax.f32 %v3789_v12, %v11103_v50  ;;  %v5080_v30 = vadd.f32 %v5079_v36, %v5031_v19  ;;  %v4187_v27 = vperm.slane %v4123_v43, 0 }
 0x2ac   : > { %v4214_v18 = vsel %vm1419_vm4, %v4186_v21, %v4213_v7  ;;  %v4984_v11 = vadd.f32 %v4983_v28, %v4935_v47 }
 0x2ad   : > { %v3965_v2 = vmax.f32 %v3821_v5, %v11104_v51  ;;  %v11135_v58 = vrot.slane %v3964_v60, 10  ;;  %v5123_v37 = vmul.f32 %v15632_v14, %v5080_v30  ;;  %v4215_v46 = vsel %vm1421_vm5, %v4187_v27, %v4214_v18 }
 0x2af   : > { %v11136_v4 = vrot.slane %v3965_v2, 10  ;;  %v4124_v35 = vmax.f32 %v3964_v60, %v11135_v58  ;;  %v5143_v62 = vadd.f32 %v15637_v39, %v5123_v37 }
 0x2b0   : > { %v5032_v8 = vpop.f32.mrf.mxu2  ;;  %v4937_v25 = vpop.f32.mrf.mxu0 }
 0x2b1   : > { %v5081_v61 = vpop.f32.mrf.mxu3  ;;  %v4125_v63 = vmax.f32 %v3965_v2, %v11136_v4  ;;  %v4188_v7 = vperm.slane %v4124_v35, 0  ;;  %v5159_v53 = vmax.f32 %v5143_v62, 0.0  ;;  %v5033_v3 = vadd.f32 %v5032_v8, %v4984_v11  ;;  %v4986_v12 = vpop.f32.mrf.mxu1 }
 0x2b2   : > { %v4938_v0 = vadd.f32 %v4937_v25, %v15252_v57  ;;  %v11576_v8 = vor.u32 %v13551_v48, %v11573_v1 }
 0x2b3   : > { %v4189_v44 = vperm.slane %v4125_v63, 0  ;;  %v4216_v40 = vsel %vm1423_vm6, %v4188_v7, %v4215_v46  ;;  %v5191_v24 = vrot.slane %v5159_v53, 4  ;;  %v5082_v36 = vadd.f32 %v5081_v61, %v5033_v3  ;;  %5800 = vmatmul.bf16.gmra.mxu0 %v5736_v13  ;;  %v6527_v46 = vld [vmem:[#allocation2 + $0xa] sm:$0xff]  ;;  %v6243_v63 = vld [vmem:[#allocation2] sm:$0xff] }
 0x2b4   : > { %6051 = vmatmul.bf16.gmra.mxu1 %v11580_v56  ;;  %v4987_v5 = vadd.f32 %v4986_v12, %v4938_v0  ;;  %v11457_v51 = vrot.slane %v5159_v53, 9  ;;  %v6526_v7 = vld [vmem:[#allocation2 + $0x2] sm:$0xff]  ;;  %v6260_v25 = vpack.c.bf16 %v6244_v26, %v6243_v63  ;;  %v6246_v63 = vld [vmem:[#allocation2 + $0x18] sm:$0xff] }
 0x2b5   : > { %v4217_v9 = vsel %vm1425_vm7, %v4189_v44, %v4216_v40  ;;  %6070 = vmatmul.bf16.gmra.mxu2 %v11584_v59  ;;  %v5124_v38 = vmul.f32 %v15632_v14, %v5082_v36  ;;  %v11458_v50 = vrot.slane %v5191_v24, 9  ;;  %v6543_v12 = vpack.c.bf16 %v6527_v46, %v6526_v7 }
 0x2b6   : > { %6089 = vmatmul.bf16.gmra.mxu3 %v11588_v54  ;;  %4225 = vst [vmem:[#allocation2 + $0x58] sm:$0xff] %v4217_v9  ;;  %v5319_v29 = vmax.f32 %v5159_v53, %v11457_v51  ;;  %v6285_v54 = vld [vmem:[#allocation2 + $0x1] sm:$0xff] }
 0x2b7   : > { %v5144_v19 = vadd.f32 %v15637_v39, %v5124_v38  ;;  %v5320_v17 = vmax.f32 %v5191_v24, %v11458_v50  ;;  %v6302_v3 = vpack.c.bf16 %v6286_v41, %v6285_v54  ;;  %v6288_v54 = vld [vmem:[#allocation2 + $0x19] sm:$0xff] }
 0x2b8   : > { %v5035_v42 = vpop.f32.mrf.mxu2  ;;  %v4939_v43 = vpop.f32.mrf.mxu0  ;;  %v11489_v53 = vrot.slane %v5319_v29, 10 }
 0x2b9   : > { %v5084_v28 = vpop.f32.mrf.mxu3  ;;  %v5036_v57 = vadd.f32 %v5035_v42, %v4987_v5  ;;  %v4988_v21 = vpop.f32.mrf.mxu1  ;;  %v5160_v60 = vmax.f32 %v5144_v19, 0.0  ;;  %v4940_v47 = vadd.f32 %v4939_v43, %v15268_v49  ;;  %v11490_v4 = vrot.slane %v5320_v17, 10 }
 0x2ba   : > { %v5479_v42 = vmax.f32 %v5319_v29, %v11489_v53 }
 0x2bb   : > { %v5085_v30 = vadd.f32 %v5084_v28, %v5036_v57  ;;  %v5192_v23 = vrot.slane %v5160_v60, 4  ;;  %v11459_v27 = vrot.slane %v5160_v60, 9  ;;  %v4989_v37 = vadd.f32 %v4988_v21, %v4940_v47 }
 0x2bc   : > { %v5480_v36 = vmax.f32 %v5320_v17, %v11490_v4 }
 0x2bd   : > { %v5125_v18 = vmul.f32 %v15632_v14, %v5085_v30  ;;  %v11460_v20 = vrot.slane %v5192_v23, 9  ;;  %v5321_v2 = vmax.f32 %v5160_v60, %v11459_v27 }
 0x2be   : > { %v5544_v51 = vperm.slane %v5480_v36, 0 }
 0x2bf   : > { %v5145_v58 = vadd.f32 %v15637_v39, %v5125_v18  ;;  %v5322_v35 = vmax.f32 %v5192_v23, %v11460_v20  ;;  %v11491_v62 = vrot.slane %v5321_v2, 10  ;;  %v5543_v20 = vperm.slane %v5479_v42, 0 }
 0x2c0   : > { %v5037_v49 = vpop.f32.mrf.mxu2  ;;  %v4942_v56 = vpop.f32.mrf.mxu0 }
 0x2c1   : > { %v5086_v11 = vpop.f32.mrf.mxu3  ;;  %v5161_v61 = vmax.f32 %v5145_v58, 0.0  ;;  %v5038_v13 = vadd.f32 %v5037_v49, %v4989_v37  ;;  %v4991_v59 = vpop.f32.mrf.mxu1  ;;  %v4943_v24 = vadd.f32 %v4942_v56, %v15276_v22  ;;  %v11492_v9 = vrot.slane %v5322_v35, 10 }
 0x2c2   : > { %v5481_v38 = vmax.f32 %v5321_v2, %v11491_v62  ;;  %v5575_v37 = vsel %vm1413_vm1, %v5544_v51, %v5543_v20 }
 0x2c3   : > { %v5193_v44 = vrot.slane %v5161_v61, 4  ;;  %v11461_v40 = vrot.slane %v5161_v61, 9  ;;  %v5087_v0 = vadd.f32 %v5086_v11, %v5038_v13  ;;  %6103 = vmatmul.bf16.vlgmr.msra.gmra.mxu0 %v11576_v8  ;;  %v4992_v21 = vadd.f32 %v4991_v59, %v4943_v24  ;;  %v13555_v11 = vld [vmem:[%s14092_s22 + $0x42c] sm:$0xf]  ;;  %v11589_v8 = vld [vmem:[%s14092_s22 + $0x438] sm:$0xf0] }
 0x2c4   : > { %6384 = vmatmul.bf16.vlgmr.msra.gmra.mxu1 %v6302_v3  ;;  %v5482_v60 = vmax.f32 %v5322_v35, %v11492_v9  ;;  %v5545_v22 = vperm.slane %v5481_v38, 0  ;;  %s13864_s22 = sshll.u32 %s13959_s21, 4  ;;  %s59_s21 = sadd.s32 1, %s13959_s21  }
 0x2c5   : > { %v11462_v5 = vrot.slane %v5193_v44, 9  ;;  %v5323_v50 = vmax.f32 %v5161_v61, %v11461_v40  ;;  %v5126_v19 = vmul.f32 %v15632_v14, %v5087_v0  ;;  %6483 = vmatmul.bf16.vlgmr.msra.gmra.mxu2 %v6260_v25  ;;  %s9510_s18 = scalar_lea.vmem [#allocation3], %s13864_s22  ;;  %p56_p0 = scmp.ge.s32.totalorder %s59_s21, 2  }
 0x2c6   : > { %6625 = vmatmul.bf16.vlgmr.msra.gmra.mxu3 %v6543_v12  ;;  %v5546_v41 = vperm.slane %v5482_v60, 0  ;;  %v5576_v4 = vsel %vm1415_vm2, %v5545_v22, %v5575_v37  ;;  %s13961_s29 = smov (%p56_p0), [#allocation4]  }
 0x2c7   : > { %v5324_v28 = vmax.f32 %v5193_v44, %v11462_v5  ;;  %v11493_v57 = vrot.slane %v5323_v50, 10  ;;  %v5146_v43 = vadd.f32 %v15637_v39, %v5126_v19  ;;  %v11592_v44 = vor.u32 %v13555_v11, %v11589_v8  ;;  %v6287_v5 = vld [vmem:[#allocation2 + $0x11] sm:$0xff]  ;;  %s9964_s1 = sshll.u32 (%p56_p0), %s13961_s29, 4  ;;  %s9965_s1 = int_to_ptr.vmem [resolvable:$true] %s9964_s1 }
 0x2c8   : > { %v5040_v30 = vpop.f32.mrf.mxu2  ;;  %v4944_v48 = vpop.f32.mrf.mxu0  ;;  %v5577_v53 = vsel %vm1417_vm3, %v5546_v41, %v5576_v4  ;;  %v6528_v19 = vld [vmem:[#allocation2 + $0x12] sm:$0xff] }
 0x2c9   : > { %v5089_v47 = vpop.f32.mrf.mxu3  ;;  %v11494_v17 = vrot.slane %v5324_v28, 10  ;;  %v5483_v23 = vmax.f32 %v5323_v50, %v11493_v57  ;;  %v5162_v27 = vmax.f32 %v5146_v43, 0.0  ;;  %v5041_v18 = vadd.f32 %v5040_v30, %v4992_v21  ;;  %v4993_v1 = vpop.f32.mrf.mxu1  ;;  %v6245_v50 = vld [vmem:[#allocation2 + $0x10] sm:$0xff] }
 0x2ca   : > { %v4945_v58 = vadd.f32 %v4944_v48, %v15294_v55  ;;  %v6529_v55 = vld [vmem:[#allocation2 + $0x1a] sm:$0xff]  ;;  %v6261_v57 = vpack.c.bf16 %v6246_v63, %v6245_v50  ;;  %v6248_v63 = vld [vmem:[#allocation2 + $0x28] sm:$0xff] }
 0x2cb   : > { %v5194_v29 = vrot.slane %v5162_v27, 4  ;;  %v11463_v2 = vrot.slane %v5162_v27, 9  ;;  %v5484_v26 = vmax.f32 %v5324_v28, %v11494_v17  ;;  %v5090_v46 = vadd.f32 %v5089_v47, %v5041_v18 }
 0x2cc   : > { %v5547_v35 = vperm.slane %v5483_v23, 0  ;;  %v4994_v59 = vadd.f32 %v4993_v1, %v4945_v58  ;;  %v6303_v28 = vpack.c.bf16 %v6288_v54, %v6287_v5  ;;  %v6544_v43 = vpack.c.bf16 %v6529_v55, %v6528_v19  ;;  %v6290_v54 = vld [vmem:[#allocation2 + $0x29] sm:$0xff] }
 0x2cd   : > { %v11464_v62 = vrot.slane %v5194_v29, 9  ;;  %v5325_v49 = vmax.f32 %v5162_v27, %v11463_v2  ;;  %v5127_v61 = vmul.f32 %v15632_v14, %v5090_v46  ;;  %v5548_v7 = vperm.slane %v5484_v26, 0  ;;  %v6531_v55 = vld [vmem:[#allocation2 + $0x2a] sm:$0xff] }
 0x2ce   : > { %v5578_v40 = vsel %vm1419_vm4, %v5547_v35, %v5577_v53 }
 0x2cf   : > { %v5326_v13 = vmax.f32 %v5194_v29, %v11464_v62  ;;  %v11495_v56 = vrot.slane %v5325_v49, 10  ;;  %v5147_v3 = vadd.f32 %v15637_v39, %v5127_v61  ;;  %v5579_v30 = vsel %vm1421_vm5, %v5548_v7, %v5578_v40 }
 0x2d0   : > { %v5042_v25 = vpop.f32.mrf.mxu2  ;;  %v4947_v9 = vpop.f32.mrf.mxu0 }
 0x2d1   : > { %v5091_v12 = vpop.f32.mrf.mxu3  ;;  %v11496_v0 = vrot.slane %v5326_v13, 10  ;;  %v5485_v24 = vmax.f32 %v5325_v49, %v11495_v56  ;;  %v5043_v36 = vadd.f32 %v5042_v25, %v4994_v59  ;;  %v4996_v38 = vpop.f32.mrf.mxu1  ;;  %v5163_v42 = vmax.f32 %v5147_v3, 0.0 }
 0x2d2   : > { %v4948_v22 = vadd.f32 %v4947_v9, %v15310_v10 }
 0x2d3   : > { %v5486_v21 = vmax.f32 %v5326_v13, %v11496_v0  ;;  %v5549_v51 = vperm.slane %v5485_v24, 0  ;;  %v5092_v60 = vadd.f32 %v5091_v12, %v5043_v36  ;;  %6108 = vmatmul.bf16.gmra.mxu0 %v11592_v44  ;;  %v5195_v23 = vrot.slane %v5163_v42, 4  ;;  %v6289_v0 = vld [vmem:[#allocation2 + $0x21] sm:$0xff] }
 0x2d4   : > { %6389 = vmatmul.bf16.gmra.mxu1 %v6303_v28  ;;  %v4997_v1 = vadd.f32 %v4996_v38, %v4948_v22  ;;  %v11465_v26 = vrot.slane %v5163_v42, 9  ;;  %v6247_v24 = vld [vmem:[#allocation2 + $0x20] sm:$0xff]  ;;  %v6304_v38 = vpack.c.bf16 %v6290_v54, %v6289_v0  ;;  %v6250_v54 = vld [vmem:[#allocation2 + $0x38] sm:$0xff] }
 0x2d5   : > { %v5550_v47 = vperm.slane %v5486_v21, 0  ;;  %v5580_v17 = vsel %vm1423_vm6, %v5549_v51, %v5579_v30  ;;  %v5128_v27 = vmul.f32 %v15632_v14, %v5092_v60  ;;  %6488 = vmatmul.bf16.gmra.mxu2 %v6261_v57  ;;  %v11466_v29 = vrot.slane %v5195_v23, 9  ;;  %v6530_v36 = vld [vmem:[#allocation2 + $0x22] sm:$0xff] }
 0x2d6   : > { %6630 = vmatmul.bf16.gmra.mxu3 %v6544_v43  ;;  %v5327_v13 = vmax.f32 %v5163_v42, %v11465_v26  ;;  %v6262_v5 = vpack.c.bf16 %v6248_v63, %v6247_v24  ;;  %v6545_v50 = vpack.c.bf16 %v6531_v55, %v6530_v36  ;;  %v6533_v36 = vld [vmem:[#allocation2 + $0x3a] sm:$0xff] }
 0x2d7   : > { %v15679_v18 = vsel %vm1425_vm7, %v5550_v47, %v5580_v17  ;;  %v5148_v48 = vadd.f32 %v15637_v39, %v5128_v27  ;;  %v5328_v49 = vmax.f32 %v5195_v23, %v11466_v29 }
 0x2d8   : > { %5607 = vst [vmem:[#allocation2 + $0x60] sm:$0xff] %v15679_v18  ;;  %v5045_v10 = vpop.f32.mrf.mxu2  ;;  %v4949_v37 = vpop.f32.mrf.mxu0  ;;  %v11497_v19 = vrot.slane %v5327_v13, 10 }
 0x2d9   : > { %v5094_v20 = vpop.f32.mrf.mxu3  ;;  %v5164_v2 = vmax.f32 %v5148_v48, 0.0  ;;  %v5046_v58 = vadd.f32 %v5045_v10, %v4997_v1  ;;  %v4998_v41 = vpop.f32.mrf.mxu1  ;;  %v4950_v62 = vadd.f32 %v4949_v37, %v15326_v6  ;;  %v11498_v3 = vrot.slane %v5328_v49, 10 }
 0x2da   : > { %v5487_v17 = vmax.f32 %v5327_v13, %v11497_v19 }
 0x2db   : > { %v5196_v46 = vrot.slane %v5164_v2, 4  ;;  %v11467_v4 = vrot.slane %v5164_v2, 9  ;;  %v5095_v35 = vadd.f32 %v5094_v20, %v5046_v58  ;;  %v4999_v59 = vadd.f32 %v4998_v41, %v4950_v62 }
 0x2dc   : > { %v5488_v21 = vmax.f32 %v5328_v49, %v11498_v3 }
 0x2dd   : > { %v11468_v11 = vrot.slane %v5196_v46, 9  ;;  %v5129_v8 = vmul.f32 %v15632_v14, %v5095_v35  ;;  %v5329_v61 = vmax.f32 %v5164_v2, %v11467_v4  ;;  %v5551_v35 = vperm.slane %v5487_v17, 0 }
 0x2df   : > { %v5149_v56 = vadd.f32 %v15637_v39, %v5129_v8  ;;  %v5330_v25 = vmax.f32 %v5196_v46, %v11468_v11  ;;  %v11499_v9 = vrot.slane %v5329_v61, 10 }
 0x2e0   : > { %v5047_v7 = vpop.f32.mrf.mxu2  ;;  %v4952_v40 = vpop.f32.mrf.mxu0 }
 0x2e1   : > { %v5096_v53 = vpop.f32.mrf.mxu3  ;;  %v5165_v12 = vmax.f32 %v5149_v56, 0.0  ;;  %v5048_v44 = vadd.f32 %v5047_v7, %v4999_v59  ;;  %v5001_v6 = vpop.f32.mrf.mxu1  ;;  %v4953_v57 = vadd.f32 %v4952_v40, %v15343_v52  ;;  %v11500_v51 = vrot.slane %v5330_v25, 10 }
 0x2e2   : > { %v5489_v30 = vmax.f32 %v5329_v61, %v11499_v9  ;;  %v5552_v52 = vperm.slane %v5488_v21, 0 }
 0x2e3   : > { %v5197_v42 = vrot.slane %v5165_v12, 4  ;;  %v11469_v28 = vrot.slane %v5165_v12, 9  ;;  %v5097_v43 = vadd.f32 %v5096_v53, %v5048_v44  ;;  %v5002_v48 = vadd.f32 %v5001_v6, %v4953_v57  ;;  %v6249_v44 = vld [vmem:[#allocation2 + $0x30] sm:$0xff] }
 0x2e4   : > { %6394 = vmatmul.bf16.gmra.mxu1 %v6304_v38  ;;  %v5490_v29 = vmax.f32 %v5330_v25, %v11500_v51  ;;  %v5553_v26 = vperm.slane %v5489_v30, 0  ;;  %v5582_v61 = vsel %vm1413_vm1, %v5552_v52, %v5551_v35  ;;  %v6263_v24 = vpack.c.bf16 %v6250_v54, %v6249_v44 }
 0x2e5   : > { %v11470_v60 = vrot.slane %v5197_v42, 9  ;;  %v5331_v22 = vmax.f32 %v5165_v12, %v11469_v28  ;;  %6493 = vmatmul.bf16.gmra.mxu2 %v6262_v5  ;;  %v5130_v47 = vmul.f32 %v15632_v14, %v5097_v43  ;;  %v6292_v12 = vld [vmem:[#allocation2 + $0x39] sm:$0xff]  ;;  %v6291_v28 = vld [vmem:[#allocation2 + $0x31] sm:$0xff] }
 0x2e6   : > { %6635 = vmatmul.bf16.gmra.mxu3 %v6545_v50  ;;  %v5554_v13 = vperm.slane %v5490_v29, 0  ;;  %v5583_v63 = vsel %vm1415_vm2, %v5553_v26, %v5582_v61  ;;  %v6305_v51 = vpack.c.bf16 %v6292_v12, %v6291_v28  ;;  %v6294_v12 = vld [vmem:[#allocation2 + $0x49] sm:$0xff] }
 0x2e7   : > { %v5332_v23 = vmax.f32 %v5197_v42, %v11470_v60  ;;  %v11501_v27 = vrot.slane %v5331_v22, 10  ;;  %v5150_v1 = vadd.f32 %v15637_v39, %v5130_v47  ;;  %v6532_v60 = vld [vmem:[#allocation2 + $0x32] sm:$0xff] }
 0x2e8   : > { %v5050_v10 = vpop.f32.mrf.mxu2  ;;  %v4954_v37 = vpop.f32.mrf.mxu0  ;;  %v5584_v38 = vsel %vm1417_vm3, %v5554_v13, %v5583_v63  ;;  %v6546_v17 = vpack.c.bf16 %v6533_v36, %v6532_v60 }
 0x2e9   : > { %v5099_v20 = vpop.f32.mrf.mxu3  ;;  %v11502_v2 = vrot.slane %v5332_v23, 10  ;;  %v5051_v58 = vadd.f32 %v5050_v10, %v5002_v48  ;;  %v5003_v41 = vpop.f32.mrf.mxu1  ;;  %v5491_v46 = vmax.f32 %v5331_v22, %v11501_v27  ;;  %v5166_v4 = vmax.f32 %v5150_v1, 0.0 }
 0x2ea   : > { %v4955_v49 = vadd.f32 %v4954_v37, %v15370_v34 }
 0x2eb   : > { %v5100_v62 = vadd.f32 %v5099_v20, %v5051_v58  ;;  %v5198_v11 = vrot.slane %v5166_v4, 4  ;;  %v11471_v8 = vrot.slane %v5166_v4, 9  ;;  %v5492_v56 = vmax.f32 %v5332_v23, %v11502_v2 }
 0x2ec   : > { %v5555_v55 = vperm.slane %v5491_v46, 0  ;;  %v5004_v25 = vadd.f32 %v5003_v41, %v4955_v49 }
 0x2ed   : > { %v5131_v59 = vmul.f32 %v15632_v14, %v5100_v62  ;;  %v11472_v7 = vrot.slane %v5198_v11, 9  ;;  %v5333_v53 = vmax.f32 %v5166_v4, %v11471_v8  ;;  %v5556_v9 = vperm.slane %v5492_v56, 0 }
 0x2ee   : > { %v5585_v57 = vsel %vm1419_vm4, %v5555_v55, %v5584_v38  ;;  %v6252_v55 = vld [vmem:[#allocation2 + $0x48] sm:$0xff] }
 0x2ef   : > { %v5151_v3 = vadd.f32 %v15637_v39, %v5131_v59  ;;  %v5334_v34 = vmax.f32 %v5198_v11, %v11472_v7  ;;  %v11503_v40 = vrot.slane %v5333_v53, 10  ;;  %v5586_v48 = vsel %vm1421_vm5, %v5556_v9, %v5585_v57  ;;  %v6293_v38 = vld [vmem:[#allocation2 + $0x41] sm:$0xff] }
 0x2f0   : > { %v5052_v6 = vpop.f32.mrf.mxu2  ;;  %v4957_v19 = vpop.f32.mrf.mxu0  ;;  %v6306_v28 = vpack.c.bf16 %v6294_v12, %v6293_v38  ;;  %v6534_v57 = vld [vmem:[#allocation2 + $0x42] sm:$0xff] }
 0x2f1   : > { %v5101_v0 = vpop.f32.mrf.mxu3  ;;  %v5167_v5 = vmax.f32 %v5151_v3, 0.0  ;;  %v5053_v50 = vadd.f32 %v5052_v6, %v5004_v25  ;;  %v5006_v42 = vpop.f32.mrf.mxu1  ;;  %v11504_v43 = vrot.slane %v5334_v34, 10  ;;  %v5493_v21 = vmax.f32 %v5333_v53, %v11503_v40  ;;  %v6251_v6 = vld [vmem:[#allocation2 + $0x40] sm:$0xff] }
 0x2f2   : > { %v4958_v47 = vadd.f32 %v4957_v19, %v15398_v33 }
 0x2f3   : > { %v5199_v22 = vrot.slane %v5167_v5, 4  ;;  %v5102_v30 = vadd.f32 %v5101_v0, %v5053_v50  ;;  %v5494_v23 = vmax.f32 %v5334_v34, %v11504_v43  ;;  %v5557_v27 = vperm.slane %v5493_v21, 0  ;;  %v6535_v0 = vld [vmem:[#allocation2 + $0x4a] sm:$0xff] }
 0x2f4   : > { %6399 = vmatmul.bf16.gmra.mxu1 %v6305_v51  ;;  %v11473_v29 = vrot.slane %v5167_v5, 9  ;;  %v5007_v58 = vadd.f32 %v5006_v42, %v4958_v47  ;;  %v6547_v60 = vpack.c.bf16 %v6535_v0, %v6534_v57 }
 0x2f5   : > { %v11474_v1 = vrot.slane %v5199_v22, 9  ;;  %v5132_v10 = vmul.f32 %v15632_v14, %v5102_v30  ;;  %6498 = vmatmul.bf16.gmra.mxu2 %v6263_v24  ;;  %v5558_v20 = vperm.slane %v5494_v23, 0  ;;  %v5587_v52 = vsel %vm1423_vm6, %v5557_v27, %v5586_v48 }
 0x2f6   : > { %6640 = vmatmul.bf16.gmra.mxu3 %v6546_v17  ;;  %v5335_v49 = vmax.f32 %v5167_v5, %v11473_v29  ;;  %v6264_v5 = vpack.c.bf16 %v6252_v55, %v6251_v6 }
 0x2f7   : > { %v5152_v2 = vadd.f32 %v15637_v39, %v5132_v10  ;;  %v15702_v33 = vsel %vm1425_vm7, %v5558_v20, %v5587_v52  ;;  %v5336_v26 = vmax.f32 %v5199_v22, %v11474_v1 }
 0x2f8   : > { %v5055_v37 = vpop.f32.mrf.mxu2  ;;  %5608 = vst [vmem:[#allocation2 + $0x68] sm:$0xff] %v15702_v33  ;;  %v4959_v35 = vpop.f32.mrf.mxu0  ;;  %v11505_v7 = vrot.slane %v5335_v49, 10 }
 0x2f9   : > { %v5104_v41 = vpop.f32.mrf.mxu3  ;;  %v5168_v46 = vmax.f32 %v5152_v2, 0.0  ;;  %v5056_v4 = vadd.f32 %v5055_v37, %v5007_v58  ;;  %v5008_v62 = vpop.f32.mrf.mxu1  ;;  %v4960_v61 = vadd.f32 %v4959_v35, %v15438_v16  ;;  %v11506_v56 = vrot.slane %v5336_v26, 10 }
 0x2fa   : > { %v5495_v43 = vmax.f32 %v5335_v49, %v11505_v7 }
 0x2fb   : > { %v5200_v11 = vrot.slane %v5168_v46, 4  ;;  %v11475_v8 = vrot.slane %v5168_v46, 9  ;;  %v5105_v13 = vadd.f32 %v5104_v41, %v5056_v4  ;;  %v5009_v25 = vadd.f32 %v5008_v62, %v4960_v61 }
 0x2fc   : > { %v5496_v24 = vmax.f32 %v5336_v26, %v11506_v56  ;;  %v5559_v10 = vperm.slane %v5495_v43, 0 }
 0x2fd   : > { %v11476_v59 = vrot.slane %v5200_v11, 9  ;;  %v5337_v54 = vmax.f32 %v5168_v46, %v11475_v8  ;;  %v5133_v63 = vmul.f32 %v15632_v14, %v5105_v13 }
 0x2fe   : > { %v5560_v47 = vperm.slane %v5496_v24, 0 }
 0x2ff   : > { %v5338_v53 = vmax.f32 %v5200_v11, %v11476_v59  ;;  %v11507_v3 = vrot.slane %v5337_v54, 10  ;;  %v5153_v44 = vadd.f32 %v15637_v39, %v5133_v63 }
 0x300   : > { %v5057_v34 = vpop.f32.mrf.mxu2  ;;  %v4962_v36 = vpop.f32.mrf.mxu0  ;;  %v5589_v37 = vsel %vm1413_vm1, %v5560_v47, %v5559_v10 }
 0x301   : > { %v5106_v40 = vpop.f32.mrf.mxu3  ;;  %v5058_v16 = vadd.f32 %v5057_v34, %v5009_v25  ;;  %v5011_v9 = vpop.f32.mrf.mxu1  ;;  %v11508_v50 = vrot.slane %v5338_v53, 10  ;;  %v5497_v19 = vmax.f32 %v5337_v54, %v11507_v3  ;;  %v5169_v42 = vmax.f32 %v5153_v44, 0.0  ;;  %v6296_v34 = vld [vmem:[#allocation2 + $0x59] sm:$0xff] }
 0x302   : > { %v4963_v51 = vadd.f32 %v4962_v36, %v15470_v45 }
 0x303   : > { %v5107_v21 = vadd.f32 %v5106_v40, %v5058_v16  ;;  %v5201_v22 = vrot.slane %v5169_v42, 4  ;;  %v11477_v30 = vrot.slane %v5169_v42, 9  ;;  %v5498_v23 = vmax.f32 %v5338_v53, %v11508_v50  ;;  %v6254_v40 = vld [vmem:[#allocation2 + $0x58] sm:$0xff] }
 0x304   : > { %6404 = vmatmul.bf16.gmra.mxu1 %v6306_v28  ;;  %v5561_v27 = vperm.slane %v5497_v19, 0  ;;  %v5012_v52 = vadd.f32 %v5011_v9, %v4963_v51  ;;  %v6537_v16 = vld [vmem:[#allocation2 + $0x5a] sm:$0xff]  ;;  %v6253_v28 = vld [vmem:[#allocation2 + $0x50] sm:$0xff] }
 0x305   : > { %v5134_v17 = vmul.f32 %v15632_v14, %v5107_v21  ;;  %6503 = vmatmul.bf16.gmra.mxu2 %v6264_v5  ;;  %v11478_v48 = vrot.slane %v5201_v22, 9  ;;  %v5339_v1 = vmax.f32 %v5169_v42, %v11477_v30  ;;  %v5562_v35 = vperm.slane %v5498_v23, 0  ;;  %v6295_v42 = vld [vmem:[#allocation2 + $0x51] sm:$0xff] }
 0x306   : > { %6645 = vmatmul.bf16.gmra.mxu3 %v6547_v60  ;;  %v5590_v62 = vsel %vm1415_vm2, %v5561_v27, %v5589_v37  ;;  %v6307_v57 = vpack.c.bf16 %v6296_v34, %v6295_v42  ;;  %v6265_v43 = vpack.c.bf16 %v6254_v40, %v6253_v28  ;;  %v6536_v21 = vld [vmem:[#allocation2 + $0x52] sm:$0xff]  ;;  %v6297_v40 = vld [vmem:[#allocation2 + $0x61] sm:$0xff] }
 0x307   : > { %v5154_v20 = vadd.f32 %v15637_v39, %v5134_v17  ;;  %v5340_v29 = vmax.f32 %v5201_v22, %v11478_v48  ;;  %v11509_v2 = vrot.slane %v5339_v1, 10  ;;  %v5591_v53 = vsel %vm1417_vm3, %v5562_v35, %v5590_v62 }
 0x308   : > { %v5060_v45 = vpop.f32.mrf.mxu2  ;;  %v4964_v46 = vpop.f32.mrf.mxu0  ;;  %v6548_v30 = vpack.c.bf16 %v6537_v16, %v6536_v21 }
 0x309   : > { %v5109_v58 = vpop.f32.mrf.mxu3  ;;  %v5170_v41 = vmax.f32 %v5154_v20, 0.0  ;;  %v5061_v26 = vadd.f32 %v5060_v45, %v5012_v52  ;;  %v5013_v4 = vpop.f32.mrf.mxu1  ;;  %v11510_v49 = vrot.slane %v5340_v29, 10  ;;  %v5499_v11 = vmax.f32 %v5339_v1, %v11509_v2 }
 0x30a   : > { %v4965_v56 = vadd.f32 %v4964_v46, %v15520_v31 }
 0x30b   : > { %v5202_v8 = vrot.slane %v5170_v41, 4  ;;  %v11479_v61 = vrot.slane %v5170_v41, 9  ;;  %v5110_v13 = vadd.f32 %v5109_v58, %v5061_v26  ;;  %v5500_v59 = vmax.f32 %v5340_v29, %v11510_v49 }
 0x30c   : > { %v5563_v54 = vperm.slane %v5499_v11, 0  ;;  %v5014_v44 = vadd.f32 %v5013_v4, %v4965_v56 }
 0x30d   : > { %v11480_v63 = vrot.slane %v5202_v8, 9  ;;  %v5341_v55 = vmax.f32 %v5170_v41, %v11479_v61  ;;  %v5135_v7 = vmul.f32 %v15632_v14, %v5110_v13  ;;  %v5564_v6 = vperm.slane %v5500_v59, 0 }
 0x30e   : > { %v5592_v0 = vsel %vm1419_vm4, %v5563_v54, %v5591_v53 }
 0x30f   : > { %v5342_v3 = vmax.f32 %v5202_v8, %v11480_v63  ;;  %v11511_v25 = vrot.slane %v5341_v55, 10  ;;  %v5155_v12 = vadd.f32 %v15637_v39, %v5135_v7  ;;  %v5593_v47 = vsel %vm1421_vm5, %v5564_v6, %v5592_v0 }
 0x310   : > { %v5062_v24 = vpop.f32.mrf.mxu2  ;;  %v4967_v50 = vpop.f32.mrf.mxu0 }
 0x311   : > { %v5111_v31 = vpop.f32.mrf.mxu3  ;;  %v11512_v36 = vrot.slane %v5342_v3, 10  ;;  %v5501_v9 = vmax.f32 %v5341_v55, %v11511_v25  ;;  %v5171_v38 = vmax.f32 %v5155_v12, 0.0  ;;  %v5063_v5 = vadd.f32 %v5062_v24, %v5014_v44  ;;  %v5016_v19 = vpop.f32.mrf.mxu1 }
 0x312   : > { %v4968_v22 = vadd.f32 %v4967_v50, %v15558_v15  ;;  %v6266_v24 = vpack.c.bf16 %v15702_v33, %v15679_v18 }
 0x313   : > { %v5502_v51 = vmax.f32 %v5342_v3, %v11512_v36  ;;  %v5565_v60 = vperm.slane %v5501_v9, 0  ;;  %v5203_v17 = vrot.slane %v5171_v38, 4  ;;  %v5112_v23 = vadd.f32 %v5111_v31, %v5063_v5  ;;  %v6538_v31 = vld [vmem:[#allocation2 + $0x62] sm:$0xff] }
 0x314   : > { %6409 = vmatmul.bf16.gmra.mxu1 %v6307_v57  ;;  %v5017_v20 = vadd.f32 %v5016_v19, %v4968_v22  ;;  %v11481_v41 = vrot.slane %v5171_v38, 9 }
 0x315   : > { %v5566_v27 = vperm.slane %v5502_v51, 0  ;;  %v5594_v48 = vsel %vm1423_vm6, %v5565_v60, %v5593_v47  ;;  %6508 = vmatmul.bf16.gmra.mxu2 %v6265_v43  ;;  %v5136_v1 = vmul.f32 %v15632_v14, %v5112_v23  ;;  %v11482_v15 = vrot.slane %v5203_v17, 9 }
 0x316   : > { %6650 = vmatmul.bf16.gmra.mxu3 %v6548_v30  ;;  %v5343_v8 = vmax.f32 %v5171_v38, %v11481_v41 }
 0x317   : > { %v15723_v10 = vsel %vm1425_vm7, %v5566_v27, %v5594_v48  ;;  %v5156_v52 = vadd.f32 %v15637_v39, %v5136_v1  ;;  %v5344_v35 = vmax.f32 %v5203_v17, %v11482_v15 }
 0x318   : > { %5609 = vst [vmem:[#allocation2 + $0x70] sm:$0xff] %v15723_v10  ;;  %v5065_v29 = vpop.f32.mrf.mxu2  ;;  %v4969_v58 = vpop.f32.mrf.mxu0  ;;  %v11513_v6 = vrot.slane %v5343_v8, 10 }
 0x319   : > { %v5114_v2 = vpop.f32.mrf.mxu3  ;;  %v5066_v45 = vadd.f32 %v5065_v29, %v5017_v20  ;;  %v5018_v37 = vpop.f32.mrf.mxu1  ;;  %v5172_v26 = vmax.f32 %v5156_v52, 0.0  ;;  %v4970_v4 = vadd.f32 %v4969_v58, %v15608_v32  ;;  %v11514_v63 = vrot.slane %v5344_v35, 10 }
 0x31a   : > { %v5503_v43 = vmax.f32 %v5343_v8, %v11513_v6 }
 0x31b   : > { %v5115_v46 = vadd.f32 %v5114_v2, %v5066_v45  ;;  %v5204_v62 = vrot.slane %v5172_v26, 4  ;;  %v11483_v49 = vrot.slane %v5172_v26, 9  ;;  %v5019_v59 = vadd.f32 %v5018_v37, %v4970_v4 }
 0x31c   : > { %v5504_v5 = vmax.f32 %v5344_v35, %v11514_v63  ;;  %v5567_v20 = vperm.slane %v5503_v43, 0  ;;  %v15765_v43 = vld [vmem:[%s17843_s9] ss:$0 sm:$0xff] }
 0x31d   : > { %v5137_v11 = vmul.f32 %v15632_v14, %v5115_v46  ;;  %v11484_v61 = vrot.slane %v5204_v62, 9  ;;  %v5345_v13 = vmax.f32 %v5172_v26, %v11483_v49 }
 0x31e   : > { %v5568_v33 = vperm.slane %v5504_v5, 0  ;;  %v15758_v5 = vld [vmem:[%s17842_s8] ss:$0 sm:$0xff] }
 0x31f   : > { %v5157_v56 = vadd.f32 %v15637_v39, %v5137_v11  ;;  %v6298_v54 = vld [vmem:[#allocation2 + $0x69] sm:$0xff]  ;;  %v5346_v55 = vmax.f32 %v5204_v62, %v11484_v61  ;;  %v11515_v25 = vrot.slane %v5345_v13, 10 }
 0x320   : > { %v5067_v7 = vpop.f32.mrf.mxu2  ;;  %v6539_v3 = vld [vmem:[#allocation2 + $0x6a] sm:$0xff]  ;;  %v15730_v44 = vpop.f32.mrf.mxu0  ;;  %v6308_v0 = vpack.c.bf16 %v6298_v54, %v6297_v40  ;;  %v5596_v52 = vsel %vm1413_vm1, %v5568_v33, %v5567_v20 }
 0x321   : > { %v5116_v53 = vpop.f32.mrf.mxu3  ;;  %v5173_v12 = vmax.f32 %v5157_v56, 0.0  ;;  %v5068_v32 = vadd.f32 %v5067_v7, %v5019_v59  ;;  %v15732_v34 = vpop.f32.mrf.mxu1  ;;  %v6549_v38 = vpack.c.bf16 %v6539_v3, %v6538_v31  ;;  %v11516_v50 = vrot.slane %v5346_v55, 10 }
 0x322   : > { %v5505_v19 = vmax.f32 %v5345_v13, %v11515_v25  ;;  %v6048_v40 = vadd.f32 %v15732_v34, %v15730_v44 }
 0x323   : > { %v5205_v16 = vrot.slane %v5173_v12, 4  ;;  %v11485_v36 = vrot.slane %v5173_v12, 9  ;;  %v5117_v9 = vadd.f32 %v5116_v53, %v5068_v32  ;;  %v5506_v60 = vmax.f32 %v5346_v55, %v11516_v50 }
 0x324   : > { %6414 = vmatmul.bf16.gmra.mxu1 %v6308_v0  ;;  %v5569_v47 = vperm.slane %v5505_v19, 0 }
 0x325   : > { %v11486_v42 = vrot.slane %v5205_v16, 9  ;;  %v5347_v28 = vmax.f32 %v5173_v12, %v11485_v36  ;;  %v5138_v57 = vmul.f32 %v15632_v14, %v5117_v9  ;;  %6513 = vmatmul.bf16.gmra.mxu2 %v6266_v24  ;;  %v5570_v29 = vperm.slane %v5506_v60, 0 }
 0x326   : > { %6655 = vmatmul.bf16.gmra.mxu3 %v6549_v38  ;;  %v5597_v45 = vsel %vm1415_vm2, %v5569_v47, %v5596_v52 }
 0x327   : > { %v5348_v21 = vmax.f32 %v5205_v16, %v11486_v42  ;;  %v11517_v51 = vrot.slane %v5347_v28, 10  ;;  %v5158_v18 = vadd.f32 %v15637_v39, %v5138_v57  ;;  %v5598_v4 = vsel %vm1417_vm3, %v5570_v29, %v5597_v45  ;;  %v15753_v16 = vld [vmem:[%s17841_s7] ss:$0 sm:$0xff] }
 0x328   : > { %v6066_v22 = vpop.f32.mrf.mxu2  ;;  %v5798_v48 = vpop.f32.mrf.mxu0 }
 0x329   : > { %v6085_v30 = vpop.f32.mrf.mxu3  ;;  %v11518_v17 = vrot.slane %v5348_v21, 10  ;;  %v5507_v23 = vmax.f32 %v5347_v28, %v11517_v51  ;;  %v5174_v27 = vmax.f32 %v5158_v18, 0.0  ;;  %v6049_v1 = vpop.f32.mrf.mxu1  ;;  %v6067_v6 = vadd.f32 %v6066_v22, %v6048_v40 }
 0x32a   : > { %v6050_v38 = vadd.f32 %v6049_v1, %v5798_v48 }
 0x32b   : > { %v5206_v15 = vrot.slane %v5174_v27, 4  ;;  %v11487_v14 = vrot.slane %v5174_v27, 9  ;;  %v5508_v2 = vmax.f32 %v5348_v21, %v11518_v17  ;;  %v5571_v39 = vperm.slane %v5507_v23, 0 }
 0x32c   : > { %v6086_v0 = vadd.f32 %v6085_v30, %v6067_v6  ;;  %v15770_v30 = vld [vmem:[%s17844_s10] ss:$0 sm:$0xff] }
 0x32d   : > { %v11488_v58 = vrot.slane %v5206_v15, 9  ;;  %v5349_v37 = vmax.f32 %v5174_v27, %v11487_v14  ;;  %v5572_v46 = vperm.slane %v5508_v2, 0  ;;  %v5599_v49 = vsel %vm1419_vm4, %v5571_v39, %v5598_v4 }
 0x32f   : > { %v5350_v41 = vmax.f32 %v5206_v15, %v11488_v58  ;;  %v11519_v26 = vrot.slane %v5349_v37, 10  ;;  %v5600_v54 = vsel %vm1421_vm5, %v5572_v46, %v5599_v49 }
 0x330   : > { %v6068_v35 = vpop.f32.mrf.mxu2  ;;  %v5801_v61 = vpop.f32.mrf.mxu0 }
 0x331   : > { %v6087_v62 = vpop.f32.mrf.mxu3  ;;  %v11520_v11 = vrot.slane %v5350_v41, 10  ;;  %v5509_v8 = vmax.f32 %v5349_v37, %v11519_v26  ;;  %v6052_v13 = vpop.f32.mrf.mxu1  ;;  %v6069_v44 = vadd.f32 %v6068_v35, %v6050_v38 }
 0x332   : > { %v6053_v60 = vadd.f32 %v6052_v13, %v5801_v61 }
 0x333   : > { %v5510_v56 = vmax.f32 %v5350_v41, %v11520_v11  ;;  %v5573_v59 = vperm.slane %v5509_v8, 0  ;;  %v6088_v19 = vadd.f32 %v6087_v62, %v6069_v44 }
 0x335   : > { %v5574_v63 = vperm.slane %v5510_v56, 0  ;;  %v5601_v55 = vsel %vm1423_vm6, %v5573_v59, %v5600_v54 }
 0x337   : > { %v5602_v7 = vsel %vm1425_vm7, %v5574_v63, %v5601_v55 }
 0x338   : > { %5610 = vst [vmem:[#allocation2 + $0x78] sm:$0xff] %v5602_v7  ;;  %v6071_v53 = vpop.f32.mrf.mxu2  ;;  %v6267_v25 = vpack.c.bf16 %v5602_v7, %v15723_v10  ;;  %v5803_v12 = vpop.f32.mrf.mxu0 }
 0x339   : > { %v6090_v3 = vpop.f32.mrf.mxu3  ;;  %v6054_v32 = vpop.f32.mrf.mxu1  ;;  %v6072_v17 = vadd.f32 %v6071_v53, %v6053_v60 }
 0x33a   : > { %6518 = vmatmul.bf16.gmra.mxu2 %v6267_v25  ;;  %v6055_v4 = vadd.f32 %v6054_v32, %v5803_v12 }
 0x33b   : > { %v6091_v52 = vadd.f32 %v6090_v3, %v6072_v17 }
 0x340   : > { %v6073_v24 = vpop.f32.mrf.mxu2  ;;  %v6104_v36 = vpop.f32.mrf.mxu0 }
 0x341   : > { %v15748_v31 = vpop.f32.mrf.mxu3  ;;  %v6385_v9 = vpop.f32.mrf.mxu1  ;;  %v6105_v10 = vadd.f32 %v6104_v36, %v6086_v0  ;;  %v6074_v13 = vadd.f32 %v6073_v24, %v6055_v4 }
 0x343   : > { %v6118_v34 = vmul.f32 %v15753_v16, %v6105_v10  ;;  %v6093_v24 = vadd.f32 %v15748_v31, %v6074_v13 }
 0x345   : > { %v6126_v50 = vadd.f32 %v15758_v5, %v6118_v34 }
 0x347   : > { %v6130_v18 = vmax.f32 %v6126_v50, 0.0 }
 0x348   : > { %v6484_v42 = vpop.f32.mrf.mxu2  ;;  %v6106_v21 = vpop.f32.mrf.mxu0 }
 0x349   : > { %v6626_v28 = vpop.f32.mrf.mxu3  ;;  %v6485_v57 = vadd.f32 %v6484_v42, %v6385_v9  ;;  %v6387_v51 = vpop.f32.mrf.mxu1  ;;  %v6107_v33 = vadd.f32 %v6106_v21, %v6088_v19  ;;  %v6138_v27 = vrot.slane %v6130_v18, 4  ;;  %v11721_v56 = vrot.slane %v6130_v18, 9 }
 0x34b   : > { %v6668_v22 = vadd.f32 %v6626_v28, %v6485_v57  ;;  %v6119_v47 = vmul.f32 %v15753_v16, %v6107_v33  ;;  %v11722_v58 = vrot.slane %v6138_v27, 9  ;;  %v6170_v38 = vmax.f32 %v6130_v18, %v11721_v56 }
 0x34d   : > { %v6687_v23 = vmul.f32 %v15765_v43, %v6668_v22  ;;  %v6127_v48 = vadd.f32 %v15758_v5, %v6119_v47  ;;  %v6171_v59 = vmax.f32 %v6138_v27, %v11722_v58  ;;  %v11729_v47 = vrot.slane %v6170_v38, 10 }
 0x34f   : > { %v6706_v1 = vadd.f32 %v15770_v30, %v6687_v23  ;;  %v6131_v20 = vmax.f32 %v6127_v48, 0.0  ;;  %v11730_v44 = vrot.slane %v6171_v59, 10 }
 0x350   : > { %v6486_v15 = vpop.f32.mrf.mxu2  ;;  %v6109_v45 = vpop.f32.mrf.mxu0 }
 0x351   : > { %v6628_v14 = vpop.f32.mrf.mxu3  ;;  %v6721_v29 = vmax.f32 %v6706_v1, 0.0  ;;  %v6487_v2 = vadd.f32 %v6486_v15, %v6387_v51  ;;  %v6390_v39 = vpop.f32.mrf.mxu1  ;;  %v6110_v46 = vadd.f32 %v6109_v45, %v6091_v52  ;;  %v6139_v35 = vrot.slane %v6131_v20, 4 }
 0x352   : > { %v11723_v62 = vrot.slane %v6131_v20, 9  ;;  %v6211_v1 = vmax.f32 %v6171_v59, %v11730_v44 }
 0x353   : > { %v6751_v37 = vrot.slane %v6721_v29, 4  ;;  %v11865_v41 = vrot.slane %v6721_v29, 9  ;;  %v6669_v26 = vadd.f32 %v6628_v14, %v6487_v2  ;;  %v6120_v61 = vmul.f32 %v15753_v16, %v6110_v46 }
 0x354   : > { %v11724_v53 = vrot.slane %v6139_v35, 9  ;;  %v6172_v3 = vmax.f32 %v6131_v20, %v11723_v62 }
 0x355   : > { %v11866_v49 = vrot.slane %v6751_v37, 9  ;;  %v6871_v11 = vmax.f32 %v6721_v29, %v11865_v41  ;;  %v6688_v8 = vmul.f32 %v15765_v43, %v6669_v26  ;;  %v6128_v7 = vadd.f32 %v15758_v5, %v6120_v61 }
 0x356   : > { %v6173_v42 = vmax.f32 %v6139_v35, %v11724_v53  ;;  %v11731_v33 = vrot.slane %v6172_v3, 10 }
 0x357   : > { %v6872_v54 = vmax.f32 %v6751_v37, %v11866_v49  ;;  %v11895_v63 = vrot.slane %v6871_v11, 10  ;;  %v6707_v55 = vadd.f32 %v15770_v30, %v6688_v8  ;;  %v6132_v0 = vmax.f32 %v6128_v7, 0.0 }
 0x358   : > { %v6489_v25 = vpop.f32.mrf.mxu2  ;;  %v6111_v36 = vpop.f32.mrf.mxu0  ;;  %v11732_v20 = vrot.slane %v6173_v42, 10  ;;  %v6212_v2 = vmax.f32 %v6172_v3, %v11731_v33  ;;  %v6210_v37 = vmax.f32 %v6170_v38, %v11729_v47  ;;  %v6227_v49 = vperm.slane %v6211_v1, 0 }
 0x359   : > { %v6631_v12 = vpop.f32.mrf.mxu3  ;;  %v11896_v32 = vrot.slane %v6872_v54, 10  ;;  %v7021_v40 = vmax.f32 %v6871_v11, %v11895_v63  ;;  %v6722_v6 = vmax.f32 %v6707_v55, 0.0  ;;  %v6392_v9 = vpop.f32.mrf.mxu1  ;;  %v6490_v10 = vadd.f32 %v6489_v25, %v6390_v39 }
 0x35a   : > { %v6140_v28 = vrot.slane %v6132_v0, 4  ;;  %v11725_v57 = vrot.slane %v6132_v0, 9  ;;  %v6112_v21 = vadd.f32 %v6111_v36, %v6093_v24  ;;  %v6213_v11 = vmax.f32 %v6173_v42, %v11732_v20 }
 0x35b   : > { %v7022_v34 = vmax.f32 %v6872_v54, %v11896_v32  ;;  %v7051_v50 = vpack.c.bf16 %v7021_v40, %v7021_v40  ;;  %v11867_v19 = vrot.slane %v6722_v6, 9  ;;  %v6752_v60 = vrot.slane %v6722_v6, 4 }
 0x35c   : > { %v11726_v17 = vrot.slane %v6140_v28, 9  ;;  %v6670_v23 = vadd.f32 %v6631_v12, %v6490_v10  ;;  %v6174_v48 = vmax.f32 %v6132_v0, %v11725_v57  ;;  %v6121_v15 = vmul.f32 %v15753_v16, %v6112_v21 }
 0x35d   : > { %v7052_v51 = vpack.c.bf16 %v7022_v34, %v7022_v34  ;;  %v6873_v22 = vmax.f32 %v6722_v6, %v11867_v19  ;;  %v7395_v31 = vunpack.c.l.b16 %v7051_v50  ;;  %v11868_v45 = vrot.slane %v6752_v60, 9 }
 0x35e   : > { %v6175_v41 = vmax.f32 %v6140_v28, %v11726_v17  ;;  %v6689_v26 = vmul.f32 %v15765_v43, %v6670_v23  ;;  %v6129_v46 = vadd.f32 %v15758_v5, %v6121_v15  ;;  %v11733_v16 = vrot.slane %v6174_v48, 10 }
 0x35f   : > { %v15781_v27 = vunpack.c.l.b16 %v7052_v51  ;;  %v11897_v18 = vrot.slane %v6873_v22, 10  ;;  %v12033_v4 = vunpack.i.l.s16 %v7395_v31  ;;  %v6228_v13 = vperm.slane %v6212_v2, 0 }
 0x360   : > { %v6491_v14 = vpop.f32.mrf.mxu2  ;;  %v6133_v8 = vmax.f32 %v6129_v46, 0.0  ;;  %v6874_v56 = vmax.f32 %v6752_v60, %v11868_v45  ;;  %v6226_v54 = vperm.slane %v6210_v37, 0  ;;  %v11734_v63 = vrot.slane %v6175_v41, 10  ;;  %v12027_v60 = vld [vmem:[%s17838_s4 + $0xf0] sm:$0xf] }
 0x361   : > { %v6633_v52 = vpop.f32.mrf.mxu3  ;;  %v11941_v29 = vunpack.i.l.s16 %v15781_v27  ;;  %v7023_v39 = vmax.f32 %v6873_v22, %v11897_v18  ;;  %v6395_v58 = vpop.f32.mrf.mxu1  ;;  %v6708_v55 = vadd.f32 %v15770_v30, %v6689_v26  ;;  %v6492_v7 = vadd.f32 %v6491_v14, %v6392_v9  ;;  %v13655_v22 = vld [vmem:[%s17838_s4 + $0xf4] sm:$0xf0] }
 0x362   : > { %v6214_v53 = vmax.f32 %v6174_v48, %v11733_v16  ;;  %v6141_v3 = vrot.slane %v6133_v8, 4  ;;  %v11727_v25 = vrot.slane %v6133_v8, 9  ;;  %v6234_v12 = vsel %vm1413_vm1, %v6227_v49, %v6226_v54  ;;  %v12173_v49 = vld [vmem:[%s17838_s4 + $0x170] sm:$0xf]  ;;  %v12019_v54 = vld [vmem:[%s17838_s4 + $0xe0] sm:$0xf] }
 0x363   : > { %v7398_v35 = vrot.slane %v11941_v29, 7  ;;  %v7053_v62 = vpack.c.bf16 %v7023_v39, %v7023_v39  ;;  %v6229_v32 = vperm.slane %v6213_v11, 0  ;;  %v6235_v0 = vsel %vm1415_vm2, %v6228_v13, %v6234_v12  ;;  %v12175_v13 = vld [vmem:[%s17838_s4 + $0x178] sm:$0xf0] }
 0x364   : > { %v11898_v36 = vrot.slane %v6874_v56, 10  ;;  %v11728_v38 = vrot.slane %v6141_v3, 9  ;;  %v6215_v44 = vmax.f32 %v6175_v41, %v11734_v63  ;;  %v6723_v34 = vmax.f32 %v6708_v55, 0.0  ;;  %v13653_v63 = vld [vmem:[%s17838_s4 + $0xe4] sm:$0xf0] }
 0x365   : > { %v7399_v61 = vsel %vm1413_vm1, %v7398_v35, %v12033_v4  ;;  %v7143_v59 = vunpack.c.l.b16 %v7053_v62  ;;  %v6176_v9 = vmax.f32 %v6133_v8, %v11727_v25  ;;  %v6671_v50 = vadd.f32 %v6633_v52, %v6492_v7  ;;  %v13671_v8 = vld [vmem:[%s17838_s4 + $0x174] sm:$0xf0] }
 0x366   : > { %v6230_v42 = vperm.slane %v6214_v53, 0  ;;  %v6177_v28 = vmax.f32 %v6141_v3, %v11728_v38  ;;  %v7024_v57 = vmax.f32 %v6874_v56, %v11898_v36  ;;  %v6236_v21 = vsel %vm1417_vm3, %v6229_v32, %v6235_v0  ;;  %v12165_v32 = vld [vmem:[%s17838_s4 + $0x160] sm:$0xf] }
 0x367   : > { %v15791_v5 = vunpack.i.l.s16 %v7143_v59  ;;  %v11735_v51 = vrot.slane %v6176_v9, 10  ;;  %v6231_v47 = vperm.slane %v6215_v44, 0  ;;  %v11869_v17 = vrot.slane %v6723_v34, 9  ;;  %v13668_v44 = vld [vmem:[%s17838_s4 + $0x164] sm:$0xf] }
 0x368   : > { %v6494_v40 = vpop.f32.mrf.mxu2  ;;  %v11736_v23 = vrot.slane %v6177_v28, 10  ;;  %v6690_v31 = vmul.f32 %v15765_v43, %v6671_v50  ;;  %v6237_v18 = vsel %vm1419_vm4, %v6230_v42, %v6236_v21  ;;  %v6753_v48 = vrot.slane %v6723_v34, 4  ;;  %v12167_v42 = vld [vmem:[%s17838_s4 + $0x168] sm:$0xf0] }
 0x369   : > { %v6636_v6 = vpop.f32.mrf.mxu3  ;;  %v7400_v24 = vrot.slane %v15791_v5, 6  ;;  %v6397_v10 = vpop.f32.mrf.mxu1  ;;  %v6495_v33 = vadd.f32 %v6494_v40, %v6395_v58  ;;  %v6216_v1 = vmax.f32 %v6176_v9, %v11735_v51  ;;  %v12028_v2 = vor.u32 %v13655_v22, %v12027_v60  ;;  %v13669_v40 = vld [vmem:[%s17838_s4 + $0x164] sm:$0xf0]  ;;  %v13651_v60 = vld [vmem:[%s17838_s4 + $0xd4] sm:$0xf0] }
 0x36a   : > { %v6217_v15 = vmax.f32 %v6177_v28, %v11736_v23  ;;  %v7054_v45 = vpack.c.bf16 %v7024_v57, %v7024_v57  ;;  %v6238_v41 = vsel %vm1421_vm5, %v6231_v47, %v6237_v18  ;;  %v6875_v26 = vmax.f32 %v6723_v34, %v11869_v17  ;;  %v12011_v28 = vld [vmem:[%s17838_s4 + $0xd0] sm:$0xf]  ;;  %v13667_v47 = vld [vmem:[%s17838_s4 + $0x154] sm:$0xf0] }
 0x36b   : > { %v15797_v19 = vsel %vm1415_vm2, %v7400_v24, %v7399_v61  ;;  %v6672_v20 = vadd.f32 %v6636_v6, %v6495_v33  ;;  %v6232_v39 = vperm.slane %v6216_v1, 0  ;;  %v6709_v4 = vadd.f32 %v15770_v30, %v6690_v31  ;;  %7358 = vmatpush.bf16.msrb.mxu0 %v12028_v2  ;;  %v13670_v61 = vld [vmem:[%s17838_s4 + $0x174] sm:$0xf]  ;;  %v12157_v22 = vld [vmem:[%s17838_s4 + $0x150] sm:$0xf] }
 0x36c   : > { %v6233_v46 = vperm.slane %v6217_v15, 0  ;;  %v11870_v35 = vrot.slane %v6753_v48, 9  ;;  %v7144_v55 = vunpack.c.l.b16 %v7054_v45  ;;  %v11899_v7 = vrot.slane %v6875_v26, 10 }
 0x36d   : > { %v6691_v58 = vmul.f32 %v15765_v43, %v6672_v20  ;;  %v6239_v62 = vsel %vm1423_vm6, %v6232_v39, %v6238_v41  ;;  %v15832_v53 = vmax.f32 %v6709_v4, 0.0  ;;  %v12174_v24 = vor.u32 %v13671_v8, %v12173_v49 }
 0x36e   : > { %v6240_v56 = vsel %vm1425_vm7, %v6233_v46, %v6239_v62  ;;  %v6876_v3 = vmax.f32 %v6753_v48, %v11870_v35  ;;  %v12178_v38 = vor.u32 %v13670_v61, %v12175_v13  ;;  %v15849_v57 = vunpack.i.l.s16 %v7144_v55  ;;  %v6299_v35 = vld [vmem:[#allocation2 + $0x71] sm:$0xff]  ;;  %v13666_v61 = vld [vmem:[%s17838_s4 + $0x154] sm:$0xf] }
 0x36f   : > { %v6710_v16 = vadd.f32 %v15770_v30, %v6691_v58  ;;  %6242 = vst [vmem:[#allocation2 + $0x80] sm:$0xff] %v6240_v56  ;;  %7719 = vmatpush.bf16.msrb.mxu1 %v12174_v24  ;;  %v12166_v33 = vor.u32 %v13669_v40, %v12165_v32  ;;  %v7226_v17 = vrot.slane %v15791_v5, 7  ;;  %v15862_v31 = vmax.f32 %v6875_v26, %v11899_v7  ;;  %v6540_v62 = vld [vmem:[#allocation2 + $0x72] sm:$0xff] }
 0x370   : > { %v6496_v14 = vpop.f32.mrf.mxu2  ;;  %7737 = vmatpush.bf16.msrb.mxu2 %v12178_v38  ;;  %v11900_v23 = vrot.slane %v6876_v3, 10  ;;  %v6754_v18 = vrot.slane %v15832_v53, 4  ;;  %v12170_v39 = vor.u32 %v13668_v44, %v12167_v42  ;;  %v12012_v58 = vor.u32 %v13651_v60, %v12011_v28  ;;  %v12159_v13 = vld [vmem:[%s17838_s4 + $0x158] sm:$0xf0]  ;;  %v13665_v44 = vld [vmem:[%s17838_s4 + $0x144] sm:$0xf0] }
 0x371   : > { %v6638_v52 = vpop.f32.mrf.mxu3  ;;  %v6400_v37 = vpop.f32.mrf.mxu1  ;;  %v6497_v11 = vadd.f32 %v6496_v14, %v6397_v10  ;;  %v6725_v59 = vmax.f32 %v6710_v16, 0.0  ;;  %v12020_v10 = vor.u32 %v13653_v63, %v12019_v54  ;;  %v11871_v14 = vrot.slane %v15832_v53, 9 }
 0x372   : > { %v15868_v16 = vmax.f32 %v6876_v3, %v11900_v23  ;;  %v12003_v3 = vld [vmem:[%s17838_s4 + $0xc0] sm:$0xf]  ;;  %v7055_v32 = vpack.c.bf16 %v15862_v31, %v15862_v31  ;;  %v12162_v28 = vor.u32 %v13666_v61, %v12159_v13 }
 0x373   : > { %v6755_v25 = vrot.slane %v6725_v59, 4  ;;  %v11873_v12 = vrot.slane %v6725_v59, 9  ;;  %v6673_v6 = vadd.f32 %v6638_v52, %v6497_v11  ;;  %7359 = vmatpush.bf16.msrb.mxu0 %v12020_v10  ;;  %7720 = vmatpush.bf16.msrb.mxu1 %v12166_v33  ;;  %v12149_v10 = vld [vmem:[%s17838_s4 + $0x140] sm:$0xf] }
 0x374   : > { %7738 = vmatpush.bf16.msrb.mxu2 %v12170_v39  ;;  %v7056_v23 = vpack.c.bf16 %v15868_v16, %v15868_v16 }
 0x375   : > { %v11874_v34 = vrot.slane %v6755_v25, 9  ;;  %v6879_v9 = vmax.f32 %v6725_v59, %v11873_v12  ;;  %v6692_v21 = vmul.f32 %v15765_v43, %v6673_v6  ;;  %v7228_v12 = vrot.slane %v15849_v57, 6 }
 0x376   : > { %v6300_v52 = vld [vmem:[#allocation2 + $0x79] sm:$0xff] }
 0x377   : > { %v6880_v48 = vmax.f32 %v6755_v25, %v11874_v34  ;;  %v11903_v1 = vrot.slane %v6879_v9, 10  ;;  %v6711_v20 = vadd.f32 %v15770_v30, %v6692_v21  ;;  %v6259_v2 = vld [vmem:[#allocation2 + $0x80] sm:$0xf]  ;;  %v6309_v49 = vpack.c.bf16 %v6300_v52, %v6299_v35  ;;  %7360 = vmatpush.bf16.msrb.mxu0 %v12012_v58 }
 0x378   : > { %v6499_v0 = vpop.f32.mrf.mxu2  ;;  %v6541_v45 = vld [vmem:[#allocation2 + $0x7a] sm:$0xff]  ;;  %v6268_v11 = vpack.c.bf16 %v6259_v2, %v6259_v2  ;;  %7739 = vmatpush.bf16.msrb.mxu2 %v12162_v28  ;;  %v6542_v28 = vld [vmem:[#allocation2 + $0x82] sm:$0xf] }
 0x379   : > { %v6641_v36 = vpop.f32.mrf.mxu3  ;;  %v6402_v50 = vpop.f32.mrf.mxu1  ;;  %v6500_v51 = vadd.f32 %v6499_v0, %v6400_v37  ;;  %v12158_v37 = vor.u32 %v13667_v47, %v12157_v22  ;;  %v11904_v41 = vrot.slane %v6880_v48, 10  ;;  %v7029_v46 = vmax.f32 %v6879_v9, %v11903_v1  ;;  %v13649_v25 = vld [vmem:[%s17838_s4 + $0xc4] sm:$0xf0]  ;;  %6419 = vmatmul.bf16.gmra.mxu1 %v6309_v49  ;;  %v13664_v22 = vld [vmem:[%s17838_s4 + $0x144] sm:$0xf] }
 0x37a   : > { %v6726_v26 = vmax.f32 %v6711_v20, 0.0  ;;  %v6550_v8 = vpack.c.bf16 %v6541_v45, %v6540_v62  ;;  %6522 = vmatmul.bf16.gmra.mxu2 %v6268_v11  ;;  %v12004_v21 = vor.u32 %v13649_v25, %v12003_v3  ;;  %v12151_v47 = vld [vmem:[%s17838_s4 + $0x148] sm:$0xf0]  ;;  %v12150_v1 = vor.u32 %v13665_v44, %v12149_v10  ;;  %v11995_v20 = vld [vmem:[%s17838_s4 + $0xb0] sm:$0xf] }
 0x37b   : > { %v6674_v15 = vadd.f32 %v6641_v36, %v6500_v51  ;;  %v7030_v56 = vmax.f32 %v6880_v48, %v11904_v41  ;;  %v7059_v59 = vpack.c.bf16 %v7029_v46, %v7029_v46  ;;  %7721 = vmatpush.bf16.msrb.mxu1 %v12158_v37  ;;  %v6877_v51 = vmax.f32 %v15832_v53, %v11871_v14  ;;  %v12141_v46 = vld [vmem:[%s17838_s4 + $0x130] sm:$0xf] }
 0x37c   : > { %v6756_v54 = vrot.slane %v6726_v26, 4  ;;  %v11875_v63 = vrot.slane %v6726_v26, 9  ;;  %6660 = vmatmul.bf16.gmra.mxu3 %v6550_v8  ;;  %7361 = vmatpush.bf16.msrb.mxu0 %v12004_v21  ;;  %v7145_v14 = vunpack.c.l.b16 %v7055_v32  ;;  %v12154_v41 = vor.u32 %v13664_v22, %v12151_v47 }
 0x37d   : > { %v6693_v4 = vmul.f32 %v15765_v43, %v6674_v15  ;;  %v7060_v0 = vpack.c.bf16 %v7030_v56, %v7030_v56  ;;  %v7149_v36 = vunpack.c.l.b16 %v7059_v59  ;;  %v13647_v15 = vld [vmem:[%s17838_s4 + $0xb4] sm:$0xf0]  ;;  %v11901_v61 = vrot.slane %v6877_v51, 10  ;;  %v13662_v59 = vld [vmem:[%s17838_s4 + $0x134] sm:$0xf] }
 0x37e   : > { %v11876_v24 = vrot.slane %v6756_v54, 9  ;;  %v6881_v38 = vmax.f32 %v6726_v26, %v11875_v63  ;;  %v13663_v26 = vld [vmem:[%s17838_s4 + $0x134] sm:$0xf0]  ;;  %v11996_v11 = vor.u32 %v13647_v15, %v11995_v20  ;;  %7740 = vmatpush.bf16.msrb.mxu2 %v12154_v41  ;;  %v7146_v63 = vunpack.c.l.b16 %v7056_v23 }
 0x37f   : > { %v6712_v40 = vadd.f32 %v15770_v30, %v6693_v4  ;;  %v7150_v33 = vunpack.c.l.b16 %v7060_v0  ;;  %v15910_v52 = vunpack.i.l.s16 %v7149_v36  ;;  %7722 = vmatpush.bf16.msrb.mxu1 %v12150_v1  ;;  %v12142_v53 = vor.u32 %v13663_v26, %v12141_v46  ;;  %v6301_v36 = vld [vmem:[#allocation2 + $0x81] sm:$0xf] }
 0x380   : > { %v6501_v55 = vpop.f32.mrf.mxu2  ;;  %v11905_v60 = vrot.slane %v6881_v38, 10  ;;  %v6882_v39 = vmax.f32 %v6756_v54, %v11876_v24  ;;  %v12143_v54 = vld [vmem:[%s17838_s4 + $0x138] sm:$0xf0]  ;;  %7362 = vmatpush.bf16.msrb.mxu0 %v11996_v11  ;;  %v7027_v44 = vmax.f32 %v6877_v51, %v11901_v61  ;;  %v7402_v21 = vrot.slane %v15849_v57, 5  ;;  %v11987_v51 = vld [vmem:[%s17838_s4 + $0xa0] sm:$0xf] }
 0x381   : > { %v6643_v7 = vpop.f32.mrf.mxu3  ;;  %v6502_v6 = vadd.f32 %v6501_v55, %v6402_v50  ;;  %v6727_v34 = vmax.f32 %v6712_v40, 0.0  ;;  %v6405_v42 = vpop.f32.mrf.mxu1  ;;  %v11872_v50 = vrot.slane %v6754_v18, 9  ;;  %v15912_v2 = vunpack.i.l.s16 %v7150_v33  ;;  %v13661_v61 = vld [vmem:[%s17838_s4 + $0x124] sm:$0xf0] }
 0x382   : > { %v7031_v45 = vmax.f32 %v6881_v38, %v11905_v60  ;;  %v12146_v24 = vor.u32 %v13662_v59, %v12143_v54  ;;  %v15934_v38 = vunpack.i.l.s16 %v7145_v14  ;;  %v7587_v60 = vrot.slane %v15849_v57, 7 }
 0x383   : > { %v6675_v9 = vadd.f32 %v6643_v7, %v6502_v6  ;;  %v6757_v31 = vrot.slane %v6727_v34, 4  ;;  %v11877_v58 = vrot.slane %v6727_v34, 9  ;;  %v7412_v4 = vrot.slane %v15912_v2, 7  ;;  %7723 = vmatpush.bf16.msrb.mxu1 %v12142_v53  ;;  %v11979_v53 = vld [vmem:[%s17838_s4 + $0x90] sm:$0xf] }
 0x384   : > { %v7061_v35 = vpack.c.bf16 %v7031_v45, %v7031_v45  ;;  %v6878_v8 = vmax.f32 %v6754_v18, %v11872_v50  ;;  %v11906_v18 = vrot.slane %v6882_v39, 10  ;;  %7741 = vmatpush.bf16.msrb.mxu2 %v12146_v24  ;;  %v15940_v22 = vunpack.i.l.s16 %v7146_v63 }
 0x385   : > { %v6694_v48 = vmul.f32 %v15765_v43, %v6675_v9  ;;  %v11878_v62 = vrot.slane %v6757_v31, 9  ;;  %v7413_v55 = vsel %vm1413_vm1, %v7412_v4, %v15910_v52  ;;  %v6883_v3 = vmax.f32 %v6727_v34, %v11877_v58 }
 0x386   : > { %v7151_v7 = vunpack.c.l.b16 %v7061_v35  ;;  %v11902_v10 = vrot.slane %v6878_v8, 10  ;;  %v6310_v23 = vpack.c.bf16 %v6301_v36, %v6301_v36  ;;  %v6551_v15 = vpack.c.bf16 %v6542_v28, %v6542_v28 }
 0x387   : > { %v6713_v37 = vadd.f32 %v15770_v30, %v6694_v48  ;;  %v6884_v6 = vmax.f32 %v6757_v31, %v11878_v62  ;;  %v11907_v47 = vrot.slane %v6883_v3, 10  ;;  %v13645_v31 = vld [vmem:[%s17838_s4 + $0xa4] sm:$0xf0]  ;;  %v7032_v48 = vmax.f32 %v6882_v39, %v11906_v18  ;;  %v13643_v18 = vld [vmem:[%s17838_s4 + $0x94] sm:$0xf0] }
 0x388   : > { %v6504_v16 = vpop.f32.mrf.mxu2  ;;  %v15932_v40 = vunpack.i.l.s16 %v7151_v7  ;;  %v7230_v58 = vrot.slane %v15934_v38, 5  ;;  %v7057_v41 = vpack.c.bf16 %v7027_v44, %v7027_v44  ;;  %v11988_v62 = vor.u32 %v13645_v31, %v11987_v51  ;;  %v13659_v51 = vld [vmem:[%s17838_s4 + $0x114] sm:$0xf0]  ;;  %v13658_v31 = vld [vmem:[%s17838_s4 + $0x114] sm:$0xf] }
 0x389   : > { %v6646_v49 = vpop.f32.mrf.mxu3  ;;  %v6728_v13 = vmax.f32 %v6713_v37, 0.0  ;;  %v6505_v56 = vadd.f32 %v6504_v16, %v6405_v42  ;;  %v6407_v42 = vpop.f32.mrf.mxu1  ;;  %v11908_v20 = vrot.slane %v6884_v6, 10  ;;  %v7028_v37 = vmax.f32 %v6878_v8, %v11902_v10  ;;  %6423 = vmatmul.bf16.gmra.mxu1 %v6310_v23  ;;  %v12133_v8 = vld [vmem:[%s17838_s4 + $0x120] sm:$0xf] }
 0x38a   : > { %v7414_v34 = vrot.slane %v15932_v40, 6  ;;  %v15958_v39 = vsel %vm1413_vm1, %v7226_v17, %v11941_v29  ;;  %v7404_v16 = vrot.slane %v15934_v38, 4  ;;  %v7033_v11 = vmax.f32 %v6883_v3, %v11907_v47  ;;  %7363 = vmatpush.bf16.msrb.mxu0 %v11988_v62  ;;  %v13660_v29 = vld [vmem:[%s17838_s4 + $0x124] sm:$0xf]  ;;  %v12135_v17 = vld [vmem:[%s17838_s4 + $0x128] sm:$0xf0] }
 0x38b   : > { %v6758_v25 = vrot.slane %v6728_v13, 4  ;;  %v11879_v32 = vrot.slane %v6728_v13, 9  ;;  %v6676_v0 = vadd.f32 %v6646_v49, %v6505_v56  ;;  %v7589_v49 = vrot.slane %v15934_v38, 6  ;;  %v12117_v62 = vld [vmem:[%s17838_s4 + $0x100] sm:$0xf] }
 0x38c   : > { %v15949_v1 = vsel %vm1415_vm2, %v7414_v34, %v7413_v55  ;;  %6664 = vmatmul.bf16.gmra.mxu3 %v6551_v15  ;;  %v7232_v27 = vrot.slane %v15940_v22, 4  ;;  %v7034_v56 = vmax.f32 %v6884_v6, %v11908_v20  ;;  %v7588_v54 = vsel %vm1413_vm1, %v7587_v60, %v15791_v5 }
 0x38d   : > { %v11880_v9 = vrot.slane %v6758_v25, 9  ;;  %v6885_v50 = vmax.f32 %v6728_v13, %v11879_v32  ;;  %v6695_v33 = vmul.f32 %v15765_v43, %v6676_v0  ;;  %v7062_v13 = vpack.c.bf16 %v7032_v48, %v7032_v48  ;;  %v12127_v48 = vld [vmem:[%s17838_s4 + $0x118] sm:$0xf0] }
 0x38e   : > { %v7406_v63 = vrot.slane %v15940_v22, 3  ;;  %v7058_v55 = vpack.c.bf16 %v7028_v37, %v7028_v37  ;;  %v7147_v3 = vunpack.c.l.b16 %v7057_v41  ;;  %v7063_v0 = vpack.c.bf16 %v7033_v11, %v7033_v11  ;;  %v11971_v37 = vld [vmem:[%s17838_s4 + $0x80] sm:$0xf]  ;;  %v13641_v41 = vld [vmem:[%s17838_s4 + $0x84] sm:$0xf0] }
 0x38f   : > { %v6886_v46 = vmax.f32 %v6758_v25, %v11880_v9  ;;  %v11909_v26 = vrot.slane %v6885_v50, 10  ;;  %v6714_v4 = vadd.f32 %v15770_v30, %v6695_v33  ;;  %v12134_v5 = vor.u32 %v13661_v61, %v12133_v8  ;;  %v12125_v33 = vld [vmem:[%s17838_s4 + $0x110] sm:$0xf] }
 0x390   : > { %v6506_v14 = vpop.f32.mrf.mxu2  ;;  %v12138_v10 = vor.u32 %v13660_v29, %v12135_v17  ;;  %v7152_v44 = vunpack.c.l.b16 %v7062_v13  ;;  %v7064_v9 = vpack.c.bf16 %v7034_v56, %v7034_v56  ;;  %v11980_v34 = vor.u32 %v13643_v18, %v11979_v53 }
 0x391   : > { %v6648_v45 = vpop.f32.mrf.mxu3  ;;  %v6507_v35 = vadd.f32 %v6506_v14, %v6407_v42  ;;  %v6729_v59 = vmax.f32 %v6714_v4, 0.0  ;;  %v11910_v7 = vrot.slane %v6886_v46, 10  ;;  %v7035_v25 = vmax.f32 %v6885_v50, %v11909_v26  ;;  %v6410_v24 = vpop.f32.mrf.mxu1  ;;  %7724 = vmatpush.bf16.msrb.mxu1 %v12134_v5 }
 0x392   : > { %7742 = vmatpush.bf16.msrb.mxu2 %v12138_v10  ;;  %v15997_v20 = vsel %vm1415_vm2, %v7589_v49, %v7588_v54  ;;  %v7148_v15 = vunpack.c.l.b16 %v7058_v55  ;;  %7364 = vmatpush.bf16.msrb.mxu0 %v11980_v34  ;;  %v7153_v26 = vunpack.c.l.b16 %v7063_v0  ;;  %v13657_v49 = vld [vmem:[%s17838_s4 + $0x104] sm:$0xf0]  ;;  %v16014_v11 = vunpack.i.l.s16 %v7152_v44  ;;  %v13656_v54 = vld [vmem:[%s17838_s4 + $0x104] sm:$0xf]  ;;  %v12119_v55 = vld [vmem:[%s17838_s4 + $0x108] sm:$0xf0] }
 0x393   : > { %v6759_v32 = vrot.slane %v6729_v59, 4  ;;  %v6677_v6 = vadd.f32 %v6648_v45, %v6507_v35  ;;  %v11881_v36 = vrot.slane %v6729_v59, 9  ;;  %v7036_v60 = vmax.f32 %v6886_v46, %v11910_v7 }
 0x394   : > { %v7065_v14 = vpack.c.bf16 %v7035_v25, %v7035_v25  ;;  %v16006_v46 = vunpack.i.l.s16 %v7147_v3  ;;  %v12126_v61 = vor.u32 %v13659_v51, %v12125_v33  ;;  %v12130_v13 = vor.u32 %v13658_v31, %v12127_v48 }
 0x395   : > { %v11882_v42 = vrot.slane %v6759_v32, 9  ;;  %v6887_v47 = vmax.f32 %v6729_v59, %v11881_v36  ;;  %v6696_v45 = vmul.f32 %v15765_v43, %v6677_v6  ;;  %v7154_v56 = vunpack.c.l.b16 %v7064_v9 }
 0x396   : > { %v7066_v59 = vpack.c.bf16 %v7036_v60, %v7036_v60  ;;  %v7155_v7 = vunpack.c.l.b16 %v7065_v14  ;;  %7725 = vmatpush.bf16.msrb.mxu1 %v12126_v61  ;;  %7743 = vmatpush.bf16.msrb.mxu2 %v12130_v13  ;;  %v11972_v18 = vor.u32 %v13641_v41, %v11971_v37  ;;  %v12118_v3 = vor.u32 %v13657_v49, %v12117_v62 }
 0x397   : > { %v6888_v4 = vmax.f32 %v6759_v32, %v11882_v42  ;;  %v11911_v35 = vrot.slane %v6887_v47, 10  ;;  %v6715_v53 = vadd.f32 %v15770_v30, %v6696_v45  ;;  %v7240_v25 = vrot.slane %v15932_v40, 7 }
 0x398   : > { %v6509_v28 = vpop.f32.mrf.mxu2  ;;  %v16024_v32 = vunpack.i.l.s16 %v7153_v26  ;;  %v7591_v36 = vrot.slane %v15940_v22, 5  ;;  %7365 = vmatpush.bf16.msrb.mxu0 %v11972_v18  ;;  %v12122_v44 = vor.u32 %v13656_v54, %v12119_v55  ;;  %v7234_v9 = vrot.slane %v16006_v46, 3 }
 0x399   : > { %v6510_v23 = vadd.f32 %v6509_v28, %v6410_v24  ;;  %v6651_v50 = vpop.f32.mrf.mxu3  ;;  %v11912_v29 = vrot.slane %v6888_v4, 10  ;;  %v7037_v17 = vmax.f32 %v6887_v47, %v11911_v35  ;;  %v16027_v24 = vunpack.i.l.s16 %v7148_v15  ;;  %v6412_v33 = vpop.f32.mrf.mxu1 }
 0x39a   : > { %v7242_v42 = vrot.slane %v16014_v11, 6  ;;  %v16032_v28 = vunpack.i.l.s16 %v7154_v56  ;;  %v7156_v60 = vunpack.c.l.b16 %v7066_v59  ;;  %v16034_v47 = vunpack.i.l.s16 %v7155_v7  ;;  %7726 = vmatpush.bf16.msrb.mxu1 %v12118_v3  ;;  %7744 = vmatpush.bf16.msrb.mxu2 %v12122_v44 }
 0x39b   : > { %v6678_v8 = vadd.f32 %v6651_v50, %v6510_v23  ;;  %v7038_v6 = vmax.f32 %v6888_v4, %v11912_v29  ;;  %v7067_v0 = vpack.c.bf16 %v7037_v17, %v7037_v17  ;;  %v6730_v23 = vmax.f32 %v6715_v53, 0.0 }
 0x39c   : > { %v7241_v51 = vsel %vm1413_vm1, %v7240_v25, %v15912_v2  ;;  %v7244_v31 = vrot.slane %v16024_v32, 5  ;;  %v7408_v45 = vrot.slane %v16006_v46, 2  ;;  %v7593_v37 = vrot.slane %v16006_v46, 4 }
 0x39d   : > { %v6697_v5 = vmul.f32 %v15765_v43, %v6678_v8  ;;  %v7068_v34 = vpack.c.bf16 %v7038_v6, %v7038_v6  ;;  %v7157_v48 = vunpack.c.l.b16 %v7067_v0  ;;  %v7595_v41 = vrot.slane %v16027_v24, 3 }
 0x39e   : > { %v7601_v4 = vrot.slane %v16014_v11, 7  ;;  %v7246_v35 = vrot.slane %v16032_v28, 4  ;;  %v16047_v8 = vunpack.i.l.s16 %v7156_v60  ;;  %v7248_v61 = vrot.slane %v16034_v47, 3 }
 0x39f   : > { %v7158_v15 = vunpack.c.l.b16 %v7068_v34  ;;  %v6716_v26 = vadd.f32 %v15770_v30, %v6697_v5  ;;  %v6760_v13 = vrot.slane %v6730_v23, 4  ;;  %v7243_v56 = vsel %vm1415_vm2, %v7242_v42, %v7241_v51 }
 0x3a0   : > { %v6511_v10 = vpop.f32.mrf.mxu2  ;;  %v16051_v59 = vunpack.i.l.s16 %v7157_v48  ;;  %v7229_v17 = vsel %vm1415_vm2, %v7228_v12, %v15958_v39  ;;  %v7245_v54 = vsel %vm1417_vm3, %v7244_v31, %v7243_v56  ;;  %v7597_v55 = vrot.slane %v15910_v52, 2 }
 0x3a1   : > { %v6512_v50 = vadd.f32 %v6511_v10, %v6412_v33  ;;  %v6653_v14 = vpop.f32.mrf.mxu3  ;;  %v16045_v62 = vunpack.i.l.s16 %v7158_v15  ;;  %v11883_v7 = vrot.slane %v6730_v23, 9  ;;  %v6731_v53 = vmax.f32 %v6716_v26, 0.0  ;;  %v6415_v42 = vpop.f32.mrf.mxu1 }
 0x3a2   : > { %v7231_v18 = vsel %vm1417_vm3, %v7230_v58, %v7229_v17  ;;  %v7416_v3 = vrot.slane %v16014_v11, 5  ;;  %v7602_v25 = vsel %vm1413_vm1, %v7601_v4, %v15932_v40  ;;  %v7603_v0 = vrot.slane %v16024_v32, 6 }
 0x3a3   : > { %v6679_v49 = vadd.f32 %v6653_v14, %v6512_v50  ;;  %v7426_v29 = vrot.slane %v16045_v62, 7  ;;  %v7605_v5 = vrot.slane %v16032_v28, 5  ;;  %v7250_v10 = vrot.slane %v16047_v8, 2 }
 0x3a4   : > { %v7247_v58 = vsel %vm1419_vm4, %v7246_v35, %v7245_v54  ;;  %v11884_v44 = vrot.slane %v6760_v13, 9  ;;  %v7233_v40 = vsel %vm1419_vm4, %v7232_v27, %v7231_v18  ;;  %v7236_v34 = vrot.slane %v16027_v24, 2 }
 0x3a5   : > { %v16068_v6 = vsel %vm1413_vm1, %v7426_v29, %v16051_v59  ;;  %v6698_v12 = vmul.f32 %v15765_v43, %v6679_v49  ;;  %v7249_v33 = vsel %vm1421_vm5, %v7248_v61, %v7247_v58  ;;  %v6889_v60 = vmax.f32 %v6730_v23, %v11883_v7 }
 0x3a6   : > { %v6761_v50 = vrot.slane %v6731_v53, 4  ;;  %v7235_v51 = vsel %vm1421_vm5, %v7234_v9, %v7233_v40  ;;  %v7238_v31 = vrot.slane %v15910_v52, 1  ;;  %v11885_v48 = vrot.slane %v6731_v53, 9 }
 0x3a7   : > { %v6717_v15 = vadd.f32 %v15770_v30, %v6698_v12  ;;  %v7252_v14 = vrot.slane %v16051_v59, 1  ;;  %v7604_v35 = vsel %vm1415_vm2, %v7603_v0, %v7602_v25  ;;  %v7607_v27 = vrot.slane %v16034_v47, 4 }
 0x3a8   : > { %v6514_v39 = vpop.f32.mrf.mxu2  ;;  %v7609_v49 = vrot.slane %v16047_v8, 3  ;;  %v7251_v23 = vsel %vm1423_vm6, %v7250_v10, %v7249_v33  ;;  %v6890_v61 = vmax.f32 %v6760_v13, %v11884_v44  ;;  %v7237_v9 = vsel %vm1423_vm6, %v7236_v34, %v7235_v51 }
 0x3a9   : > { %v6515_v26 = vadd.f32 %v6514_v39, %v6415_v42  ;;  %v6656_v4 = vpop.f32.mrf.mxu3  ;;  %v7253_v52 = vsel %vm1425_vm7, %v7252_v14, %v7251_v23  ;;  %v11913_v29 = vrot.slane %v6889_v60, 10  ;;  %v11886_v17 = vrot.slane %v6761_v50, 9  ;;  %v6417_v51 = vpop.f32.mrf.mxu1 }
 0x3aa   : > { %v7239_v54 = vsel %vm1425_vm7, %v7238_v31, %v7237_v9  ;;  %v7592_v7 = vsel %vm1417_vm3, %v7591_v36, %v15997_v20  ;;  %v6891_v18 = vmax.f32 %v6731_v53, %v11885_v48  ;;  %v6732_v25 = vmax.f32 %v6717_v15, 0.0  ;;  %v16143_v9 = vld [vmem:[%s17844_s10] ss:$0 sm:$0xff] }
 0x3ab   : > { %v6680_v56 = vadd.f32 %v6656_v4, %v6515_v26  ;;  %v16095_v12 = vpack.c.b16 %v7253_v52, %v7239_v54  ;;  %v7594_v13 = vsel %vm1419_vm4, %v7593_v37, %v7592_v7  ;;  %v7418_v39 = vrot.slane %v16024_v32, 4 }
 0x3ac   : > { %v7420_v0 = vrot.slane %v16032_v28, 3  ;;  %v7611_v10 = vrot.slane %v16051_v59, 2  ;;  %v11914_v44 = vrot.slane %v6890_v61, 10  ;;  %v7596_v20 = vsel %vm1421_vm5, %v7595_v41, %v7594_v13 }
 0x3ad   : > { %v6699_v58 = vmul.f32 %v15765_v43, %v6680_v56  ;;  %7366 = vmatmul.bf16.vlgmr.msrb.gmra.mxu0 %v16095_v12  ;;  %v7599_v36 = vrot.slane %v15912_v2, 1  ;;  %v7606_v53 = vsel %vm1417_vm3, %v7605_v5, %v7604_v35  ;;  %v7039_v42 = vmax.f32 %v6889_v60, %v11913_v29 }
 0x3ae   : > { %v7598_v32 = vsel %vm1423_vm6, %v7597_v55, %v7596_v20  ;;  %v7608_v28 = vsel %vm1419_vm4, %v7607_v27, %v7606_v53  ;;  %v7613_v59 = vrot.slane %v16045_v62, 1  ;;  %v6892_v43 = vmax.f32 %v6761_v50, %v11886_v17 }
 0x3af   : > { %v11915_v40 = vrot.slane %v6891_v18, 10  ;;  %v6762_v34 = vrot.slane %v6732_v25, 4  ;;  %v7610_v33 = vsel %vm1421_vm5, %v7609_v49, %v7608_v28  ;;  %v6718_v41 = vadd.f32 %v15770_v30, %v6699_v58 }
 0x3b0   : > { %v6516_v37 = vpop.f32.mrf.mxu2  ;;  %v7612_v2 = vsel %vm1423_vm6, %v7611_v10, %v7610_v33  ;;  %v7403_v55 = vsel %vm1417_vm3, %v7402_v21, %v15797_v19  ;;  %v7040_v5 = vmax.f32 %v6890_v61, %v11914_v44  ;;  %v11887_v60 = vrot.slane %v6732_v25, 9  ;;  %v16129_v21 = vld [vmem:[%s17843_s9] ss:$0 sm:$0xff] }
 0x3b1   : > { %v6517_v31 = vadd.f32 %v6516_v37, %v6417_v51  ;;  %v7600_v48 = vsel %vm1425_vm7, %v7599_v36, %v7598_v32  ;;  %v7614_v50 = vsel %vm1425_vm7, %v7613_v59, %v7612_v2  ;;  %v6658_v15 = vpop.f32.mrf.mxu3  ;;  %v7069_v14 = vpack.c.bf16 %v7039_v42, %v7039_v42 }
 0x3b2   : > { %v7635_v26 = vpack.c.b16 %v7614_v50, %v7600_v48  ;;  %v7405_v30 = vsel %vm1419_vm4, %v7404_v16, %v7403_v55  ;;  %v11916_v35 = vrot.slane %v6892_v43, 10  ;;  %v7041_v27 = vmax.f32 %v6891_v18, %v11915_v40 }
 0x3b3   : > { %v6681_v4 = vadd.f32 %v6658_v15, %v6517_v31  ;;  %v11888_v49 = vrot.slane %v6762_v34, 9  ;;  %v7407_v19 = vsel %vm1421_vm5, %v7406_v63, %v7405_v30  ;;  %v6733_v57 = vmax.f32 %v6718_v41, 0.0 }
 0x3b4   : > { %7727 = vmatmul.bf16.vlgmr.msrb.gmra.mxu1 %v7635_v26  ;;  %7745 = vmatmul.bf16.vlgmr.msrb.gmra.mxu2 %v7635_v26  ;;  %v7409_v38 = vsel %vm1423_vm6, %v7408_v45, %v7407_v19  ;;  %v7410_v16 = vrot.slane %v16027_v24, 1  ;;  %v6893_v61 = vmax.f32 %v6732_v25, %v11887_v60  ;;  %v7417_v22 = vsel %vm1417_vm3, %v7416_v3, %v15949_v1 }
 0x3b5   : > { %v6700_v23 = vmul.f32 %v16129_v21, %v6681_v4  ;;  %v7070_v63 = vpack.c.bf16 %v7040_v5, %v7040_v5  ;;  %v7419_v45 = vsel %vm1419_vm4, %v7418_v39, %v7417_v22  ;;  %v7159_v56 = vunpack.c.l.b16 %v7069_v14 }
 0x3b6   : > { %v7411_v46 = vsel %vm1425_vm7, %v7410_v16, %v7409_v38  ;;  %v7042_v24 = vmax.f32 %v6892_v43, %v11916_v35  ;;  %v7071_v29 = vpack.c.bf16 %v7041_v27, %v7041_v27  ;;  %v6894_v17 = vmax.f32 %v6762_v34, %v11888_v49 }
 0x3b7   : > { %v6719_v52 = vadd.f32 %v16143_v9, %v6700_v23  ;;  %v6763_v11 = vrot.slane %v6733_v57, 4  ;;  %v7421_v1 = vsel %vm1421_vm5, %v7420_v0, %v7419_v45  ;;  %v11917_v3 = vrot.slane %v6893_v61, 10 }
 0x3b8   : > { %v11889_v7 = vrot.slane %v6733_v57, 9  ;;  %v7422_v18 = vrot.slane %v16034_v47, 2  ;;  %v7160_v25 = vunpack.c.l.b16 %v7070_v63  ;;  %v11958_v10 = vunpack.i.l.s16 %v7159_v56 }
 0x3b9   : > { %v6734_v13 = vmax.f32 %v6719_v52, 0.0  ;;  %v7072_v58 = vpack.c.bf16 %v7042_v24, %v7042_v24  ;;  %v7161_v44 = vunpack.c.l.b16 %v7071_v29  ;;  %v11918_v20 = vrot.slane %v6894_v17, 10 }
 0x3ba   : > { %v11890_v39 = vrot.slane %v6763_v11, 9  ;;  %v7043_v36 = vmax.f32 %v6893_v61, %v11917_v3  ;;  %v6895_v53 = vmax.f32 %v6733_v57, %v11889_v7  ;;  %v11959_v37 = vunpack.i.l.s16 %v7160_v25 }
 0x3bb   : > { %v6764_v42 = vrot.slane %v6734_v13, 4  ;;  %v7423_v32 = vsel %vm1423_vm6, %v7422_v18, %v7421_v1  ;;  %v7424_v28 = vrot.slane %v16047_v8, 1  ;;  %v7254_v0 = vrot.slane %v11958_v10, 7 }
 0x3bc   : > { %v7162_v59 = vunpack.c.l.b16 %v7072_v58  ;;  %v16154_v43 = vunpack.i.l.s16 %v7161_v44  ;;  %v7044_v47 = vmax.f32 %v6894_v17, %v11918_v20  ;;  %v6896_v34 = vmax.f32 %v6763_v11, %v11890_v39 }
 0x3bd   : > { %v16148_v54 = vpop.f32.mrf.mxu2  ;;  %v7425_v33 = vsel %vm1425_vm7, %v7424_v28, %v7423_v32  ;;  %v7073_v51 = vpack.c.bf16 %v7043_v36, %v7043_v36  ;;  %v11919_v41 = vrot.slane %v6895_v53, 10  ;;  %v11891_v2 = vrot.slane %v6734_v13, 9 }
 0x3be   : > { %v16157_v31 = vpack.c.b16 %v7425_v33, %v7411_v46  ;;  %v7256_v55 = vrot.slane %v11959_v37, 6  ;;  %v11892_v5 = vrot.slane %v6764_v42, 9  ;;  %v11961_v60 = vunpack.i.l.s16 %v7162_v59 }
 0x3bf   : > { %v7258_v48 = vrot.slane %v16154_v43, 5  ;;  %v7074_v8 = vpack.c.bf16 %v7044_v47, %v7044_v47  ;;  %v7255_v50 = vsel %vm1413_vm1, %v7254_v0, %v16045_v62  ;;  %v11920_v15 = vrot.slane %v6896_v34, 10 }
 0x3c0   : > { %v7163_v14 = vunpack.c.l.b16 %v7073_v51  ;;  %v7045_v26 = vmax.f32 %v6895_v53, %v11919_v41  ;;  %v6897_v4 = vmax.f32 %v6734_v13, %v11891_v2  ;;  %v7615_v30 = vrot.slane %v11959_v37, 7 }
 0x3c1   : > { %v6898_v35 = vmax.f32 %v6764_v42, %v11892_v5  ;;  %v7257_v27 = vsel %vm1415_vm2, %v7256_v55, %v7255_v50  ;;  %v7617_v49 = vrot.slane %v16154_v43, 6  ;;  %v7164_v19 = vunpack.c.l.b16 %v7074_v8 }
 0x3c2   : > { %v7259_v57 = vsel %vm1417_vm3, %v7258_v48, %v7257_v27  ;;  %v7260_v23 = vrot.slane %v11961_v60, 4  ;;  %v7046_v38 = vmax.f32 %v6896_v34, %v11920_v15  ;;  %v11962_v16 = vunpack.i.l.s16 %v7163_v14 }
 0x3c3   : > { %v7075_v61 = vpack.c.bf16 %v7045_v26, %v7045_v26  ;;  %v11921_v22 = vrot.slane %v6897_v4, 10  ;;  %v7428_v63 = vrot.slane %v11958_v10, 6  ;;  %v7616_v52 = vsel %vm1413_vm1, %v7615_v30, %v11958_v10 }
 0x3c4   : > { %v7261_v62 = vsel %vm1419_vm4, %v7260_v23, %v7259_v57  ;;  %v11922_v46 = vrot.slane %v6898_v35, 10  ;;  %v7619_v45 = vrot.slane %v11961_v60, 5  ;;  %v11963_v56 = vunpack.i.l.s16 %v7164_v19 }
 0x3c5   : > { %v6521_v40 = vpop.f32.mrf.mxu2  ;;  %v7618_v24 = vsel %vm1415_vm2, %v7617_v49, %v7616_v52  ;;  %v7076_v29 = vpack.c.bf16 %v7046_v38, %v7046_v38  ;;  %v7165_v17 = vunpack.c.l.b16 %v7075_v61  ;;  %v7047_v11 = vmax.f32 %v6897_v4, %v11921_v22  ;;  %v13654_v38 = vld [vmem:[%s17838_s4 + $0xf4] sm:$0xf]  ;;  %v13652_v61 = vld [vmem:[%s17838_s4 + $0xe4] sm:$0xf] }
 0x3c6   : > { %v7262_v1 = vrot.slane %v11962_v16, 3  ;;  %v7621_v3 = vrot.slane %v11962_v16, 4  ;;  %v7048_v7 = vmax.f32 %v6898_v35, %v11922_v46  ;;  %v7620_v18 = vsel %vm1417_vm3, %v7619_v45, %v7618_v24  ;;  %v13650_v45 = vld [vmem:[%s17838_s4 + $0xd4] sm:$0xf] }
 0x3c7   : > { %v7429_v25 = vsel %vm1415_vm2, %v7428_v63, %v16068_v6  ;;  %v7430_v13 = vrot.slane %v11959_v37, 5  ;;  %v7264_v10 = vrot.slane %v11963_v56, 2  ;;  %v7623_v20 = vrot.slane %v11963_v56, 3  ;;  %v12021_v63 = vld [vmem:[%s17838_s4 + $0xe8] sm:$0xf0] }
 0x3c8   : > { %v7263_v58 = vsel %vm1421_vm5, %v7262_v1, %v7261_v62  ;;  %v7622_v44 = vsel %vm1419_vm4, %v7621_v3, %v7620_v18  ;;  %v11964_v36 = vunpack.i.l.s16 %v7165_v17  ;;  %v7077_v53 = vpack.c.bf16 %v7047_v11, %v7047_v11  ;;  %v13648_v17 = vld [vmem:[%s17838_s4 + $0xc4] sm:$0xf]  ;;  %v12005_v11 = vld [vmem:[%s17838_s4 + $0xc8] sm:$0xf0]  ;;  %v13646_v3 = vld [vmem:[%s17838_s4 + $0xb4] sm:$0xf] }
 0x3c9   : > { %v7431_v39 = vsel %vm1417_vm3, %v7430_v13, %v7429_v25  ;;  %v7265_v42 = vsel %vm1423_vm6, %v7264_v10, %v7263_v58  ;;  %v7624_v32 = vsel %vm1421_vm5, %v7623_v20, %v7622_v44  ;;  %v7078_v28 = vpack.c.bf16 %v7048_v7, %v7048_v7  ;;  %v11997_v7 = vld [vmem:[%s17838_s4 + $0xb8] sm:$0xf0]  ;;  %v13644_v20 = vld [vmem:[%s17838_s4 + $0xa4] sm:$0xf] }
 0x3ca   : > { %v7166_v0 = vunpack.c.l.b16 %v7076_v29  ;;  %v7432_v59 = vrot.slane %v16154_v43, 4  ;;  %v7167_v6 = vunpack.c.l.b16 %v7077_v53  ;;  %v7266_v47 = vrot.slane %v11964_v36, 1 }
 0x3cb   : > { %v7625_v40 = vrot.slane %v11964_v36, 2  ;;  %v7434_v33 = vrot.slane %v11961_v60, 3  ;;  %v7168_v51 = vunpack.c.l.b16 %v7078_v28  ;;  %v7436_v50 = vrot.slane %v11962_v16, 2  ;;  %v12029_v16 = vld [vmem:[%s17838_s4 + $0xf8] sm:$0xf0] }
 0x3cc   : > { %v11965_v37 = vunpack.i.l.s16 %v7166_v0  ;;  %v7433_v34 = vsel %vm1419_vm4, %v7432_v59, %v7431_v39  ;;  %v16179_v41 = vsel %vm1425_vm7, %v7266_v47, %v7265_v42  ;;  %v16183_v48 = vunpack.i.l.s16 %v7167_v6  ;;  %v11989_v39 = vld [vmem:[%s17838_s4 + $0xa8] sm:$0xf0]  ;;  %v13642_v42 = vld [vmem:[%s17838_s4 + $0x94] sm:$0xf] }
 0x3cd   : > { %v7626_v2 = vsel %vm1423_vm6, %v7625_v40, %v7624_v32  ;;  %v7435_v5 = vsel %vm1421_vm5, %v7434_v33, %v7433_v34  ;;  %v16188_v8 = vunpack.i.l.s16 %v7168_v51  ;;  %v7438_v14 = vrot.slane %v11963_v56, 1  ;;  %v12013_v56 = vld [vmem:[%s17838_s4 + $0xd8] sm:$0xf0] }
 0x3ce   : > { %v7627_v55 = vrot.slane %v11965_v37, 1  ;;  %v7268_v15 = vrot.slane %v16183_v48, 7  ;;  %v7437_v60 = vsel %vm1423_vm6, %v7436_v50, %v7435_v5  ;;  %v7440_v27 = vrot.slane %v11965_v37, 7  ;;  %v11981_v32 = vld [vmem:[%s17838_s4 + $0x98] sm:$0xf0] }
 0x3cf   : > { %v7270_v4 = vrot.slane %v16188_v8, 6  ;;  %v7439_v30 = vsel %vm1425_vm7, %v7438_v14, %v7437_v60  ;;  %v7442_v19 = vrot.slane %v16183_v48, 6  ;;  %v7444_v23 = vrot.slane %v16188_v8, 5  ;;  %v13640_v60 = vld [vmem:[%s17838_s4 + $0x84] sm:$0xf] }
 0x3d0   : > { %v16186_v43 = vsel %vm1425_vm7, %v7627_v55, %v7626_v2  ;;  %v7269_v26 = vsel %vm1413_vm1, %v7268_v15, %v11965_v37  ;;  %v7441_v49 = vsel %vm1413_vm1, %v7440_v27, %v11964_v36  ;;  %v12032_v62 = vor.u32 %v13654_v38, %v12029_v16  ;;  %v11973_v14 = vld [vmem:[%s17838_s4 + $0x88] sm:$0xf0] }
 0x3d1   : > { %v16196_v35 = vsel %vm1415_vm2, %v7270_v4, %v7269_v26  ;;  %v7443_v57 = vsel %vm1415_vm2, %v7442_v19, %v7441_v49  ;;  %v12024_v46 = vor.u32 %v13652_v61, %v12021_v63  ;;  %v12016_v24 = vor.u32 %v13650_v45, %v12013_v56  ;;  %v12092_v26 = vld [vmem:[%s17838_s4 + $0x70] sm:$0xf]  ;;  %v13639_v49 = vld [vmem:[%s17838_s4 + $0x74] sm:$0xf0] }
 0x3d2   : > { %v7445_v22 = vsel %vm1417_vm3, %v7444_v23, %v7443_v57  ;;  %7376 = vmatpush.bf16.msra.mxu0 %v12032_v62  ;;  %v12008_v1 = vor.u32 %v13648_v17, %v12005_v11  ;;  %v12000_v58 = vor.u32 %v13646_v3, %v11997_v7  ;;  %v11992_v53 = vor.u32 %v13644_v20, %v11989_v39  ;;  %v13635_v11 = vld [vmem:[%s17838_s4 + $0x54] sm:$0xf0]  ;;  %v12068_v3 = vld [vmem:[%s17838_s4 + $0x40] sm:$0xf]  ;;  %v13633_v7 = vld [vmem:[%s17838_s4 + $0x44] sm:$0xf0] }
 0x3d3   : > { %v16215_v52 = vpack.c.b16 %v7445_v22, %v7439_v30  ;;  %v11984_v6 = vor.u32 %v13642_v42, %v11981_v32  ;;  %v11976_v27 = vor.u32 %v13640_v60, %v11973_v14  ;;  %v7629_v19 = vrot.slane %v16188_v8, 7  ;;  %v12044_v20 = vld [vmem:[%s17838_s4 + $0x10] sm:$0xf]  ;;  %v13627_v39 = vld [vmem:[%s17838_s4 + $0x14] sm:$0xf0] }
 0x3d4   : > { %v12093_v57 = vor.u32 %v13639_v49, %v12092_v26  ;;  %v13638_v42 = vld [vmem:[%s17838_s4 + $0x74] sm:$0xf]  ;;  %v12094_v32 = vld [vmem:[%s17838_s4 + $0x78] sm:$0xf0]  ;;  %v13624_v26 = vld [vmem:[%s17838_s4 + $0x4] sm:$0xf] }
 0x3d5   : > { %v7630_v63 = vsel %vm1413_vm1, %v7629_v19, %v16183_v48  ;;  %v12076_v48 = vld [vmem:[%s17838_s4 + $0x50] sm:$0xf]  ;;  %v12046_v60 = vld [vmem:[%s17838_s4 + $0x18] sm:$0xf0] }
 0x3d6   : > { %7377 = vmatpush.bf16.msra.mxu0 %v12024_v46 }
 0x3da   : > { %7378 = vmatpush.bf16.msra.mxu0 %v12016_v24  ;;  %v12084_v24 = vld [vmem:[%s17838_s4 + $0x60] sm:$0xf] }
 0x3de   : > { %7379 = vmatpush.bf16.msra.mxu0 %v12008_v1  ;;  %v12077_v1 = vor.u32 %v13635_v11, %v12076_v48  ;;  %v13758_v11 = vld [vmem:[%s17839_s5 + $0x2ac] sm:$0xf0] }
 0x3e2   : > { %7380 = vmatpush.bf16.msra.mxu0 %v12000_v58  ;;  %v12052_v58 = vld [vmem:[%s17838_s4 + $0x20] sm:$0xf] }
 0x3e6   : > { %7381 = vmatpush.bf16.msra.mxu0 %v11992_v53  ;;  %v12036_v53 = vld [vmem:[%s17838_s4] sm:$0xf] }
 0x3ea   : > { %7382 = vmatpush.bf16.msra.mxu0 %v11984_v6 }
 0x3ee   : > { %7383 = vmatpush.bf16.msra.mxu0 %v11976_v27 }
 0x3f2   : > { %7530 = vmatpush.bf16.msrb.mxu0 %v12093_v57 }
 0x3f6   : > { %v6420_v29 = vpop.f32.mrf.mxu1 }
 0x3f7   : > { %v6520_v18 = vadd.f32 %v16148_v54, %v6420_v29  ;;  %v13637_v29 = vld [vmem:[%s17838_s4 + $0x64] sm:$0xf0] }
 0x3fd   : > { %v6523_v25 = vpop.f32.mrf.mxu2 }
 0x3fe   : > { %v6422_v44 = vpop.f32.mrf.mxu1  ;;  %v12060_v25 = vld [vmem:[%s17838_s4 + $0x30] sm:$0xf] }
 0x3ff   : > { %v6661_v13 = vpop.f32.mrf.mxu3 }
 0x400   : > { %v6682_v10 = vadd.f32 %v6661_v13, %v6520_v18  ;;  %v12069_v18 = vor.u32 %v13633_v7, %v12068_v3  ;;  %v12505_v3 = vld [vmem:[%s17839_s5 + $0x3e0] sm:$0xf]  ;;  %v13798_v7 = vld [vmem:[%s17839_s5 + $0x3ec] sm:$0xf0] }
 0x402   : > { %v6701_v36 = vmul.f32 %v16129_v21, %v6682_v10  ;;  %v13629_v10 = vld [vmem:[%s17838_s4 + $0x24] sm:$0xf0] }
 0x403   : > { %v12053_v44 = vor.u32 %v13629_v10, %v12052_v58  ;;  %v12507_v58 = vld [vmem:[%s17839_s5 + $0x3f0] sm:$0xf0] }
 0x404   : > { %v6720_v54 = vadd.f32 %v16143_v9, %v6701_v36  ;;  %v12045_v36 = vor.u32 %v13627_v39, %v12044_v20  ;;  %v12489_v20 = vld [vmem:[%s17839_s5 + $0x3c0] sm:$0xf]  ;;  %v13794_v39 = vld [vmem:[%s17839_s5 + $0x3cc] sm:$0xf0] }
 0x405   : > { %v6524_v0 = vpop.f32.mrf.mxu2 }
 0x406   : > { %v6735_v28 = vmax.f32 %v6720_v54, 0.0  ;;  %v6424_v21 = vpop.f32.mrf.mxu1  ;;  %v13625_v54 = vld [vmem:[%s17838_s4 + $0x4] sm:$0xf0]  ;;  %v13636_v0 = vld [vmem:[%s17838_s4 + $0x64] sm:$0xf] }
 0x407   : > { %v6663_v59 = vpop.f32.mrf.mxu3 }
 0x408   : > { %v6765_v37 = vrot.slane %v6735_v28, 4  ;;  %v11893_v47 = vrot.slane %v6735_v28, 9  ;;  %v12086_v59 = vld [vmem:[%s17838_s4 + $0x68] sm:$0xf0] }
 0x409   : > { %v12089_v6 = vor.u32 %v13636_v0, %v12086_v59 }
 0x40a   : > { %v11894_v40 = vrot.slane %v6765_v37, 9  ;;  %v6899_v34 = vmax.f32 %v6735_v28, %v11893_v47  ;;  %v12097_v28 = vor.u32 %v13638_v42, %v12094_v32  ;;  %v12078_v47 = vld [vmem:[%s17838_s4 + $0x58] sm:$0xf0]  ;;  %v13792_v42 = vld [vmem:[%s17839_s5 + $0x3c4] sm:$0xf] }
 0x40b   : > { %v12491_v32 = vld [vmem:[%s17839_s5 + $0x3d0] sm:$0xf0] }
 0x40c   : > { %v6900_v9 = vmax.f32 %v6765_v37, %v11894_v40  ;;  %v11923_v33 = vrot.slane %v6899_v34, 10  ;;  %v13634_v37 = vld [vmem:[%s17838_s4 + $0x54] sm:$0xf]  ;;  %v13632_v40 = vld [vmem:[%s17838_s4 + $0x44] sm:$0xf] }
 0x40d   : > { %v12081_v21 = vor.u32 %v13634_v37, %v12078_v47 }
 0x40e   : > { %v7049_v51 = vmax.f32 %v6899_v34, %v11923_v33  ;;  %v11924_v2 = vrot.slane %v6900_v9, 10  ;;  %v6425_v50 = vpop.f32.mrf.mxu1  ;;  %v12070_v34 = vld [vmem:[%s17838_s4 + $0x48] sm:$0xf0]  ;;  %v13630_v33 = vld [vmem:[%s17838_s4 + $0x34] sm:$0xf] }
 0x40f   : > { %v6665_v55 = vpop.f32.mrf.mxu3 }
 0x410   : > { %v7079_v5 = vpack.c.bf16 %v7049_v51, %v7049_v51  ;;  %v7050_v15 = vmax.f32 %v6900_v9, %v11924_v2  ;;  %v12073_v9 = vor.u32 %v13632_v40, %v12070_v34  ;;  %v12062_v51 = vld [vmem:[%s17838_s4 + $0x38] sm:$0xf0]  ;;  %v13628_v55 = vld [vmem:[%s17838_s4 + $0x24] sm:$0xf]  ;;  %v7761_v40 = vld [vmem:[%s17845_s11] sm:$0x3] }
 0x411   : > { %v12065_v2 = vor.u32 %v13630_v33, %v12062_v51  ;;  %v7773_v34 = vld [vmem:[%s17846_s12] sm:$0x3]  ;;  %v16444_v51 = vperm.slane %v7761_v40, 0 }
 0x412   : > { %v7169_v4 = vunpack.c.l.b16 %v7079_v5  ;;  %v7080_v30 = vpack.c.bf16 %v7050_v15, %v7050_v15  ;;  %v12054_v5 = vld [vmem:[%s17838_s4 + $0x28] sm:$0xf0]  ;;  %v13626_v15 = vld [vmem:[%s17838_s4 + $0x14] sm:$0xf] }
 0x413   : > { %v12057_v50 = vor.u32 %v13628_v55, %v12054_v5  ;;  %v12049_v14 = vor.u32 %v13626_v15, %v12046_v60  ;;  %v12329_v55 = vld [vmem:[%s17839_s5 + $0x280] sm:$0xf]  ;;  %v13754_v5 = vld [vmem:[%s17839_s5 + $0x28c] sm:$0xf0] }
 0x414   : > { %v11968_v23 = vunpack.i.l.s16 %v7169_v4  ;;  %v7584_v38 = vunpack.c.l.b16 %v7080_v30  ;;  %v12038_v4 = vld [vmem:[%s17838_s4 + $0x8] sm:$0xf0]  ;;  %v12330_v15 = vor.u32 %v13754_v5, %v12329_v55  ;;  %v13790_v60 = vld [vmem:[%s17839_s5 + $0x3ac] sm:$0xf0] }
 0x415   : > { %v12041_v30 = vor.u32 %v13624_v26, %v12038_v4  ;;  %v12347_v26 = vld [vmem:[%s17839_s5 + $0x2b0] sm:$0xf0] }
 0x416   : > { %v7272_v16 = vrot.slane %v11968_v23, 5  ;;  %v12114_v61 = vunpack.i.l.s16 %v7584_v38  ;;  %v7631_v22 = vrot.slane %v11968_v23, 6  ;;  %v12377_v23 = vld [vmem:[%s17839_s5 + $0x2e0] sm:$0xf]  ;;  %v13766_v38 = vld [vmem:[%s17839_s5 + $0x2ec] sm:$0xf0] }
 0x417   : > { %v6666_v62 = vpop.f32.mrf.mxu3 }
 0x418   : > { %v7273_v46 = vsel %vm1417_vm3, %v7272_v16, %v16196_v35  ;;  %v7632_v45 = vsel %vm1415_vm2, %v7631_v22, %v7630_v63  ;;  %v7633_v56 = vrot.slane %v12114_v61, 5  ;;  %v12085_v35 = vor.u32 %v13637_v29, %v12084_v24 }
 0x419   : > { %v7275_v8 = vpack.c.b16 %v7273_v46, %v16179_v41  ;;  %v12378_v16 = vor.u32 %v13766_v38, %v12377_v23  ;;  %v12361_v46 = vld [vmem:[%s17839_s5 + $0x2c0] sm:$0xf] }
 0x41a   : > { %v7634_v17 = vsel %vm1417_vm3, %v7633_v56, %v7632_v45  ;;  %7531 = vmatpush.bf16.msrb.mxu0 %v12085_v35  ;;  %v13762_v45 = vld [vmem:[%s17839_s5 + $0x2cc] sm:$0xf0]  ;;  %v12345_v35 = vld [vmem:[%s17839_s5 + $0x2a0] sm:$0xf] }
 0x41b   : > { %7371 = vmatmul.bf16.gmra.mxu0 %v7275_v8  ;;  %v7636_v41 = vpack.c.b16 %v7634_v17, %v16186_v43  ;;  %v13631_v43 = vld [vmem:[%s17838_s4 + $0x34] sm:$0xf0]  ;;  %8399 = vmatpush.bf16.msrb.mxu3 %v12378_v16  ;;  %v12362_v56 = vor.u32 %v13762_v45, %v12361_v46  ;;  %v12457_v23 = vld [vmem:[%s17839_s5 + $0x380] sm:$0xf]  ;;  %s9966_s4 = sshll.u32 (%p56_p0), %s17850_s16, 4  ;;  %s9967_s4 = int_to_ptr.hbm [resolvable:$true] %s9966_s4 }
 0x41c   : > { %v12061_v13 = vor.u32 %v13631_v43, %v12060_v25  ;;  %v12506_v25 = vor.u32 %v13798_v7, %v12505_v3  ;;  %v12379_v43 = vld [vmem:[%s17839_s5 + $0x2f0] sm:$0xf0] }
 0x41d   : > { %7732 = vmatmul.bf16.gmra.mxu1 %v7636_v41  ;;  %7750 = vmatmul.bf16.gmra.mxu2 %v7636_v41  ;;  %v12346_v41 = vor.u32 %v13758_v11, %v12345_v35 }
 0x41e   : > { %7532 = vmatpush.bf16.msrb.mxu0 %v12077_v1 }
 0x41f   : > { %8400 = vmatpush.bf16.msrb.mxu3 %v12362_v56  ;;  %v13784_v56 = vld [vmem:[%s17839_s5 + $0x384] sm:$0xf] }
 0x422   : > { %7533 = vmatpush.bf16.msrb.mxu0 %v12069_v18  ;;  %v13764_v18 = vld [vmem:[%s17839_s5 + $0x2e4] sm:$0xf] }
 0x423   : > { %8401 = vmatpush.bf16.msrb.mxu3 %v12346_v41  ;;  %v12382_v10 = vor.u32 %v13764_v18, %v12379_v43  ;;  %v16499_v18 = vperm.slane %v7773_v34, 1 }
 0x425   : > { %8425 = vmatpush.bf16.msra.mxu1 %v12382_v10 }
 0x426   : > { %7534 = vmatpush.bf16.msrb.mxu0 %v12061_v13  ;;  %v13796_v13 = vld [vmem:[%s17839_s5 + $0x3e4] sm:$0xf] }
 0x427   : > { %8402 = vmatpush.bf16.msrb.mxu3 %v12330_v15  ;;  %v12427_v15 = vld [vmem:[%s17839_s5 + $0x350] sm:$0xf0] }
 0x42a   : > { %7535 = vmatpush.bf16.msrb.mxu0 %v12053_v44  ;;  %v7367_v27 = vpop.f32.mrf.mxu0  ;;  %v12510_v44 = vor.u32 %v13796_v13, %v12507_v58 }
 0x42b   : > { %7384 = vmatmul.bf16.vlgmr.msra.gmra.mxu0 %v16095_v12  ;;  %v12037_v12 = vor.u32 %v13625_v54, %v12036_v53  ;;  %v12490_v53 = vor.u32 %v13794_v39, %v12489_v20  ;;  %v12363_v54 = vld [vmem:[%s17839_s5 + $0x2d0] sm:$0xf0] }
 0x42c   : > { %8438 = vmatpush.bf16.msra.mxu2 %v12510_v44  ;;  %v13782_v44 = vld [vmem:[%s17839_s5 + $0x36c] sm:$0xf0]  ;;  %v12315_v20 = vld [vmem:[%s17839_s5 + $0x270] sm:$0xf0] }
 0x42e   : > { %7536 = vmatpush.bf16.msrb.mxu0 %v12045_v36  ;;  %v13760_v36 = vld [vmem:[%s17839_s5 + $0x2c4] sm:$0xf] }
 0x431   : > { %v7728_v49 = vpop.f32.mrf.mxu1 }
 0x432   : > { %7537 = vmatpush.bf16.msrb.mxu0 %v12037_v12  ;;  %v16368_v57 = vpop.f32.mrf.mxu0  ;;  %v12366_v12 = vor.u32 %v13760_v36, %v12363_v54  ;;  %v13780_v54 = vld [vmem:[%s17839_s5 + $0x364] sm:$0xf] }
 0x434   : > { %8426 = vmatpush.bf16.msra.mxu1 %v12366_v12 }
 0x436   : > { %7548 = vmatpush.bf16.msra.mxu0 %v12097_v28  ;;  %v12494_v28 = vor.u32 %v13792_v42, %v12491_v32  ;;  %v12443_v42 = vld [vmem:[%s17839_s5 + $0x370] sm:$0xf0]  ;;  %v12297_v32 = vld [vmem:[%s17839_s5 + $0x240] sm:$0xf] }
 0x437   : > { %v16366_v19 = vpop.f32.mrf.mxu2 }
 0x438   : > { %8439 = vmatpush.bf16.msra.mxu2 %v12494_v28 }
 0x439   : > { %v16376_v61 = vpop.f32.mrf.mxu1 }
 0x43a   : > { %7549 = vmatpush.bf16.msra.mxu0 %v12089_v6 }
 0x43b   : > { %7389 = vmatmul.bf16.gmra.mxu0 %v7275_v8 }
 0x43e   : > { %7550 = vmatpush.bf16.msra.mxu0 %v12081_v21 }
 0x442   : > { %7551 = vmatpush.bf16.msra.mxu0 %v12073_v9 }
 0x446   : > { %7552 = vmatpush.bf16.msra.mxu0 %v12065_v2  ;;  %v16446_v2 = vperm.slane %v7773_v34, 0  ;;  %v12299_v34 = vld [vmem:[%s17839_s5 + $0x250] sm:$0xf0] }
 0x44a   : > { %7553 = vmatpush.bf16.msra.mxu0 %v12057_v50  ;;  %v12473_v50 = vld [vmem:[%s17839_s5 + $0x3a0] sm:$0xf] }
 0x44b   : > { %7538 = vmatmul.bf16.vlgmr.msrb.gmra.mxu0 %v16157_v31  ;;  %v12474_v4 = vor.u32 %v13790_v60, %v12473_v50  ;;  %v13776_v50 = vld [vmem:[%s17839_s5 + $0x344] sm:$0xf] }
 0x44c   : > { %v12430_v60 = vor.u32 %v13776_v50, %v12427_v15 }
 0x44e   : > { %7554 = vmatpush.bf16.msra.mxu0 %v12049_v14  ;;  %v13756_v14 = vld [vmem:[%s17839_s5 + $0x2a4] sm:$0xf] }
 0x452   : > { %7555 = vmatpush.bf16.msra.mxu0 %v12041_v30  ;;  %v12350_v30 = vor.u32 %v13756_v14, %v12347_v26  ;;  %v12281_v14 = vld [vmem:[%s17839_s5 + $0x220] sm:$0xf] }
 0x453   : > { %v12409_v26 = vld [vmem:[%s17839_s5 + $0x320] sm:$0xf] }
 0x454   : > { %8427 = vmatpush.bf16.msra.mxu1 %v12350_v30 }
 0x456   : > { %8412 = vmatpush.bf16.msrb.mxu0 %v12506_v25 }
 0x45a   : > { %8413 = vmatpush.bf16.msrb.mxu0 %v12490_v53 }
 0x45b   : > { %7543 = vmatmul.bf16.gmra.mxu0 %v16215_v52 }
 0x45e   : > { %8414 = vmatpush.bf16.msrb.mxu0 %v12474_v4 }
 0x46b   : > { %7556 = vmatmul.bf16.vlgmr.msra.gmra.mxu0 %v16157_v31  ;;  %v16378_v31 = vpop.f32.mrf.mxu2 }
 0x47b   : > { %7561 = vmatmul.bf16.gmra.mxu0 %v16215_v52 }
 0x498   : > { %v7372_v52 = vpop.f32.mrf.mxu0 }
 0x49a   : > { %v7733_v22 = vpop.f32.mrf.mxu1 }
 0x4a0   : > { %v7374_v62 = vpop.f32.mrf.mxu0  ;;  %v16380_v63 = vpop.f32.mrf.mxu2 }
 0x4a1   : > { %v12331_v62 = vld [vmem:[%s17839_s5 + $0x290] sm:$0xf0] }
 0x4a2   : > { %v7735_v8 = vpop.f32.mrf.mxu1 }
 0x4a3   : > { %v12459_v8 = vld [vmem:[%s17839_s5 + $0x390] sm:$0xf0] }
 0x4a8   : > { %v16388_v24 = vpop.f32.mrf.mxu0  ;;  %v7753_v29 = vpop.f32.mrf.mxu2 }
 0x4a9   : > { %v12462_v29 = vor.u32 %v13784_v56, %v12459_v8 }
 0x4b0   : > { %v16390_v48 = vpop.f32.mrf.mxu0 }
 0x4b8   : > { %v16392_v17 = vpop.f32.mrf.mxu0 }
 0x4c0   : > { %v7392_v1 = vpop.f32.mrf.mxu0 }
 0x4c1   : > { %v16495_v1 = vperm.slane %v7761_v40, 1  ;;  %v13778_v40 = vld [vmem:[%s17839_s5 + $0x34c] sm:$0xf0] }
 0x4c8   : > { %v7539_v0 = vpop.f32.mrf.mxu0 }
 0x4c9   : > { %v7540_v21 = vadd.f32 %v7539_v0, %v7367_v27  ;;  %v13788_v27 = vld [vmem:[%s17839_s5 + $0x3a4] sm:$0xf]  ;;  %v12446_v0 = vor.u32 %v13780_v54, %v12443_v42  ;;  %v13767_v42 = vld [vmem:[%s17839_s5 + $0x2f4] sm:$0xf0] }
 0x4cb   : > { %v7755_v33 = vadd.f32 %v7728_v49, %v7540_v21  ;;  %v12475_v49 = vld [vmem:[%s17839_s5 + $0x3b0] sm:$0xf0] }
 0x4cc   : > { %v12478_v16 = vor.u32 %v13788_v27, %v12475_v49  ;;  %v13774_v49 = vld [vmem:[%s17839_s5 + $0x32c] sm:$0xf0] }
 0x4cd   : > { %v7767_v38 = vmul.f32 %v16444_v51, %v7755_v33 }
 0x4ce   : > { %8440 = vmatpush.bf16.msra.mxu2 %v12478_v16 }
 0x4cf   : > { %v16492_v11 = vadd.f32 %v16446_v2, %v7767_v38  ;;  %v12283_v38 = vld [vmem:[%s17839_s5 + $0x230] sm:$0xf0] }
 0x4d0   : > { %v7541_v59 = vpop.f32.mrf.mxu0 }
 0x4d1   : > { %v7542_v3 = vadd.f32 %v7541_v59, %v16368_v57  ;;  %v7785_v25 = vmax.f32 %v16492_v11, 0.0  ;;  %v13750_v57 = vld [vmem:[%s17839_s5 + $0x26c] sm:$0xf0] }
 0x4d2   : > { %8441 = vmatpush.bf16.msra.mxu2 %v12462_v29  ;;  %v13746_v59 = vld [vmem:[%s17839_s5 + $0x24c] sm:$0xf0]  ;;  %v12265_v29 = vld [vmem:[%s17839_s5 + $0x200] sm:$0xf] }
 0x4d3   : > { %v7757_v13 = vadd.f32 %v16376_v61, %v7542_v3  ;;  %v13748_v61 = vld [vmem:[%s17839_s5 + $0x264] sm:$0xf]  ;;  %v12298_v21 = vor.u32 %v13746_v59, %v12297_v32  ;;  %v12513_v32 = vld [vmem:[%s17839_s5 + $0x3e8] sm:$0xf] }
 0x4d4   : > { %v12318_v53 = vor.u32 %v13748_v61, %v12315_v20  ;;  %v12395_v20 = vld [vmem:[%s17839_s5 + $0x310] sm:$0xf0] }
 0x4d6   : > { %8442 = vmatpush.bf16.msra.mxu2 %v12446_v0  ;;  %v13799_v0 = vld [vmem:[%s17839_s5 + $0x3f4] sm:$0xf0] }
 0x4d8   : > { %v7544_v6 = vpop.f32.mrf.mxu0 }
 0x4d9   : > { %v7545_v37 = vadd.f32 %v7544_v6, %v7372_v52  ;;  %v13786_v52 = vld [vmem:[%s17839_s5 + $0x38c] sm:$0xf0]  ;;  %v12425_v6 = vld [vmem:[%s17839_s5 + $0x340] sm:$0xf] }
 0x4da   : > { %v12458_v46 = vor.u32 %v13786_v52, %v12457_v23  ;;  %v12426_v55 = vor.u32 %v13778_v40, %v12425_v6  ;;  %v13740_v23 = vld [vmem:[%s17839_s5 + $0x224] sm:$0xf]  ;;  %v12410_v52 = vor.u32 %v13774_v49, %v12409_v26  ;;  %8443 = vmatpush.bf16.msra.mxu2 %v12430_v60  ;;  %v13797_v40 = vld [vmem:[%s17839_s5 + $0x3ec] sm:$0xf]  ;;  %v13763_v60 = vld [vmem:[%s17839_s5 + $0x2d4] sm:$0xf0] }
 0x4db   : > { %v16436_v47 = vadd.f32 %v7733_v22, %v7545_v37  ;;  %v13752_v22 = vld [vmem:[%s17839_s5 + $0x284] sm:$0xf]  ;;  %v7769_v37 = vmul.f32 %v16444_v51, %v7757_v13  ;;  %v13770_v13 = vld [vmem:[%s17839_s5 + $0x30c] sm:$0xf0] }
 0x4dc   : > { %v12334_v45 = vor.u32 %v13752_v22, %v12331_v62  ;;  %8415 = vmatpush.bf16.msrb.mxu0 %v12458_v46  ;;  %v12286_v22 = vor.u32 %v13740_v23, %v12283_v38  ;;  %v13772_v62 = vld [vmem:[%s17839_s5 + $0x324] sm:$0xf]  ;;  %v12411_v46 = vld [vmem:[%s17839_s5 + $0x330] sm:$0xf0]  ;;  %v13761_v38 = vld [vmem:[%s17839_s5 + $0x2cc] sm:$0xf] }
 0x4dd   : > { %v12414_v8 = vor.u32 %v13772_v62, %v12411_v46  ;;  %v7771_v3 = vmul.f32 %v16444_v51, %v16436_v47  ;;  %v13768_v47 = vld [vmem:[%s17839_s5 + $0x304] sm:$0xf]  ;;  %v13793_v62 = vld [vmem:[%s17839_s5 + $0x3cc] sm:$0xf]  ;;  %v12499_v46 = vld [vmem:[%s17839_s5 + $0x3d8] sm:$0xf0] }
 0x4de   : > { %8428 = vmatpush.bf16.msra.mxu1 %v12334_v45  ;;  %v7781_v45 = vadd.f32 %v16446_v2, %v7769_v37  ;;  %v12398_v54 = vor.u32 %v13768_v47, %v12395_v20  ;;  %v13789_v47 = vld [vmem:[%s17839_s5 + $0x3ac] sm:$0xf] }
 0x4df   : > { %8444 = vmatpush.bf16.msra.mxu2 %v12414_v8 }
 0x4e0   : > { %v7546_v9 = vpop.f32.mrf.mxu0 }
 0x4e2   : > { %8429 = vmatpush.bf16.msra.mxu1 %v12318_v53 }
 0x4e3   : > { %8445 = vmatpush.bf16.msra.mxu2 %v12398_v54 }
 0x4e8   : > { %v7557_v35 = vpop.f32.mrf.mxu0 }
 0x4e9   : > { %v7558_v41 = vadd.f32 %v7557_v35, %v16388_v24  ;;  %v12313_v24 = vld [vmem:[%s17839_s5 + $0x260] sm:$0xf]  ;;  %v13738_v35 = vld [vmem:[%s17839_s5 + $0x20c] sm:$0xf0] }
 0x4ea   : > { %v12314_v10 = vor.u32 %v13750_v57, %v12313_v24  ;;  %v13736_v24 = vld [vmem:[%s17839_s5 + $0x204] sm:$0xf] }
 0x4eb   : > { %v7756_v7 = vadd.f32 %v16366_v19, %v7558_v41  ;;  %v12441_v19 = vld [vmem:[%s17839_s5 + $0x360] sm:$0xf] }
 0x4ec   : > { %v12442_v36 = vor.u32 %v13782_v44, %v12441_v19  ;;  %8403 = vmatpush.bf16.msrb.mxu3 %v12314_v10  ;;  %v12393_v41 = vld [vmem:[%s17839_s5 + $0x300] sm:$0xf]  ;;  %v12267_v10 = vld [vmem:[%s17839_s5 + $0x210] sm:$0xf0] }
 0x4ed   : > { %v7768_v43 = vmul.f32 %v16495_v1, %v7756_v7  ;;  %v12394_v44 = vor.u32 %v13770_v13, %v12393_v41  ;;  %v12270_v61 = vor.u32 %v13736_v24, %v12267_v10  ;;  %v13759_v41 = vld [vmem:[%s17839_s5 + $0x2b4] sm:$0xf0]  ;;  %v13757_v24 = vld [vmem:[%s17839_s5 + $0x2ac] sm:$0xf]  ;;  %v12355_v10 = vld [vmem:[%s17839_s5 + $0x2b8] sm:$0xf0] }
 0x4ee   : > { %8416 = vmatpush.bf16.msrb.mxu0 %v12442_v36  ;;  %v13791_v13 = vld [vmem:[%s17839_s5 + $0x3b4] sm:$0xf0] }
 0x4ef   : > { %v7780_v58 = vadd.f32 %v16499_v18, %v7768_v43 }
 0x4f0   : > { %v7559_v39 = vpop.f32.mrf.mxu0  ;;  %8404 = vmatpush.bf16.msrb.mxu3 %v12298_v21  ;;  %v12514_v21 = vor.u32 %v13799_v0, %v12513_v32 }
 0x4f1   : > { %v7786_v12 = vmax.f32 %v7780_v58, 0.0  ;;  %v7560_v28 = vadd.f32 %v7559_v39, %v16390_v48  ;;  %v13744_v48 = vld [vmem:[%s17839_s5 + $0x244] sm:$0xf]  ;;  %v12266_v58 = vor.u32 %v13738_v35, %v12265_v29  ;;  %v7787_v39 = vmax.f32 %v7781_v45, 0.0  ;;  %v12353_v45 = vld [vmem:[%s17839_s5 + $0x2a8] sm:$0xf] }
 0x4f2   : > { %v12302_v5 = vor.u32 %v13744_v48, %v12299_v34  ;;  %8417 = vmatpush.bf16.msrb.mxu0 %v12426_v55  ;;  %v12515_v48 = vld [vmem:[%s17839_s5 + $0x3f8] sm:$0xf0]  ;;  %v12502_v35 = vor.u32 %v13793_v62, %v12499_v46  ;;  %v13747_v62 = vld [vmem:[%s17839_s5 + $0x254] sm:$0xf0] }
 0x4f3   : > { %v16549_v9 = vrot.slane %v7786_v12, 4  ;;  %v7758_v33 = vadd.f32 %v16378_v31, %v7560_v28  ;;  %v13742_v31 = vld [vmem:[%s17839_s5 + $0x22c] sm:$0xf0]  ;;  %v7783_v12 = vadd.f32 %v16446_v2, %v7771_v3  ;;  %v12387_v2 = vld [vmem:[%s17839_s5 + $0x2f8] sm:$0xf0]  ;;  %v12518_v15 = vor.u32 %v13797_v40, %v12515_v48 }
 0x4f4   : > { %v12282_v27 = vor.u32 %v13742_v31, %v12281_v14  ;;  %8430 = vmatpush.bf16.msra.mxu1 %v12302_v5  ;;  %v12497_v14 = vld [vmem:[%s17839_s5 + $0x3c8] sm:$0xf]  ;;  %v12339_v40 = vld [vmem:[%s17839_s5 + $0x298] sm:$0xf0]  ;;  %v13785_v48 = vld [vmem:[%s17839_s5 + $0x38c] sm:$0xf] }
 0x4f5   : > { %v7802_v4 = vsel %vm7800_vm8, %v16549_v9, %v7785_v25  ;;  %v7770_v30 = vmul.f32 %v16495_v1, %v7758_v33  ;;  %v7789_v31 = vmax.f32 %v7783_v12, 0.0  ;;  %8490 = vmatpush.bf16.msrb.mxu2 %v12518_v15  ;;  %v12481_v3 = vld [vmem:[%s17839_s5 + $0x3a8] sm:$0xf]  ;;  %v13751_v15 = vld [vmem:[%s17839_s5 + $0x274] sm:$0xf0] }
 0x4f6   : > { %v7803_v16 = vrot.slane %v7802_v4, 4  ;;  %8405 = vmatpush.bf16.msrb.mxu3 %v12282_v27  ;;  %8418 = vmatpush.bf16.msrb.mxu0 %v12410_v52  ;;  %v12465_v12 = vld [vmem:[%s17839_s5 + $0x388] sm:$0xf] }
 0x4f7   : > { %v7782_v56 = vadd.f32 %v16499_v18, %v7770_v30 }
 0x4f8   : > { %v12180_v7 = vrot.slane %v7803_v16, 9  ;;  %v7562_v43 = vpop.f32.mrf.mxu0  ;;  %8431 = vmatpush.bf16.msra.mxu1 %v12286_v22 }
 0x4f9   : > { %v7788_v57 = vmax.f32 %v7782_v56, 0.0  ;;  %v7563_v19 = vadd.f32 %v7562_v43, %v16392_v17  ;;  %v12385_v17 = vld [vmem:[%s17839_s5 + $0x2e8] sm:$0xf]  ;;  %v12354_v43 = vor.u32 %v13759_v41, %v12353_v45  ;;  %8491 = vmatpush.bf16.msrb.mxu2 %v12502_v35 }
 0x4fa   : > { %v7835_v51 = vmax.f32 %v7803_v16, %v12180_v7  ;;  %v12386_v28 = vor.u32 %v13767_v42, %v12385_v17  ;;  %8406 = vmatpush.bf16.msrb.mxu3 %v12266_v58  ;;  %8419 = vmatpush.bf16.msrb.mxu0 %v12394_v44  ;;  %v12371_v16 = vld [vmem:[%s17839_s5 + $0x2d8] sm:$0xf0]  ;;  %v12482_v17 = vor.u32 %v13791_v13, %v12481_v3  ;;  %v13745_v3 = vld [vmem:[%s17839_s5 + $0x24c] sm:$0xf] }
 0x4fb   : > { %v7798_v36 = vrot.slane %v7788_v57, 4  ;;  %v7760_v53 = vadd.f32 %v16380_v63, %v7563_v19  ;;  %v13765_v63 = vld [vmem:[%s17839_s5 + $0x2ec] sm:$0xf]  ;;  %v12374_v29 = vor.u32 %v13761_v38, %v12371_v16  ;;  %v12358_v42 = vor.u32 %v13757_v24, %v12355_v10 }
 0x4fc   : > { %v12186_v34 = vrot.slane %v7835_v51, 10  ;;  %8432 = vmatpush.bf16.msra.mxu1 %v12270_v61  ;;  %v12390_v50 = vor.u32 %v13765_v63, %v12387_v2  ;;  %v13777_v24 = vld [vmem:[%s17839_s5 + $0x34c] sm:$0xf] }
 0x4fd   : > { %v7804_v59 = vsel %vm7800_vm8, %v7787_v39, %v7798_v36  ;;  %v7805_v6 = vsel %vm7800_vm8, %v7798_v36, %v7787_v39  ;;  %v7772_v37 = vmul.f32 %v16495_v1, %v7760_v53  ;;  %v12369_v1 = vld [vmem:[%s17839_s5 + $0x2c8] sm:$0xf]  ;;  %v13755_v36 = vld [vmem:[%s17839_s5 + $0x294] sm:$0xf0] }
 0x4fe   : > { %v7806_v33 = vrot.slane %v7805_v6, 4  ;;  %v12181_v55 = vrot.slane %v7804_v59, 9  ;;  %8451 = vmatpush.bf16.msra.mxu3 %v12386_v28  ;;  %8464 = vmatpush.bf16.msra.mxu0 %v12514_v21  ;;  %v12370_v49 = vor.u32 %v13763_v60, %v12369_v1  ;;  %v16664_v52 = vmax.f32 %v7835_v51, %v12186_v34  ;;  %v12483_v51 = vld [vmem:[%s17839_s5 + $0x3b8] sm:$0xf0]  ;;  %v12337_v39 = vld [vmem:[%s17839_s5 + $0x288] sm:$0xf] }
 0x4ff   : > { %v7784_v5 = vadd.f32 %v16499_v18, %v7772_v37  ;;  %v13795_v18 = vld [vmem:[%s17839_s5 + $0x3d4] sm:$0xf0]  ;;  %v12486_v32 = vor.u32 %v13789_v47, %v12483_v51  ;;  %v13753_v37 = vld [vmem:[%s17839_s5 + $0x28c] sm:$0xf]  ;;  %v12338_v21 = vor.u32 %v13755_v36, %v12337_v39  ;;  %v12467_v34 = vld [vmem:[%s17839_s5 + $0x398] sm:$0xf0] }
 0x500   : > { %v12182_v26 = vrot.slane %v7806_v33, 9  ;;  %v7564_v4 = vpop.f32.mrf.mxu0  ;;  %v7836_v30 = vmax.f32 %v7804_v59, %v12181_v55  ;;  %8477 = vmatpush.bf16.msrb.mxu1 %v12390_v50  ;;  %v12498_v23 = vor.u32 %v13795_v18, %v12497_v14  ;;  %v7878_v44 = vperm.slane %v16664_v52, 0  ;;  %v13787_v28 = vld [vmem:[%s17839_s5 + $0x394] sm:$0xf0]  ;;  %v12321_v50 = vld [vmem:[%s17839_s5 + $0x268] sm:$0xf] }
 0x501   : > { %v7790_v27 = vmax.f32 %v7784_v5, 0.0  ;;  %v7879_v0 = vperm.slane %v16664_v52, 4  ;;  %8492 = vmatpush.bf16.msrb.mxu2 %v12486_v32  ;;  %v12466_v2 = vor.u32 %v13787_v28, %v12465_v12  ;;  %v12342_v5 = vor.u32 %v13753_v37, %v12339_v40  ;;  %v13749_v4 = vld [vmem:[%s17839_s5 + $0x26c] sm:$0xf]  ;;  %v12451_v52 = vld [vmem:[%s17839_s5 + $0x378] sm:$0xf0] }
 0x502   : > { %v7837_v22 = vmax.f32 %v7806_v33, %v12182_v26  ;;  %v12187_v56 = vrot.slane %v7836_v30, 10  ;;  %8452 = vmatpush.bf16.msra.mxu3 %v12370_v49  ;;  %8465 = vmatpush.bf16.msra.mxu0 %v12498_v23  ;;  %v12470_v60 = vor.u32 %v13785_v48, %v12467_v34  ;;  %v12322_v14 = vor.u32 %v13751_v15, %v12321_v50  ;;  %v13783_v26 = vld [vmem:[%s17839_s5 + $0x374] sm:$0xf0]  ;;  %v13781_v49 = vld [vmem:[%s17839_s5 + $0x36c] sm:$0xf] }
 0x503   : > { %v7799_v8 = vrot.slane %v7790_v27, 4  ;;  %v16741_v18 = vpack.c.bf16 %v7879_v0, %v7878_v44  ;;  %v12323_v27 = vld [vmem:[%s17839_s5 + $0x278] sm:$0xf0]  ;;  %v7801_v23 = vsel %vm7800_vm8, %v7785_v25, %v16549_v9  ;;  %v12433_v9 = vld [vmem:[%s17839_s5 + $0x348] sm:$0xf]  ;;  %v12454_v35 = vor.u32 %v13781_v49, %v12451_v52 }
 0x504   : > { %v12188_v7 = vrot.slane %v7837_v22, 10  ;;  %v7866_v57 = vmax.f32 %v7836_v30, %v12187_v56  ;;  %8478 = vmatpush.bf16.msrb.mxu1 %v12374_v29  ;;  %v12326_v16 = vor.u32 %v13749_v4, %v12323_v27  ;;  %v13779_v56 = vld [vmem:[%s17839_s5 + $0x354] sm:$0xf0]  ;;  %v12289_v44 = vld [vmem:[%s17839_s5 + $0x228] sm:$0xf] }
 0x505   : > { %v7807_v19 = vsel %vm7800_vm8, %v7789_v31, %v7799_v8  ;;  %v16689_v58 = vsel %vm7800_vm8, %v7799_v8, %v7789_v31  ;;  %v12449_v31 = vld [vmem:[%s17839_s5 + $0x368] sm:$0xf]  ;;  %8493 = vmatpush.bf16.msrb.mxu2 %v12470_v60  ;;  %v12434_v13 = vor.u32 %v13779_v56, %v12433_v9  ;;  %v8040_v32 = vunpack.c.h.b16 %v16741_v18  ;;  %v13773_v0 = vld [vmem:[%s17839_s5 + $0x32c] sm:$0xf]  ;;  %v13739_v40 = vld [vmem:[%s17839_s5 + $0x214] sm:$0xf0] }
 0x506   : > { %v7867_v61 = vmax.f32 %v7837_v22, %v12188_v7  ;;  %v12183_v20 = vrot.slane %v7807_v19, 9  ;;  %v7880_v53 = vperm.slane %v7866_v57, 0  ;;  %v7881_v54 = vperm.slane %v7866_v57, 4  ;;  %8453 = vmatpush.bf16.msra.mxu3 %v12354_v43  ;;  %8466 = vmatpush.bf16.msra.mxu0 %v12482_v17  ;;  %v12305_v22 = vld [vmem:[%s17839_s5 + $0x248] sm:$0xf] }
 0x507   : > { %v12450_v38 = vor.u32 %v13783_v26, %v12449_v31  ;;  %v12306_v41 = vor.u32 %v13747_v62, %v12305_v22  ;;  %v12307_v7 = vld [vmem:[%s17839_s5 + $0x258] sm:$0xf0]  ;;  %v12179_v43 = vrot.slane %v7801_v23, 9  ;;  %v12401_v48 = vld [vmem:[%s17839_s5 + $0x308] sm:$0xf] }
 0x508   : > { %v7882_v63 = vperm.slane %v7867_v61, 0  ;;  %v7883_v59 = vperm.slane %v7867_v61, 4  ;;  %v7838_v6 = vmax.f32 %v7807_v19, %v12183_v20  ;;  %8479 = vmatpush.bf16.msrb.mxu1 %v12358_v42  ;;  %v7902_v33 = vpack.c.bf16 %v7881_v54, %v7880_v53  ;;  %v12435_v57 = vld [vmem:[%s17839_s5 + $0x358] sm:$0xf0]  ;;  %v13743_v61 = vld [vmem:[%s17839_s5 + $0x234] sm:$0xf0] }
 0x509   : > { %v8039_v19 = vunpack.c.l.b16 %v16741_v18  ;;  %8494 = vmatpush.bf16.msrb.mxu2 %v12454_v35  ;;  %v12310_v47 = vor.u32 %v13745_v3, %v12307_v7  ;;  %v12438_v51 = vor.u32 %v13777_v24, %v12435_v57  ;;  %v12417_v20 = vld [vmem:[%s17839_s5 + $0x328] sm:$0xf]  ;;  %v13775_v53 = vld [vmem:[%s17839_s5 + $0x334] sm:$0xf0]  ;;  %v13741_v54 = vld [vmem:[%s17839_s5 + $0x22c] sm:$0xf]  ;;  %v12290_v28 = vor.u32 %v13743_v61, %v12289_v44 }
 0x50a   : > { %v7903_v1 = vpack.c.bf16 %v7883_v59, %v7882_v63  ;;  %v12189_v55 = vrot.slane %v7838_v6, 10  ;;  %8454 = vmatpush.bf16.msra.mxu3 %v12338_v21  ;;  %8467 = vmatpush.bf16.msra.mxu0 %v12466_v2  ;;  %v8041_v46 = vunpack.c.l.b16 %v7902_v33  ;;  %v8042_v11 = vunpack.c.h.b16 %v7902_v33  ;;  %v12291_v42 = vld [vmem:[%s17839_s5 + $0x238] sm:$0xf0]  ;;  %v12273_v59 = vld [vmem:[%s17839_s5 + $0x208] sm:$0xf] }
 0x50b   : > { %v12419_v63 = vld [vmem:[%s17839_s5 + $0x338] sm:$0xf0]  ;;  %v16817_v21 = vmax.f32 %v7801_v23, %v12179_v43  ;;  %v12418_v2 = vor.u32 %v13775_v53, %v12417_v20  ;;  %v13771_v34 = vld [vmem:[%s17839_s5 + $0x314] sm:$0xf0]  ;;  %v16828_v33 = vunpack.i.l.s16 %v8039_v19  ;;  %v13769_v15 = vld [vmem:[%s17839_s5 + $0x30c] sm:$0xf]  ;;  %v16848_v18 = vunpack.i.l.s16 %v8040_v32 }
 0x50c   : > { %v7868_v30 = vmax.f32 %v7838_v6, %v12189_v55  ;;  %8480 = vmatpush.bf16.msrb.mxu1 %v12342_v5  ;;  %v8043_v45 = vunpack.c.l.b16 %v7903_v1  ;;  %v8044_v8 = vunpack.c.h.b16 %v7903_v1  ;;  %v16790_v17 = vunpack.i.l.s16 %v8041_v46  ;;  %v13737_v5 = vld [vmem:[%s17839_s5 + $0x20c] sm:$0xf]  ;;  %v12275_v50 = vld [vmem:[%s17839_s5 + $0x218] sm:$0xf0]  ;;  %v12635_v46 = vld [vmem:[%s17839_s5 + $0xe0] sm:$0xf] }
 0x50d   : > { %v16792_v39 = vunpack.i.l.s16 %v8042_v11  ;;  %8495 = vmatpush.bf16.msrb.mxu2 %v12438_v51  ;;  %v12294_v1 = vor.u32 %v13741_v54, %v12291_v42  ;;  %v12422_v55 = vor.u32 %v13773_v0, %v12419_v63  ;;  %v12403_v31 = vld [vmem:[%s17839_s5 + $0x318] sm:$0xf0]  ;;  %v12274_v27 = vor.u32 %v13739_v40, %v12273_v59  ;;  %v13702_v11 = vld [vmem:[%s17839_s5 + $0xec] sm:$0xf0]  ;;  %v12763_v56 = vld [vmem:[%s17839_s5 + $0x1e0] sm:$0xf] }
 0x50e   : > { %v7884_v25 = vperm.slane %v7868_v30, 0  ;;  %v7885_v29 = vperm.slane %v7868_v30, 4  ;;  %8455 = vmatpush.bf16.msra.mxu3 %v12322_v14  ;;  %8468 = vmatpush.bf16.msra.mxu0 %v12450_v38  ;;  %v16794_v36 = vunpack.i.l.s16 %v8043_v45  ;;  %v16806_v12 = vunpack.i.l.s16 %v8044_v8  ;;  %v13734_v8 = vld [vmem:[%s17839_s5 + $0x1ec] sm:$0xf0]  ;;  %v12637_v3 = vld [vmem:[%s17839_s5 + $0xf0] sm:$0xf0] }
 0x50f   : > { %v8063_v26 = vrot.slane %v16790_v17, 7  ;;  %v8069_v30 = vrot.slane %v16792_v39, 7  ;;  %v12278_v52 = vor.u32 %v13737_v5, %v12275_v50  ;;  %v12406_v45 = vor.u32 %v13769_v15, %v12403_v31  ;;  %v13732_v7 = vld [vmem:[%s17839_s5 + $0x1e4] sm:$0xf]  ;;  %v12765_v43 = vld [vmem:[%s17839_s5 + $0x1f0] sm:$0xf0] }
 0x510   : > { %v7904_v10 = vpack.c.bf16 %v7885_v29, %v7884_v25  ;;  %8481 = vmatpush.bf16.msrb.mxu1 %v12326_v16  ;;  %v8065_v4 = vrot.slane %v16794_v36, 6  ;;  %v8071_v23 = vrot.slane %v16806_v12, 6  ;;  %v12402_v16 = vor.u32 %v13771_v34, %v12401_v48  ;;  %v13700_v29 = vld [vmem:[%s17839_s5 + $0xe4] sm:$0xf]  ;;  %v13698_v51 = vld [vmem:[%s17839_s5 + $0xcc] sm:$0xf0] }
 0x511   : > { %v8064_v22 = vsel %vm1413_vm1, %v8063_v26, %v16828_v33  ;;  %v8070_v62 = vsel %vm1413_vm1, %v8069_v30, %v16848_v18  ;;  %8496 = vmatpush.bf16.msrb.mxu2 %v12422_v55  ;;  %v12636_v19 = vor.u32 %v13702_v11, %v12635_v46  ;;  %v12640_v44 = vor.u32 %v13700_v29, %v12637_v3  ;;  %v12747_v20 = vld [vmem:[%s17839_s5 + $0x1c0] sm:$0xf]  ;;  %v13730_v53 = vld [vmem:[%s17839_s5 + $0x1cc] sm:$0xf0]  ;;  %v13696_v54 = vld [vmem:[%s17839_s5 + $0xc4] sm:$0xf] }
 0x512   : > { %8456 = vmatpush.bf16.msra.mxu3 %v12306_v41  ;;  %v8045_v6 = vunpack.c.l.b16 %v7904_v10  ;;  %v8046_v37 = vunpack.c.h.b16 %v7904_v10  ;;  %8469 = vmatpush.bf16.msra.mxu0 %v12434_v13  ;;  %v8066_v25 = vsel %vm1415_vm2, %v8065_v4, %v8064_v22  ;;  %v8072_v9 = vsel %vm1415_vm2, %v8071_v23, %v8070_v62  ;;  %v12621_v42 = vld [vmem:[%s17839_s5 + $0xd0] sm:$0xf0]  ;;  %v13728_v32 = vld [vmem:[%s17839_s5 + $0x1c4] sm:$0xf]  ;;  %v12731_v40 = vld [vmem:[%s17839_s5 + $0x1a0] sm:$0xf] }
 0x513   : > { %v12185_v13 = vrot.slane %v16817_v21, 10  ;;  %v12764_v10 = vor.u32 %v13734_v8, %v12763_v56  ;;  %v12768_v61 = vor.u32 %v13732_v7, %v12765_v43  ;;  %v12748_v59 = vor.u32 %v13730_v53, %v12747_v20  ;;  %v13726_v48 = vld [vmem:[%s17839_s5 + $0x1ac] sm:$0xf0]  ;;  %v13692_v34 = vld [vmem:[%s17839_s5 + $0xa4] sm:$0xf] }
 0x514   : > { %8482 = vmatpush.bf16.msrb.mxu1 %v12310_v47  ;;  %v16839_v60 = vunpack.i.l.s16 %v8045_v6  ;;  %v16841_v14 = vunpack.i.l.s16 %v8046_v37  ;;  %v12619_v47 = vld [vmem:[%s17839_s5 + $0xc0] sm:$0xf]  ;;  %v13694_v37 = vld [vmem:[%s17839_s5 + $0xac] sm:$0xf0]  ;;  %v13724_v55 = vld [vmem:[%s17839_s5 + $0x1a4] sm:$0xf]  ;;  %v12732_v26 = vor.u32 %v13726_v48, %v12731_v40 }
 0x515   : > { %8497 = vmatpush.bf16.msrb.mxu2 %v12406_v45  ;;  %v7864_v0 = vmax.f32 %v16817_v21, %v12185_v13  ;;  %v12620_v63 = vor.u32 %v13698_v51, %v12619_v47  ;;  %v12603_v6 = vld [vmem:[%s17839_s5 + $0xa0] sm:$0xf]  ;;  %v12733_v5 = vld [vmem:[%s17839_s5 + $0x1b0] sm:$0xf0]  ;;  %v13690_v30 = vld [vmem:[%s17839_s5 + $0x8c] sm:$0xf0] }
 0x516   : > { %8457 = vmatpush.bf16.msra.mxu3 %v12290_v28  ;;  %v8067_v49 = vrot.slane %v16839_v60, 5  ;;  %v8073_v38 = vrot.slane %v16841_v14, 5  ;;  %8470 = vmatpush.bf16.msra.mxu0 %v12418_v2  ;;  %v12749_v28 = vld [vmem:[%s17839_s5 + $0x1d0] sm:$0xf0]  ;;  %v12624_v2 = vor.u32 %v13696_v54, %v12621_v42  ;;  %v12604_v31 = vor.u32 %v13694_v37, %v12603_v6  ;;  %v12587_v4 = vld [vmem:[%s17839_s5 + $0x80] sm:$0xf] }
 0x517   : > { %v12752_v21 = vor.u32 %v13728_v32, %v12749_v28  ;;  %v7876_v50 = vperm.slane %v7864_v0, 0  ;;  %v7877_v15 = vperm.slane %v7864_v0, 4  ;;  %v12715_v23 = vld [vmem:[%s17839_s5 + $0x180] sm:$0xf]  ;;  %v13720_v22 = vld [vmem:[%s17839_s5 + $0x184] sm:$0xf]  ;;  %v12588_v11 = vor.u32 %v13690_v30, %v12587_v4 }
 0x518   : > { %8483 = vmatpush.bf16.msrb.mxu1 %v12294_v1  ;;  %v8068_v35 = vsel %vm1417_vm3, %v8067_v49, %v8066_v25  ;;  %v8074_v41 = vsel %vm1417_vm3, %v8073_v38, %v8072_v9  ;;  %v12605_v1 = vld [vmem:[%s17839_s5 + $0xb0] sm:$0xf0]  ;;  %v12736_v49 = vor.u32 %v13724_v55, %v12733_v5  ;;  %v13722_v38 = vld [vmem:[%s17839_s5 + $0x18c] sm:$0xf0]  ;;  %v12571_v25 = vld [vmem:[%s17839_s5 + $0x60] sm:$0xf] }
 0x519   : > { %v16887_v24 = vpack.c.b16 %v8068_v35, %v8068_v35  ;;  %v16889_v57 = vpack.c.b16 %v8074_v41, %v8074_v41  ;;  %v12717_v62 = vld [vmem:[%s17839_s5 + $0x190] sm:$0xf0]  ;;  %v16968_v46 = vpack.c.bf16 %v7877_v15, %v7876_v50  ;;  %v12716_v45 = vor.u32 %v13722_v38, %v12715_v23  ;;  %v13686_v9 = vld [vmem:[%s17839_s5 + $0x6c] sm:$0xf0]  ;;  %v12699_v29 = vld [vmem:[%s17839_s5 + $0x160] sm:$0xf] }
 0x51a   : > { %8458 = vmatpush.bf16.msra.mxu3 %v12274_v27  ;;  %8471 = vmatpush.bf16.msra.mxu0 %v12402_v16  ;;  %v12608_v27 = vor.u32 %v13692_v34, %v12605_v1  ;;  %v13688_v16 = vld [vmem:[%s17839_s5 + $0x84] sm:$0xf]  ;;  %v12720_v8 = vor.u32 %v13720_v22, %v12717_v62  ;;  %v13718_v35 = vld [vmem:[%s17839_s5 + $0x16c] sm:$0xf0]  ;;  %v12573_v3 = vld [vmem:[%s17839_s5 + $0x70] sm:$0xf0] }
 0x51b   : > { %8407 = vmatmul.bf16.vlgmr.msrb.gmra.mxu3 %v16887_v24  ;;  %8420 = vmatmul.bf16.vlgmr.msrb.gmra.mxu0 %v16889_v57  ;;  %v13684_v41 = vld [vmem:[%s17839_s5 + $0x64] sm:$0xf]  ;;  %v12701_v43 = vld [vmem:[%s17839_s5 + $0x170] sm:$0xf0]  ;;  %v8504_v13 = vunpack.c.l.b16 %v16968_v46  ;;  %v12555_v47 = vld [vmem:[%s17839_s5 + $0x40] sm:$0xf] }
 0x51c   : > { %8484 = vmatpush.bf16.msrb.mxu1 %v12278_v52  ;;  %8446 = vmatmul.bf16.vlgmr.msra.gmra.mxu2 %v16889_v57  ;;  %v12589_v52 = vld [vmem:[%s17839_s5 + $0x90] sm:$0xf0]  ;;  %v13716_v7 = vld [vmem:[%s17839_s5 + $0x164] sm:$0xf]  ;;  %v13682_v51 = vld [vmem:[%s17839_s5 + $0x4c] sm:$0xf0] }
 0x51d   : > { %8433 = vmatmul.bf16.vlgmr.msra.gmra.mxu1 %v16887_v24  ;;  %8885 = vmatpush.bf16.msra.mxu2 %v12768_v61  ;;  %v12592_v56 = vor.u32 %v13688_v16, %v12589_v52  ;;  %v12704_v61 = vor.u32 %v13716_v7, %v12701_v43  ;;  %v12683_v20 = vld [vmem:[%s17839_s5 + $0x140] sm:$0xf]  ;;  %v13714_v53 = vld [vmem:[%s17839_s5 + $0x14c] sm:$0xf0]  ;;  %v13680_v54 = vld [vmem:[%s17839_s5 + $0x44] sm:$0xf] }
 0x51e   : > { %8846 = vmatpush.bf16.msrb.mxu3 %v12636_v19  ;;  %8859 = vmatpush.bf16.msrb.mxu0 %v12764_v10  ;;  %v12572_v19 = vor.u32 %v13686_v9, %v12571_v25  ;;  %v12700_v10 = vor.u32 %v13718_v35, %v12699_v29  ;;  %v12557_v42 = vld [vmem:[%s17839_s5 + $0x50] sm:$0xf0]  ;;  %v13712_v32 = vld [vmem:[%s17839_s5 + $0x144] sm:$0xf]  ;;  %v12539_v0 = vld [vmem:[%s17839_s5 + $0x20] sm:$0xf] }
 0x51f   : > { %v12685_v28 = vld [vmem:[%s17839_s5 + $0x150] sm:$0xf0]  ;;  %v8512_v6 = vrot.slane %v16790_v17, 6  ;;  %v7809_v37 = vrot.slane %v16689_v58, 4  ;;  %v8514_v40 = vrot.slane %v16794_v36, 5  ;;  %v12560_v48 = vor.u32 %v13680_v54, %v12557_v42 }
 0x520   : > { %8872 = vmatpush.bf16.msra.mxu1 %v12640_v44  ;;  %v12576_v44 = vor.u32 %v13684_v41, %v12573_v3  ;;  %v12688_v58 = vor.u32 %v13712_v32, %v12685_v28  ;;  %v13710_v34 = vld [vmem:[%s17839_s5 + $0x12c] sm:$0xf0]  ;;  %v13676_v1 = vld [vmem:[%s17839_s5 + $0x24] sm:$0xf]  ;;  %v12541_v55 = vld [vmem:[%s17839_s5 + $0x30] sm:$0xf0] }
 0x521   : > { %8886 = vmatpush.bf16.msra.mxu2 %v12752_v21  ;;  %v12684_v21 = vor.u32 %v13714_v53, %v12683_v20  ;;  %v13708_v50 = vld [vmem:[%s17839_s5 + $0x124] sm:$0xf]  ;;  %v12669_v15 = vld [vmem:[%s17839_s5 + $0x130] sm:$0xf0]  ;;  %v12523_v4 = vld [vmem:[%s17839_s5] sm:$0xf] }
 0x522   : > { %8847 = vmatpush.bf16.msrb.mxu3 %v12620_v63  ;;  %8860 = vmatpush.bf16.msrb.mxu0 %v12748_v59  ;;  %v12519_v63 = vunpack.i.l.s16 %v8504_v13  ;;  %v8510_v59 = vrot.slane %v16828_v33, 7  ;;  %v8505_v33 = vunpack.c.h.b16 %v16968_v46  ;;  %v13674_v30 = vld [vmem:[%s17839_s5 + $0xc] sm:$0xf0]  ;;  %v8516_v23 = vrot.slane %v16848_v18, 7  ;;  %v13672_v22 = vld [vmem:[%s17839_s5 + $0x4] sm:$0xf] }
 0x523   : > { %v12184_v38 = vrot.slane %v7809_v37, 9  ;;  %v13706_v52 = vld [vmem:[%s17839_s5 + $0x10c] sm:$0xf0]  ;;  %v8518_v62 = vrot.slane %v16792_v39, 6  ;;  %v12544_v46 = vor.u32 %v13676_v1, %v12541_v55  ;;  %v12525_v18 = vld [vmem:[%s17839_s5 + $0x10] sm:$0xf0]  ;;  %v12524_v13 = vor.u32 %v13674_v30, %v12523_v4 }
 0x524   : > { %8873 = vmatpush.bf16.msra.mxu1 %v12624_v2  ;;  %v12556_v2 = vor.u32 %v13682_v51, %v12555_v47  ;;  %v8511_v5 = vsel %vm1413_vm1, %v8510_v59, %v12519_v63  ;;  %v12653_v25 = vld [vmem:[%s17839_s5 + $0x110] sm:$0xf0]  ;;  %v12520_v9 = vunpack.i.l.s16 %v8505_v33  ;;  %v12771_v29 = vld [vmem:[%s17839_s5 + $0x1e8] sm:$0xf]  ;;  %v13735_v41 = vld [vmem:[%s17839_s5 + $0x1f4] sm:$0xf0] }
 0x525   : > { %8887 = vmatpush.bf16.msra.mxu2 %v12736_v49  ;;  %v13701_v3 = vld [vmem:[%s17839_s5 + $0xec] sm:$0xf]  ;;  %v8520_v43 = vrot.slane %v16806_v12, 5  ;;  %v12773_v47 = vld [vmem:[%s17839_s5 + $0x1f8] sm:$0xf0]  ;;  %v7839_v20 = vmax.f32 %v7809_v37, %v12184_v38  ;;  %v12772_v54 = vor.u32 %v13735_v41, %v12771_v29 }
 0x526   : > { %8848 = vmatpush.bf16.msrb.mxu3 %v12604_v31  ;;  %8861 = vmatpush.bf16.msrb.mxu0 %v12732_v26  ;;  %v8513_v31 = vsel %vm1415_vm2, %v8512_v6, %v8511_v5  ;;  %v9022_v26 = vrot.slane %v16794_v36, 7  ;;  %v8517_v7 = vsel %vm1413_vm1, %v8516_v23, %v12520_v9  ;;  %v12627_v42 = vld [vmem:[%s17839_s5 + $0xc8] sm:$0xf]  ;;  %v13699_v32 = vld [vmem:[%s17839_s5 + $0xd4] sm:$0xf0] }
 0x527   : > { %v8515_v49 = vsel %vm1417_vm3, %v8514_v40, %v8513_v31  ;;  %v8519_v51 = vsel %vm1415_vm2, %v8518_v62, %v8517_v7  ;;  %v12755_v59 = vld [vmem:[%s17839_s5 + $0x1c8] sm:$0xf]  ;;  %v13731_v6 = vld [vmem:[%s17839_s5 + $0x1d4] sm:$0xf0]  ;;  %v13697_v37 = vld [vmem:[%s17839_s5 + $0xcc] sm:$0xf] }
 0x528   : > { %8874 = vmatpush.bf16.msra.mxu1 %v12608_v27  ;;  %v12651_v27 = vld [vmem:[%s17839_s5 + $0x100] sm:$0xf]  ;;  %v17093_v35 = vsel %vm1413_vm1, %v9022_v26, %v16790_v17  ;;  %v12645_v17 = vld [vmem:[%s17839_s5 + $0xf8] sm:$0xf0]  ;;  %v8521_v63 = vsel %vm1417_vm3, %v8520_v43, %v8519_v51  ;;  %v12190_v40 = vrot.slane %v7839_v20, 10  ;;  %v17138_v33 = vpack.c.b16 %v8515_v49, %v8515_v49 }
 0x529   : > { %8888 = vmatpush.bf16.msra.mxu2 %v12720_v8  ;;  %v13703_v8 = vld [vmem:[%s17839_s5 + $0xf4] sm:$0xf0]  ;;  %v12648_v28 = vor.u32 %v13701_v3, %v12645_v17  ;;  %v13693_v31 = vld [vmem:[%s17839_s5 + $0xac] sm:$0xf]  ;;  %v12613_v26 = vld [vmem:[%s17839_s5 + $0xb8] sm:$0xf0] }
 0x52a   : > { %8849 = vmatpush.bf16.msrb.mxu3 %v12588_v11  ;;  %8862 = vmatpush.bf16.msrb.mxu0 %v12716_v45  ;;  %v12672_v11 = vor.u32 %v13708_v50, %v12669_v15  ;;  %v13704_v45 = vld [vmem:[%s17839_s5 + $0x104] sm:$0xf]  ;;  %v13695_v1 = vld [vmem:[%s17839_s5 + $0xb4] sm:$0xf0]  ;;  %v12739_v50 = vld [vmem:[%s17839_s5 + $0x1a8] sm:$0xf] }
 0x52b   : > { %8459 = vmatmul.bf16.vlgmr.msra.gmra.mxu3 %v16887_v24  ;;  %8472 = vmatmul.bf16.vlgmr.msra.gmra.mxu0 %v16889_v57  ;;  %v13727_v15 = vld [vmem:[%s17839_s5 + $0x1b4] sm:$0xf0]  ;;  %v13725_v4 = vld [vmem:[%s17839_s5 + $0x1ac] sm:$0xf]  ;;  %v12741_v30 = vld [vmem:[%s17839_s5 + $0x1b8] sm:$0xf0] }
 0x52c   : > { %8875 = vmatpush.bf16.msra.mxu1 %v12592_v56  ;;  %8498 = vmatmul.bf16.vlgmr.msrb.gmra.mxu2 %v16889_v57  ;;  %v12667_v57 = vld [vmem:[%s17839_s5 + $0x120] sm:$0xf]  ;;  %v12643_v56 = vld [vmem:[%s17839_s5 + $0xe8] sm:$0xf]  ;;  %v12740_v23 = vor.u32 %v13727_v15, %v12739_v50  ;;  %v13723_v62 = vld [vmem:[%s17839_s5 + $0x194] sm:$0xf0] }
 0x52d   : > { %8485 = vmatmul.bf16.vlgmr.msrb.gmra.mxu1 %v16887_v24  ;;  %v13678_v24 = vld [vmem:[%s17839_s5 + $0x2c] sm:$0xf0]  ;;  %8889 = vmatpush.bf16.msra.mxu2 %v12704_v61  ;;  %v12668_v16 = vor.u32 %v13710_v34, %v12667_v57  ;;  %v12656_v61 = vor.u32 %v13704_v45, %v12653_v25  ;;  %v12644_v53 = vor.u32 %v13703_v8, %v12643_v56  ;;  %v12611_v34 = vld [vmem:[%s17839_s5 + $0xa8] sm:$0xf]  ;;  %v12725_v45 = vld [vmem:[%s17839_s5 + $0x198] sm:$0xf0] }
 0x52e   : > { %8850 = vmatpush.bf16.msrb.mxu3 %v12572_v19  ;;  %8863 = vmatpush.bf16.msrb.mxu0 %v12700_v10  ;;  %v12540_v36 = vor.u32 %v13678_v24, %v12539_v0  ;;  %v12652_v19 = vor.u32 %v13706_v52, %v12651_v27  ;;  %v13733_v10 = vld [vmem:[%s17839_s5 + $0x1ec] sm:$0xf]  ;;  %v12757_v24 = vld [vmem:[%s17839_s5 + $0x1d8] sm:$0xf0]  ;;  %v12628_v57 = vor.u32 %v13699_v32, %v12627_v42  ;;  %v12595_v38 = vld [vmem:[%s17839_s5 + $0x88] sm:$0xf] }
 0x52f   : > { %v12776_v0 = vor.u32 %v13733_v10, %v12773_v47  ;;  %v7869_v27 = vmax.f32 %v7839_v20, %v12190_v40  ;;  %v12612_v49 = vor.u32 %v13695_v1, %v12611_v34  ;;  %v12744_v52 = vor.u32 %v13725_v4, %v12741_v30  ;;  %v12579_v29 = vld [vmem:[%s17839_s5 + $0x68] sm:$0xf]  ;;  %v13687_v41 = vld [vmem:[%s17839_s5 + $0x74] sm:$0xf0]  ;;  %v12581_v17 = vld [vmem:[%s17839_s5 + $0x78] sm:$0xf0] }
 0x530   : > { %8876 = vmatpush.bf16.msra.mxu1 %v12576_v44  ;;  %v12528_v44 = vor.u32 %v13672_v22, %v12525_v18  ;;  %v12723_v22 = vld [vmem:[%s17839_s5 + $0x188] sm:$0xf]  ;;  %v13721_v18 = vld [vmem:[%s17839_s5 + $0x18c] sm:$0xf]  ;;  %v12709_v47 = vld [vmem:[%s17839_s5 + $0x178] sm:$0xf0]  ;;  %v12580_v51 = vor.u32 %v13687_v41, %v12579_v29 }
 0x531   : > { %8890 = vmatpush.bf16.msra.mxu2 %v12688_v58  ;;  %v12756_v58 = vor.u32 %v13731_v6, %v12755_v59  ;;  %v7886_v25 = vperm.slane %v7869_v27, 0  ;;  %v7887_v9 = vperm.slane %v7869_v27, 4  ;;  %v12724_v8 = vor.u32 %v13723_v62, %v12723_v22  ;;  %v12707_v43 = vld [vmem:[%s17839_s5 + $0x168] sm:$0xf]  ;;  %v13717_v10 = vld [vmem:[%s17839_s5 + $0x16c] sm:$0xf] }
 0x532   : > { %8851 = vmatpush.bf16.msrb.mxu3 %v12556_v2  ;;  %8864 = vmatpush.bf16.msrb.mxu0 %v12684_v21  ;;  %v12629_v2 = vld [vmem:[%s17839_s5 + $0xd8] sm:$0xf0]  ;;  %v13729_v21 = vld [vmem:[%s17839_s5 + $0x1cc] sm:$0xf]  ;;  %v12728_v7 = vor.u32 %v13721_v18, %v12725_v45  ;;  %v13683_v20 = vld [vmem:[%s17839_s5 + $0x54] sm:$0xf0] }
 0x533   : > { %v12632_v55 = vor.u32 %v13697_v37, %v12629_v2  ;;  %v12760_v5 = vor.u32 %v13729_v21, %v12757_v24  ;;  %v12691_v42 = vld [vmem:[%s17839_s5 + $0x148] sm:$0xf]  ;;  %v13715_v32 = vld [vmem:[%s17839_s5 + $0x154] sm:$0xf0]  ;;  %v13713_v59 = vld [vmem:[%s17839_s5 + $0x14c] sm:$0xf] }
 0x534   : > { %8877 = vmatpush.bf16.msra.mxu1 %v12560_v48  ;;  %v17140_v48 = vpack.c.b16 %v8521_v63, %v8521_v63  ;;  %v12565_v63 = vld [vmem:[%s17839_s5 + $0x58] sm:$0xf0]  ;;  %v12692_v2 = vor.u32 %v13715_v32, %v12691_v42  ;;  %v12547_v21 = vld [vmem:[%s17839_s5 + $0x28] sm:$0xf]  ;;  %v13679_v24 = vld [vmem:[%s17839_s5 + $0x34] sm:$0xf0] }
 0x535   : > { %8891 = vmatpush.bf16.msra.mxu2 %v12672_v11  ;;  %v12597_v11 = vld [vmem:[%s17839_s5 + $0x98] sm:$0xf0]  ;;  %v13711_v34 = vld [vmem:[%s17839_s5 + $0x134] sm:$0xf0]  ;;  %v13677_v1 = vld [vmem:[%s17839_s5 + $0x2c] sm:$0xf] }
 0x536   : > { %8852 = vmatpush.bf16.msrb.mxu3 %v12540_v36  ;;  %8865 = vmatpush.bf16.msrb.mxu0 %v12668_v16  ;;  %v13691_v36 = vld [vmem:[%s17839_s5 + $0x94] sm:$0xf0]  ;;  %v12616_v16 = vor.u32 %v13693_v31, %v12613_v26  ;;  %v12693_v6 = vld [vmem:[%s17839_s5 + $0x158] sm:$0xf0]  ;;  %v13709_v50 = vld [vmem:[%s17839_s5 + $0x12c] sm:$0xf]  ;;  %v12548_v26 = vor.u32 %v13679_v24, %v12547_v21 }
 0x537   : > { %v12596_v56 = vor.u32 %v13691_v36, %v12595_v38  ;;  %v12696_v40 = vor.u32 %v13713_v59, %v12693_v6  ;;  %v12677_v15 = vld [vmem:[%s17839_s5 + $0x138] sm:$0xf0]  ;;  %v12531_v31 = vld [vmem:[%s17839_s5 + $0x8] sm:$0xf]  ;;  %v13675_v30 = vld [vmem:[%s17839_s5 + $0x14] sm:$0xf0] }
 0x538   : > { %8878 = vmatpush.bf16.msra.mxu1 %v12544_v46  ;;  %v13689_v46 = vld [vmem:[%s17839_s5 + $0x8c] sm:$0xf]  ;;  %v12659_v27 = vld [vmem:[%s17839_s5 + $0x108] sm:$0xf]  ;;  %v12680_v38 = vor.u32 %v13709_v50, %v12677_v15  ;;  %v12661_v62 = vld [vmem:[%s17839_s5 + $0x118] sm:$0xf0] }
 0x539   : > { %8892 = vmatpush.bf16.msra.mxu2 %v12656_v61  ;;  %v12600_v3 = vor.u32 %v13689_v46, %v12597_v11  ;;  %v12563_v61 = vld [vmem:[%s17839_s5 + $0x48] sm:$0xf]  ;;  %v13673_v36 = vld [vmem:[%s17839_s5 + $0xc] sm:$0xf]  ;;  %v12957_v46 = vld [vmem:[%s17839_s5 + $0x4e0] sm:$0xf] }
 0x53a   : > { %8853 = vmatpush.bf16.msrb.mxu3 %v12524_v13  ;;  %8866 = vmatpush.bf16.msrb.mxu0 %v12652_v19  ;;  %v13719_v13 = vld [vmem:[%s17839_s5 + $0x174] sm:$0xf0]  ;;  %v13685_v19 = vld [vmem:[%s17839_s5 + $0x6c] sm:$0xf]  ;;  %v12564_v37 = vor.u32 %v13683_v20, %v12563_v61  ;;  %v13830_v11 = vld [vmem:[%s17839_s5 + $0x4ec] sm:$0xf0] }
 0x53b   : > { %v13085_v18 = vld [vmem:[%s17839_s5 + $0x5e0] sm:$0xf]  ;;  %v13862_v45 = vld [vmem:[%s17839_s5 + $0x5ec] sm:$0xf0]  ;;  %v13860_v29 = vld [vmem:[%s17839_s5 + $0x5e4] sm:$0xf] }
 0x53c   : > { %8879 = vmatpush.bf16.msra.mxu1 %v12528_v44  ;;  %8893 = vmatmul.bf16.vlgmr.msra.gmra.mxu2 %v17140_v48  ;;  %v12708_v44 = vor.u32 %v13719_v13, %v12707_v43  ;;  %v13087_v41 = vld [vmem:[%s17839_s5 + $0x5f0] sm:$0xf0]  ;;  %v9024_v43 = vrot.slane %v16839_v60, 6  ;;  %v13069_v61 = vld [vmem:[%s17839_s5 + $0x5c0] sm:$0xf] }
 0x53d   : > { %8937 = vmatpush.bf16.msrb.mxu2 %v12776_v0  ;;  %8854 = vmatmul.bf16.vlgmr.msrb.gmra.mxu3 %v17138_v33  ;;  %v17233_v0 = vpack.c.bf16 %v7887_v9, %v7886_v25  ;;  %v13828_v25 = vld [vmem:[%s17839_s5 + $0x4e4] sm:$0xf]  ;;  %v12532_v9 = vor.u32 %v13675_v30, %v12531_v31  ;;  %v13858_v60 = vld [vmem:[%s17839_s5 + $0x5cc] sm:$0xf0]  ;;  %v13071_v32 = vld [vmem:[%s17839_s5 + $0x5d0] sm:$0xf0] }
 0x53e   : > { %8898 = vmatpush.bf16.msra.mxu3 %v12644_v53  ;;  %8911 = vmatpush.bf16.msra.mxu0 %v12772_v54  ;;  %v12584_v53 = vor.u32 %v13685_v19, %v12581_v17  ;;  %v12712_v54 = vor.u32 %v13717_v10, %v12709_v47  ;;  %v12958_v19 = vor.u32 %v13830_v11, %v12957_v46  ;;  %v12941_v10 = vld [vmem:[%s17839_s5 + $0x4c0] sm:$0xf]  ;;  %v13826_v47 = vld [vmem:[%s17839_s5 + $0x4cc] sm:$0xf0]  ;;  %v13824_v20 = vld [vmem:[%s17839_s5 + $0x4c4] sm:$0xf] }
 0x53f   : > { %8867 = vmatmul.bf16.vlgmr.msrb.gmra.mxu0 %v17140_v48  ;;  %8880 = vmatmul.bf16.vlgmr.msra.gmra.mxu1 %v17138_v33  ;;  %v13086_v17 = vor.u32 %v13862_v45, %v13085_v18  ;;  %v13856_v42 = vld [vmem:[%s17839_s5 + $0x5c4] sm:$0xf]  ;;  %v12925_v59 = vld [vmem:[%s17839_s5 + $0x4a0] sm:$0xf]  ;;  %v13822_v6 = vld [vmem:[%s17839_s5 + $0x4ac] sm:$0xf0] }
 0x540   : > { %8924 = vmatpush.bf16.msrb.mxu1 %v12648_v28  ;;  %v13681_v28 = vld [vmem:[%s17839_s5 + $0x4c] sm:$0xf]  ;;  %v13053_v21 = vld [vmem:[%s17839_s5 + $0x5a0] sm:$0xf]  ;;  %v13854_v24 = vld [vmem:[%s17839_s5 + $0x5ac] sm:$0xf0] }
 0x541   : > { %8938 = vmatpush.bf16.msrb.mxu2 %v12760_v5  ;;  %v12549_v5 = vld [vmem:[%s17839_s5 + $0x38] sm:$0xf0]  ;;  %v13818_v50 = vld [vmem:[%s17839_s5 + $0x48c] sm:$0xf0]  ;;  %v13848_v30 = vld [vmem:[%s17839_s5 + $0x584] sm:$0xf] }
 0x542   : > { %8899 = vmatpush.bf16.msra.mxu3 %v12628_v57  ;;  %8912 = vmatpush.bf16.msra.mxu0 %v12756_v58  ;;  %v12568_v57 = vor.u32 %v13681_v28, %v12565_v63  ;;  %v12675_v58 = vld [vmem:[%s17839_s5 + $0x128] sm:$0xf]  ;;  %v13070_v63 = vor.u32 %v13858_v60, %v13069_v61  ;;  %v13812_v46 = vld [vmem:[%s17839_s5 + $0x464] sm:$0xf]  ;;  %v12895_v11 = vld [vmem:[%s17839_s5 + $0x470] sm:$0xf0] }
 0x543   : > { %v12676_v4 = vor.u32 %v13711_v34, %v12675_v58  ;;  %v13852_v58 = vld [vmem:[%s17839_s5 + $0x5a4] sm:$0xf]  ;;  %v13055_v34 = vld [vmem:[%s17839_s5 + $0x5b0] sm:$0xf0]  ;;  %v13806_v61 = vld [vmem:[%s17839_s5 + $0x42c] sm:$0xf0] }
 0x544   : > { %8925 = vmatpush.bf16.msrb.mxu1 %v12632_v55  ;;  %v9016_v55 = vunpack.c.l.b16 %v17233_v0  ;;  %v13058_v31 = vor.u32 %v13852_v58, %v13055_v34  ;;  %v13844_v18 = vld [vmem:[%s17839_s5 + $0x564] sm:$0xf]  ;;  %v13023_v45 = vld [vmem:[%s17839_s5 + $0x570] sm:$0xf0]  ;;  %v9030_v58 = vrot.slane %v16841_v14, 6 }
 0x545   : > { %8939 = vmatpush.bf16.msrb.mxu2 %v12744_v52  ;;  %v13705_v52 = vld [vmem:[%s17839_s5 + $0x10c] sm:$0xf]  ;;  %v12965_v14 = vld [vmem:[%s17839_s5 + $0x4e8] sm:$0xf] }
 0x546   : > { %8900 = vmatpush.bf16.msra.mxu3 %v12612_v49  ;;  %8913 = vmatpush.bf16.msra.mxu0 %v12740_v23  ;;  %v13707_v49 = vld [vmem:[%s17839_s5 + $0x114] sm:$0xf0]  ;;  %v12552_v23 = vor.u32 %v13677_v1, %v12549_v5  ;;  %v12841_v22 = vunpack.i.l.s16 %v9016_v55  ;;  %v12926_v1 = vor.u32 %v13822_v6, %v12925_v59  ;;  %v13054_v55 = vor.u32 %v13854_v24, %v13053_v21  ;;  %v12909_v5 = vld [vmem:[%s17839_s5 + $0x480] sm:$0xf]  ;;  %v13802_v59 = vld [vmem:[%s17839_s5 + $0x40c] sm:$0xf0] }
 0x547   : > { %v12973_v6 = vld [vmem:[%s17839_s5 + $0x500] sm:$0xf] }
 0x548   : > { %8926 = vmatpush.bf16.msrb.mxu1 %v12616_v16  ;;  %v12533_v16 = vld [vmem:[%s17839_s5 + $0x18] sm:$0xf0]  ;;  %v9026_v13 = vrot.slane %v12841_v22, 5  ;;  %v13021_v22 = vld [vmem:[%s17839_s5 + $0x560] sm:$0xf] }
 0x549   : > { %8940 = vmatpush.bf16.msrb.mxu2 %v12728_v7  ;;  %v12664_v7 = vor.u32 %v13705_v52, %v12661_v62  ;;  %v13846_v62 = vld [vmem:[%s17839_s5 + $0x56c] sm:$0xf0] }
 0x54a   : > { %8901 = vmatpush.bf16.msra.mxu3 %v12596_v56  ;;  %8914 = vmatpush.bf16.msra.mxu0 %v12724_v8  ;;  %v12660_v56 = vor.u32 %v13707_v49, %v12659_v27  ;;  %v12959_v8 = vld [vmem:[%s17839_s5 + $0x4f0] sm:$0xf0]  ;;  %v12910_v49 = vor.u32 %v13818_v50, %v12909_v5  ;;  %v13831_v50 = vld [vmem:[%s17839_s5 + $0x4f4] sm:$0xf0] }
 0x54b   : > { %v13039_v27 = vld [vmem:[%s17839_s5 + $0x590] sm:$0xf0] }
 0x54c   : > { %8927 = vmatpush.bf16.msrb.mxu1 %v12600_v3  ;;  %v12536_v3 = vor.u32 %v13673_v36, %v12533_v16  ;;  %v13814_v36 = vld [vmem:[%s17839_s5 + $0x46c] sm:$0xf0]  ;;  %v13042_v52 = vor.u32 %v13848_v30, %v13039_v27  ;;  %v12975_v5 = vld [vmem:[%s17839_s5 + $0x510] sm:$0xf0]  ;;  %v12967_v27 = vld [vmem:[%s17839_s5 + $0x4f8] sm:$0xf0] }
 0x54d   : > { %8941 = vmatpush.bf16.msrb.mxu2 %v12712_v54  ;;  %v12943_v54 = vld [vmem:[%s17839_s5 + $0x4d0] sm:$0xf0] }
 0x54e   : > { %8902 = vmatpush.bf16.msra.mxu3 %v12580_v51  ;;  %8915 = vmatpush.bf16.msra.mxu0 %v12708_v44  ;;  %v12962_v51 = vor.u32 %v13828_v25, %v12959_v8  ;;  %v13090_v44 = vor.u32 %v13860_v29, %v13087_v41  ;;  %v13810_v8 = vld [vmem:[%s17839_s5 + $0x44c] sm:$0xf0]  ;;  %v12898_v29 = vor.u32 %v13812_v46, %v12895_v11 }
 0x54f   : > { %v13026_v41 = vor.u32 %v13844_v18, %v13023_v45  ;;  %v13077_v45 = vld [vmem:[%s17839_s5 + $0x5c8] sm:$0xf] }
 0x550   : > { %8928 = vmatpush.bf16.msrb.mxu1 %v12584_v53  ;;  %v9025_v53 = vsel %vm1415_vm2, %v9024_v43, %v17093_v35  ;;  %v12942_v35 = vor.u32 %v13826_v47, %v12941_v10  ;;  %v13808_v43 = vld [vmem:[%s17839_s5 + $0x444] sm:$0xf]  ;;  %v9017_v10 = vunpack.c.h.b16 %v17233_v0  ;;  %v12989_v0 = vld [vmem:[%s17839_s5 + $0x520] sm:$0xf] }
 0x551   : > { %8942 = vmatpush.bf16.msrb.mxu2 %v12696_v40  ;;  %v17345_v28 = vsel %vm1417_vm3, %v9026_v13, %v9025_v53  ;;  %v12927_v40 = vld [vmem:[%s17839_s5 + $0x4b0] sm:$0xf0]  ;;  %v13838_v53 = vld [vmem:[%s17839_s5 + $0x52c] sm:$0xf0] }
 0x552   : > { %8903 = vmatpush.bf16.msra.mxu3 %v12564_v37  ;;  %8916 = vmatpush.bf16.msra.mxu0 %v12692_v2  ;;  %v12946_v37 = vor.u32 %v13824_v20, %v12943_v54  ;;  %v13074_v2 = vor.u32 %v13856_v42, %v13071_v32  ;;  %v12879_v13 = vld [vmem:[%s17839_s5 + $0x450] sm:$0xf0]  ;;  %v13804_v54 = vld [vmem:[%s17839_s5 + $0x424] sm:$0xf]  ;;  %v12990_v24 = vor.u32 %v13838_v53, %v12989_v0  ;;  %v12917_v53 = vld [vmem:[%s17839_s5 + $0x488] sm:$0xf] }
 0x553   : > { %v12882_v60 = vor.u32 %v13808_v43, %v12879_v13  ;;  %v12863_v42 = vld [vmem:[%s17839_s5 + $0x430] sm:$0xf0]  ;;  %v13836_v32 = vld [vmem:[%s17839_s5 + $0x524] sm:$0xf]  ;;  %v12933_v13 = vld [vmem:[%s17839_s5 + $0x4a8] sm:$0xf] }
 0x554   : > { %8929 = vmatpush.bf16.msrb.mxu1 %v12568_v57  ;;  %v13820_v57 = vld [vmem:[%s17839_s5 + $0x4a4] sm:$0xf]  ;;  %v12866_v34 = vor.u32 %v13804_v54, %v12863_v42  ;;  %v13819_v54 = vld [vmem:[%s17839_s5 + $0x494] sm:$0xf0] }
 0x555   : > { %8943 = vmatpush.bf16.msrb.mxu2 %v12680_v38  ;;  %v12930_v15 = vor.u32 %v13820_v57, %v12927_v40  ;;  %v12893_v38 = vld [vmem:[%s17839_s5 + $0x460] sm:$0xf]  ;;  %v13834_v57 = vld [vmem:[%s17839_s5 + $0x50c] sm:$0xf0]  ;;  %v13800_v40 = vld [vmem:[%s17839_s5 + $0x404] sm:$0xf] }
 0x556   : > { %8904 = vmatpush.bf16.msra.mxu3 %v12548_v26  ;;  %8917 = vmatpush.bf16.msra.mxu0 %v12676_v4  ;;  %v13816_v26 = vld [vmem:[%s17839_s5 + $0x484] sm:$0xf]  ;;  %v12911_v4 = vld [vmem:[%s17839_s5 + $0x490] sm:$0xf0]  ;;  %v12894_v25 = vor.u32 %v13814_v36, %v12893_v38  ;;  %v12974_v30 = vor.u32 %v13834_v57, %v12973_v6  ;;  %v12919_v6 = vld [vmem:[%s17839_s5 + $0x498] sm:$0xf0] }
 0x557   : > { %v12914_v16 = vor.u32 %v13816_v26, %v12911_v4  ;;  %v12901_v57 = vld [vmem:[%s17839_s5 + $0x468] sm:$0xf] }
 0x558   : > { %8930 = vmatpush.bf16.msrb.mxu1 %v12552_v23 }
 0x559   : > { %8944 = vmatpush.bf16.msrb.mxu2 %v12664_v7  ;;  %v13842_v7 = vld [vmem:[%s17839_s5 + $0x54c] sm:$0xf0] }
 0x55a   : > { %8905 = vmatpush.bf16.msra.mxu3 %v12532_v9  ;;  %8918 = vmatpush.bf16.msra.mxu0 %v12660_v56  ;;  %v13022_v9 = vor.u32 %v13846_v62, %v13021_v22  ;;  %v12877_v56 = vld [vmem:[%s17839_s5 + $0x440] sm:$0xf]  ;;  %v12949_v22 = vld [vmem:[%s17839_s5 + $0x4c8] sm:$0xf]  ;;  %v13827_v62 = vld [vmem:[%s17839_s5 + $0x4d4] sm:$0xf0] }
 0x55b   : > { %v12878_v47 = vor.u32 %v13810_v8, %v12877_v56  ;;  %v12951_v56 = vld [vmem:[%s17839_s5 + $0x4d8] sm:$0xf0]  ;;  %v13857_v8 = vld [vmem:[%s17839_s5 + $0x5cc] sm:$0xf] }
 0x55c   : > { %8931 = vmatpush.bf16.msrb.mxu1 %v12536_v3  ;;  %8945 = vmatmul.bf16.vlgmr.msrb.gmra.mxu2 %v17140_v48  ;;  %v13005_v3 = vld [vmem:[%s17839_s5 + $0x540] sm:$0xf] }
 0x55d   : > { %9397 = vmatpush.bf16.msra.mxu2 %v13090_v44  ;;  %8906 = vmatmul.bf16.vlgmr.msra.gmra.mxu3 %v17138_v33  ;;  %v12861_v44 = vld [vmem:[%s17839_s5 + $0x420] sm:$0xf] }
 0x55e   : > { %9358 = vmatpush.bf16.msrb.mxu3 %v12958_v19  ;;  %9371 = vmatpush.bf16.msrb.mxu0 %v13086_v17  ;;  %v13840_v19 = vld [vmem:[%s17839_s5 + $0x544] sm:$0xf]  ;;  %v13007_v17 = vld [vmem:[%s17839_s5 + $0x550] sm:$0xf0]  ;;  %v12862_v21 = vor.u32 %v13806_v61, %v12861_v44  ;;  %v12935_v44 = vld [vmem:[%s17839_s5 + $0x4b8] sm:$0xf0] }
 0x55f   : > { %8919 = vmatmul.bf16.vlgmr.msra.gmra.mxu0 %v17140_v48  ;;  %8932 = vmatmul.bf16.vlgmr.msrb.gmra.mxu1 %v17138_v33  ;;  %v13037_v33 = vld [vmem:[%s17839_s5 + $0x580] sm:$0xf]  ;;  %v13850_v48 = vld [vmem:[%s17839_s5 + $0x58c] sm:$0xf0]  ;;  %v13010_v20 = vor.u32 %v13840_v19, %v13007_v17  ;;  %v13823_v19 = vld [vmem:[%s17839_s5 + $0x4b4] sm:$0xf0] }
 0x560   : > { %9384 = vmatpush.bf16.msra.mxu1 %v12962_v51  ;;  %v13038_v23 = vor.u32 %v13850_v48, %v13037_v33  ;;  %v13006_v51 = vor.u32 %v13842_v7, %v13005_v3  ;;  %v13829_v33 = vld [vmem:[%s17839_s5 + $0x4ec] sm:$0xf]  ;;  %v12950_v7 = vor.u32 %v13827_v62, %v12949_v22  ;;  %v13807_v22 = vld [vmem:[%s17839_s5 + $0x434] sm:$0xf0] }
 0x561   : > { %9398 = vmatpush.bf16.msra.mxu2 %v13074_v2  ;;  %v9028_v2 = vrot.slane %v16806_v12, 7  ;;  %v12847_v12 = vld [vmem:[%s17839_s5 + $0x410] sm:$0xf0]  ;;  %v12970_v46 = vor.u32 %v13829_v33, %v12967_v27  ;;  %v13853_v61 = vld [vmem:[%s17839_s5 + $0x5ac] sm:$0xf] }
 0x562   : > { %9359 = vmatpush.bf16.msrb.mxu3 %v12942_v35  ;;  %9372 = vmatpush.bf16.msrb.mxu0 %v13070_v63  ;;  %v12991_v35 = vld [vmem:[%s17839_s5 + $0x530] sm:$0xf0]  ;;  %v12845_v63 = vld [vmem:[%s17839_s5 + $0x400] sm:$0xf]  ;;  %v12885_v33 = vld [vmem:[%s17839_s5 + $0x448] sm:$0xf] }
 0x563   : > { %v9029_v48 = vsel %vm1413_vm1, %v9028_v2, %v16792_v39  ;;  %v12846_v4 = vor.u32 %v13802_v59, %v12845_v63  ;;  %v12850_v39 = vor.u32 %v13800_v40, %v12847_v12  ;;  %v13851_v63 = vld [vmem:[%s17839_s5 + $0x594] sm:$0xf0]  ;;  %v13817_v59 = vld [vmem:[%s17839_s5 + $0x48c] sm:$0xf]  ;;  %v13047_v2 = vld [vmem:[%s17839_s5 + $0x598] sm:$0xf0] }
 0x564   : > { %9385 = vmatpush.bf16.msra.mxu1 %v12946_v37  ;;  %v12842_v37 = vunpack.i.l.s16 %v9017_v10  ;;  %v9031_v38 = vsel %vm1415_vm2, %v9030_v58, %v9029_v48  ;;  %v13815_v40 = vld [vmem:[%s17839_s5 + $0x474] sm:$0xf0]  ;;  %v12922_v58 = vor.u32 %v13817_v59, %v12919_v6 }
 0x565   : > { %9399 = vmatpush.bf16.msra.mxu2 %v13058_v31  ;;  %v13863_v31 = vld [vmem:[%s17839_s5 + $0x5f4] sm:$0xf0] }
 0x566   : > { %9360 = vmatpush.bf16.msrb.mxu3 %v12926_v1  ;;  %9373 = vmatpush.bf16.msrb.mxu0 %v13054_v55  ;;  %v12994_v1 = vor.u32 %v13836_v32, %v12991_v35  ;;  %v13832_v55 = vld [vmem:[%s17839_s5 + $0x504] sm:$0xf]  ;;  %v9032_v26 = vrot.slane %v12842_v37, 5  ;;  %v13045_v35 = vld [vmem:[%s17839_s5 + $0x588] sm:$0xf] }
 0x567   : > { %v12978_v36 = vor.u32 %v13832_v55, %v12975_v5  ;;  %v13849_v37 = vld [vmem:[%s17839_s5 + $0x58c] sm:$0xf]  ;;  %v13847_v12 = vld [vmem:[%s17839_s5 + $0x574] sm:$0xf0]  ;;  %v12903_v5 = vld [vmem:[%s17839_s5 + $0x478] sm:$0xf0] }
 0x568   : > { %9386 = vmatpush.bf16.msra.mxu1 %v12930_v15  ;;  %v13093_v15 = vld [vmem:[%s17839_s5 + $0x5e8] sm:$0xf]  ;;  %v9033_v18 = vsel %vm1417_vm3, %v9032_v26, %v9031_v38  ;;  %v13813_v55 = vld [vmem:[%s17839_s5 + $0x46c] sm:$0xf]  ;;  %v13811_v48 = vld [vmem:[%s17839_s5 + $0x454] sm:$0xf0] }
 0x569   : > { %9400 = vmatpush.bf16.msra.mxu2 %v13042_v52  ;;  %v13094_v52 = vor.u32 %v13863_v31, %v13093_v15  ;;  %v17554_v3 = vpack.c.b16 %v9033_v18, %v9033_v18  ;;  %v12902_v15 = vor.u32 %v13815_v40, %v12901_v57  ;;  %v12906_v26 = vor.u32 %v13813_v55, %v12903_v5  ;;  %v13843_v27 = vld [vmem:[%s17839_s5 + $0x554] sm:$0xf0]  ;;  %v13841_v38 = vld [vmem:[%s17839_s5 + $0x54c] sm:$0xf] }
 0x56a   : > { %9361 = vmatpush.bf16.msrb.mxu3 %v12910_v49  ;;  %9374 = vmatpush.bf16.msrb.mxu0 %v13038_v23  ;;  %v13861_v49 = vld [vmem:[%s17839_s5 + $0x5ec] sm:$0xf]  ;;  %v13095_v23 = vld [vmem:[%s17839_s5 + $0x5f8] sm:$0xf0]  ;;  %v13839_v18 = vld [vmem:[%s17839_s5 + $0x534] sm:$0xf0] }
 0x56b   : > { %v13098_v11 = vor.u32 %v13861_v49, %v13095_v23  ;;  %v13809_v49 = vld [vmem:[%s17839_s5 + $0x44c] sm:$0xf]  ;;  %v12887_v23 = vld [vmem:[%s17839_s5 + $0x458] sm:$0xf0] }
 0x56c   : > { %9387 = vmatpush.bf16.msra.mxu1 %v12914_v16  ;;  %v12966_v16 = vor.u32 %v13831_v50, %v12965_v14  ;;  %v13845_v14 = vld [vmem:[%s17839_s5 + $0x56c] sm:$0xf]  ;;  %v13031_v50 = vld [vmem:[%s17839_s5 + $0x578] sm:$0xf0]  ;;  %v12890_v62 = vor.u32 %v13809_v49, %v12887_v23 }
 0x56d   : > { %9401 = vmatpush.bf16.msra.mxu2 %v13026_v41  ;;  %v17552_v41 = vpack.c.b16 %v17345_v28, %v17345_v28  ;;  %v13061_v28 = vld [vmem:[%s17839_s5 + $0x5a8] sm:$0xf] }
 0x56e   : > { %9362 = vmatpush.bf16.msrb.mxu3 %v12894_v25  ;;  %9375 = vmatpush.bf16.msrb.mxu0 %v13022_v9  ;;  %v13859_v25 = vld [vmem:[%s17839_s5 + $0x5d4] sm:$0xf0]  ;;  %v13825_v9 = vld [vmem:[%s17839_s5 + $0x4cc] sm:$0xf] }
 0x56f   : > { %v13078_v43 = vor.u32 %v13859_v25, %v13077_v45  ;;  %v12954_v17 = vor.u32 %v13825_v9, %v12951_v56  ;;  %v13805_v45 = vld [vmem:[%s17839_s5 + $0x42c] sm:$0xf]  ;;  %v12871_v25 = vld [vmem:[%s17839_s5 + $0x438] sm:$0xf0] }
 0x570   : > { %9388 = vmatpush.bf16.msra.mxu1 %v12898_v29  ;;  %v13079_v29 = vld [vmem:[%s17839_s5 + $0x5d8] sm:$0xf0]  ;;  %v13837_v9 = vld [vmem:[%s17839_s5 + $0x52c] sm:$0xf] }
 0x571   : > { %9402 = vmatpush.bf16.msra.mxu2 %v13010_v20  ;;  %v13082_v10 = vor.u32 %v13857_v8, %v13079_v29  ;;  %v12934_v20 = vor.u32 %v13823_v19, %v12933_v13  ;;  %v12999_v56 = vld [vmem:[%s17839_s5 + $0x538] sm:$0xf0]  ;;  %v12874_v13 = vor.u32 %v13805_v45, %v12871_v25 }
 0x572   : > { %9363 = vmatpush.bf16.msrb.mxu3 %v12878_v47  ;;  %9376 = vmatpush.bf16.msrb.mxu0 %v13006_v51  ;;  %v13855_v47 = vld [vmem:[%s17839_s5 + $0x5b4] sm:$0xf0]  ;;  %v13821_v51 = vld [vmem:[%s17839_s5 + $0x4ac] sm:$0xf]  ;;  %v13002_v19 = vor.u32 %v13837_v9, %v12999_v56  ;;  %v9480_v56 = vld [vmem:[%s17848_s14] sm:$0xf] }
 0x573   : > { %v13062_v0 = vor.u32 %v13855_v47, %v13061_v28  ;;  %v12938_v42 = vor.u32 %v13821_v51, %v12935_v44  ;;  %v13801_v28 = vld [vmem:[%s17839_s5 + $0x40c] sm:$0xf]  ;;  %v12855_v47 = vld [vmem:[%s17839_s5 + $0x418] sm:$0xf0] }
 0x574   : > { %9389 = vmatpush.bf16.msra.mxu1 %v12882_v60  ;;  %v13063_v60 = vld [vmem:[%s17839_s5 + $0x5b8] sm:$0xf0]  ;;  %v13833_v51 = vld [vmem:[%s17839_s5 + $0x50c] sm:$0xf] }
 0x575   : > { %9403 = vmatpush.bf16.msra.mxu2 %v12994_v1  ;;  %v13066_v32 = vor.u32 %v13853_v61, %v13063_v60  ;;  %v13029_v1 = vld [vmem:[%s17839_s5 + $0x568] sm:$0xf]  ;;  %v12983_v44 = vld [vmem:[%s17839_s5 + $0x518] sm:$0xf0] }
 0x576   : > { %9364 = vmatpush.bf16.msrb.mxu3 %v12862_v21  ;;  %9377 = vmatpush.bf16.msrb.mxu0 %v12990_v24  ;;  %v12918_v21 = vor.u32 %v13819_v54, %v12917_v53  ;;  %v13046_v24 = vor.u32 %v13851_v63, %v13045_v35  ;;  %v13030_v31 = vor.u32 %v13847_v12, %v13029_v1 }
 0x578   : > { %9390 = vmatpush.bf16.msra.mxu1 %v12866_v34  ;;  %v13050_v34 = vor.u32 %v13849_v37, %v13047_v2 }
 0x579   : > { %9404 = vmatpush.bf16.msra.mxu2 %v12978_v36  ;;  %v12886_v36 = vor.u32 %v13811_v48, %v12885_v33 }
 0x57a   : > { %9365 = vmatpush.bf16.msrb.mxu3 %v12846_v4  ;;  %9378 = vmatpush.bf16.msrb.mxu0 %v12974_v30  ;;  %v13034_v4 = vor.u32 %v13845_v14, %v13031_v50  ;;  %v13013_v30 = vld [vmem:[%s17839_s5 + $0x548] sm:$0xf] }
 0x57c   : > { %9391 = vmatpush.bf16.msra.mxu1 %v12850_v39  ;;  %9405 = vmatmul.bf16.vlgmr.msra.gmra.mxu2 %v17554_v3  ;;  %v13015_v39 = vld [vmem:[%s17839_s5 + $0x558] sm:$0xf0] }
 0x57d   : > { %9449 = vmatpush.bf16.msrb.mxu2 %v13098_v11  ;;  %9366 = vmatmul.bf16.vlgmr.msrb.gmra.mxu3 %v17552_v41  ;;  %v12997_v11 = vld [vmem:[%s17839_s5 + $0x528] sm:$0xf] }
 0x57e   : > { %9410 = vmatpush.bf16.msra.mxu3 %v12966_v16  ;;  %9423 = vmatpush.bf16.msra.mxu0 %v13094_v52  ;;  %v13014_v16 = vor.u32 %v13843_v27, %v13013_v30  ;;  %v12869_v52 = vld [vmem:[%s17839_s5 + $0x428] sm:$0xf]  ;;  %v12998_v29 = vor.u32 %v13839_v18, %v12997_v11  ;;  %v9466_v18 = vld [vmem:[%s17847_s13] sm:$0xf] }
 0x57f   : > { %9379 = vmatmul.bf16.vlgmr.msrb.gmra.mxu0 %v17554_v3  ;;  %9392 = vmatmul.bf16.vlgmr.msra.gmra.mxu1 %v17552_v41  ;;  %v12870_v8 = vor.u32 %v13807_v22, %v12869_v52  ;;  %v9468_v9 = vperm.slane %v9466_v18, 0 }
 0x580   : > { %9436 = vmatpush.bf16.msrb.mxu1 %v12970_v46  ;;  %v13018_v46 = vor.u32 %v13841_v38, %v13015_v39 }
 0x581   : > { %9450 = vmatpush.bf16.msrb.mxu2 %v13082_v10  ;;  %v13835_v10 = vld [vmem:[%s17839_s5 + $0x514] sm:$0xf0] }
 0x582   : > { %9411 = vmatpush.bf16.msra.mxu3 %v12950_v7  ;;  %9424 = vmatpush.bf16.msra.mxu0 %v13078_v43  ;;  %v12853_v7 = vld [vmem:[%s17839_s5 + $0x408] sm:$0xf]  ;;  %v13803_v43 = vld [vmem:[%s17839_s5 + $0x414] sm:$0xf0] }
 0x583   : > { %v12854_v61 = vor.u32 %v13803_v43, %v12853_v7  ;;  %v9469_v43 = vperm.slane %v9466_v18, 1 }
 0x584   : > { %9437 = vmatpush.bf16.msrb.mxu1 %v12954_v17  ;;  %v12981_v17 = vld [vmem:[%s17839_s5 + $0x508] sm:$0xf] }
 0x585   : > { %9451 = vmatpush.bf16.msrb.mxu2 %v13066_v32  ;;  %v12982_v60 = vor.u32 %v13835_v10, %v12981_v17  ;;  %v9482_v10 = vperm.slane %v9480_v56, 0 }
 0x586   : > { %9412 = vmatpush.bf16.msra.mxu3 %v12934_v20  ;;  %9425 = vmatpush.bf16.msra.mxu0 %v13062_v0  ;;  %v12858_v20 = vor.u32 %v13801_v28, %v12855_v47  ;;  %v12986_v0 = vor.u32 %v13833_v51, %v12983_v44  ;;  %v9483_v47 = vperm.slane %v9480_v56, 1 }
 0x588   : > { %9438 = vmatpush.bf16.msrb.mxu1 %v12938_v42 }
 0x589   : > { %9452 = vmatpush.bf16.msrb.mxu2 %v13050_v34 }
 0x58a   : > { %9413 = vmatpush.bf16.msra.mxu3 %v12918_v21  ;;  %9426 = vmatpush.bf16.msra.mxu0 %v13046_v24 }
 0x58c   : > { %9439 = vmatpush.bf16.msrb.mxu1 %v12922_v58 }
 0x58d   : > { %9453 = vmatpush.bf16.msrb.mxu2 %v13034_v4 }
 0x58e   : > { %9414 = vmatpush.bf16.msra.mxu3 %v12902_v15  ;;  %9427 = vmatpush.bf16.msra.mxu0 %v13030_v31 }
 0x590   : > { %9440 = vmatpush.bf16.msrb.mxu1 %v12906_v26 }
 0x591   : > { %9454 = vmatpush.bf16.msrb.mxu2 %v13018_v46 }
 0x592   : > { %9415 = vmatpush.bf16.msra.mxu3 %v12886_v36  ;;  %9428 = vmatpush.bf16.msra.mxu0 %v13014_v16 }
 0x594   : > { %9441 = vmatpush.bf16.msrb.mxu1 %v12890_v62 }
 0x595   : > { %9455 = vmatpush.bf16.msrb.mxu2 %v13002_v19 }
 0x596   : > { %9416 = vmatpush.bf16.msra.mxu3 %v12870_v8  ;;  %9429 = vmatpush.bf16.msra.mxu0 %v12998_v29 }
 0x598   : > { %9442 = vmatpush.bf16.msrb.mxu1 %v12874_v13  ;;  %v8421_v53 = vpop.f32.mrf.mxu0 }
 0x599   : > { %9456 = vmatpush.bf16.msrb.mxu2 %v12986_v0 }
 0x59a   : > { %9417 = vmatpush.bf16.msra.mxu3 %v12854_v61  ;;  %9430 = vmatpush.bf16.msra.mxu0 %v12982_v60  ;;  %v8434_v54 = vpop.f32.mrf.mxu1 }
 0x59c   : > { %9443 = vmatpush.bf16.msrb.mxu1 %v12858_v20  ;;  %9457 = vmatmul.bf16.vlgmr.msrb.gmra.mxu2 %v17554_v3 }
 0x59d   : > { %9418 = vmatmul.bf16.vlgmr.msra.gmra.mxu3 %v17552_v41  ;;  %9431 = vmatmul.bf16.vlgmr.msra.gmra.mxu0 %v17554_v3 }
 0x59e   : > { %v8408_v42 = vpop.f32.mrf.mxu3 }
 0x59f   : > { %9444 = vmatmul.bf16.vlgmr.msrb.gmra.mxu1 %v17552_v41  ;;  %v8422_v32 = vadd.f32 %v8421_v53, %v8408_v42  ;;  %v8447_v35 = vpop.f32.mrf.mxu2 }
 0x5a0   : > { %v8448_v63 = vadd.f32 %v8447_v35, %v8434_v54  ;;  %v8423_v59 = vpop.f32.mrf.mxu0 }
 0x5a2   : > { %v8436_v6 = vpop.f32.mrf.mxu1 }
 0x5a6   : > { %v8410_v37 = vpop.f32.mrf.mxu3 }
 0x5a7   : > { %v8449_v2 = vpop.f32.mrf.mxu2 }
 0x5a8   : > { %v8473_v21 = vpop.f32.mrf.mxu0  ;;  %v9470_v2 = vperm.slane %v9466_v18, 2 }
 0x5aa   : > { %v8486_v24 = vpop.f32.mrf.mxu1 }
 0x5ae   : > { %v8460_v57 = vpop.f32.mrf.mxu3 }
 0x5af   : > { %v8474_v40 = vadd.f32 %v8473_v21, %v8460_v57  ;;  %v8499_v58 = vpop.f32.mrf.mxu2 }
 0x5b0   : > { %v8500_v34 = vadd.f32 %v8499_v58, %v8486_v24  ;;  %v8475_v1 = vpop.f32.mrf.mxu0 }
 0x5b2   : > { %v8488_v41 = vpop.f32.mrf.mxu1 }
 0x5b6   : > { %v8462_v12 = vpop.f32.mrf.mxu3 }
 0x5b7   : > { %v8501_v3 = vpop.f32.mrf.mxu2  ;;  %v9484_v12 = vperm.slane %v9480_v56, 2 }
 0x5bc   : > { %v8868_v55 = vpop.f32.mrf.mxu0  ;;  %v8881_v5 = vpop.f32.mrf.mxu1 }
 0x5bd   : > { %v8882_v14 = vadd.f32 %v8881_v5, %v8448_v63 }
 0x5bf   : > { %v8894_v31 = vpop.f32.mrf.mxu2 }
 0x5c0   : > { %v8855_v50 = vpop.f32.mrf.mxu3  ;;  %v8895_v29 = vadd.f32 %v8894_v31, %v8882_v14 }
 0x5c1   : > { %v8856_v15 = vadd.f32 %v8855_v50, %v8422_v32 }
 0x5c3   : > { %v8869_v48 = vadd.f32 %v8868_v55, %v8856_v15  ;;  %v9485_v55 = vperm.slane %v9480_v56, 3 }
 0x5c4   : > { %v8870_v33 = vpop.f32.mrf.mxu0  ;;  %v8883_v26 = vpop.f32.mrf.mxu1 }
 0x5c7   : > { %v8896_v30 = vpop.f32.mrf.mxu2 }
 0x5c8   : > { %v8857_v4 = vpop.f32.mrf.mxu3  ;;  %v13872_v30 = vld [vmem:[%s17840_s6 + $0x38] sm:$0xff] (%p56_p0) }
 0x5c9   :  { %9906 = vmatpush.bf16.msra.mxu0 (%p56_p0), %v13872_v30 }
 0x5dc   : > { %v8920_v27 = vpop.f32.mrf.mxu0  ;;  %v8933_v49 = vpop.f32.mrf.mxu1 }
 0x5dd   : > { %v8934_v59 = vadd.f32 %v8933_v49, %v8500_v34  ;;  %v13888_v49 = vld [vmem:[%s17840_s6 + $0xb8] sm:$0xff] (%p56_p0) }
 0x5de   :  { %9932 = vmatpush.bf16.msra.mxu2 (%p56_p0), %v13888_v49 }
 0x5df   : > { %v8946_v39 = vpop.f32.mrf.mxu2 }
 0x5e0   : > { %v8907_v23 = vpop.f32.mrf.mxu3  ;;  %v8947_v24 = vadd.f32 %v8946_v39, %v8934_v59  ;;  %v13879_v39 = vld [vmem:[%s17840_s6 + $0x70] sm:$0xff] (%p56_p0) }
 0x5e1   : > { %v8908_v38 = vadd.f32 %v8907_v23, %v8474_v40  ;;  %v9471_v40 = vperm.slane %v9466_v18, 3  ;;  %v13896_v23 = vld [vmem:[%s17840_s6 + $0xf8] sm:$0xff] (%p56_p0)  ;;  %v13877_v18 = vld [vmem:[%s17840_s6 + $0x60] sm:$0xff] (%p56_p0) }
 0x5e2   :  { %9945 = vmatpush.bf16.msra.mxu3 (%p56_p0), %v13896_v23 }
 0x5e3   : > { %v8921_v16 = vadd.f32 %v8920_v27, %v8908_v38  ;;  %v13880_v27 = vld [vmem:[%s17840_s6 + $0x78] sm:$0xff] (%p56_p0)  ;;  %v13871_v38 = vld [vmem:[%s17840_s6 + $0x30] sm:$0xff] (%p56_p0) }
 0x5e4   : > { %v8922_v36 = vpop.f32.mrf.mxu0  ;;  %v8935_v52 = vpop.f32.mrf.mxu1  ;;  %9919 = vmatpush.bf16.msra.mxu1 (%p56_p0), %v13880_v27  ;;  %9907 = vmatpush.bf16.msra.mxu0 (%p56_p0), %v13871_v38  ;;  %v13881_v38 = vld [vmem:[%s17840_s6 + $0x80] sm:$0xff] (%p56_p0) }
 0x5e5   :  { %v13887_v36 = vld [vmem:[%s17840_s6 + $0xb0] sm:$0xff] (%p56_p0)  ;;  %v13870_v52 = vld [vmem:[%s17840_s6 + $0x28] sm:$0xff] (%p56_p0) }
 0x5e6   :  { %9933 = vmatpush.bf16.msra.mxu2 (%p56_p0), %v13887_v36 }
 0x5e7   : > { %v8948_v62 = vpop.f32.mrf.mxu2 }
 0x5e8   : > { %v8909_v22 = vpop.f32.mrf.mxu3  ;;  %9920 = vmatpush.bf16.msra.mxu1 (%p56_p0), %v13879_v39  ;;  %v13886_v62 = vld [vmem:[%s17840_s6 + $0xa8] sm:$0xff] (%p56_p0)  ;;  %9908 = vmatpush.bf16.msra.mxu0 (%p56_p0), %v13870_v52  ;;  %v13889_v39 = vld [vmem:[%s17840_s6 + $0xc0] sm:$0xff] (%p56_p0) }
 0x5e9   :  { %v13878_v22 = vld [vmem:[%s17840_s6 + $0x68] sm:$0xff] (%p56_p0) }
 0x5ea   :  { %9934 = vmatpush.bf16.msra.mxu2 (%p56_p0), %v13886_v62 }
 0x5ec   :  { %9921 = vmatpush.bf16.msra.mxu1 (%p56_p0), %v13878_v22 }
 0x5f0   :  { %9922 = vmatpush.bf16.msra.mxu1 (%p56_p0), %v13877_v18 }
 0x5fc   : > { %v9380_v46 = vpop.f32.mrf.mxu0  ;;  %v9393_v11 = vpop.f32.mrf.mxu1 }
 0x5ff   : > { %v9406_v8 = vpop.f32.mrf.mxu2 }
 0x600   : > { %v9367_v45 = vpop.f32.mrf.mxu3  ;;  %v9407_v7 = vadd.f32 %v9406_v8, %v9393_v11  ;;  %v13869_v11 = vld [vmem:[%s17840_s6 + $0x20] sm:$0xff] (%p56_p0) }
 0x601   : > { %v9381_v25 = vadd.f32 %v9380_v46, %v9367_v45  ;;  %v13894_v46 = vld [vmem:[%s17840_s6 + $0xe8] sm:$0xff] (%p56_p0)  ;;  %v13885_v45 = vld [vmem:[%s17840_s6 + $0xa0] sm:$0xff] (%p56_p0)  ;;  %9909 = vmatpush.bf16.msra.mxu0 (%p56_p0), %v13869_v11 }
 0x602   : > { %v9463_v28 = vadd.f32 %v9407_v7, %v8895_v29  ;;  %v13868_v7 = vld [vmem:[%s17840_s6 + $0x18] sm:$0xff] (%p56_p0)  ;;  %9935 = vmatpush.bf16.msra.mxu2 (%p56_p0), %v13885_v45 }
 0x603   : > { %v9462_v19 = vadd.f32 %v9381_v25, %v8869_v48  ;;  %v13893_v25 = vld [vmem:[%s17840_s6 + $0xe0] sm:$0xff] (%p56_p0) }
 0x604   : > { %v9382_v13 = vpop.f32.mrf.mxu0  ;;  %v9395_v17 = vpop.f32.mrf.mxu1  ;;  %v9477_v44 = vmul.f32 %v9469_v43, %v9463_v28  ;;  %v13876_v43 = vld [vmem:[%s17840_s6 + $0x58] sm:$0xff] (%p56_p0)  ;;  %v13883_v28 = vld [vmem:[%s17840_s6 + $0x90] sm:$0xff] (%p56_p0) }
 0x605   : > { %v9476_v51 = vmul.f32 %v9468_v9, %v9462_v19  ;;  %v13884_v13 = vld [vmem:[%s17840_s6 + $0x98] sm:$0xff] (%p56_p0)  ;;  %v13867_v17 = vld [vmem:[%s17840_s6 + $0x10] sm:$0xff] (%p56_p0)  ;;  %9910 = vmatpush.bf16.msra.mxu0 (%p56_p0), %v13868_v7  ;;  %9923 = vmatpush.bf16.msra.mxu1 (%p56_p0), %v13876_v43 }
 0x606   : > { %v9491_v60 = vadd.f32 %v9483_v47, %v9477_v44  ;;  %v13892_v19 = vld [vmem:[%s17840_s6 + $0xd8] sm:$0xff] (%p56_p0)  ;;  %9936 = vmatpush.bf16.msra.mxu2 (%p56_p0), %v13884_v13  ;;  %v13891_v44 = vld [vmem:[%s17840_s6 + $0xd0] sm:$0xff] (%p56_p0) }
 0x607   : > { %v9490_v61 = vadd.f32 %v9482_v10, %v9476_v51  ;;  %v9408_v0 = vpop.f32.mrf.mxu2  ;;  %v13875_v10 = vld [vmem:[%s17840_s6 + $0x50] sm:$0xff] (%p56_p0) }
 0x608   : > { %v9369_v20 = vpop.f32.mrf.mxu3  ;;  %v9495_v53 = vmax.f32 %v9491_v60, 0.0  ;;  %v13866_v0 = vld [vmem:[%s17840_s6 + $0x8] sm:$0xff] (%p56_p0) }
 0x609   : > { %v9494_v54 = vmax.f32 %v9490_v61, 0.0  ;;  %9911 = vmatpush.bf16.msra.mxu0 (%p56_p0), %v13867_v17  ;;  %9924 = vmatpush.bf16.msra.mxu1 (%p56_p0), %v13875_v10 }
 0x60a   : > { %v9502_v42 = vrot.slane %v9495_v53, 4  ;;  %9937 = vmatpush.bf16.msra.mxu2 (%p56_p0), %v13883_v28 }
 0x60c   : > { %v9504_v32 = vsel %vm7800_vm8, %v9494_v54, %v9502_v42 }
 0x60d   : > { %9511 = vst [vmem:[%s9510_s18] sm:$0xff] %v9504_v32  ;;  %9912 = vmatpush.bf16.msra.mxu0 (%p56_p0), %v13866_v0 }
 0x61a   : > { %v9432_v35 = vpop.f32.mrf.mxu0 }
 0x61c   : > { %v9445_v63 = vpop.f32.mrf.mxu1 }
 0x61f   : > { %v9458_v21 = vpop.f32.mrf.mxu2 }
 0x620   : > { %v9419_v6 = vpop.f32.mrf.mxu3  ;;  %v9459_v57 = vadd.f32 %v9458_v21, %v9445_v63 }
 0x621   : > { %v9433_v37 = vadd.f32 %v9432_v35, %v9419_v6  ;;  %v13874_v35 = vld [vmem:[%s17840_s6 + $0x48] sm:$0xff] (%p56_p0) }
 0x622   : > { %v9434_v58 = vpop.f32.mrf.mxu0  ;;  %v9465_v3 = vadd.f32 %v9459_v57, %v8947_v24  ;;  %9925 = vmatpush.bf16.msra.mxu1 (%p56_p0), %v13874_v35 }
 0x623   : > { %v9464_v1 = vadd.f32 %v9433_v37, %v8921_v16  ;;  %v13895_v16 = vld [vmem:[%s17840_s6 + $0xf0] sm:$0xff] (%p56_p0)  ;;  %v13882_v37 = vld [vmem:[%s17840_s6 + $0x88] sm:$0xff] (%p56_p0) }
 0x624   : > { %v9447_v41 = vpop.f32.mrf.mxu1  ;;  %v9479_v14 = vmul.f32 %v9471_v40, %v9465_v3  ;;  %9946 = vmatpush.bf16.msra.mxu3 (%p56_p0), %v13895_v16  ;;  %v13890_v58 = vld [vmem:[%s17840_s6 + $0xc8] sm:$0xff] (%p56_p0)  ;;  %9938 = vmatpush.bf16.msra.mxu2 (%p56_p0), %v13882_v37 }
 0x625   : > { %v9478_v5 = vmul.f32 %v9470_v2, %v9464_v1 }
 0x626   : > { %v9493_v15 = vadd.f32 %v9485_v55, %v9479_v14 }
 0x627   : > { %v9492_v50 = vadd.f32 %v9484_v12, %v9478_v5  ;;  %v9460_v33 = vpop.f32.mrf.mxu2 }
 0x628   : > { %v9421_v31 = vpop.f32.mrf.mxu3  ;;  %v9497_v34 = vmax.f32 %v9493_v15, 0.0  ;;  %9947 = vmatpush.bf16.msra.mxu3 (%p56_p0), %v13894_v46  ;;  %9939 = vmatpush.bf16.msra.mxu2 (%p56_p0), %v13881_v38  ;;  %v13926_v38 = vld [vmem:[%s17849_s15] ss:$0 sm:$0xff] (%p56_p0) }
 0x629   : > { %v9496_v48 = vmax.f32 %v9492_v50, 0.0  ;;  %58 = sbr.rel (!%p56_p0) target bundleno = 3 (0x3), region = 102 }
 0x62a   : > { %v9503_v26 = vrot.slane %v9497_v34, 4 }
 0x62c   : > { %v9505_v4 = vsel %vm7800_vm8, %v9496_v48, %v9503_v26  ;;  %9948 = vmatpush.bf16.msra.mxu3 (%p56_p0), %v13893_v25  ;;  %v13865_v26 = vld [vmem:[%s17840_s6] sm:$0xff] (%p56_p0) }
 0x62d   : > { %9512 = vst [vmem:[%s9510_s18 + $0x8] sm:$0xff] %v9505_v4  ;;  %v13873_v4 = vld [vmem:[%s17840_s6 + $0x40] sm:$0xff] (%p56_p0)  ;;  %9913 = vmatpush.bf16.msra.mxu0 (%p56_p0), %v13865_v26 }
 0x62e   :  { %9926 = vmatpush.bf16.msra.mxu1 %v13873_v4 }
 0x630   :  { %9949 = vmatpush.bf16.msra.mxu3 %v13892_v19 }
 0x634   :  { %v9513_v9 = vld [vmem:[#allocation3] sm:$0xff]  ;;  %v9515_v56 = vld [vmem:[#allocation3 + $0x10] sm:$0xff]  ;;  %v9514_v8 = vld [vmem:[#allocation3 + $0x8] sm:$0xff]  ;;  %9950 = vmatpush.bf16.msra.mxu3 %v13891_v44 }
 0x635   :  { %9521 = vst [vmem:[#allocation1] ss:$2 sm:$0xff] %v9513_v9  ;;  %v9516_v29 = vld [vmem:[#allocation3 + $0x18] sm:$0xff] }
 0x636   :  { %9529 = vst [vmem:[#allocation1 + $0x20] ss:$2 sm:$0xff] %v9515_v56 }
 0x637   :  { %9523 = vst [vmem:[#allocation1 + $0x10] ss:$2 sm:$0xff] %v9514_v8 }
 0x638   :  { %9531 = vst [vmem:[#allocation1 + $0x30] ss:$2 sm:$0xff] %v9516_v29  ;;  %9951 = vmatpush.bf16.msra.mxu3 %v13890_v58 }
 0x63c   :  { %v9524_v47 = vld.sshfl [vmem:[#allocation1] sm:$0xff pattern:$0x75316420]  ;;  %v9525_v51 = vld.sshfl [vmem:[#allocation1 + $0x8] sm:$0xff pattern:$0x75316420]  ;;  %9952 = vmatpush.bf16.msra.mxu3 %v13889_v39 }
 0x63d   :  { %v9532_v61 = vld.sshfl [vmem:[#allocation1 + $0x20] sm:$0xff pattern:$0x75316420]  ;;  %v9545_v60 = vsel %vm7800_vm8, %v9524_v47, 0.0  ;;  %v9552_v20 = vsel %vm7800_vm8, %v9525_v51, 0.0 }
 0x63e   :  { %v9546_v53 = vrot.slane %v9545_v60, 4  ;;  %v9573_v54 = vsel %vm7800_vm8, %v9532_v61, 0.0  ;;  %v9533_v42 = vld.sshfl [vmem:[#allocation1 + $0x28] sm:$0xff pattern:$0x75316420]  ;;  %v9553_v32 = vrot.slane %v9552_v20, 4 }
 0x63f   :  { %v9574_v63 = vrot.slane %v9573_v54, 4  ;;  %v9580_v59 = vsel %vm7800_vm8, %v9533_v42, 0.0  ;;  %v9526_v6 = vld.sshfl [vmem:[#allocation1 + $0x10] sm:$0xff pattern:$0x75316420] }
 0x640   :  { %v9547_v2 = vadd.f32 %v9546_v53, %v9545_v60  ;;  %v9554_v21 = vadd.f32 %v9553_v32, %v9552_v20  ;;  %v9581_v24 = vrot.slane %v9580_v59, 4  ;;  %v9534_v57 = vld.sshfl [vmem:[#allocation1 + $0x30] sm:$0xff pattern:$0x75316420]  ;;  %v9559_v40 = vsel %vm7800_vm8, %v9526_v6, 0.0 }
 0x641   :  { %v9575_v1 = vadd.f32 %v9574_v63, %v9573_v54  ;;  %v9560_v41 = vrot.slane %v9559_v40, 4  ;;  %v9587_v12 = vsel %vm7800_vm8, %v9534_v57, 0.0  ;;  %v9527_v3 = vld.sshfl [vmem:[#allocation1 + $0x18] sm:$0xff pattern:$0x75316420] }
 0x642   :  { %v9548_v55 = vrot.slane %v9547_v2, 2  ;;  %v9555_v5 = vrot.slane %v9554_v21, 2  ;;  %v9582_v14 = vadd.f32 %v9581_v24, %v9580_v59  ;;  %v9588_v50 = vrot.slane %v9587_v12, 4  ;;  %v9535_v15 = vld.sshfl [vmem:[#allocation1 + $0x38] sm:$0xff pattern:$0x75316420] }
 0x643   :  { %v9576_v31 = vrot.slane %v9575_v1, 2  ;;  %v9561_v33 = vadd.f32 %v9560_v41, %v9559_v40  ;;  %v9566_v34 = vsel %vm7800_vm8, %v9527_v3, 0.0  ;;  %v9594_v48 = vsel %vm7800_vm8, %v9535_v15, 0.0 }
 0x644   :  { %v9549_v30 = vadd.f32 %v9548_v55, %v9547_v2  ;;  %v9556_v27 = vadd.f32 %v9555_v5, %v9554_v21  ;;  %v9583_v49 = vrot.slane %v9582_v14, 2  ;;  %v9589_v23 = vadd.f32 %v9588_v50, %v9587_v12 }
 0x645   :  { %v9577_v36 = vadd.f32 %v9576_v31, %v9575_v1  ;;  %v9562_v16 = vrot.slane %v9561_v33, 2  ;;  %v9567_v52 = vrot.slane %v9566_v34, 4  ;;  %v9595_v22 = vrot.slane %v9594_v48, 4 }
 0x646   :  { %v9550_v62 = vrot.slane %v9549_v30, 1  ;;  %v9557_v46 = vrot.slane %v9556_v27, 1  ;;  %v9584_v11 = vadd.f32 %v9583_v49, %v9582_v14  ;;  %v9590_v18 = vrot.slane %v9589_v23, 2 }
 0x647   :  { %v9578_v45 = vrot.slane %v9577_v36, 1  ;;  %v9563_v25 = vadd.f32 %v9562_v16, %v9561_v33  ;;  %v9568_v9 = vadd.f32 %v9567_v52, %v9566_v34  ;;  %v9596_v56 = vadd.f32 %v9595_v22, %v9594_v48 }
 0x648   :  { %v9551_v8 = vadd.f32 %v9550_v62, %v9549_v30  ;;  %v9558_v29 = vadd.f32 %v9557_v46, %v9556_v27  ;;  %v9585_v7 = vrot.slane %v9584_v11, 1  ;;  %v9591_v43 = vadd.f32 %v9590_v18, %v9589_v23 }
 0x649   :  { %v9579_v13 = vadd.f32 %v9578_v45, %v9577_v36  ;;  %v9564_v19 = vrot.slane %v9563_v25, 1  ;;  %v9569_v17 = vrot.slane %v9568_v9, 2  ;;  %v9597_v10 = vrot.slane %v9596_v56, 2 }
 0x64a   :  { %v9601_v28 = vmul.f32 0.25, %v9551_v8  ;;  %v9586_v47 = vadd.f32 %v9585_v7, %v9584_v11  ;;  %v9602_v51 = vmul.f32 0.25, %v9558_v29  ;;  %v9592_v44 = vrot.slane %v9591_v43, 1 }
 0x64b   :  { %v9605_v61 = vmul.f32 0.25, %v9579_v13  ;;  %v9565_v60 = vadd.f32 %v9564_v19, %v9563_v25  ;;  %v9570_v20 = vadd.f32 %v9569_v17, %v9568_v9  ;;  %v9598_v0 = vadd.f32 %v9597_v10, %v9596_v56 }
 0x64c   :  { %v9609_v53 = vpack.c.bf16 %v9601_v28, %v9601_v28  ;;  %v9606_v54 = vmul.f32 0.25, %v9586_v47  ;;  %v9610_v42 = vpack.c.bf16 %v9602_v51, %v9602_v51  ;;  %v9593_v32 = vadd.f32 %v9592_v44, %v9591_v43 }
 0x64d   :  { %v9613_v35 = vpack.c.bf16 %v9605_v61, %v9605_v61  ;;  %v9603_v63 = vmul.f32 0.25, %v9565_v60  ;;  %v9571_v59 = vrot.slane %v9570_v20, 1  ;;  %v9599_v6 = vrot.slane %v9598_v0, 1 }
 0x64e   :  { %v9693_v37 = vunpack.c.l.b16 %v9609_v53  ;;  %v9614_v2 = vpack.c.bf16 %v9606_v54, %v9606_v54  ;;  %v9694_v21 = vunpack.c.l.b16 %v9610_v42  ;;  %v9607_v24 = vmul.f32 0.25, %v9593_v32 }
 0x64f   :  { %v9697_v57 = vunpack.c.l.b16 %v9613_v35  ;;  %v9611_v40 = vpack.c.bf16 %v9603_v63, %v9603_v63  ;;  %v9572_v58 = vadd.f32 %v9571_v59, %v9570_v20  ;;  %v9600_v1 = vadd.f32 %v9599_v6, %v9598_v0 }
 0x650   :  { %v9698_v41 = vunpack.c.l.b16 %v9614_v2  ;;  %v9615_v12 = vpack.c.bf16 %v9607_v24, %v9607_v24 }
 0x651   :  { %v9702_v3 = vsel %vm1413_vm1, %v9697_v57, %v9693_v37  ;;  %v9695_v55 = vunpack.c.l.b16 %v9611_v40  ;;  %v9604_v5 = vmul.f32 0.25, %v9572_v58  ;;  %v9608_v14 = vmul.f32 0.25, %v9600_v1 }
 0x652   :  { %v9706_v50 = vpack.c.b16 %v9702_v3, %v9702_v3  ;;  %v9703_v15 = vsel %vm1413_vm1, %v9698_v41, %v9694_v21  ;;  %v9699_v31 = vunpack.c.l.b16 %v9615_v12 }
 0x653   :  { %v9707_v33 = vpack.c.b16 %v9703_v15, %v9703_v15  ;;  %v9612_v34 = vpack.c.bf16 %v9604_v5, %v9604_v5  ;;  %v9616_v48 = vpack.c.bf16 %v9608_v14, %v9608_v14 }
 0x654   :  { %9914 = vmatmul.bf16.vlgmr.msra.gmra.mxu0 %v9706_v50  ;;  %v9704_v26 = vsel %vm1413_vm1, %v9699_v31, %v9695_v55 }
 0x655   :  { %9927 = vmatmul.bf16.vlgmr.msra.gmra.mxu1 %v9707_v33  ;;  %v9708_v4 = vpack.c.b16 %v9704_v26, %v9704_v26  ;;  %v9696_v30 = vunpack.c.l.b16 %v9612_v34  ;;  %v9700_v27 = vunpack.c.l.b16 %v9616_v48 }
 0x657   :  { %9940 = vmatmul.bf16.vlgmr.msra.gmra.mxu2 %v9708_v4  ;;  %v9705_v49 = vsel %vm1413_vm1, %v9700_v27, %v9696_v30 }
 0x658   :  { %v9709_v23 = vpack.c.b16 %v9705_v49, %v9705_v49 }
 0x65a   :  { %9953 = vmatmul.bf16.vlgmr.msra.gmra.mxu3 %v9709_v23 }
 0x6d1   :  { %v9915_v39 = vpop.f32.mrf.mxu0 }
 0x6d2   :  { %v9928_v36 = vpop.f32.mrf.mxu1  ;;  %v9916_v16 = vadd.f32 %v13926_v38, %v9915_v39 }
 0x6d4   :  { %v9929_v52 = vadd.f32 %v9928_v36, %v9916_v16 }
 0x6d9   :  { %v9917_v22 = vpop.f32.mrf.mxu0 }
 0x6da   :  { %v9941_v62 = vpop.f32.mrf.mxu2  ;;  %v9930_v46 = vpop.f32.mrf.mxu1 }
 0x6db   :  { %v9942_v11 = vadd.f32 %v9941_v62, %v9929_v52 }
 0x6dd   :  { %v9954_v18 = vpop.f32.mrf.mxu3 }
 0x6de   :  { %v9955_v45 = vadd.f32 %v9954_v18, %v9942_v11 }
 0x6e0   :  { %9958 = vst [vmem:[#allocation4] sm:$0x3] %v9955_v45 }
 0x6e1   :  { %9969 = dma.vmem_to_hbm [thread:$0]  %s9965_s1, 32, %s9967_s4, [#allocation5]  }
 0x6e2   :  { %v9943_v25 = vpop.f32.mrf.mxu2 }
 0x6e5   :  { %v9956_v9 = vpop.f32.mrf.mxu3 }
 0x6e6   :  { %13955 = dma.done.wait [#allocation5], 32  }
 0x6e7   :  { %13956 = vsyncadd [#allocation5], 4294967264 }
 0x6e8   :  { %9974 = vsyncpa [#allocation5], 1 }

</bundles_post_ra>
